<compile_context>
chip_gen: v7x
topology: tpu7x:2x2x1
jax: 0.10.0
libtpu: 0.0.40
codegen_flags: <defaults>
</compile_context>

<pallas_src>
import math

import jax
import jax.numpy as jnp
from jax.experimental import pallas as pl
from jax.experimental.pallas import tpu as pltpu


def _round_up(x, m):
    return (x + m - 1) // m * m


# ----------------------------------------------------------------------------
# Fused GEMM kernel:  o = act( (x [+ x_add]) @ w + bias [+ residual] )
#   x, x_add, w, residual : bf16 ;  accumulation / epilogue : f32
# ----------------------------------------------------------------------------
def _make_gemm_kernel(alpha, has_add, has_res):
    def kernel(*refs):
        i = 0
        a = refs[i][...]; i += 1
        if has_add:
            a = (a.astype(jnp.float32)
                 + refs[i][...].astype(jnp.float32)).astype(jnp.bfloat16)
            i += 1
        w = refs[i][...]; i += 1
        b = refs[i][...]; i += 1
        y = jnp.dot(a, w, preferred_element_type=jnp.float32)
        y = y + b.astype(jnp.float32)
        if has_res:
            y = y + refs[i][...].astype(jnp.float32); i += 1
        if alpha is not None:
            y = jnp.where(y > 0, y, alpha * y)
        o_ref = refs[i]
        o_ref[...] = y.astype(o_ref.dtype)
    return kernel


def pallas_gemm_fused(x, w, b, *, alpha, x_add=None, residual=None,
                      out_dtype=jnp.bfloat16, tm=512, tn=None):
    """o = act((x [+ x_add]) @ w + b [+ residual]).

    x, x_add: (M, K) bf16; w: (K, N) bf16; b: (1, N) f32; residual: (M, N) bf16.
    Output is written lane-exact with shape (M, N) (no 128-padded N writes).
    """
    M, K = x.shape
    K2, N = w.shape
    assert K == K2
    if tn is None or tn > N or N % tn != 0:
        tn = N                      # conv GEMMs: Cout is 16/32 -> single block

    # M tile: big to amortize per-step overhead, capped at M; keep bf16
    # sublane alignment and pad the (rare) ragged case so we never rely on
    # edge-block masking.  At the shapes used here Mp == M (no copy).
    tm_eff = min(tm, M)
    if tm_eff % 16 != 0:
        tm_eff = _round_up(tm_eff, 16)
    Mp = _round_up(M, tm_eff)
    if Mp != M:
        pad = ((0, Mp - M), (0, 0))
        x = jnp.pad(x, pad)
        if x_add is not None:
            x_add = jnp.pad(x_add, pad)
        if residual is not None:
            residual = jnp.pad(residual, pad)

    grid = (Mp // tm_eff, N // tn)

    in_specs = [pl.BlockSpec((tm_eff, K), lambda i, j: (i, 0))]
    args = [x]
    if x_add is not None:
        in_specs.append(pl.BlockSpec((tm_eff, K), lambda i, j: (i, 0)))
        args.append(x_add)
    in_specs.append(pl.BlockSpec((K, tn), lambda i, j: (0, j)))
    args.append(w)
    in_specs.append(pl.BlockSpec((1, tn), lambda i, j: (0, j)))
    args.append(b)
    if residual is not None:
        in_specs.append(pl.BlockSpec((tm_eff, tn), lambda i, j: (i, j)))
        args.append(residual)
    out_spec = pl.BlockSpec((tm_eff, tn), lambda i, j: (i, j))

    bytes_accessed = (x.size * x.dtype.itemsize
                      + w.size * w.dtype.itemsize
                      + b.size * 4
                      + Mp * N * jnp.dtype(out_dtype).itemsize)
    if x_add is not None:
        bytes_accessed += x_add.size * x_add.dtype.itemsize
    if residual is not None:
        bytes_accessed += residual.size * residual.dtype.itemsize
    cost = pl.CostEstimate(flops=int(2 * Mp * K * N),
                           transcendentals=0,
                           bytes_accessed=int(bytes_accessed))

    out = pl.pallas_call(
        _make_gemm_kernel(alpha, x_add is not None, residual is not None),
        out_shape=jax.ShapeDtypeStruct((Mp, N), out_dtype),
        grid_spec=pltpu.PrefetchScalarGridSpec(
            num_scalar_prefetch=0,
            grid=grid,
            in_specs=in_specs,
            out_specs=out_spec,
        ),
        compiler_params=pltpu.CompilerParams(
            dimension_semantics=("parallel", "parallel")),
        cost_estimate=cost,
    )(*args)
    return out[:M] if Mp != M else out


# ----------------------------------------------------------------------------
# 3-D convolution = im2col (bf16 glue) + fused Pallas GEMM (hot path)
# ----------------------------------------------------------------------------
def conv3d_same(x, w_mat, b, *, k, stride, alpha, residual=None):
    """x: (B, D, H, W, Cin) bf16; w_mat: (k^3*Cin, Cout) bf16; TF 'same' pad.

    If `residual` (B, od, oh, ow, Cout) is given, the kernel computes
    LeakyReLU(conv(x) + bias + residual) with a fused epilogue.
    """
    B, D, H, W, C = x.shape
    Cout = w_mat.shape[1]

    def out_and_pad(n):
        o = -(-n // stride)
        pad_total = max((o - 1) * stride + k - n, 0)
        return o, pad_total // 2, pad_total - pad_total // 2

    od, pdl, pdr = out_and_pad(D)
    oh, phl, phr = out_and_pad(H)
    ow, pwl, pwr = out_and_pad(W)
    xp = jnp.pad(x, ((0, 0), (pdl, pdr), (phl, phr), (pwl, pwr), (0, 0)))

    # TODO(synk): im2col still materializes the (M, k^3*C) patch matrix in HBM
    # (bf16).  Fully fusing it needs window/element-offset reads in-kernel.
    cols = []
    for kd in range(k):
        for kh in range(k):
            for kw in range(k):
                cols.append(xp[:, kd:kd + stride * od:stride,
                                  kh:kh + stride * oh:stride,
                                  kw:kw + stride * ow:stride, :])
    col = jnp.stack(cols, axis=4).reshape(B * od * oh * ow, k * k * k * C)

    res_flat = None
    if residual is not None:
        res_flat = residual.reshape(B * od * oh * ow, Cout)

    y = pallas_gemm_fused(col, w_mat, b, alpha=alpha, residual=res_flat)
    return y.reshape(B, od, oh, ow, Cout)


# ----------------------------------------------------------------------------
# Parameters (deterministic synthetic init, pre-reshaped + pre-cast to bf16)
# ----------------------------------------------------------------------------
def _conv3d_params(key, k, cin, cout):
    k1, k2 = jax.random.split(key)
    scale = 1.0 / math.sqrt(k * k * k * cin)
    w = jax.random.normal(k1, (k, k, k, cin, cout), jnp.float32) * scale
    b = jax.random.normal(k2, (cout,), jnp.float32) * 0.01
    w_mat = w.reshape(k * k * k * cin, cout).astype(jnp.bfloat16)
    return w_mat, b.reshape(1, cout)


def init_params(key, enc_in, nf_2d=512):
    keys = jax.random.split(key, 16)
    params = {}
    params["vol0_a"] = _conv3d_params(keys[0], 4, 4, 16)
    params["vol0_b"] = _conv3d_params(keys[1], 4, 16, 16)
    params["vol1_a"] = _conv3d_params(keys[2], 4, 16, 16)
    params["vol1_b"] = _conv3d_params(keys[3], 4, 16, 32)
    params["vol1_c"] = _conv3d_params(keys[4], 4, 32, 32)
    for r in range(5):
        w1, b1 = _conv3d_params(keys[5 + 2 * r], 3, 32, 32)
        w2, b2 = _conv3d_params(keys[6 + 2 * r], 3, 32, 32)
        params["vol_a%d" % (r + 1)] = (w1, b1, w2, b2)
    ke1, ke2 = jax.random.split(keys[15])
    we = (jax.random.normal(ke1, (enc_in, nf_2d), jnp.float32)
          / math.sqrt(enc_in)).astype(jnp.bfloat16)
    be = (jax.random.normal(ke2, (nf_2d,), jnp.float32) * 0.01).reshape(1, nf_2d)
    params["vol_encoder"] = (we, be)
    return params


# ----------------------------------------------------------------------------
# Forward pass
# ----------------------------------------------------------------------------
def voxel_processing(voxels_ncdhw, params):
    # input: (B, 4, D, D, D) NCDHW f32 -> channels-last bf16 for compute
    x = jnp.transpose(voxels_ncdhw, (0, 2, 3, 4, 1)).astype(jnp.bfloat16)

    x = conv3d_same(x, *params["vol0_a"], k=4, stride=2, alpha=0.2)
    x = conv3d_same(x, *params["vol0_b"], k=4, stride=1, alpha=0.2)
    x = conv3d_same(x, *params["vol1_a"], k=4, stride=2, alpha=0.2)
    x = conv3d_same(x, *params["vol1_b"], k=4, stride=1, alpha=0.2)
    x = conv3d_same(x, *params["vol1_c"], k=4, stride=1, alpha=0.2)

    shortcut = x
    for r in range(5):
        w1, b1, w2, b2 = params["vol_a%d" % (r + 1)]
        y = conv3d_same(x, w1, b1, k=3, stride=1, alpha=0.2)
        # second conv: bias + residual add + LeakyReLU(0.2) fused in-kernel
        x = conv3d_same(y, w2, b2, k=3, stride=1, alpha=0.2, residual=x)

    # Outer shortcut add is fused into the encoder GEMM's A operand.
    # torch: (x + shortcut).permute(0,2,3,4,1).reshape(B,32,32,-1)
    #        .permute(0,3,1,2) -> 1x1 Conv2d(-> 512) -> LeakyReLU(0.3)
    # expressed shape-generically: 1x1 conv over the fused (S*C) channel axis.
    B, S1, S2, S3, C = x.shape
    x_flat = x.reshape(B * S1 * S2, S3 * C)
    sc_flat = shortcut.reshape(B * S1 * S2, S3 * C)
    we, be = params["vol_encoder"]
    y = pallas_gemm_fused(x_flat, we, be, alpha=0.3, x_add=sc_flat,
                          out_dtype=jnp.float32, tn=256)
    y = y.reshape(B, S1, S2, we.shape[1])
    return jnp.transpose(y, (0, 3, 1, 2))               # NCHW output


# ----------------------------------------------------------------------------
if __name__ == "__main__":
    key = jax.random.PRNGKey(0)
    k_in, k_par = jax.random.split(key)

    B, D = 2, 16                      # small stand-in for the original 128^3
    voxels = jax.random.normal(k_in, (B, 4, D, D, D), jnp.float32)

    S = D // 4                        # spatial size after two stride-2 convs
    params = init_params(k_par, enc_in=S * 32, nf_2d=512)

    fwd = jax.jit(voxel_processing)
    out = jax.block_until_ready(fwd(voxels, params))

    assert out.shape == (B, 512, S, S), out.shape
    assert bool(jnp.all(jnp.isfinite(out)))
    print("KERNEL_OK")
</pallas_src>

<mosaic_0001>
module attributes {stable_mosaic.version = 11 : i64} {
  func.func @kernel(%arg0: i32, %arg1: i32, %arg2: memref<512x256xbf16, #tpu.memory_space<vmem>>, %arg3: memref<256x16xbf16, #tpu.memory_space<vmem>>, %arg4: memref<1x16xf32, #tpu.memory_space<vmem>>, %arg5: memref<512x16xbf16, #tpu.memory_space<vmem>>) attributes {dimension_semantics = [#tpu.dimension_semantics<parallel>, #tpu.dimension_semantics<parallel>], iteration_bounds = array<i64: 2, 1>, scalar_prefetch = 0 : i64, scratch_operands = 0 : i64, tpu.core_type = #tpu.core_type<tc>, window_params = [{transform_indices = @transform_0, window_bounds = array<i64: 512, 256>}, {transform_indices = @transform_1, window_bounds = array<i64: 256, 16>}, {transform_indices = @transform_2, window_bounds = array<i64: 1, 16>}, {transform_indices = @transform_3, window_bounds = array<i64: 512, 16>}]} {
    %c0 = arith.constant 0 : index
    %c0_0 = arith.constant 0 : index
    %0 = vector.load %arg2[%c0, %c0_0] : memref<512x256xbf16, #tpu.memory_space<vmem>>, vector<512x256xbf16>
    %c0_1 = arith.constant 0 : index
    %c0_2 = arith.constant 0 : index
    %1 = vector.load %arg3[%c0_1, %c0_2] : memref<256x16xbf16, #tpu.memory_space<vmem>>, vector<256x16xbf16>
    %c0_3 = arith.constant 0 : index
    %c0_4 = arith.constant 0 : index
    %2 = vector.load %arg4[%c0_3, %c0_4] : memref<1x16xf32, #tpu.memory_space<vmem>>, vector<1x16xf32>
    %cst = arith.constant dense<0.000000e+00> : vector<512x16xf32>
    %3 = tpu.matmul %0, %1, %cst {dimension_numbers = #tpu.dot_dimension_numbers<[1], [0], [0], [1], [0, 0, 1, 1], [], []>} : vector<512x256xbf16>, vector<256x16xbf16>, vector<512x16xf32> -> vector<512x16xf32>
    %4 = vector.broadcast %2 : vector<1x16xf32> to vector<512x16xf32>
    %5 = arith.addf %3, %4 : vector<512x16xf32>
    %cst_5 = arith.constant 0.000000e+00 : f32
    %6 = vector.broadcast %cst_5 : f32 to vector<512x16xf32>
    %7 = arith.cmpf ogt, %5, %6 : vector<512x16xf32>
    %cst_6 = arith.constant 2.000000e-01 : f32
    %8 = vector.broadcast %cst_6 : f32 to vector<512x16xf32>
    %9 = arith.mulf %8, %5 : vector<512x16xf32>
    %10 = arith.select %7, %5, %9 : vector<512x16xi1>, vector<512x16xf32>
    %11 = arith.truncf %10 : vector<512x16xf32> to vector<512x16xbf16>
    %c0_7 = arith.constant 0 : index
    %c0_8 = arith.constant 0 : index
    %12 = vector.load %arg5[%c0_7, %c0_8] : memref<512x16xbf16, #tpu.memory_space<vmem>>, vector<512x16xbf16>
    tpu.vector_store %arg5[%c0_7, %c0_8], %11 {strides = array<i32>} : memref<512x16xbf16, #tpu.memory_space<vmem>>, vector<512x16xbf16>,
    return
  }
  func.func @transform_0(%arg0: i32, %arg1: i32) -> (i32, i32) {
    %c0_i32 = arith.constant 0 : i32
    %c0_i32_0 = arith.constant 0 : i32
    return %arg0, %c0_i32 : i32, i32
  }
  func.func @transform_1(%arg0: i32, %arg1: i32) -> (i32, i32) {
    %c0_i32 = arith.constant 0 : i32
    %c0_i32_0 = arith.constant 0 : i32
    return %c0_i32, %arg1 : i32, i32
  }
  func.func @transform_2(%arg0: i32, %arg1: i32) -> (i32, i32) {
    %c0_i32 = arith.constant 0 : i32
    %c0_i32_0 = arith.constant 0 : i32
    return %c0_i32, %arg1 : i32, i32
  }
  func.func @transform_3(%arg0: i32, %arg1: i32) -> (i32, i32) {
    %c0_i32 = arith.constant 0 : i32
    return %arg0, %arg1 : i32, i32
  }
}

module attributes {stable_mosaic.version = 11 : i64} {
  func.func @kernel(%arg0: i32, %arg1: i32, %arg2: memref<512x1024xbf16, #tpu.memory_space<vmem>>, %arg3: memref<1024x16xbf16, #tpu.memory_space<vmem>>, %arg4: memref<1x16xf32, #tpu.memory_space<vmem>>, %arg5: memref<512x16xbf16, #tpu.memory_space<vmem>>) attributes {dimension_semantics = [#tpu.dimension_semantics<parallel>, #tpu.dimension_semantics<parallel>], iteration_bounds = array<i64: 2, 1>, scalar_prefetch = 0 : i64, scratch_operands = 0 : i64, tpu.core_type = #tpu.core_type<tc>, window_params = [{transform_indices = @transform_0, window_bounds = array<i64: 512, 1024>}, {transform_indices = @transform_1, window_bounds = array<i64: 1024, 16>}, {transform_indices = @transform_2, window_bounds = array<i64: 1, 16>}, {transform_indices = @transform_3, window_bounds = array<i64: 512, 16>}]} {
    %c0 = arith.constant 0 : index
    %c0_0 = arith.constant 0 : index
    %0 = vector.load %arg2[%c0, %c0_0] : memref<512x1024xbf16, #tpu.memory_space<vmem>>, vector<512x1024xbf16>
    %c0_1 = arith.constant 0 : index
    %c0_2 = arith.constant 0 : index
    %1 = vector.load %arg3[%c0_1, %c0_2] : memref<1024x16xbf16, #tpu.memory_space<vmem>>, vector<1024x16xbf16>
    %c0_3 = arith.constant 0 : index
    %c0_4 = arith.constant 0 : index
    %2 = vector.load %arg4[%c0_3, %c0_4] : memref<1x16xf32, #tpu.memory_space<vmem>>, vector<1x16xf32>
    %cst = arith.constant dense<0.000000e+00> : vector<512x16xf32>
    %3 = tpu.matmul %0, %1, %cst {dimension_numbers = #tpu.dot_dimension_numbers<[1], [0], [0], [1], [0, 0, 1, 1], [], []>} : vector<512x1024xbf16>, vector<1024x16xbf16>, vector<512x16xf32> -> vector<512x16xf32>
    %4 = vector.broadcast %2 : vector<1x16xf32> to vector<512x16xf32>
    %5 = arith.addf %3, %4 : vector<512x16xf32>
    %cst_5 = arith.constant 0.000000e+00 : f32
    %6 = vector.broadcast %cst_5 : f32 to vector<512x16xf32>
    %7 = arith.cmpf ogt, %5, %6 : vector<512x16xf32>
    %cst_6 = arith.constant 2.000000e-01 : f32
    %8 = vector.broadcast %cst_6 : f32 to vector<512x16xf32>
    %9 = arith.mulf %8, %5 : vector<512x16xf32>
    %10 = arith.select %7, %5, %9 : vector<512x16xi1>, vector<512x16xf32>
    %11 = arith.truncf %10 : vector<512x16xf32> to vector<512x16xbf16>
    %c0_7 = arith.constant 0 : index
    %c0_8 = arith.constant 0 : index
    %12 = vector.load %arg5[%c0_7, %c0_8] : memref<512x16xbf16, #tpu.memory_space<vmem>>, vector<512x16xbf16>
    tpu.vector_store %arg5[%c0_7, %c0_8], %11 {strides = array<i32>} : memref<512x16xbf16, #tpu.memory_space<vmem>>, vector<512x16xbf16>,
    return
  }
  func.func @transform_0(%arg0: i32, %arg1: i32) -> (i32, i32) {
    %c0_i32 = arith.constant 0 : i32
    %c0_i32_0 = arith.constant 0 : i32
    return %arg0, %c0_i32 : i32, i32
  }
  func.func @transform_1(%arg0: i32, %arg1: i32) -> (i32, i32) {
    %c0_i32 = arith.constant 0 : i32
    %c0_i32_0 = arith.constant 0 : i32
    return %c0_i32, %arg1 : i32, i32
  }
  func.func @transform_2(%arg0: i32, %arg1: i32) -> (i32, i32) {
    %c0_i32 = arith.constant 0 : i32
    %c0_i32_0 = arith.constant 0 : i32
    return %c0_i32, %arg1 : i32, i32
  }
  func.func @transform_3(%arg0: i32, %arg1: i32) -> (i32, i32) {
    %c0_i32 = arith.constant 0 : i32
    return %arg0, %arg1 : i32, i32
  }
}

module attributes {stable_mosaic.version = 11 : i64} {
  func.func @kernel(%arg0: i32, %arg1: i32, %arg2: memref<128x1024xbf16, #tpu.memory_space<vmem>>, %arg3: memref<1024x16xbf16, #tpu.memory_space<vmem>>, %arg4: memref<1x16xf32, #tpu.memory_space<vmem>>, %arg5: memref<128x16xbf16, #tpu.memory_space<vmem>>) attributes {dimension_semantics = [#tpu.dimension_semantics<parallel>, #tpu.dimension_semantics<parallel>], iteration_bounds = array<i64: 1, 1>, scalar_prefetch = 0 : i64, scratch_operands = 0 : i64, tpu.core_type = #tpu.core_type<tc>, window_params = [{transform_indices = @transform_0, window_bounds = array<i64: 128, 1024>}, {transform_indices = @transform_1, window_bounds = array<i64: 1024, 16>}, {transform_indices = @transform_2, window_bounds = array<i64: 1, 16>}, {transform_indices = @transform_3, window_bounds = array<i64: 128, 16>}]} {
    %c0 = arith.constant 0 : index
    %c0_0 = arith.constant 0 : index
    %0 = vector.load %arg2[%c0, %c0_0] : memref<128x1024xbf16, #tpu.memory_space<vmem>>, vector<128x1024xbf16>
    %c0_1 = arith.constant 0 : index
    %c0_2 = arith.constant 0 : index
    %1 = vector.load %arg3[%c0_1, %c0_2] : memref<1024x16xbf16, #tpu.memory_space<vmem>>, vector<1024x16xbf16>
    %c0_3 = arith.constant 0 : index
    %c0_4 = arith.constant 0 : index
    %2 = vector.load %arg4[%c0_3, %c0_4] : memref<1x16xf32, #tpu.memory_space<vmem>>, vector<1x16xf32>
    %cst = arith.constant dense<0.000000e+00> : vector<128x16xf32>
    %3 = tpu.matmul %0, %1, %cst {dimension_numbers = #tpu.dot_dimension_numbers<[1], [0], [0], [1], [0, 0, 1, 1], [], []>} : vector<128x1024xbf16>, vector<1024x16xbf16>, vector<128x16xf32> -> vector<128x16xf32>
    %4 = vector.broadcast %2 : vector<1x16xf32> to vector<128x16xf32>
    %5 = arith.addf %3, %4 : vector<128x16xf32>
    %cst_5 = arith.constant 0.000000e+00 : f32
    %6 = vector.broadcast %cst_5 : f32 to vector<128x16xf32>
    %7 = arith.cmpf ogt, %5, %6 : vector<128x16xf32>
    %cst_6 = arith.constant 2.000000e-01 : f32
    %8 = vector.broadcast %cst_6 : f32 to vector<128x16xf32>
    %9 = arith.mulf %8, %5 : vector<128x16xf32>
    %10 = arith.select %7, %5, %9 : vector<128x16xi1>, vector<128x16xf32>
    %11 = arith.truncf %10 : vector<128x16xf32> to vector<128x16xbf16>
    %c0_7 = arith.constant 0 : index
    %c0_8 = arith.constant 0 : index
    %12 = vector.load %arg5[%c0_7, %c0_8] : memref<128x16xbf16, #tpu.memory_space<vmem>>, vector<128x16xbf16>
    tpu.vector_store %arg5[%c0_7, %c0_8], %11 {strides = array<i32>} : memref<128x16xbf16, #tpu.memory_space<vmem>>, vector<128x16xbf16>,
    return
  }
  func.func @transform_0(%arg0: i32, %arg1: i32) -> (i32, i32) {
    %c0_i32 = arith.constant 0 : i32
    %c0_i32_0 = arith.constant 0 : i32
    return %arg0, %c0_i32 : i32, i32
  }
  func.func @transform_1(%arg0: i32, %arg1: i32) -> (i32, i32) {
    %c0_i32 = arith.constant 0 : i32
    %c0_i32_0 = arith.constant 0 : i32
    return %c0_i32, %arg1 : i32, i32
  }
  func.func @transform_2(%arg0: i32, %arg1: i32) -> (i32, i32) {
    %c0_i32 = arith.constant 0 : i32
    %c0_i32_0 = arith.constant 0 : i32
    return %c0_i32, %arg1 : i32, i32
  }
  func.func @transform_3(%arg0: i32, %arg1: i32) -> (i32, i32) {
    %c0_i32 = arith.constant 0 : i32
    return %arg0, %arg1 : i32, i32
  }
}

module attributes {stable_mosaic.version = 11 : i64} {
  func.func @kernel(%arg0: i32, %arg1: i32, %arg2: memref<128x1024xbf16, #tpu.memory_space<vmem>>, %arg3: memref<1024x32xbf16, #tpu.memory_space<vmem>>, %arg4: memref<1x32xf32, #tpu.memory_space<vmem>>, %arg5: memref<128x32xbf16, #tpu.memory_space<vmem>>) attributes {dimension_semantics = [#tpu.dimension_semantics<parallel>, #tpu.dimension_semantics<parallel>], iteration_bounds = array<i64: 1, 1>, scalar_prefetch = 0 : i64, scratch_operands = 0 : i64, tpu.core_type = #tpu.core_type<tc>, window_params = [{transform_indices = @transform_0, window_bounds = array<i64: 128, 1024>}, {transform_indices = @transform_1, window_bounds = array<i64: 1024, 32>}, {transform_indices = @transform_2, window_bounds = array<i64: 1, 32>}, {transform_indices = @transform_3, window_bounds = array<i64: 128, 32>}]} {
    %c0 = arith.constant 0 : index
    %c0_0 = arith.constant 0 : index
    %0 = vector.load %arg2[%c0, %c0_0] : memref<128x1024xbf16, #tpu.memory_space<vmem>>, vector<128x1024xbf16>
    %c0_1 = arith.constant 0 : index
    %c0_2 = arith.constant 0 : index
    %1 = vector.load %arg3[%c0_1, %c0_2] : memref<1024x32xbf16, #tpu.memory_space<vmem>>, vector<1024x32xbf16>
    %c0_3 = arith.constant 0 : index
    %c0_4 = arith.constant 0 : index
    %2 = vector.load %arg4[%c0_3, %c0_4] : memref<1x32xf32, #tpu.memory_space<vmem>>, vector<1x32xf32>
    %cst = arith.constant dense<0.000000e+00> : vector<128x32xf32>
    %3 = tpu.matmul %0, %1, %cst {dimension_numbers = #tpu.dot_dimension_numbers<[1], [0], [0], [1], [0, 0, 1, 1], [], []>} : vector<128x1024xbf16>, vector<1024x32xbf16>, vector<128x32xf32> -> vector<128x32xf32>
    %4 = vector.broadcast %2 : vector<1x32xf32> to vector<128x32xf32>
    %5 = arith.addf %3, %4 : vector<128x32xf32>
    %cst_5 = arith.constant 0.000000e+00 : f32
    %6 = vector.broadcast %cst_5 : f32 to vector<128x32xf32>
    %7 = arith.cmpf ogt, %5, %6 : vector<128x32xf32>
    %cst_6 = arith.constant 2.000000e-01 : f32
    %8 = vector.broadcast %cst_6 : f32 to vector<128x32xf32>
    %9 = arith.mulf %8, %5 : vector<128x32xf32>
    %10 = arith.select %7, %5, %9 : vector<128x32xi1>, vector<128x32xf32>
    %11 = arith.truncf %10 : vector<128x32xf32> to vector<128x32xbf16>
    %c0_7 = arith.constant 0 : index
    %c0_8 = arith.constant 0 : index
    %12 = vector.load %arg5[%c0_7, %c0_8] : memref<128x32xbf16, #tpu.memory_space<vmem>>, vector<128x32xbf16>
    tpu.vector_store %arg5[%c0_7, %c0_8], %11 {strides = array<i32>} : memref<128x32xbf16, #tpu.memory_space<vmem>>, vector<128x32xbf16>,
    return
  }
  func.func @transform_0(%arg0: i32, %arg1: i32) -> (i32, i32) {
    %c0_i32 = arith.constant 0 : i32
    %c0_i32_0 = arith.constant 0 : i32
    return %arg0, %c0_i32 : i32, i32
  }
  func.func @transform_1(%arg0: i32, %arg1: i32) -> (i32, i32) {
    %c0_i32 = arith.constant 0 : i32
    %c0_i32_0 = arith.constant 0 : i32
    return %c0_i32, %arg1 : i32, i32
  }
  func.func @transform_2(%arg0: i32, %arg1: i32) -> (i32, i32) {
    %c0_i32 = arith.constant 0 : i32
    %c0_i32_0 = arith.constant 0 : i32
    return %c0_i32, %arg1 : i32, i32
  }
  func.func @transform_3(%arg0: i32, %arg1: i32) -> (i32, i32) {
    %c0_i32 = arith.constant 0 : i32
    return %arg0, %arg1 : i32, i32
  }
}

module attributes {stable_mosaic.version = 11 : i64} {
  func.func @kernel(%arg0: i32, %arg1: i32, %arg2: memref<128x2048xbf16, #tpu.memory_space<vmem>>, %arg3: memref<2048x32xbf16, #tpu.memory_space<vmem>>, %arg4: memref<1x32xf32, #tpu.memory_space<vmem>>, %arg5: memref<128x32xbf16, #tpu.memory_space<vmem>>) attributes {dimension_semantics = [#tpu.dimension_semantics<parallel>, #tpu.dimension_semantics<parallel>], iteration_bounds = array<i64: 1, 1>, scalar_prefetch = 0 : i64, scratch_operands = 0 : i64, tpu.core_type = #tpu.core_type<tc>, window_params = [{transform_indices = @transform_0, window_bounds = array<i64: 128, 2048>}, {transform_indices = @transform_1, window_bounds = array<i64: 2048, 32>}, {transform_indices = @transform_2, window_bounds = array<i64: 1, 32>}, {transform_indices = @transform_3, window_bounds = array<i64: 128, 32>}]} {
    %c0 = arith.constant 0 : index
    %c0_0 = arith.constant 0 : index
    %0 = vector.load %arg2[%c0, %c0_0] : memref<128x2048xbf16, #tpu.memory_space<vmem>>, vector<128x2048xbf16>
    %c0_1 = arith.constant 0 : index
    %c0_2 = arith.constant 0 : index
    %1 = vector.load %arg3[%c0_1, %c0_2] : memref<2048x32xbf16, #tpu.memory_space<vmem>>, vector<2048x32xbf16>
    %c0_3 = arith.constant 0 : index
    %c0_4 = arith.constant 0 : index
    %2 = vector.load %arg4[%c0_3, %c0_4] : memref<1x32xf32, #tpu.memory_space<vmem>>, vector<1x32xf32>
    %cst = arith.constant dense<0.000000e+00> : vector<128x32xf32>
    %3 = tpu.matmul %0, %1, %cst {dimension_numbers = #tpu.dot_dimension_numbers<[1], [0], [0], [1], [0, 0, 1, 1], [], []>} : vector<128x2048xbf16>, vector<2048x32xbf16>, vector<128x32xf32> -> vector<128x32xf32>
    %4 = vector.broadcast %2 : vector<1x32xf32> to vector<128x32xf32>
    %5 = arith.addf %3, %4 : vector<128x32xf32>
    %cst_5 = arith.constant 0.000000e+00 : f32
    %6 = vector.broadcast %cst_5 : f32 to vector<128x32xf32>
    %7 = arith.cmpf ogt, %5, %6 : vector<128x32xf32>
    %cst_6 = arith.constant 2.000000e-01 : f32
    %8 = vector.broadcast %cst_6 : f32 to vector<128x32xf32>
    %9 = arith.mulf %8, %5 : vector<128x32xf32>
    %10 = arith.select %7, %5, %9 : vector<128x32xi1>, vector<128x32xf32>
    %11 = arith.truncf %10 : vector<128x32xf32> to vector<128x32xbf16>
    %c0_7 = arith.constant 0 : index
    %c0_8 = arith.constant 0 : index
    %12 = vector.load %arg5[%c0_7, %c0_8] : memref<128x32xbf16, #tpu.memory_space<vmem>>, vector<128x32xbf16>
    tpu.vector_store %arg5[%c0_7, %c0_8], %11 {strides = array<i32>} : memref<128x32xbf16, #tpu.memory_space<vmem>>, vector<128x32xbf16>,
    return
  }
  func.func @transform_0(%arg0: i32, %arg1: i32) -> (i32, i32) {
    %c0_i32 = arith.constant 0 : i32
    %c0_i32_0 = arith.constant 0 : i32
    return %arg0, %c0_i32 : i32, i32
  }
  func.func @transform_1(%arg0: i32, %arg1: i32) -> (i32, i32) {
    %c0_i32 = arith.constant 0 : i32
    %c0_i32_0 = arith.constant 0 : i32
    return %c0_i32, %arg1 : i32, i32
  }
  func.func @transform_2(%arg0: i32, %arg1: i32) -> (i32, i32) {
    %c0_i32 = arith.constant 0 : i32
    %c0_i32_0 = arith.constant 0 : i32
    return %c0_i32, %arg1 : i32, i32
  }
  func.func @transform_3(%arg0: i32, %arg1: i32) -> (i32, i32) {
    %c0_i32 = arith.constant 0 : i32
    return %arg0, %arg1 : i32, i32
  }
}

module attributes {stable_mosaic.version = 11 : i64} {
  func.func @kernel(%arg0: i32, %arg1: i32, %arg2: memref<128x864xbf16, #tpu.memory_space<vmem>>, %arg3: memref<864x32xbf16, #tpu.memory_space<vmem>>, %arg4: memref<1x32xf32, #tpu.memory_space<vmem>>, %arg5: memref<128x32xbf16, #tpu.memory_space<vmem>>) attributes {dimension_semantics = [#tpu.dimension_semantics<parallel>, #tpu.dimension_semantics<parallel>], iteration_bounds = array<i64: 1, 1>, scalar_prefetch = 0 : i64, scratch_operands = 0 : i64, tpu.core_type = #tpu.core_type<tc>, window_params = [{transform_indices = @transform_0, window_bounds = array<i64: 128, 864>}, {transform_indices = @transform_1, window_bounds = array<i64: 864, 32>}, {transform_indices = @transform_2, window_bounds = array<i64: 1, 32>}, {transform_indices = @transform_3, window_bounds = array<i64: 128, 32>}]} {
    %c0 = arith.constant 0 : index
    %c0_0 = arith.constant 0 : index
    %0 = vector.load %arg2[%c0, %c0_0] : memref<128x864xbf16, #tpu.memory_space<vmem>>, vector<128x864xbf16>
    %c0_1 = arith.constant 0 : index
    %c0_2 = arith.constant 0 : index
    %1 = vector.load %arg3[%c0_1, %c0_2] : memref<864x32xbf16, #tpu.memory_space<vmem>>, vector<864x32xbf16>
    %c0_3 = arith.constant 0 : index
    %c0_4 = arith.constant 0 : index
    %2 = vector.load %arg4[%c0_3, %c0_4] : memref<1x32xf32, #tpu.memory_space<vmem>>, vector<1x32xf32>
    %cst = arith.constant dense<0.000000e+00> : vector<128x32xf32>
    %3 = tpu.matmul %0, %1, %cst {dimension_numbers = #tpu.dot_dimension_numbers<[1], [0], [0], [1], [0, 0, 1, 1], [], []>} : vector<128x864xbf16>, vector<864x32xbf16>, vector<128x32xf32> -> vector<128x32xf32>
    %4 = vector.broadcast %2 : vector<1x32xf32> to vector<128x32xf32>
    %5 = arith.addf %3, %4 : vector<128x32xf32>
    %cst_5 = arith.constant 0.000000e+00 : f32
    %6 = vector.broadcast %cst_5 : f32 to vector<128x32xf32>
    %7 = arith.cmpf ogt, %5, %6 : vector<128x32xf32>
    %cst_6 = arith.constant 2.000000e-01 : f32
    %8 = vector.broadcast %cst_6 : f32 to vector<128x32xf32>
    %9 = arith.mulf %8, %5 : vector<128x32xf32>
    %10 = arith.select %7, %5, %9 : vector<128x32xi1>, vector<128x32xf32>
    %11 = arith.truncf %10 : vector<128x32xf32> to vector<128x32xbf16>
    %c0_7 = arith.constant 0 : index
    %c0_8 = arith.constant 0 : index
    %12 = vector.load %arg5[%c0_7, %c0_8] : memref<128x32xbf16, #tpu.memory_space<vmem>>, vector<128x32xbf16>
    tpu.vector_store %arg5[%c0_7, %c0_8], %11 {strides = array<i32>} : memref<128x32xbf16, #tpu.memory_space<vmem>>, vector<128x32xbf16>,
    return
  }
  func.func @transform_0(%arg0: i32, %arg1: i32) -> (i32, i32) {
    %c0_i32 = arith.constant 0 : i32
    %c0_i32_0 = arith.constant 0 : i32
    return %arg0, %c0_i32 : i32, i32
  }
  func.func @transform_1(%arg0: i32, %arg1: i32) -> (i32, i32) {
    %c0_i32 = arith.constant 0 : i32
    %c0_i32_0 = arith.constant 0 : i32
    return %c0_i32, %arg1 : i32, i32
  }
  func.func @transform_2(%arg0: i32, %arg1: i32) -> (i32, i32) {
    %c0_i32 = arith.constant 0 : i32
    %c0_i32_0 = arith.constant 0 : i32
    return %c0_i32, %arg1 : i32, i32
  }
  func.func @transform_3(%arg0: i32, %arg1: i32) -> (i32, i32) {
    %c0_i32 = arith.constant 0 : i32
    return %arg0, %arg1 : i32, i32
  }
}

module attributes {stable_mosaic.version = 11 : i64} {
  func.func @kernel(%arg0: i32, %arg1: i32, %arg2: memref<128x864xbf16, #tpu.memory_space<vmem>>, %arg3: memref<864x32xbf16, #tpu.memory_space<vmem>>, %arg4: memref<1x32xf32, #tpu.memory_space<vmem>>, %arg5: memref<128x32xbf16, #tpu.memory_space<vmem>>, %arg6: memref<128x32xbf16, #tpu.memory_space<vmem>>) attributes {dimension_semantics = [#tpu.dimension_semantics<parallel>, #tpu.dimension_semantics<parallel>], iteration_bounds = array<i64: 1, 1>, scalar_prefetch = 0 : i64, scratch_operands = 0 : i64, tpu.core_type = #tpu.core_type<tc>, window_params = [{transform_indices = @transform_0, window_bounds = array<i64: 128, 864>}, {transform_indices = @transform_1, window_bounds = array<i64: 864, 32>}, {transform_indices = @transform_2, window_bounds = array<i64: 1, 32>}, {transform_indices = @transform_3, window_bounds = array<i64: 128, 32>}, {transform_indices = @transform_4, window_bounds = array<i64: 128, 32>}]} {
    %c0 = arith.constant 0 : index
    %c0_0 = arith.constant 0 : index
    %0 = vector.load %arg2[%c0, %c0_0] : memref<128x864xbf16, #tpu.memory_space<vmem>>, vector<128x864xbf16>
    %c0_1 = arith.constant 0 : index
    %c0_2 = arith.constant 0 : index
    %1 = vector.load %arg3[%c0_1, %c0_2] : memref<864x32xbf16, #tpu.memory_space<vmem>>, vector<864x32xbf16>
    %c0_3 = arith.constant 0 : index
    %c0_4 = arith.constant 0 : index
    %2 = vector.load %arg4[%c0_3, %c0_4] : memref<1x32xf32, #tpu.memory_space<vmem>>, vector<1x32xf32>
    %cst = arith.constant dense<0.000000e+00> : vector<128x32xf32>
    %3 = tpu.matmul %0, %1, %cst {dimension_numbers = #tpu.dot_dimension_numbers<[1], [0], [0], [1], [0, 0, 1, 1], [], []>} : vector<128x864xbf16>, vector<864x32xbf16>, vector<128x32xf32> -> vector<128x32xf32>
    %4 = vector.broadcast %2 : vector<1x32xf32> to vector<128x32xf32>
    %5 = arith.addf %3, %4 : vector<128x32xf32>
    %c0_5 = arith.constant 0 : index
    %c0_6 = arith.constant 0 : index
    %6 = vector.load %arg5[%c0_5, %c0_6] : memref<128x32xbf16, #tpu.memory_space<vmem>>, vector<128x32xbf16>
    %7 = arith.extf %6 : vector<128x32xbf16> to vector<128x32xf32>
    %8 = arith.addf %5, %7 : vector<128x32xf32>
    %cst_7 = arith.constant 0.000000e+00 : f32
    %9 = vector.broadcast %cst_7 : f32 to vector<128x32xf32>
    %10 = arith.cmpf ogt, %8, %9 : vector<128x32xf32>
    %cst_8 = arith.constant 2.000000e-01 : f32
    %11 = vector.broadcast %cst_8 : f32 to vector<128x32xf32>
    %12 = arith.mulf %11, %8 : vector<128x32xf32>
    %13 = arith.select %10, %8, %12 : vector<128x32xi1>, vector<128x32xf32>
    %14 = arith.truncf %13 : vector<128x32xf32> to vector<128x32xbf16>
    %c0_9 = arith.constant 0 : index
    %c0_10 = arith.constant 0 : index
    %15 = vector.load %arg6[%c0_9, %c0_10] : memref<128x32xbf16, #tpu.memory_space<vmem>>, vector<128x32xbf16>
    tpu.vector_store %arg6[%c0_9, %c0_10], %14 {strides = array<i32>} : memref<128x32xbf16, #tpu.memory_space<vmem>>, vector<128x32xbf16>,
    return
  }
  func.func @transform_0(%arg0: i32, %arg1: i32) -> (i32, i32) {
    %c0_i32 = arith.constant 0 : i32
    %c0_i32_0 = arith.constant 0 : i32
    return %arg0, %c0_i32 : i32, i32
  }
  func.func @transform_1(%arg0: i32, %arg1: i32) -> (i32, i32) {
    %c0_i32 = arith.constant 0 : i32
    %c0_i32_0 = arith.constant 0 : i32
    return %c0_i32, %arg1 : i32, i32
  }
  func.func @transform_2(%arg0: i32, %arg1: i32) -> (i32, i32) {
    %c0_i32 = arith.constant 0 : i32
    %c0_i32_0 = arith.constant 0 : i32
    return %c0_i32, %arg1 : i32, i32
  }
  func.func @transform_3(%arg0: i32, %arg1: i32) -> (i32, i32) {
    %c0_i32 = arith.constant 0 : i32
    return %arg0, %arg1 : i32, i32
  }
  func.func @transform_4(%arg0: i32, %arg1: i32) -> (i32, i32) {
    %c0_i32 = arith.constant 0 : i32
    return %arg0, %arg1 : i32, i32
  }
}

module attributes {stable_mosaic.version = 11 : i64} {
  func.func @kernel(%arg0: i32, %arg1: i32, %arg2: memref<32x128xbf16, #tpu.memory_space<vmem>>, %arg3: memref<32x128xbf16, #tpu.memory_space<vmem>>, %arg4: memref<128x256xbf16, #tpu.memory_space<vmem>>, %arg5: memref<1x256xf32, #tpu.memory_space<vmem>>, %arg6: memref<32x256xf32, #tpu.memory_space<vmem>>) attributes {dimension_semantics = [#tpu.dimension_semantics<parallel>, #tpu.dimension_semantics<parallel>], iteration_bounds = array<i64: 1, 2>, scalar_prefetch = 0 : i64, scratch_operands = 0 : i64, tpu.core_type = #tpu.core_type<tc>, window_params = [{transform_indices = @transform_0, window_bounds = array<i64: 32, 128>}, {transform_indices = @transform_1, window_bounds = array<i64: 32, 128>}, {transform_indices = @transform_2, window_bounds = array<i64: 128, 256>}, {transform_indices = @transform_3, window_bounds = array<i64: 1, 256>}, {transform_indices = @transform_4, window_bounds = array<i64: 32, 256>}]} {
    %c0 = arith.constant 0 : index
    %c0_0 = arith.constant 0 : index
    %0 = vector.load %arg2[%c0, %c0_0] : memref<32x128xbf16, #tpu.memory_space<vmem>>, vector<32x128xbf16>
    %1 = arith.extf %0 : vector<32x128xbf16> to vector<32x128xf32>
    %c0_1 = arith.constant 0 : index
    %c0_2 = arith.constant 0 : index
    %2 = vector.load %arg3[%c0_1, %c0_2] : memref<32x128xbf16, #tpu.memory_space<vmem>>, vector<32x128xbf16>
    %3 = arith.extf %2 : vector<32x128xbf16> to vector<32x128xf32>
    %4 = arith.addf %1, %3 : vector<32x128xf32>
    %5 = arith.truncf %4 : vector<32x128xf32> to vector<32x128xbf16>
    %c0_3 = arith.constant 0 : index
    %c0_4 = arith.constant 0 : index
    %6 = vector.load %arg4[%c0_3, %c0_4] : memref<128x256xbf16, #tpu.memory_space<vmem>>, vector<128x256xbf16>
    %c0_5 = arith.constant 0 : index
    %c0_6 = arith.constant 0 : index
    %7 = vector.load %arg5[%c0_5, %c0_6] : memref<1x256xf32, #tpu.memory_space<vmem>>, vector<1x256xf32>
    %cst = arith.constant dense<0.000000e+00> : vector<32x256xf32>
    %8 = tpu.matmul %5, %6, %cst {dimension_numbers = #tpu.dot_dimension_numbers<[1], [0], [0], [1], [0, 0, 1, 1], [], []>} : vector<32x128xbf16>, vector<128x256xbf16>, vector<32x256xf32> -> vector<32x256xf32>
    %9 = vector.broadcast %7 : vector<1x256xf32> to vector<32x256xf32>
    %10 = arith.addf %8, %9 : vector<32x256xf32>
    %cst_7 = arith.constant 0.000000e+00 : f32
    %11 = vector.broadcast %cst_7 : f32 to vector<32x256xf32>
    %12 = arith.cmpf ogt, %10, %11 : vector<32x256xf32>
    %cst_8 = arith.constant 3.000000e-01 : f32
    %13 = vector.broadcast %cst_8 : f32 to vector<32x256xf32>
    %14 = arith.mulf %13, %10 : vector<32x256xf32>
    %15 = arith.select %12, %10, %14 : vector<32x256xi1>, vector<32x256xf32>
    %c0_9 = arith.constant 0 : index
    %c0_10 = arith.constant 0 : index
    %16 = vector.load %arg6[%c0_9, %c0_10] : memref<32x256xf32, #tpu.memory_space<vmem>>, vector<32x256xf32>
    tpu.vector_store %arg6[%c0_9, %c0_10], %15 {strides = array<i32>} : memref<32x256xf32, #tpu.memory_space<vmem>>, vector<32x256xf32>,
    return
  }
  func.func @transform_0(%arg0: i32, %arg1: i32) -> (i32, i32) {
    %c0_i32 = arith.constant 0 : i32
    %c0_i32_0 = arith.constant 0 : i32
    return %arg0, %c0_i32 : i32, i32
  }
  func.func @transform_1(%arg0: i32, %arg1: i32) -> (i32, i32) {
    %c0_i32 = arith.constant 0 : i32
    %c0_i32_0 = arith.constant 0 : i32
    return %arg0, %c0_i32 : i32, i32
  }
  func.func @transform_2(%arg0: i32, %arg1: i32) -> (i32, i32) {
    %c0_i32 = arith.constant 0 : i32
    %c0_i32_0 = arith.constant 0 : i32
    return %c0_i32, %arg1 : i32, i32
  }
  func.func @transform_3(%arg0: i32, %arg1: i32) -> (i32, i32) {
    %c0_i32 = arith.constant 0 : i32
    %c0_i32_0 = arith.constant 0 : i32
    return %c0_i32, %arg1 : i32, i32
  }
  func.func @transform_4(%arg0: i32, %arg1: i32) -> (i32, i32) {
    %c0_i32 = arith.constant 0 : i32
    return %arg0, %arg1 : i32, i32
  }
}

</mosaic_0001>

<bundles_post_ra>
// kernel: voxel_processing.16
= control target key start
LH: loop header
LB: loop body
LE: loop exit
PB: predicated region body
PF: predicated region fallthrough
CT: control target
= control target key end

     0   :  { %s2090_s12 = smov 0   ;;  %s2092_s13 = smov 0   ;;  %s2472_s0 = inlined_call_operand.vmem [shape: bf16[1024,256], index: 0, kind: input, shape index: {}]   ;;  %s2473_s1 = inlined_call_operand.vmem [shape: bf16[256,16], index: 1, kind: input, shape index: {}]   ;;  %s2474_s2 = inlined_call_operand.vmem [shape: f32[1,16], index: 2, kind: input, shape index: {}]   ;;  %s2475_s3 = inlined_call_operand.vmem [shape: bf16[1024,16], index: 3, kind: output, shape index: {}]  }
   0x1   :  { %s2094_s14 = smov 0  }
   0x2 LB: > { %s25_s15 = sadd.s32 1, %s2063_s13  ;;  %p1658_p0 = scmp.ge.s32.totalorder %s2067_s14, 1  ;;  %s2067_s14 = sphi %s2094_s14, %s13_s14   ;;  %s2063_s13 = sphi %s2092_s13, %s2477_s13   ;;  %s2059_s12 = sphi %s2090_s12, %s2476_s12  }
   0x3   : > { %p27_p1 = scmp.ge.s32.totalorder %s25_s15, 2  ;;  %p170_p2 = scmp.lt.s32.totalorder %s2067_s14, 3 }
   0x5   : > { %s2479_s15 = smov (%p27_p1, %s25_s15), 0  ;;  %p171_p3 = pnand %p1658_p0, %p170_p2 }
   0x6   : > { %v1933_v0 = vld [vmem:[%s2473_s1] sm:$0xff] (!%p171_p3)   ;;  %v2069_v1 = vmov (!%p171_p3), 0   ;;  %s1659_s18 = sshll.u32 (!%p171_p3), %s2059_s12, 6  ;;  %v1934_v2 = vld [vmem:[%s2473_s1 + $0x8] sm:$0xff] (!%p171_p3)   ;;  %v1935_v3 = vld [vmem:[%s2473_s1 + $0x10] sm:$0xff] (!%p171_p3)   ;;  %vm1485_vm2 = vcmask (!%p171_p3), 125952  }
   0x7   : > { %174 = sbr.rel (%p171_p3) target bundleno = 414 (0x19e), region = 32  ;;  %748 = vmatprep.subr.bf16.mxu0 (!%p171_p3), %v2069_v1  ;;  %1876 = vmatprep.subr.bf16.mxu1 (!%p171_p3), %v2069_v1  ;;  %p206_p4 = scmp.lt.s32.totalorder (!%p171_p3), %s1659_s18, 127  ;;  %v1936_v4 = vld [vmem:[%s2473_s1 + $0x18] sm:$0xff] (!%p171_p3)   ;;  %v1937_v5 = vld [vmem:[%s2473_s1 + $0x20] sm:$0xff] (!%p171_p3)   ;;  %v1938_v7 = vld [vmem:[%s2473_s1 + $0x28] sm:$0xff] (!%p171_p3)  }
   0x8   : > { %749 = vmatpush1.bf16.msra.mxu0 (!%p171_p3), %v1933_v0  ;;  %1892 = vmatpush1.bf16.msra.mxu1 (!%p171_p3), %v1933_v0  ;;  %v1939_v9 = vld [vmem:[%s2473_s1 + $0x30] sm:$0xff] (!%p171_p3)   ;;  %v1940_v10 = vld [vmem:[%s2473_s1 + $0x38] sm:$0xff] (!%p171_p3)   ;;  %v1941_v11 = vld [vmem:[%s2473_s1 + $0x40] sm:$0xff] (!%p171_p3)  }
   0x9   : > { %750 = vmatprep.subr.bf16.mxu0 (!%p171_p3), %v2069_v1  ;;  %1877 = vmatprep.subr.bf16.mxu1 (!%p171_p3), %v2069_v1  ;;  %v1942_v12 = vld [vmem:[%s2473_s1 + $0x48] sm:$0xff] (!%p171_p3)   ;;  %v1943_v13 = vld [vmem:[%s2473_s1 + $0x50] sm:$0xff] (!%p171_p3)   ;;  %v1944_v14 = vld [vmem:[%s2473_s1 + $0x58] sm:$0xff] (!%p171_p3)  }
   0xa   : > { %v1945_v15 = vld [vmem:[%s2473_s1 + $0x60] sm:$0xff] (!%p171_p3)   ;;  %v1946_v16 = vld [vmem:[%s2473_s1 + $0x68] sm:$0xff] (!%p171_p3)   ;;  %v1947_v17 = vld [vmem:[%s2473_s1 + $0x70] sm:$0xff] (!%p171_p3)  }
   0xb   : > { %v1948_v18 = vld [vmem:[%s2473_s1 + $0x78] sm:$0xff] (!%p171_p3)  }
   0xc   : > { %751 = vmatpush1.bf16.msra.mxu0 (!%p171_p3), %v1934_v2  ;;  %1893 = vmatpush1.bf16.msra.mxu1 (!%p171_p3), %v1934_v2 }
   0xd   : > { %752 = vmatprep.subr.bf16.mxu0 (!%p171_p3), %v2069_v1  ;;  %1878 = vmatprep.subr.bf16.mxu1 (!%p171_p3), %v2069_v1 }
   0xe   : > { %s2481_s18 = smov (!%p206_p4, %s1659_s18), 127 }
   0xf   : > { %s1811_s25 = sshll.u32 %s2481_s18, 3  ;;  %s1663_s6 = sshll.u32 %s2481_s18, 2 }
  0x10   : > { %753 = vmatpush1.bf16.msra.mxu0 %v1935_v3  ;;  %1894 = vmatpush1.bf16.msra.mxu1 %v1935_v3  ;;  %s2137_s30 = scalar_lea.vmem %s2472_s0, %s1811_s25  ;;  %s2273_s8 = scalar_lea.vmem %s2475_s3, %s1663_s6 }
  0x11   : > { %754 = vmatprep.subr.bf16.mxu0 %v2069_v1  ;;  %1879 = vmatprep.subr.bf16.mxu1 %v2069_v1  ;;  %v1951_v6 = vld [vmem:[%s2137_s30 + $0x4] ss:$8 sps:$4 sm:$0xff]   ;;  %v1949_v19 = vld [vmem:[%s2137_s30] ss:$8 sps:$4 sm:$0xff]   ;;  %v1955_v21 = vld [vmem:[%s2137_s30 + $0x14] ss:$8 sps:$4 sm:$0xff]  }
  0x12   : > { %v1954_v8 = vld [vmem:[%s2137_s30 + $0x104] ss:$8 sps:$4 sm:$0xff]   ;;  %780 = vmatprep.mubr.bf16.mxu0 %v1951_v6  ;;  %v1952_v20 = vld [vmem:[%s2137_s30 + $0x100] ss:$8 sps:$4 sm:$0xff]   ;;  %v1957_v22 = vld [vmem:[%s2137_s30 + $0x114] ss:$8 sps:$4 sm:$0xff]  }
  0x13   : > { %908 = vmatprep.mubr.bf16.mxu1 %v1954_v8  ;;  %v1959_v23 = vld [vmem:[%s2137_s30 + $0x10] ss:$8 sps:$4 sm:$0xff]   ;;  %v1961_v25 = vld [vmem:[%s2137_s30 + $0x24] ss:$8 sps:$4 sm:$0xff]   ;;  %v1965_v27 = vld [vmem:[%s2137_s30 + $0x20] ss:$8 sps:$4 sm:$0xff]  }
  0x14   : > { %755 = vmatpush1.bf16.msra.mxu0 %v1936_v4  ;;  %1895 = vmatpush1.bf16.msra.mxu1 %v1936_v4  ;;  %v1960_v24 = vld [vmem:[%s2137_s30 + $0x110] ss:$8 sps:$4 sm:$0xff]   ;;  %v1963_v26 = vld [vmem:[%s2137_s30 + $0x124] ss:$8 sps:$4 sm:$0xff]   ;;  %v1966_v28 = vld [vmem:[%s2137_s30 + $0x120] ss:$8 sps:$4 sm:$0xff]  }
  0x15   : > { %756 = vmatprep.subr.bf16.mxu0 %v2069_v1  ;;  %1880 = vmatprep.subr.bf16.mxu1 %v2069_v1  ;;  %v1967_v29 = vld [vmem:[%s2137_s30 + $0x34] ss:$8 sps:$4 sm:$0xff]   ;;  %v1971_v31 = vld [vmem:[%s2137_s30 + $0x30] ss:$8 sps:$4 sm:$0xff]   ;;  %v1973_v33 = vld [vmem:[%s2137_s30 + $0x44] ss:$8 sps:$4 sm:$0xff]  }
  0x16   : > { %v1969_v30 = vld [vmem:[%s2137_s30 + $0x134] ss:$8 sps:$4 sm:$0xff]   ;;  %v1972_v32 = vld [vmem:[%s2137_s30 + $0x130] ss:$8 sps:$4 sm:$0xff]   ;;  %v1975_v34 = vld [vmem:[%s2137_s30 + $0x144] ss:$8 sps:$4 sm:$0xff]  }
  0x17   : > { %v1977_v35 = vld [vmem:[%s2137_s30 + $0x40] ss:$8 sps:$4 sm:$0xff]   ;;  %v1979_v37 = vld [vmem:[%s2137_s30 + $0x54] ss:$8 sps:$4 sm:$0xff]   ;;  %v1983_v39 = vld [vmem:[%s2137_s30 + $0x50] ss:$8 sps:$4 sm:$0xff]  }
  0x18   : > { %757 = vmatpush1.bf16.msra.mxu0 %v1937_v5  ;;  %1896 = vmatpush1.bf16.msra.mxu1 %v1937_v5  ;;  %v1978_v36 = vld [vmem:[%s2137_s30 + $0x140] ss:$8 sps:$4 sm:$0xff]   ;;  %v1981_v38 = vld [vmem:[%s2137_s30 + $0x154] ss:$8 sps:$4 sm:$0xff]   ;;  %v1984_v40 = vld [vmem:[%s2137_s30 + $0x150] ss:$8 sps:$4 sm:$0xff]  }
  0x19   : > { %758 = vmatprep.subr.bf16.mxu0 %v2069_v1  ;;  %1881 = vmatprep.subr.bf16.mxu1 %v2069_v1  ;;  %v1985_v41 = vld [vmem:[%s2137_s30 + $0x64] ss:$8 sps:$4 sm:$0xff]   ;;  %v1989_v43 = vld [vmem:[%s2137_s30 + $0x60] ss:$8 sps:$4 sm:$0xff]   ;;  %v1991_v45 = vld [vmem:[%s2137_s30 + $0x74] ss:$8 sps:$4 sm:$0xff]  }
  0x1a   : > { %v1987_v42 = vld [vmem:[%s2137_s30 + $0x164] ss:$8 sps:$4 sm:$0xff]   ;;  %v1990_v44 = vld [vmem:[%s2137_s30 + $0x160] ss:$8 sps:$4 sm:$0xff]   ;;  %v1993_v46 = vld [vmem:[%s2137_s30 + $0x174] ss:$8 sps:$4 sm:$0xff]  }
  0x1b   : > { %v1995_v47 = vld [vmem:[%s2137_s30 + $0x70] ss:$8 sps:$4 sm:$0xff]   ;;  %v1997_v49 = vld [vmem:[%s2137_s30 + $0x84] ss:$8 sps:$4 sm:$0xff]   ;;  %v2001_v51 = vld [vmem:[%s2137_s30 + $0x80] ss:$8 sps:$4 sm:$0xff]  }
  0x1c   : > { %759 = vmatpush1.bf16.msra.mxu0 %v1938_v7  ;;  %1897 = vmatpush1.bf16.msra.mxu1 %v1938_v7  ;;  %v1996_v48 = vld [vmem:[%s2137_s30 + $0x170] ss:$8 sps:$4 sm:$0xff]   ;;  %v1999_v50 = vld [vmem:[%s2137_s30 + $0x184] ss:$8 sps:$4 sm:$0xff]   ;;  %v2002_v52 = vld [vmem:[%s2137_s30 + $0x180] ss:$8 sps:$4 sm:$0xff]  }
  0x1d   : > { %760 = vmatprep.subr.bf16.mxu0 %v2069_v1  ;;  %1882 = vmatprep.subr.bf16.mxu1 %v2069_v1  ;;  %v2003_v53 = vld [vmem:[%s2137_s30 + $0x94] ss:$8 sps:$4 sm:$0xff]   ;;  %v2007_v55 = vld [vmem:[%s2137_s30 + $0x90] ss:$8 sps:$4 sm:$0xff]   ;;  %v2009_v57 = vld [vmem:[%s2137_s30 + $0xa4] ss:$8 sps:$4 sm:$0xff]  }
  0x1e   : > { %v2005_v54 = vld [vmem:[%s2137_s30 + $0x194] ss:$8 sps:$4 sm:$0xff]   ;;  %v2008_v56 = vld [vmem:[%s2137_s30 + $0x190] ss:$8 sps:$4 sm:$0xff]   ;;  %v2011_v58 = vld [vmem:[%s2137_s30 + $0x1a4] ss:$8 sps:$4 sm:$0xff]  }
  0x1f   : > { %v2013_v59 = vld [vmem:[%s2137_s30 + $0xa0] ss:$8 sps:$4 sm:$0xff]   ;;  %v2015_v61 = vld [vmem:[%s2137_s30 + $0xb4] ss:$8 sps:$4 sm:$0xff]   ;;  %v2019_v63 = vld [vmem:[%s2137_s30 + $0xb0] ss:$8 sps:$4 sm:$0xff]  }
  0x20   : > { %761 = vmatpush1.bf16.msra.mxu0 %v1939_v9  ;;  %1898 = vmatpush1.bf16.msra.mxu1 %v1939_v9  ;;  %v2014_v60 = vld [vmem:[%s2137_s30 + $0x1a0] ss:$8 sps:$4 sm:$0xff]   ;;  %v2017_v62 = vld [vmem:[%s2137_s30 + $0x1b4] ss:$8 sps:$4 sm:$0xff]   ;;  %v2020_v0 = vld [vmem:[%s2137_s30 + $0x1b0] ss:$8 sps:$4 sm:$0xff]  }
  0x21   : > { %762 = vmatprep.subr.bf16.mxu0 %v2069_v1  ;;  %1883 = vmatprep.subr.bf16.mxu1 %v2069_v1  ;;  %v2023_v2 = vld [vmem:[%s2137_s30 + $0x1c4] ss:$8 sps:$4 sm:$0xff]   ;;  %v2025_v3 = vld [vmem:[%s2137_s30 + $0xc0] ss:$8 sps:$4 sm:$0xff]   ;;  %v2027_v5 = vld [vmem:[%s2137_s30 + $0xd4] ss:$8 sps:$4 sm:$0xff]  }
  0x22   : > { %v2026_v4 = vld [vmem:[%s2137_s30 + $0x1c0] ss:$8 sps:$4 sm:$0xff]   ;;  %v2029_v6 = vld [vmem:[%s2137_s30 + $0x1d4] ss:$8 sps:$4 sm:$0xff]   ;;  %v2031_v7 = vld [vmem:[%s2137_s30 + $0xd0] ss:$8 sps:$4 sm:$0xff]  }
  0x23   : > { %v2032_v8 = vld [vmem:[%s2137_s30 + $0x1d0] ss:$8 sps:$4 sm:$0xff]   ;;  %v2033_v9 = vld [vmem:[%s2137_s30 + $0xe4] ss:$8 sps:$4 sm:$0xff]  }
  0x24   : > { %763 = vmatpush1.bf16.msra.mxu0 %v1940_v10  ;;  %1899 = vmatpush1.bf16.msra.mxu1 %v1940_v10  ;;  %v2035_v10 = vld [vmem:[%s2137_s30 + $0x1e4] ss:$8 sps:$4 sm:$0xff]  }
  0x25   : > { %764 = vmatprep.subr.bf16.mxu0 %v2069_v1  ;;  %1884 = vmatprep.subr.bf16.mxu1 %v2069_v1 }
  0x28   : > { %765 = vmatpush1.bf16.msra.mxu0 %v1941_v11  ;;  %1900 = vmatpush1.bf16.msra.mxu1 %v1941_v11  ;;  %v2037_v11 = vld [vmem:[%s2137_s30 + $0xe0] ss:$8 sps:$4 sm:$0xff]  }
  0x29   : > { %766 = vmatprep.subr.bf16.mxu0 %v2069_v1  ;;  %1885 = vmatprep.subr.bf16.mxu1 %v2069_v1 }
  0x2c   : > { %767 = vmatpush1.bf16.msra.mxu0 %v1942_v12  ;;  %1901 = vmatpush1.bf16.msra.mxu1 %v1942_v12  ;;  %v2038_v12 = vld [vmem:[%s2137_s30 + $0x1e0] ss:$8 sps:$4 sm:$0xff]  }
  0x2d   : > { %768 = vmatprep.subr.bf16.mxu0 %v2069_v1  ;;  %1886 = vmatprep.subr.bf16.mxu1 %v2069_v1 }
  0x30   : > { %769 = vmatpush1.bf16.msra.mxu0 %v1943_v13  ;;  %1902 = vmatpush1.bf16.msra.mxu1 %v1943_v13  ;;  %v2039_v13 = vld [vmem:[%s2137_s30 + $0xf4] ss:$8 sps:$4 sm:$0xff]  }
  0x31   : > { %770 = vmatprep.subr.bf16.mxu0 %v2069_v1  ;;  %1887 = vmatprep.subr.bf16.mxu1 %v2069_v1 }
  0x34   : > { %771 = vmatpush1.bf16.msra.mxu0 %v1944_v14  ;;  %1903 = vmatpush1.bf16.msra.mxu1 %v1944_v14  ;;  %v2041_v14 = vld [vmem:[%s2137_s30 + $0x1f4] ss:$8 sps:$4 sm:$0xff]  }
  0x35   : > { %772 = vmatprep.subr.bf16.mxu0 %v2069_v1  ;;  %1888 = vmatprep.subr.bf16.mxu1 %v2069_v1 }
  0x38   : > { %773 = vmatpush1.bf16.msra.mxu0 %v1945_v15  ;;  %1904 = vmatpush1.bf16.msra.mxu1 %v1945_v15  ;;  %v2043_v15 = vld [vmem:[%s2137_s30 + $0xf0] ss:$8 sps:$4 sm:$0xff]  }
  0x39   : > { %774 = vmatprep.subr.bf16.mxu0 %v2069_v1  ;;  %1889 = vmatprep.subr.bf16.mxu1 %v2069_v1 }
  0x3c   : > { %775 = vmatpush1.bf16.msra.mxu0 %v1946_v16  ;;  %1905 = vmatpush1.bf16.msra.mxu1 %v1946_v16  ;;  %v2044_v16 = vld [vmem:[%s2137_s30 + $0x1f0] ss:$8 sps:$4 sm:$0xff]  }
  0x3d   : > { %776 = vmatprep.subr.bf16.mxu0 %v2069_v1  ;;  %1890 = vmatprep.subr.bf16.mxu1 %v2069_v1 }
  0x40   : > { %777 = vmatpush1.bf16.msra.mxu0 %v1947_v17  ;;  %1906 = vmatpush1.bf16.msra.mxu1 %v1947_v17  ;;  %v2263_v17 = vld [vmem:[%s2474_s2] ss:$0 sm:$0xff] }
  0x41   : > { %778 = vmatprep.subr.bf16.mxu0 %v2069_v1  ;;  %1891 = vmatprep.subr.bf16.mxu1 %v2069_v1  ;;  %v2021_v1 = vld [vmem:[%s2137_s30 + $0xc4] ss:$8 sps:$4 sm:$0xff]  }
  0x44   : > { %779 = vmatpush1.bf16.msra.mxu0 %v1948_v18  ;;  %1907 = vmatpush1.bf16.msra.mxu1 %v1948_v18 }
  0x47   : > { %781 = vmatmul.mubr.bf16.vlgmr.msra.gmra.mrb[0].mxu0 %v1949_v19  ;;  %909 = vmatmul.mubr.bf16.vlgmr.msra.gmra.mrb[0].mxu1 %v1952_v20 }
  0x48   : > { %788 = vmatprep.mubr.bf16.mxu0 %v1955_v21  ;;  %916 = vmatprep.mubr.bf16.mxu1 %v1957_v22 }
  0x4f   : > { %789 = vmatmul.mubr.bf16.gmra.mrb[4].mxu0 %v1959_v23  ;;  %917 = vmatmul.mubr.bf16.gmra.mrb[4].mxu1 %v1960_v24 }
  0x50   : > { %796 = vmatprep.mubr.bf16.mxu0 %v1961_v25  ;;  %924 = vmatprep.mubr.bf16.mxu1 %v1963_v26 }
  0x57   : > { %797 = vmatmul.mubr.bf16.gmra.mrb[8].mxu0 %v1965_v27  ;;  %925 = vmatmul.mubr.bf16.gmra.mrb[8].mxu1 %v1966_v28 }
  0x58   : > { %804 = vmatprep.mubr.bf16.mxu0 %v1967_v29  ;;  %932 = vmatprep.mubr.bf16.mxu1 %v1969_v30 }
  0x5f   : > { %805 = vmatmul.mubr.bf16.gmra.mrb[12].mxu0 %v1971_v31  ;;  %933 = vmatmul.mubr.bf16.gmra.mrb[12].mxu1 %v1972_v32 }
  0x60   : > { %812 = vmatprep.mubr.bf16.mxu0 %v1973_v33  ;;  %940 = vmatprep.mubr.bf16.mxu1 %v1975_v34 }
  0x67   : > { %813 = vmatmul.mubr.bf16.gmra.mrb[16].mxu0 %v1977_v35  ;;  %941 = vmatmul.mubr.bf16.gmra.mrb[16].mxu1 %v1978_v36 }
  0x68   : > { %820 = vmatprep.mubr.bf16.mxu0 %v1979_v37  ;;  %948 = vmatprep.mubr.bf16.mxu1 %v1981_v38 }
  0x6f   : > { %821 = vmatmul.mubr.bf16.gmra.mrb[20].mxu0 %v1983_v39  ;;  %949 = vmatmul.mubr.bf16.gmra.mrb[20].mxu1 %v1984_v40 }
  0x70   : > { %828 = vmatprep.mubr.bf16.mxu0 %v1985_v41  ;;  %956 = vmatprep.mubr.bf16.mxu1 %v1987_v42 }
  0x77   : > { %829 = vmatmul.mubr.bf16.gmra.mrb[24].mxu0 %v1989_v43  ;;  %957 = vmatmul.mubr.bf16.gmra.mrb[24].mxu1 %v1990_v44 }
  0x78   : > { %836 = vmatprep.mubr.bf16.mxu0 %v1991_v45  ;;  %964 = vmatprep.mubr.bf16.mxu1 %v1993_v46 }
  0x7f   : > { %837 = vmatmul.mubr.bf16.gmra.mrb[28].mxu0 %v1995_v47  ;;  %965 = vmatmul.mubr.bf16.gmra.mrb[28].mxu1 %v1996_v48 }
  0x80   : > { %844 = vmatprep.mubr.bf16.mxu0 %v1997_v49  ;;  %972 = vmatprep.mubr.bf16.mxu1 %v1999_v50 }
  0x87   : > { %845 = vmatmul.mubr.bf16.gmra.mrb[32].mxu0 %v2001_v51  ;;  %973 = vmatmul.mubr.bf16.gmra.mrb[32].mxu1 %v2002_v52 }
  0x88   : > { %852 = vmatprep.mubr.bf16.mxu0 %v2003_v53  ;;  %980 = vmatprep.mubr.bf16.mxu1 %v2005_v54 }
  0x8f   : > { %853 = vmatmul.mubr.bf16.gmra.mrb[36].mxu0 %v2007_v55  ;;  %981 = vmatmul.mubr.bf16.gmra.mrb[36].mxu1 %v2008_v56 }
  0x90   : > { %860 = vmatprep.mubr.bf16.mxu0 %v2009_v57  ;;  %988 = vmatprep.mubr.bf16.mxu1 %v2011_v58 }
  0x97   : > { %861 = vmatmul.mubr.bf16.gmra.mrb[40].mxu0 %v2013_v59  ;;  %989 = vmatmul.mubr.bf16.gmra.mrb[40].mxu1 %v2014_v60 }
  0x98   : > { %868 = vmatprep.mubr.bf16.mxu0 %v2015_v61  ;;  %996 = vmatprep.mubr.bf16.mxu1 %v2017_v62 }
  0x9f   : > { %869 = vmatmul.mubr.bf16.gmra.mrb[44].mxu0 %v2019_v63  ;;  %997 = vmatmul.mubr.bf16.gmra.mrb[44].mxu1 %v2020_v0 }
  0xa0   : > { %876 = vmatprep.mubr.bf16.mxu0 %v2021_v1  ;;  %1004 = vmatprep.mubr.bf16.mxu1 %v2023_v2 }
  0xa7   : > { %877 = vmatmul.mubr.bf16.gmra.mrb[48].mxu0 %v2025_v3  ;;  %1005 = vmatmul.mubr.bf16.gmra.mrb[48].mxu1 %v2026_v4 }
  0xa8   : > { %884 = vmatprep.mubr.bf16.mxu0 %v2027_v5  ;;  %1012 = vmatprep.mubr.bf16.mxu1 %v2029_v6 }
  0xaf   : > { %885 = vmatmul.mubr.bf16.gmra.mrb[52].mxu0 %v2031_v7  ;;  %1013 = vmatmul.mubr.bf16.gmra.mrb[52].mxu1 %v2032_v8 }
  0xb0   : > { %892 = vmatprep.mubr.bf16.mxu0 %v2033_v9  ;;  %1020 = vmatprep.mubr.bf16.mxu1 %v2035_v10 }
  0xb7   : > { %893 = vmatmul.mubr.bf16.gmra.mrb[56].mxu0 %v2037_v11  ;;  %1021 = vmatmul.mubr.bf16.gmra.mrb[56].mxu1 %v2038_v12 }
  0xb8   : > { %900 = vmatprep.mubr.bf16.mxu0 %v2039_v13  ;;  %1028 = vmatprep.mubr.bf16.mxu1 %v2041_v14 }
  0xbf   : > { %901 = vmatmul.mubr.bf16.gmra.mrb[60].mxu0 %v2043_v15  ;;  %1029 = vmatmul.mubr.bf16.gmra.mrb[60].mxu1 %v2044_v16 }
 0x11a   : > { %v782_v18 = vpop.f32.mrb[0].mxu0  ;;  %v910_v19 = vpop.f32.mrb[0].mxu1 }
 0x11b   : > { %v783_v20 = vadd.f32 %v2263_v17, %v782_v18  ;;  %v911_v21 = vadd.f32 %v2263_v17, %v910_v19  ;;  %v784_v22 = vpop.f32.mrb[1].mxu0  ;;  %v912_v23 = vpop.f32.mrb[1].mxu1 }
 0x11c   : > { %v785_v24 = vpop.f32.mrb[2].mxu0  ;;  %v913_v25 = vpop.f32.mrb[2].mxu1 }
 0x11d   : > { %vm1037_vm0 = vcmp.gt.f32.partialorder %v783_v20, 0.0  ;;  %v1101_v26 = vmul.f32 0.2, %v783_v20  ;;  %vm1069_vm1 = vcmp.gt.f32.partialorder %v911_v21, 0.0  ;;  %v1133_v27 = vmul.f32 0.2, %v911_v21 }
 0x11e   : > { %v786_v28 = vadd.f32 %v2263_v17, %v785_v24  ;;  %v914_v29 = vadd.f32 %v2263_v17, %v913_v25  ;;  %v787_v30 = vpop.f32.mrb[3].mxu0  ;;  %v915_v31 = vpop.f32.mrb[3].mxu1 }
 0x11f   : > { %v1165_v32 = vsel %vm1037_vm0, %v783_v20, %v1101_v26  ;;  %v1197_v33 = vsel %vm1069_vm1, %v911_v21, %v1133_v27 }
 0x120   : > { %v1812_v34 = vpack.c.bf16 %v1165_v32, %v1165_v32  ;;  %v1844_v35 = vpack.c.bf16 %v1197_v33, %v1197_v33  ;;  %vm1038_vm3 = vcmp.gt.f32.partialorder %v786_v28, 0.0  ;;  %v1102_v36 = vmul.f32 0.2, %v786_v28 }
 0x121   : > { %vm1070_vm4 = vcmp.gt.f32.partialorder %v914_v29, 0.0  ;;  %v1134_v37 = vmul.f32 0.2, %v914_v29 }
 0x122   : > { %1486 = vst.msk [vmem:[%s2273_s8] sm:$0xf] %vm1485_vm2, %v1812_v34  ;;  %1518 = vst.msk [vmem:[%s2273_s8 + $0x80] sm:$0xf] %vm1485_vm2, %v1844_v35  ;;  %v1166_v38 = vsel %vm1038_vm3, %v786_v28, %v1102_v36  ;;  %v790_v39 = vpop.f32.mrb[4].mxu0  ;;  %v918_v40 = vpop.f32.mrb[4].mxu1 }
 0x123   : > { %v1813_v41 = vpack.c.bf16 %v1166_v38, %v1166_v38  ;;  %v1198_v42 = vsel %vm1070_vm4, %v914_v29, %v1134_v37  ;;  %v791_v43 = vadd.f32 %v2263_v17, %v790_v39  ;;  %v919_v44 = vadd.f32 %v2263_v17, %v918_v40  ;;  %v792_v45 = vpop.f32.mrb[5].mxu0  ;;  %v920_v46 = vpop.f32.mrb[5].mxu1 }
 0x124   : > { %v1845_v47 = vpack.c.bf16 %v1198_v42, %v1198_v42  ;;  %v793_v48 = vpop.f32.mrb[6].mxu0  ;;  %v921_v49 = vpop.f32.mrb[6].mxu1 }
 0x125   : > { %1487 = vst.msk [vmem:[%s2273_s8 + $0x4] sm:$0xf] %vm1485_vm2, %v1813_v41  ;;  %vm1039_vm5 = vcmp.gt.f32.partialorder %v791_v43, 0.0  ;;  %v1103_v50 = vmul.f32 0.2, %v791_v43  ;;  %vm1071_vm6 = vcmp.gt.f32.partialorder %v919_v44, 0.0  ;;  %v794_v52 = vadd.f32 %v2263_v17, %v793_v48 }
 0x126   : > { %v1135_v51 = vmul.f32 0.2, %v919_v44  ;;  %1519 = vst.msk [vmem:[%s2273_s8 + $0x84] sm:$0xf] %vm1485_vm2, %v1845_v47  ;;  %v922_v53 = vadd.f32 %v2263_v17, %v921_v49  ;;  %v795_v54 = vpop.f32.mrb[7].mxu0  ;;  %v923_v55 = vpop.f32.mrb[7].mxu1 }
 0x127   : > { %v1167_v56 = vsel %vm1039_vm5, %v791_v43, %v1103_v50  ;;  %vm1040_vm7 = vcmp.gt.f32.partialorder %v794_v52, 0.0  ;;  %v1104_v60 = vmul.f32 0.2, %v794_v52 }
 0x128   : > { %v1199_v57 = vsel %vm1071_vm6, %v919_v44, %v1135_v51  ;;  %v1814_v58 = vpack.c.bf16 %v1167_v56, %v1167_v56  ;;  %vm1072_vm8 = vcmp.gt.f32.partialorder %v922_v53, 0.0  ;;  %v1136_v61 = vmul.f32 0.2, %v922_v53 }
 0x129   : > { %v1846_v59 = vpack.c.bf16 %v1199_v57, %v1199_v57  ;;  %v1168_v62 = vsel %vm1040_vm7, %v794_v52, %v1104_v60 }
 0x12a   : > { %1488 = vst.msk [vmem:[%s2273_s8 + $0x8] sm:$0xf] %vm1485_vm2, %v1814_v58  ;;  %v798_v63 = vpop.f32.mrb[8].mxu0  ;;  %v926_v0 = vpop.f32.mrb[8].mxu1  ;;  %v1815_v1 = vpack.c.bf16 %v1168_v62, %v1168_v62  ;;  %v1200_v2 = vsel %vm1072_vm8, %v922_v53, %v1136_v61 }
 0x12b   : > { %1520 = vst.msk [vmem:[%s2273_s8 + $0x88] sm:$0xf] %vm1485_vm2, %v1846_v59  ;;  %v799_v3 = vadd.f32 %v2263_v17, %v798_v63  ;;  %v927_v4 = vadd.f32 %v2263_v17, %v926_v0  ;;  %v800_v5 = vpop.f32.mrb[9].mxu0  ;;  %v928_v6 = vpop.f32.mrb[9].mxu1  ;;  %v1847_v7 = vpack.c.bf16 %v1200_v2, %v1200_v2 }
 0x12c   : > { %v801_v8 = vpop.f32.mrb[10].mxu0  ;;  %v929_v9 = vpop.f32.mrb[10].mxu1  ;;  %1489 = vst.msk [vmem:[%s2273_s8 + $0xc] sm:$0xf] %vm1485_vm2, %v1815_v1 }
 0x12d   : > { %vm1041_vm9 = vcmp.gt.f32.partialorder %v799_v3, 0.0  ;;  %v1105_v10 = vmul.f32 0.2, %v799_v3  ;;  %vm1073_vm10 = vcmp.gt.f32.partialorder %v927_v4, 0.0  ;;  %v1137_v11 = vmul.f32 0.2, %v927_v4 }
 0x12e   : > { %1521 = vst.msk [vmem:[%s2273_s8 + $0x8c] sm:$0xf] %vm1485_vm2, %v1847_v7  ;;  %v802_v12 = vadd.f32 %v2263_v17, %v801_v8  ;;  %v930_v13 = vadd.f32 %v2263_v17, %v929_v9  ;;  %v803_v14 = vpop.f32.mrb[11].mxu0  ;;  %v931_v15 = vpop.f32.mrb[11].mxu1 }
 0x12f   : > { %v1169_v16 = vsel %vm1041_vm9, %v799_v3, %v1105_v10  ;;  %v1201_v18 = vsel %vm1073_vm10, %v927_v4, %v1137_v11 }
 0x130   : > { %v1816_v19 = vpack.c.bf16 %v1169_v16, %v1169_v16  ;;  %v1848_v20 = vpack.c.bf16 %v1201_v18, %v1201_v18  ;;  %vm1042_vm11 = vcmp.gt.f32.partialorder %v802_v12, 0.0  ;;  %v1106_v21 = vmul.f32 0.2, %v802_v12 }
 0x131   : > { %vm1074_vm12 = vcmp.gt.f32.partialorder %v930_v13, 0.0  ;;  %v1138_v22 = vmul.f32 0.2, %v930_v13 }
 0x132   : > { %1490 = vst.msk [vmem:[%s2273_s8 + $0x10] sm:$0xf] %vm1485_vm2, %v1816_v19  ;;  %1522 = vst.msk [vmem:[%s2273_s8 + $0x90] sm:$0xf] %vm1485_vm2, %v1848_v20  ;;  %v1170_v23 = vsel %vm1042_vm11, %v802_v12, %v1106_v21  ;;  %v806_v24 = vpop.f32.mrb[12].mxu0  ;;  %v934_v25 = vpop.f32.mrb[12].mxu1 }
 0x133   : > { %v1817_v26 = vpack.c.bf16 %v1170_v23, %v1170_v23  ;;  %v1202_v27 = vsel %vm1074_vm12, %v930_v13, %v1138_v22  ;;  %v807_v28 = vadd.f32 %v2263_v17, %v806_v24  ;;  %v935_v29 = vadd.f32 %v2263_v17, %v934_v25  ;;  %v808_v30 = vpop.f32.mrb[13].mxu0  ;;  %v936_v31 = vpop.f32.mrb[13].mxu1 }
 0x134   : > { %v1849_v32 = vpack.c.bf16 %v1202_v27, %v1202_v27  ;;  %v809_v33 = vpop.f32.mrb[14].mxu0  ;;  %v937_v34 = vpop.f32.mrb[14].mxu1 }
 0x135   : > { %1491 = vst.msk [vmem:[%s2273_s8 + $0x14] sm:$0xf] %vm1485_vm2, %v1817_v26  ;;  %vm1043_vm13 = vcmp.gt.f32.partialorder %v807_v28, 0.0  ;;  %v1107_v35 = vmul.f32 0.2, %v807_v28  ;;  %vm1075_vm14 = vcmp.gt.f32.partialorder %v935_v29, 0.0  ;;  %v810_v37 = vadd.f32 %v2263_v17, %v809_v33 }
 0x136   : > { %v1139_v36 = vmul.f32 0.2, %v935_v29  ;;  %1523 = vst.msk [vmem:[%s2273_s8 + $0x94] sm:$0xf] %vm1485_vm2, %v1849_v32  ;;  %v938_v38 = vadd.f32 %v2263_v17, %v937_v34  ;;  %v811_v39 = vpop.f32.mrb[15].mxu0  ;;  %v939_v40 = vpop.f32.mrb[15].mxu1 }
 0x137   : > { %v1171_v41 = vsel %vm1043_vm13, %v807_v28, %v1107_v35  ;;  %vm1044_vm15 = vcmp.gt.f32.partialorder %v810_v37, 0.0  ;;  %v1108_v45 = vmul.f32 0.2, %v810_v37 }
 0x138   : > { %v1203_v42 = vsel %vm1075_vm14, %v935_v29, %v1139_v36  ;;  %v1818_v43 = vpack.c.bf16 %v1171_v41, %v1171_v41  ;;  %vm1076_vm0 = vcmp.gt.f32.partialorder %v938_v38, 0.0  ;;  %v1140_v46 = vmul.f32 0.2, %v938_v38 }
 0x139   : > { %v1850_v44 = vpack.c.bf16 %v1203_v42, %v1203_v42  ;;  %v1172_v47 = vsel %vm1044_vm15, %v810_v37, %v1108_v45 }
 0x13a   : > { %1492 = vst.msk [vmem:[%s2273_s8 + $0x18] sm:$0xf] %vm1485_vm2, %v1818_v43  ;;  %v814_v48 = vpop.f32.mrb[16].mxu0  ;;  %v942_v49 = vpop.f32.mrb[16].mxu1  ;;  %v1819_v50 = vpack.c.bf16 %v1172_v47, %v1172_v47  ;;  %v1204_v51 = vsel %vm1076_vm0, %v938_v38, %v1140_v46 }
 0x13b   : > { %1524 = vst.msk [vmem:[%s2273_s8 + $0x98] sm:$0xf] %vm1485_vm2, %v1850_v44  ;;  %v815_v52 = vadd.f32 %v2263_v17, %v814_v48  ;;  %v943_v53 = vadd.f32 %v2263_v17, %v942_v49  ;;  %v816_v54 = vpop.f32.mrb[17].mxu0  ;;  %v944_v55 = vpop.f32.mrb[17].mxu1  ;;  %v1851_v56 = vpack.c.bf16 %v1204_v51, %v1204_v51 }
 0x13c   : > { %v817_v57 = vpop.f32.mrb[18].mxu0  ;;  %v945_v58 = vpop.f32.mrb[18].mxu1  ;;  %1493 = vst.msk [vmem:[%s2273_s8 + $0x1c] sm:$0xf] %vm1485_vm2, %v1819_v50 }
 0x13d   : > { %vm1045_vm1 = vcmp.gt.f32.partialorder %v815_v52, 0.0  ;;  %v1109_v59 = vmul.f32 0.2, %v815_v52  ;;  %vm1077_vm3 = vcmp.gt.f32.partialorder %v943_v53, 0.0  ;;  %v1141_v60 = vmul.f32 0.2, %v943_v53 }
 0x13e   : > { %1525 = vst.msk [vmem:[%s2273_s8 + $0x9c] sm:$0xf] %vm1485_vm2, %v1851_v56  ;;  %v818_v61 = vadd.f32 %v2263_v17, %v817_v57  ;;  %v946_v62 = vadd.f32 %v2263_v17, %v945_v58  ;;  %v819_v63 = vpop.f32.mrb[19].mxu0  ;;  %v947_v0 = vpop.f32.mrb[19].mxu1 }
 0x13f   : > { %v1173_v1 = vsel %vm1045_vm1, %v815_v52, %v1109_v59  ;;  %v1205_v2 = vsel %vm1077_vm3, %v943_v53, %v1141_v60 }
 0x140   : > { %v1820_v3 = vpack.c.bf16 %v1173_v1, %v1173_v1  ;;  %v1852_v4 = vpack.c.bf16 %v1205_v2, %v1205_v2  ;;  %vm1046_vm4 = vcmp.gt.f32.partialorder %v818_v61, 0.0  ;;  %v1110_v5 = vmul.f32 0.2, %v818_v61 }
 0x141   : > { %vm1078_vm5 = vcmp.gt.f32.partialorder %v946_v62, 0.0  ;;  %v1142_v6 = vmul.f32 0.2, %v946_v62 }
 0x142   : > { %1494 = vst.msk [vmem:[%s2273_s8 + $0x20] sm:$0xf] %vm1485_vm2, %v1820_v3  ;;  %1526 = vst.msk [vmem:[%s2273_s8 + $0xa0] sm:$0xf] %vm1485_vm2, %v1852_v4  ;;  %v1174_v7 = vsel %vm1046_vm4, %v818_v61, %v1110_v5  ;;  %v822_v8 = vpop.f32.mrb[20].mxu0  ;;  %v950_v9 = vpop.f32.mrb[20].mxu1 }
 0x143   : > { %v1821_v10 = vpack.c.bf16 %v1174_v7, %v1174_v7  ;;  %v1206_v11 = vsel %vm1078_vm5, %v946_v62, %v1142_v6  ;;  %v823_v12 = vadd.f32 %v2263_v17, %v822_v8  ;;  %v951_v13 = vadd.f32 %v2263_v17, %v950_v9  ;;  %v824_v14 = vpop.f32.mrb[21].mxu0  ;;  %v952_v15 = vpop.f32.mrb[21].mxu1 }
 0x144   : > { %v1853_v16 = vpack.c.bf16 %v1206_v11, %v1206_v11  ;;  %v825_v18 = vpop.f32.mrb[22].mxu0  ;;  %v953_v19 = vpop.f32.mrb[22].mxu1 }
 0x145   : > { %1495 = vst.msk [vmem:[%s2273_s8 + $0x24] sm:$0xf] %vm1485_vm2, %v1821_v10  ;;  %vm1047_vm6 = vcmp.gt.f32.partialorder %v823_v12, 0.0  ;;  %v1111_v20 = vmul.f32 0.2, %v823_v12  ;;  %vm1079_vm7 = vcmp.gt.f32.partialorder %v951_v13, 0.0  ;;  %v826_v22 = vadd.f32 %v2263_v17, %v825_v18 }
 0x146   : > { %v1143_v21 = vmul.f32 0.2, %v951_v13  ;;  %1527 = vst.msk [vmem:[%s2273_s8 + $0xa4] sm:$0xf] %vm1485_vm2, %v1853_v16  ;;  %v954_v23 = vadd.f32 %v2263_v17, %v953_v19  ;;  %v827_v24 = vpop.f32.mrb[23].mxu0  ;;  %v955_v25 = vpop.f32.mrb[23].mxu1 }
 0x147   : > { %v1175_v26 = vsel %vm1047_vm6, %v823_v12, %v1111_v20  ;;  %vm1048_vm8 = vcmp.gt.f32.partialorder %v826_v22, 0.0  ;;  %v1112_v30 = vmul.f32 0.2, %v826_v22 }
 0x148   : > { %v1207_v27 = vsel %vm1079_vm7, %v951_v13, %v1143_v21  ;;  %v1822_v28 = vpack.c.bf16 %v1175_v26, %v1175_v26  ;;  %vm1080_vm9 = vcmp.gt.f32.partialorder %v954_v23, 0.0  ;;  %v1144_v31 = vmul.f32 0.2, %v954_v23 }
 0x149   : > { %v1854_v29 = vpack.c.bf16 %v1207_v27, %v1207_v27  ;;  %v1176_v32 = vsel %vm1048_vm8, %v826_v22, %v1112_v30 }
 0x14a   : > { %1496 = vst.msk [vmem:[%s2273_s8 + $0x28] sm:$0xf] %vm1485_vm2, %v1822_v28  ;;  %v830_v33 = vpop.f32.mrb[24].mxu0  ;;  %v958_v34 = vpop.f32.mrb[24].mxu1  ;;  %v1823_v35 = vpack.c.bf16 %v1176_v32, %v1176_v32  ;;  %v1208_v36 = vsel %vm1080_vm9, %v954_v23, %v1144_v31 }
 0x14b   : > { %1528 = vst.msk [vmem:[%s2273_s8 + $0xa8] sm:$0xf] %vm1485_vm2, %v1854_v29  ;;  %v831_v37 = vadd.f32 %v2263_v17, %v830_v33  ;;  %v959_v38 = vadd.f32 %v2263_v17, %v958_v34  ;;  %v832_v39 = vpop.f32.mrb[25].mxu0  ;;  %v960_v40 = vpop.f32.mrb[25].mxu1  ;;  %v1855_v41 = vpack.c.bf16 %v1208_v36, %v1208_v36 }
 0x14c   : > { %v833_v42 = vpop.f32.mrb[26].mxu0  ;;  %v961_v43 = vpop.f32.mrb[26].mxu1  ;;  %1497 = vst.msk [vmem:[%s2273_s8 + $0x2c] sm:$0xf] %vm1485_vm2, %v1823_v35 }
 0x14d   : > { %vm1049_vm10 = vcmp.gt.f32.partialorder %v831_v37, 0.0  ;;  %v1113_v44 = vmul.f32 0.2, %v831_v37  ;;  %vm1081_vm11 = vcmp.gt.f32.partialorder %v959_v38, 0.0  ;;  %v1145_v45 = vmul.f32 0.2, %v959_v38 }
 0x14e   : > { %1529 = vst.msk [vmem:[%s2273_s8 + $0xac] sm:$0xf] %vm1485_vm2, %v1855_v41  ;;  %v834_v46 = vadd.f32 %v2263_v17, %v833_v42  ;;  %v962_v47 = vadd.f32 %v2263_v17, %v961_v43  ;;  %v835_v48 = vpop.f32.mrb[27].mxu0  ;;  %v963_v49 = vpop.f32.mrb[27].mxu1 }
 0x14f   : > { %v1177_v50 = vsel %vm1049_vm10, %v831_v37, %v1113_v44  ;;  %v1209_v51 = vsel %vm1081_vm11, %v959_v38, %v1145_v45 }
 0x150   : > { %v1824_v52 = vpack.c.bf16 %v1177_v50, %v1177_v50  ;;  %v1856_v53 = vpack.c.bf16 %v1209_v51, %v1209_v51  ;;  %vm1050_vm12 = vcmp.gt.f32.partialorder %v834_v46, 0.0  ;;  %v1114_v54 = vmul.f32 0.2, %v834_v46 }
 0x151   : > { %vm1082_vm13 = vcmp.gt.f32.partialorder %v962_v47, 0.0  ;;  %v1146_v55 = vmul.f32 0.2, %v962_v47 }
 0x152   : > { %1498 = vst.msk [vmem:[%s2273_s8 + $0x30] sm:$0xf] %vm1485_vm2, %v1824_v52  ;;  %1530 = vst.msk [vmem:[%s2273_s8 + $0xb0] sm:$0xf] %vm1485_vm2, %v1856_v53  ;;  %v1178_v56 = vsel %vm1050_vm12, %v834_v46, %v1114_v54  ;;  %v838_v57 = vpop.f32.mrb[28].mxu0  ;;  %v966_v58 = vpop.f32.mrb[28].mxu1 }
 0x153   : > { %v1825_v59 = vpack.c.bf16 %v1178_v56, %v1178_v56  ;;  %v1210_v60 = vsel %vm1082_vm13, %v962_v47, %v1146_v55  ;;  %v839_v61 = vadd.f32 %v2263_v17, %v838_v57  ;;  %v967_v62 = vadd.f32 %v2263_v17, %v966_v58  ;;  %v840_v63 = vpop.f32.mrb[29].mxu0  ;;  %v968_v0 = vpop.f32.mrb[29].mxu1 }
 0x154   : > { %v1857_v1 = vpack.c.bf16 %v1210_v60, %v1210_v60  ;;  %v841_v2 = vpop.f32.mrb[30].mxu0  ;;  %v969_v3 = vpop.f32.mrb[30].mxu1 }
 0x155   : > { %1499 = vst.msk [vmem:[%s2273_s8 + $0x34] sm:$0xf] %vm1485_vm2, %v1825_v59  ;;  %vm1051_vm14 = vcmp.gt.f32.partialorder %v839_v61, 0.0  ;;  %v1115_v4 = vmul.f32 0.2, %v839_v61  ;;  %vm1083_vm15 = vcmp.gt.f32.partialorder %v967_v62, 0.0  ;;  %v842_v6 = vadd.f32 %v2263_v17, %v841_v2 }
 0x156   : > { %v1147_v5 = vmul.f32 0.2, %v967_v62  ;;  %1531 = vst.msk [vmem:[%s2273_s8 + $0xb4] sm:$0xf] %vm1485_vm2, %v1857_v1  ;;  %v970_v7 = vadd.f32 %v2263_v17, %v969_v3  ;;  %v843_v8 = vpop.f32.mrb[31].mxu0  ;;  %v971_v9 = vpop.f32.mrb[31].mxu1 }
 0x157   : > { %v1179_v10 = vsel %vm1051_vm14, %v839_v61, %v1115_v4  ;;  %vm1052_vm0 = vcmp.gt.f32.partialorder %v842_v6, 0.0  ;;  %v1116_v14 = vmul.f32 0.2, %v842_v6 }
 0x158   : > { %v1211_v11 = vsel %vm1083_vm15, %v967_v62, %v1147_v5  ;;  %v1826_v12 = vpack.c.bf16 %v1179_v10, %v1179_v10  ;;  %vm1084_vm1 = vcmp.gt.f32.partialorder %v970_v7, 0.0  ;;  %v1148_v15 = vmul.f32 0.2, %v970_v7 }
 0x159   : > { %v1858_v13 = vpack.c.bf16 %v1211_v11, %v1211_v11  ;;  %v1180_v16 = vsel %vm1052_vm0, %v842_v6, %v1116_v14 }
 0x15a   : > { %1500 = vst.msk [vmem:[%s2273_s8 + $0x38] sm:$0xf] %vm1485_vm2, %v1826_v12  ;;  %v846_v18 = vpop.f32.mrb[32].mxu0  ;;  %v974_v19 = vpop.f32.mrb[32].mxu1  ;;  %v1827_v20 = vpack.c.bf16 %v1180_v16, %v1180_v16  ;;  %v1212_v21 = vsel %vm1084_vm1, %v970_v7, %v1148_v15 }
 0x15b   : > { %1532 = vst.msk [vmem:[%s2273_s8 + $0xb8] sm:$0xf] %vm1485_vm2, %v1858_v13  ;;  %v847_v22 = vadd.f32 %v2263_v17, %v846_v18  ;;  %v975_v23 = vadd.f32 %v2263_v17, %v974_v19  ;;  %v848_v24 = vpop.f32.mrb[33].mxu0  ;;  %v976_v25 = vpop.f32.mrb[33].mxu1  ;;  %v1859_v26 = vpack.c.bf16 %v1212_v21, %v1212_v21 }
 0x15c   : > { %v849_v27 = vpop.f32.mrb[34].mxu0  ;;  %v977_v28 = vpop.f32.mrb[34].mxu1  ;;  %1501 = vst.msk [vmem:[%s2273_s8 + $0x3c] sm:$0xf] %vm1485_vm2, %v1827_v20 }
 0x15d   : > { %vm1053_vm3 = vcmp.gt.f32.partialorder %v847_v22, 0.0  ;;  %v1117_v29 = vmul.f32 0.2, %v847_v22  ;;  %vm1085_vm4 = vcmp.gt.f32.partialorder %v975_v23, 0.0  ;;  %v1149_v30 = vmul.f32 0.2, %v975_v23 }
 0x15e   : > { %1533 = vst.msk [vmem:[%s2273_s8 + $0xbc] sm:$0xf] %vm1485_vm2, %v1859_v26  ;;  %v850_v31 = vadd.f32 %v2263_v17, %v849_v27  ;;  %v978_v32 = vadd.f32 %v2263_v17, %v977_v28  ;;  %v851_v33 = vpop.f32.mrb[35].mxu0  ;;  %v979_v34 = vpop.f32.mrb[35].mxu1 }
 0x15f   : > { %v1181_v35 = vsel %vm1053_vm3, %v847_v22, %v1117_v29  ;;  %v1213_v36 = vsel %vm1085_vm4, %v975_v23, %v1149_v30 }
 0x160   : > { %v1828_v37 = vpack.c.bf16 %v1181_v35, %v1181_v35  ;;  %v1860_v38 = vpack.c.bf16 %v1213_v36, %v1213_v36  ;;  %vm1054_vm5 = vcmp.gt.f32.partialorder %v850_v31, 0.0  ;;  %v1118_v39 = vmul.f32 0.2, %v850_v31 }
 0x161   : > { %vm1086_vm6 = vcmp.gt.f32.partialorder %v978_v32, 0.0  ;;  %v1150_v40 = vmul.f32 0.2, %v978_v32 }
 0x162   : > { %1502 = vst.msk [vmem:[%s2273_s8 + $0x40] sm:$0xf] %vm1485_vm2, %v1828_v37  ;;  %1534 = vst.msk [vmem:[%s2273_s8 + $0xc0] sm:$0xf] %vm1485_vm2, %v1860_v38  ;;  %v1182_v41 = vsel %vm1054_vm5, %v850_v31, %v1118_v39  ;;  %v854_v42 = vpop.f32.mrb[36].mxu0  ;;  %v982_v43 = vpop.f32.mrb[36].mxu1 }
 0x163   : > { %v1829_v44 = vpack.c.bf16 %v1182_v41, %v1182_v41  ;;  %v1214_v45 = vsel %vm1086_vm6, %v978_v32, %v1150_v40  ;;  %v855_v46 = vadd.f32 %v2263_v17, %v854_v42  ;;  %v983_v47 = vadd.f32 %v2263_v17, %v982_v43  ;;  %v856_v48 = vpop.f32.mrb[37].mxu0  ;;  %v984_v49 = vpop.f32.mrb[37].mxu1 }
 0x164   : > { %v1861_v50 = vpack.c.bf16 %v1214_v45, %v1214_v45  ;;  %v857_v51 = vpop.f32.mrb[38].mxu0  ;;  %v985_v52 = vpop.f32.mrb[38].mxu1 }
 0x165   : > { %1503 = vst.msk [vmem:[%s2273_s8 + $0x44] sm:$0xf] %vm1485_vm2, %v1829_v44  ;;  %vm1055_vm7 = vcmp.gt.f32.partialorder %v855_v46, 0.0  ;;  %v1119_v53 = vmul.f32 0.2, %v855_v46  ;;  %vm1087_vm8 = vcmp.gt.f32.partialorder %v983_v47, 0.0  ;;  %v858_v55 = vadd.f32 %v2263_v17, %v857_v51 }
 0x166   : > { %v1151_v54 = vmul.f32 0.2, %v983_v47  ;;  %1535 = vst.msk [vmem:[%s2273_s8 + $0xc4] sm:$0xf] %vm1485_vm2, %v1861_v50  ;;  %v986_v56 = vadd.f32 %v2263_v17, %v985_v52  ;;  %v859_v57 = vpop.f32.mrb[39].mxu0  ;;  %v987_v58 = vpop.f32.mrb[39].mxu1 }
 0x167   : > { %v1183_v59 = vsel %vm1055_vm7, %v855_v46, %v1119_v53  ;;  %vm1056_vm9 = vcmp.gt.f32.partialorder %v858_v55, 0.0  ;;  %v1120_v63 = vmul.f32 0.2, %v858_v55 }
 0x168   : > { %v1215_v60 = vsel %vm1087_vm8, %v983_v47, %v1151_v54  ;;  %v1830_v61 = vpack.c.bf16 %v1183_v59, %v1183_v59  ;;  %vm1088_vm10 = vcmp.gt.f32.partialorder %v986_v56, 0.0  ;;  %v1152_v0 = vmul.f32 0.2, %v986_v56 }
 0x169   : > { %v1862_v62 = vpack.c.bf16 %v1215_v60, %v1215_v60  ;;  %v1184_v1 = vsel %vm1056_vm9, %v858_v55, %v1120_v63 }
 0x16a   : > { %1504 = vst.msk [vmem:[%s2273_s8 + $0x48] sm:$0xf] %vm1485_vm2, %v1830_v61  ;;  %v862_v2 = vpop.f32.mrb[40].mxu0  ;;  %v990_v3 = vpop.f32.mrb[40].mxu1  ;;  %v1831_v4 = vpack.c.bf16 %v1184_v1, %v1184_v1  ;;  %v1216_v5 = vsel %vm1088_vm10, %v986_v56, %v1152_v0 }
 0x16b   : > { %1536 = vst.msk [vmem:[%s2273_s8 + $0xc8] sm:$0xf] %vm1485_vm2, %v1862_v62  ;;  %v863_v6 = vadd.f32 %v2263_v17, %v862_v2  ;;  %v991_v7 = vadd.f32 %v2263_v17, %v990_v3  ;;  %v864_v8 = vpop.f32.mrb[41].mxu0  ;;  %v992_v9 = vpop.f32.mrb[41].mxu1  ;;  %v1863_v10 = vpack.c.bf16 %v1216_v5, %v1216_v5 }
 0x16c   : > { %v865_v11 = vpop.f32.mrb[42].mxu0  ;;  %v993_v12 = vpop.f32.mrb[42].mxu1  ;;  %1505 = vst.msk [vmem:[%s2273_s8 + $0x4c] sm:$0xf] %vm1485_vm2, %v1831_v4 }
 0x16d   : > { %vm1057_vm11 = vcmp.gt.f32.partialorder %v863_v6, 0.0  ;;  %v1121_v13 = vmul.f32 0.2, %v863_v6  ;;  %vm1089_vm12 = vcmp.gt.f32.partialorder %v991_v7, 0.0  ;;  %v1153_v14 = vmul.f32 0.2, %v991_v7 }
 0x16e   : > { %1537 = vst.msk [vmem:[%s2273_s8 + $0xcc] sm:$0xf] %vm1485_vm2, %v1863_v10  ;;  %v866_v15 = vadd.f32 %v2263_v17, %v865_v11  ;;  %v994_v16 = vadd.f32 %v2263_v17, %v993_v12  ;;  %v867_v18 = vpop.f32.mrb[43].mxu0  ;;  %v995_v19 = vpop.f32.mrb[43].mxu1 }
 0x16f   : > { %v1185_v20 = vsel %vm1057_vm11, %v863_v6, %v1121_v13  ;;  %v1217_v21 = vsel %vm1089_vm12, %v991_v7, %v1153_v14 }
 0x170   : > { %v1832_v22 = vpack.c.bf16 %v1185_v20, %v1185_v20  ;;  %v1864_v23 = vpack.c.bf16 %v1217_v21, %v1217_v21  ;;  %vm1058_vm13 = vcmp.gt.f32.partialorder %v866_v15, 0.0  ;;  %v1122_v24 = vmul.f32 0.2, %v866_v15 }
 0x171   : > { %vm1090_vm14 = vcmp.gt.f32.partialorder %v994_v16, 0.0  ;;  %v1154_v25 = vmul.f32 0.2, %v994_v16 }
 0x172   : > { %1506 = vst.msk [vmem:[%s2273_s8 + $0x50] sm:$0xf] %vm1485_vm2, %v1832_v22  ;;  %1538 = vst.msk [vmem:[%s2273_s8 + $0xd0] sm:$0xf] %vm1485_vm2, %v1864_v23  ;;  %v1186_v26 = vsel %vm1058_vm13, %v866_v15, %v1122_v24  ;;  %v870_v27 = vpop.f32.mrb[44].mxu0  ;;  %v998_v28 = vpop.f32.mrb[44].mxu1 }
 0x173   : > { %v1833_v29 = vpack.c.bf16 %v1186_v26, %v1186_v26  ;;  %v1218_v30 = vsel %vm1090_vm14, %v994_v16, %v1154_v25  ;;  %v871_v31 = vadd.f32 %v2263_v17, %v870_v27  ;;  %v999_v32 = vadd.f32 %v2263_v17, %v998_v28  ;;  %v872_v33 = vpop.f32.mrb[45].mxu0  ;;  %v1000_v34 = vpop.f32.mrb[45].mxu1 }
 0x174   : > { %v1865_v35 = vpack.c.bf16 %v1218_v30, %v1218_v30  ;;  %v873_v36 = vpop.f32.mrb[46].mxu0  ;;  %v1001_v37 = vpop.f32.mrb[46].mxu1 }
 0x175   : > { %1507 = vst.msk [vmem:[%s2273_s8 + $0x54] sm:$0xf] %vm1485_vm2, %v1833_v29  ;;  %vm1059_vm15 = vcmp.gt.f32.partialorder %v871_v31, 0.0  ;;  %v1123_v38 = vmul.f32 0.2, %v871_v31  ;;  %vm1091_vm0 = vcmp.gt.f32.partialorder %v999_v32, 0.0  ;;  %v874_v40 = vadd.f32 %v2263_v17, %v873_v36 }
 0x176   : > { %v1155_v39 = vmul.f32 0.2, %v999_v32  ;;  %1539 = vst.msk [vmem:[%s2273_s8 + $0xd4] sm:$0xf] %vm1485_vm2, %v1865_v35  ;;  %v1002_v41 = vadd.f32 %v2263_v17, %v1001_v37  ;;  %v875_v42 = vpop.f32.mrb[47].mxu0  ;;  %v1003_v43 = vpop.f32.mrb[47].mxu1 }
 0x177   : > { %v1187_v44 = vsel %vm1059_vm15, %v871_v31, %v1123_v38  ;;  %vm1060_vm1 = vcmp.gt.f32.partialorder %v874_v40, 0.0  ;;  %v1124_v48 = vmul.f32 0.2, %v874_v40 }
 0x178   : > { %v1219_v45 = vsel %vm1091_vm0, %v999_v32, %v1155_v39  ;;  %v1834_v46 = vpack.c.bf16 %v1187_v44, %v1187_v44  ;;  %vm1092_vm3 = vcmp.gt.f32.partialorder %v1002_v41, 0.0  ;;  %v1156_v49 = vmul.f32 0.2, %v1002_v41 }
 0x179   : > { %v1866_v47 = vpack.c.bf16 %v1219_v45, %v1219_v45  ;;  %v1188_v50 = vsel %vm1060_vm1, %v874_v40, %v1124_v48 }
 0x17a   : > { %1508 = vst.msk [vmem:[%s2273_s8 + $0x58] sm:$0xf] %vm1485_vm2, %v1834_v46  ;;  %v878_v51 = vpop.f32.mrb[48].mxu0  ;;  %v1006_v52 = vpop.f32.mrb[48].mxu1  ;;  %v1835_v53 = vpack.c.bf16 %v1188_v50, %v1188_v50  ;;  %v1220_v54 = vsel %vm1092_vm3, %v1002_v41, %v1156_v49 }
 0x17b   : > { %1540 = vst.msk [vmem:[%s2273_s8 + $0xd8] sm:$0xf] %vm1485_vm2, %v1866_v47  ;;  %v879_v55 = vadd.f32 %v2263_v17, %v878_v51  ;;  %v1007_v56 = vadd.f32 %v2263_v17, %v1006_v52  ;;  %v880_v57 = vpop.f32.mrb[49].mxu0  ;;  %v1008_v58 = vpop.f32.mrb[49].mxu1  ;;  %v1867_v59 = vpack.c.bf16 %v1220_v54, %v1220_v54 }
 0x17c   : > { %v881_v60 = vpop.f32.mrb[50].mxu0  ;;  %v1009_v61 = vpop.f32.mrb[50].mxu1  ;;  %1509 = vst.msk [vmem:[%s2273_s8 + $0x5c] sm:$0xf] %vm1485_vm2, %v1835_v53 }
 0x17d   : > { %vm1061_vm4 = vcmp.gt.f32.partialorder %v879_v55, 0.0  ;;  %v1125_v62 = vmul.f32 0.2, %v879_v55  ;;  %vm1093_vm5 = vcmp.gt.f32.partialorder %v1007_v56, 0.0  ;;  %v1157_v63 = vmul.f32 0.2, %v1007_v56 }
 0x17e   : > { %1541 = vst.msk [vmem:[%s2273_s8 + $0xdc] sm:$0xf] %vm1485_vm2, %v1867_v59  ;;  %v882_v0 = vadd.f32 %v2263_v17, %v881_v60  ;;  %v1010_v1 = vadd.f32 %v2263_v17, %v1009_v61  ;;  %v883_v2 = vpop.f32.mrb[51].mxu0  ;;  %v1011_v3 = vpop.f32.mrb[51].mxu1 }
 0x17f   : > { %v1189_v4 = vsel %vm1061_vm4, %v879_v55, %v1125_v62  ;;  %v1221_v5 = vsel %vm1093_vm5, %v1007_v56, %v1157_v63 }
 0x180   : > { %v1836_v6 = vpack.c.bf16 %v1189_v4, %v1189_v4  ;;  %v1868_v7 = vpack.c.bf16 %v1221_v5, %v1221_v5  ;;  %vm1062_vm6 = vcmp.gt.f32.partialorder %v882_v0, 0.0  ;;  %v1126_v8 = vmul.f32 0.2, %v882_v0 }
 0x181   : > { %vm1094_vm7 = vcmp.gt.f32.partialorder %v1010_v1, 0.0  ;;  %v1158_v9 = vmul.f32 0.2, %v1010_v1 }
 0x182   : > { %1510 = vst.msk [vmem:[%s2273_s8 + $0x60] sm:$0xf] %vm1485_vm2, %v1836_v6  ;;  %1542 = vst.msk [vmem:[%s2273_s8 + $0xe0] sm:$0xf] %vm1485_vm2, %v1868_v7  ;;  %v1190_v10 = vsel %vm1062_vm6, %v882_v0, %v1126_v8  ;;  %v886_v11 = vpop.f32.mrb[52].mxu0  ;;  %v1014_v12 = vpop.f32.mrb[52].mxu1 }
 0x183   : > { %v1837_v13 = vpack.c.bf16 %v1190_v10, %v1190_v10  ;;  %v1222_v14 = vsel %vm1094_vm7, %v1010_v1, %v1158_v9  ;;  %v887_v15 = vadd.f32 %v2263_v17, %v886_v11  ;;  %v1015_v16 = vadd.f32 %v2263_v17, %v1014_v12  ;;  %v888_v18 = vpop.f32.mrb[53].mxu0  ;;  %v1016_v19 = vpop.f32.mrb[53].mxu1 }
 0x184   : > { %v1869_v20 = vpack.c.bf16 %v1222_v14, %v1222_v14  ;;  %v889_v21 = vpop.f32.mrb[54].mxu0  ;;  %v1017_v22 = vpop.f32.mrb[54].mxu1 }
 0x185   : > { %1511 = vst.msk [vmem:[%s2273_s8 + $0x64] sm:$0xf] %vm1485_vm2, %v1837_v13  ;;  %vm1063_vm8 = vcmp.gt.f32.partialorder %v887_v15, 0.0  ;;  %v1127_v23 = vmul.f32 0.2, %v887_v15  ;;  %vm1095_vm9 = vcmp.gt.f32.partialorder %v1015_v16, 0.0  ;;  %v890_v25 = vadd.f32 %v2263_v17, %v889_v21 }
 0x186   : > { %v1159_v24 = vmul.f32 0.2, %v1015_v16  ;;  %1543 = vst.msk [vmem:[%s2273_s8 + $0xe4] sm:$0xf] %vm1485_vm2, %v1869_v20  ;;  %v1018_v26 = vadd.f32 %v2263_v17, %v1017_v22  ;;  %v891_v27 = vpop.f32.mrb[55].mxu0  ;;  %v1019_v28 = vpop.f32.mrb[55].mxu1 }
 0x187   : > { %v1191_v29 = vsel %vm1063_vm8, %v887_v15, %v1127_v23  ;;  %vm1064_vm10 = vcmp.gt.f32.partialorder %v890_v25, 0.0  ;;  %v1128_v33 = vmul.f32 0.2, %v890_v25 }
 0x188   : > { %v1223_v30 = vsel %vm1095_vm9, %v1015_v16, %v1159_v24  ;;  %v1838_v31 = vpack.c.bf16 %v1191_v29, %v1191_v29  ;;  %vm1096_vm11 = vcmp.gt.f32.partialorder %v1018_v26, 0.0  ;;  %v1160_v34 = vmul.f32 0.2, %v1018_v26 }
 0x189   : > { %v1870_v32 = vpack.c.bf16 %v1223_v30, %v1223_v30  ;;  %v1192_v35 = vsel %vm1064_vm10, %v890_v25, %v1128_v33 }
 0x18a   : > { %1512 = vst.msk [vmem:[%s2273_s8 + $0x68] sm:$0xf] %vm1485_vm2, %v1838_v31  ;;  %v894_v36 = vpop.f32.mrb[56].mxu0  ;;  %v1022_v37 = vpop.f32.mrb[56].mxu1  ;;  %v1839_v38 = vpack.c.bf16 %v1192_v35, %v1192_v35  ;;  %v1224_v39 = vsel %vm1096_vm11, %v1018_v26, %v1160_v34 }
 0x18b   : > { %1544 = vst.msk [vmem:[%s2273_s8 + $0xe8] sm:$0xf] %vm1485_vm2, %v1870_v32  ;;  %v895_v40 = vadd.f32 %v2263_v17, %v894_v36  ;;  %v1023_v41 = vadd.f32 %v2263_v17, %v1022_v37  ;;  %v896_v42 = vpop.f32.mrb[57].mxu0  ;;  %v1024_v43 = vpop.f32.mrb[57].mxu1  ;;  %v1871_v44 = vpack.c.bf16 %v1224_v39, %v1224_v39 }
 0x18c   : > { %v897_v45 = vpop.f32.mrb[58].mxu0  ;;  %v1025_v46 = vpop.f32.mrb[58].mxu1  ;;  %1513 = vst.msk [vmem:[%s2273_s8 + $0x6c] sm:$0xf] %vm1485_vm2, %v1839_v38 }
 0x18d   : > { %vm1065_vm12 = vcmp.gt.f32.partialorder %v895_v40, 0.0  ;;  %v1129_v47 = vmul.f32 0.2, %v895_v40  ;;  %vm1097_vm13 = vcmp.gt.f32.partialorder %v1023_v41, 0.0  ;;  %v1161_v48 = vmul.f32 0.2, %v1023_v41 }
 0x18e   : > { %1545 = vst.msk [vmem:[%s2273_s8 + $0xec] sm:$0xf] %vm1485_vm2, %v1871_v44  ;;  %v898_v49 = vadd.f32 %v2263_v17, %v897_v45  ;;  %v1026_v50 = vadd.f32 %v2263_v17, %v1025_v46  ;;  %v899_v51 = vpop.f32.mrb[59].mxu0  ;;  %v1027_v52 = vpop.f32.mrb[59].mxu1 }
 0x18f   : > { %v1193_v53 = vsel %vm1065_vm12, %v895_v40, %v1129_v47  ;;  %v1225_v54 = vsel %vm1097_vm13, %v1023_v41, %v1161_v48 }
 0x190   : > { %v1840_v55 = vpack.c.bf16 %v1193_v53, %v1193_v53  ;;  %v1872_v56 = vpack.c.bf16 %v1225_v54, %v1225_v54  ;;  %vm1066_vm14 = vcmp.gt.f32.partialorder %v898_v49, 0.0  ;;  %v1130_v57 = vmul.f32 0.2, %v898_v49 }
 0x191   : > { %vm1098_vm15 = vcmp.gt.f32.partialorder %v1026_v50, 0.0  ;;  %v1162_v58 = vmul.f32 0.2, %v1026_v50 }
 0x192   : > { %1514 = vst.msk [vmem:[%s2273_s8 + $0x70] sm:$0xf] %vm1485_vm2, %v1840_v55  ;;  %1546 = vst.msk [vmem:[%s2273_s8 + $0xf0] sm:$0xf] %vm1485_vm2, %v1872_v56  ;;  %v1194_v59 = vsel %vm1066_vm14, %v898_v49, %v1130_v57  ;;  %v902_v60 = vpop.f32.mrb[60].mxu0  ;;  %v1030_v61 = vpop.f32.mrb[60].mxu1 }
 0x193   : > { %v1841_v62 = vpack.c.bf16 %v1194_v59, %v1194_v59  ;;  %v1226_v63 = vsel %vm1098_vm15, %v1026_v50, %v1162_v58  ;;  %v903_v0 = vadd.f32 %v2263_v17, %v902_v60  ;;  %v1031_v1 = vadd.f32 %v2263_v17, %v1030_v61  ;;  %v904_v2 = vpop.f32.mrb[61].mxu0  ;;  %v1032_v3 = vpop.f32.mrb[61].mxu1 }
 0x194   : > { %v1873_v4 = vpack.c.bf16 %v1226_v63, %v1226_v63  ;;  %v905_v5 = vpop.f32.mrb[62].mxu0  ;;  %v1033_v6 = vpop.f32.mrb[62].mxu1 }
 0x195   : > { %1515 = vst.msk [vmem:[%s2273_s8 + $0x74] sm:$0xf] %vm1485_vm2, %v1841_v62  ;;  %vm1067_vm0 = vcmp.gt.f32.partialorder %v903_v0, 0.0  ;;  %v1131_v7 = vmul.f32 0.2, %v903_v0  ;;  %vm1099_vm1 = vcmp.gt.f32.partialorder %v1031_v1, 0.0  ;;  %v906_v9 = vadd.f32 %v2263_v17, %v905_v5 }
 0x196   : > { %v1163_v8 = vmul.f32 0.2, %v1031_v1  ;;  %1547 = vst.msk [vmem:[%s2273_s8 + $0xf4] sm:$0xf] %vm1485_vm2, %v1873_v4  ;;  %v1034_v10 = vadd.f32 %v2263_v17, %v1033_v6  ;;  %v907_v11 = vpop.f32.mrb[63].mxu0  ;;  %v1035_v12 = vpop.f32.mrb[63].mxu1 }
 0x197   : > { %v1195_v13 = vsel %vm1067_vm0, %v903_v0, %v1131_v7  ;;  %vm1068_vm3 = vcmp.gt.f32.partialorder %v906_v9, 0.0  ;;  %v1132_v18 = vmul.f32 0.2, %v906_v9 }
 0x198   : > { %v1227_v14 = vsel %vm1099_vm1, %v1031_v1, %v1163_v8  ;;  %v1842_v15 = vpack.c.bf16 %v1195_v13, %v1195_v13  ;;  %vm1100_vm4 = vcmp.gt.f32.partialorder %v1034_v10, 0.0  ;;  %v1164_v19 = vmul.f32 0.2, %v1034_v10 }
 0x199   : > { %v1874_v16 = vpack.c.bf16 %v1227_v14, %v1227_v14  ;;  %v1196_v20 = vsel %vm1068_vm3, %v906_v9, %v1132_v18 }
 0x19a   : > { %1516 = vst.msk [vmem:[%s2273_s8 + $0x78] sm:$0xf] %vm1485_vm2, %v1842_v15  ;;  %v1843_v21 = vpack.c.bf16 %v1196_v20, %v1196_v20  ;;  %v1228_v22 = vsel %vm1100_vm4, %v1034_v10, %v1164_v19 }
 0x19b   : > { %1548 = vst.msk [vmem:[%s2273_s8 + $0xf8] sm:$0xf] %vm1485_vm2, %v1874_v16  ;;  %v1875_v17 = vpack.c.bf16 %v1228_v22, %v1228_v22 }
 0x19c   : > { %1517 = vst.msk [vmem:[%s2273_s8 + $0x7c] sm:$0xf] %vm1485_vm2, %v1843_v21 }
 0x19d   : > { %1549 = vst.msk [vmem:[%s2273_s8 + $0xfc] sm:$0xf] %vm1485_vm2, %v1875_v17 }
 0x19e PF: > { %s13_s14 = sadd.s32 1, %s2067_s14   ;;  %s2476_s12 = smov %s2063_s13 }
 0x19f   : > { %p10_p5 = scmp.ge.s32.totalorder %s13_s14, 4   ;;  %s2477_s13 = smov %s2479_s15 }
 0x1a1   :  { %12 = sbr.rel (!%p10_p5) target bundleno = 2 (0x2), region = 68 }

// kernel: voxel_processing.17
= control target key start
LH: loop header
LB: loop body
LE: loop exit
PB: predicated region body
PF: predicated region fallthrough
CT: control target
= control target key end

     0   :  { %s5038_s12 = smov 0   ;;  %s5040_s13 = smov 0   ;;  %s5812_s0 = inlined_call_operand.vmem [shape: bf16[1024,1024], index: 0, kind: input, shape index: {}]   ;;  %s5813_s1 = inlined_call_operand.vmem [shape: bf16[1024,16], index: 1, kind: input, shape index: {}]   ;;  %s5814_s2 = inlined_call_operand.vmem [shape: f32[1,16], index: 2, kind: input, shape index: {}]   ;;  %s5815_s3 = inlined_call_operand.vmem [shape: bf16[1024,16], index: 3, kind: output, shape index: {}]  }
   0x1   :  { %s5042_s14 = smov 0  }
   0x2 LB: > { %s25_s15 = sadd.s32 1, %s5011_s13  ;;  %p4061_p0 = scmp.ge.s32.totalorder %s5015_s14, 1  ;;  %s5015_s14 = sphi %s5042_s14, %s13_s14   ;;  %s5011_s13 = sphi %s5040_s13, %s5817_s13   ;;  %s5007_s12 = sphi %s5038_s12, %s5816_s12  }
   0x3   : > { %p27_p1 = scmp.ge.s32.totalorder %s25_s15, 2  ;;  %p170_p2 = scmp.lt.s32.totalorder %s5015_s14, 3 }
   0x5   : > { %s5819_s15 = smov (%p27_p1, %s25_s15), 0  ;;  %p171_p3 = pnand %p4061_p0, %p170_p2 }
   0x6   : > { %v4928_v0 = vld [vmem:[%s5813_s1] sm:$0xff] (!%p171_p3)   ;;  %v5017_v1 = vmov (!%p171_p3), 0   ;;  %v4930_v3 = vld [vmem:[%s5813_s1 + $0x8] sm:$0xff] (!%p171_p3)   ;;  %v4932_v5 = vld [vmem:[%s5813_s1 + $0x10] sm:$0xff] (!%p171_p3)   ;;  %s4062_s9 = sshll.u32 (!%p171_p3), %s5007_s12, 6  ;;  %vm3888_vm1 = vcmask (!%p171_p3), 125952  }
   0x7   : > { %174 = sbr.rel (%p171_p3) target bundleno = 799 (0x31f), region = 32  ;;  %2284 = vmatprep.subr.bf16.mxu1 (!%p171_p3), %v5017_v1  ;;  %2862 = vmatprep.subr.bf16.mxu0 (!%p171_p3), %v5017_v1  ;;  %v4929_v2 = vld [vmem:[%s5813_s1 + $0x100] sm:$0xff] (!%p171_p3)   ;;  %v4931_v4 = vld [vmem:[%s5813_s1 + $0x108] sm:$0xff] (!%p171_p3)   ;;  %v4933_v6 = vld [vmem:[%s5813_s1 + $0x110] sm:$0xff] (!%p171_p3)   ;;  %p206_p4 = scmp.lt.s32.totalorder (!%p171_p3), %s4062_s9, 127 }
   0x8   : > { %2285 = vmatpush1.bf16.msra.mxu1 (!%p171_p3), %v4928_v0  ;;  %2863 = vmatpush1.bf16.msra.mxu0 (!%p171_p3), %v4929_v2  ;;  %v4934_v7 = vld [vmem:[%s5813_s1 + $0x18] sm:$0xff] (!%p171_p3)   ;;  %v4936_v9 = vld [vmem:[%s5813_s1 + $0x20] sm:$0xff] (!%p171_p3)   ;;  %v4938_v11 = vld [vmem:[%s5813_s1 + $0x28] sm:$0xff] (!%p171_p3)  }
   0x9   : > { %2286 = vmatprep.subr.bf16.mxu1 (!%p171_p3), %v5017_v1  ;;  %2864 = vmatprep.subr.bf16.mxu0 (!%p171_p3), %v5017_v1  ;;  %v4935_v8 = vld [vmem:[%s5813_s1 + $0x118] sm:$0xff] (!%p171_p3)   ;;  %v4937_v10 = vld [vmem:[%s5813_s1 + $0x120] sm:$0xff] (!%p171_p3)   ;;  %v4939_v12 = vld [vmem:[%s5813_s1 + $0x128] sm:$0xff] (!%p171_p3)  }
   0xa   : > { %v4940_v13 = vld [vmem:[%s5813_s1 + $0x30] sm:$0xff] (!%p171_p3)   ;;  %v4942_v15 = vld [vmem:[%s5813_s1 + $0x38] sm:$0xff] (!%p171_p3)   ;;  %v4944_v17 = vld [vmem:[%s5813_s1 + $0x40] sm:$0xff] (!%p171_p3)  }
   0xb   : > { %v4941_v14 = vld [vmem:[%s5813_s1 + $0x130] sm:$0xff] (!%p171_p3)   ;;  %v4943_v16 = vld [vmem:[%s5813_s1 + $0x138] sm:$0xff] (!%p171_p3)   ;;  %v4945_v18 = vld [vmem:[%s5813_s1 + $0x140] sm:$0xff] (!%p171_p3)  }
   0xc   : > { %2287 = vmatpush1.bf16.msra.mxu1 (!%p171_p3), %v4930_v3  ;;  %2865 = vmatpush1.bf16.msra.mxu0 (!%p171_p3), %v4931_v4  ;;  %v4946_v24 = vld [vmem:[%s5813_s1 + $0x48] sm:$0xff] (!%p171_p3)   ;;  %v4948_v27 = vld [vmem:[%s5813_s1 + $0x50] sm:$0xff] (!%p171_p3)   ;;  %v4950_v29 = vld [vmem:[%s5813_s1 + $0x58] sm:$0xff] (!%p171_p3)  }
   0xd   : > { %2288 = vmatprep.subr.bf16.mxu1 (!%p171_p3), %v5017_v1  ;;  %2866 = vmatprep.subr.bf16.mxu0 (!%p171_p3), %v5017_v1  ;;  %v4947_v26 = vld [vmem:[%s5813_s1 + $0x148] sm:$0xff] (!%p171_p3)   ;;  %v4949_v28 = vld [vmem:[%s5813_s1 + $0x150] sm:$0xff] (!%p171_p3)   ;;  %v4951_v30 = vld [vmem:[%s5813_s1 + $0x158] sm:$0xff] (!%p171_p3)  }
   0xe   : > { %s5821_s9 = smov (!%p206_p4, %s4062_s9), 127  ;;  %v4952_v31 = vld [vmem:[%s5813_s1 + $0x60] sm:$0xff]   ;;  %v4954_v33 = vld [vmem:[%s5813_s1 + $0x68] sm:$0xff]   ;;  %v4956_v35 = vld [vmem:[%s5813_s1 + $0x70] sm:$0xff]  }
   0xf   : > { %s4454_s23 = sshll.u32 %s5821_s9, 5  ;;  %v4953_v32 = vld [vmem:[%s5813_s1 + $0x160] sm:$0xff]   ;;  %v4955_v34 = vld [vmem:[%s5813_s1 + $0x168] sm:$0xff]   ;;  %v4957_v36 = vld [vmem:[%s5813_s1 + $0x170] sm:$0xff]   ;;  %s4066_s17 = sshll.u32 %s5821_s9, 2 }
  0x10   : > { %2289 = vmatpush1.bf16.msra.mxu1 %v4932_v5  ;;  %2867 = vmatpush1.bf16.msra.mxu0 %v4933_v6  ;;  %s5129_s28 = scalar_lea.vmem %s5812_s0, %s4454_s23  ;;  %v4958_v37 = vld [vmem:[%s5813_s1 + $0x78] sm:$0xff]   ;;  %v4960_v45 = vld [vmem:[%s5813_s1 + $0x80] sm:$0xff]   ;;  %v4962_v51 = vld [vmem:[%s5813_s1 + $0x88] sm:$0xff]   ;;  %s5594_s19 = scalar_lea.vmem %s5815_s3, %s4066_s17 }
  0x11   : > { %2290 = vmatprep.subr.bf16.mxu1 %v5017_v1  ;;  %2868 = vmatprep.subr.bf16.mxu0 %v5017_v1  ;;  %v5140_v19 = vld [vmem:[%s5129_s28] sm:$0xff]  ;;  %v5146_v21 = vld [vmem:[%s5129_s28 + $0x10] sm:$0xff]  ;;  %v4959_v38 = vld [vmem:[%s5813_s1 + $0x178] sm:$0xff]  }
  0x12   : > { %v5143_v20 = vld [vmem:[%s5129_s28 + $0x20] sm:$0xff]  ;;  %v5151_v23 = vld [vmem:[%s5129_s28 + $0x30] sm:$0xff]  ;;  %v4963_v52 = vld [vmem:[%s5813_s1 + $0x188] sm:$0xff]  }
  0x13   : > { %v4069_v22 = vcombine.high %v5140_v19, %v5143_v20  ;;  %v4073_v25 = vcombine.high %v5146_v21, %v5151_v23  ;;  %v237_v39 = vld [vmem:[%s5129_s28 + $0x40] sm:$0xff]  ;;  %v239_v41 = vld [vmem:[%s5129_s28 + $0x50] sm:$0xff]  ;;  %v4068_v42 = vcombine.low %v5140_v19, %v5143_v20  ;;  %v4072_v44 = vcombine.low %v5146_v21, %v5151_v23  ;;  %v4966_v2 = vld [vmem:[%s5813_s1 + $0x98] sm:$0xff]  }
  0x14   : > { %2291 = vmatpush1.bf16.msra.mxu1 %v4934_v7  ;;  %2869 = vmatpush1.bf16.msra.mxu0 %v4935_v8  ;;  %v241_v40 = vld [vmem:[%s5129_s28 + $0x60] sm:$0xff]  ;;  %v243_v43 = vld [vmem:[%s5129_s28 + $0x70] sm:$0xff]  ;;  %v4967_v3 = vld [vmem:[%s5813_s1 + $0x198] sm:$0xff]  }
  0x15   : > { %2292 = vmatprep.subr.bf16.mxu1 %v5017_v1  ;;  %2870 = vmatprep.subr.bf16.mxu0 %v5017_v1  ;;  %v4961_v46 = vld [vmem:[%s5813_s1 + $0x180] sm:$0xff]   ;;  %v4077_v47 = vcombine.high %v237_v39, %v241_v40  ;;  %v4081_v48 = vcombine.high %v239_v41, %v243_v43  ;;  %v247_v53 = vld [vmem:[%s5129_s28 + $0x90] sm:$0xff]  ;;  %v4076_v55 = vcombine.low %v237_v39, %v241_v40  ;;  %v4979_v39 = vld [vmem:[%s5813_s1 + $0x1c8] sm:$0xff]  }
  0x16   : > { %2316 = vmatprep.mubr.bf16.mxu1 %v4069_v22  ;;  %2894 = vmatprep.mubr.bf16.mxu0 %v4073_v25  ;;  %v245_v49 = vld [vmem:[%s5129_s28 + $0x80] sm:$0xff]  ;;  %v251_v54 = vld [vmem:[%s5129_s28 + $0xb0] sm:$0xff]  ;;  %v4080_v56 = vcombine.low %v239_v41, %v243_v43 }
  0x17   : > { %v249_v50 = vld [vmem:[%s5129_s28 + $0xa0] sm:$0xff]  ;;  %v4089_v58 = vcombine.high %v247_v53, %v251_v54  ;;  %v4964_v59 = vld [vmem:[%s5813_s1 + $0x90] sm:$0xff]   ;;  %v4088_v6 = vcombine.low %v247_v53, %v251_v54  ;;  %v4982_v54 = vld [vmem:[%s5813_s1 + $0xd8] sm:$0xff]  }
  0x18   : > { %2293 = vmatpush1.bf16.msra.mxu1 %v4936_v9  ;;  %2871 = vmatpush1.bf16.msra.mxu0 %v4937_v10  ;;  %v4085_v57 = vcombine.high %v245_v49, %v249_v50  ;;  %v4965_v60 = vld [vmem:[%s5813_s1 + $0x190] sm:$0xff]   ;;  %v253_v61 = vld [vmem:[%s5129_s28 + $0xc0] sm:$0xff]  ;;  %v4084_v4 = vcombine.low %v245_v49, %v249_v50 }
  0x19   : > { %2294 = vmatprep.subr.bf16.mxu1 %v5017_v1  ;;  %2872 = vmatprep.subr.bf16.mxu0 %v5017_v1  ;;  %v257_v62 = vld [vmem:[%s5129_s28 + $0xe0] sm:$0xff]  ;;  %v255_v63 = vld [vmem:[%s5129_s28 + $0xd0] sm:$0xff] }
  0x1a   : > { %v259_v0 = vld [vmem:[%s5129_s28 + $0xf0] sm:$0xff]  ;;  %v4968_v5 = vld [vmem:[%s5813_s1 + $0xa0] sm:$0xff]   ;;  %v4093_v7 = vcombine.high %v253_v61, %v257_v62 }
  0x1b   : > { %v4969_v8 = vld [vmem:[%s5813_s1 + $0x1a0] sm:$0xff]   ;;  %v4097_v9 = vcombine.high %v255_v63, %v259_v0  ;;  %v4972_v20 = vld [vmem:[%s5813_s1 + $0xb0] sm:$0xff]  }
  0x1c   : > { %2295 = vmatpush1.bf16.msra.mxu1 %v4938_v11  ;;  %2873 = vmatpush1.bf16.msra.mxu0 %v4939_v12  ;;  %v261_v10 = vld [vmem:[%s5129_s28 + $0x100] sm:$0xff]  ;;  %v263_v12 = vld [vmem:[%s5129_s28 + $0x110] sm:$0xff] }
  0x1d   : > { %2296 = vmatprep.subr.bf16.mxu1 %v5017_v1  ;;  %2874 = vmatprep.subr.bf16.mxu0 %v5017_v1  ;;  %v265_v11 = vld [vmem:[%s5129_s28 + $0x120] sm:$0xff]  ;;  %v4973_v21 = vld [vmem:[%s5813_s1 + $0x1b0] sm:$0xff]  }
  0x1e   : > { %v269_v22 = vld [vmem:[%s5129_s28 + $0x140] sm:$0xff]  ;;  %v271_v25 = vld [vmem:[%s5129_s28 + $0x150] sm:$0xff] }
  0x1f   : > { %v273_v23 = vld [vmem:[%s5129_s28 + $0x160] sm:$0xff]  ;;  %v291_v49 = vld [vmem:[%s5129_s28 + $0x1f0] sm:$0xff] }
  0x20   : > { %2297 = vmatpush1.bf16.msra.mxu1 %v4940_v13  ;;  %2875 = vmatpush1.bf16.msra.mxu0 %v4941_v14  ;;  %v267_v13 = vld [vmem:[%s5129_s28 + $0x130] sm:$0xff]  ;;  %v4970_v14 = vld [vmem:[%s5813_s1 + $0xa8] sm:$0xff]   ;;  %v4108_v40 = vcombine.low %v269_v22, %v273_v23 }
  0x21   : > { %2298 = vmatprep.subr.bf16.mxu1 %v5017_v1  ;;  %2876 = vmatprep.subr.bf16.mxu0 %v5017_v1  ;;  %v4105_v19 = vcombine.high %v263_v12, %v267_v13 }
  0x24   : > { %2299 = vmatpush1.bf16.msra.mxu1 %v4942_v15  ;;  %2877 = vmatpush1.bf16.msra.mxu0 %v4943_v16  ;;  %v4971_v15 = vld [vmem:[%s5813_s1 + $0x1a8] sm:$0xff]   ;;  %v4092_v16 = vcombine.low %v253_v61, %v257_v62 }
  0x25   : > { %2300 = vmatprep.subr.bf16.mxu1 %v5017_v1  ;;  %2878 = vmatprep.subr.bf16.mxu0 %v5017_v1 }
  0x28   : > { %2301 = vmatpush1.bf16.msra.mxu1 %v4944_v17  ;;  %2879 = vmatpush1.bf16.msra.mxu0 %v4945_v18  ;;  %v4096_v17 = vcombine.low %v255_v63, %v259_v0  ;;  %v4101_v18 = vcombine.high %v261_v10, %v265_v11  ;;  %v301_v0 = vld [vmem:[%s5129_s28 + $0x240] sm:$0xff] }
  0x29   : > { %2302 = vmatprep.subr.bf16.mxu1 %v5017_v1  ;;  %2880 = vmatprep.subr.bf16.mxu0 %v5017_v1 }
  0x2c   : > { %2303 = vmatpush1.bf16.msra.mxu1 %v4946_v24  ;;  %2881 = vmatpush1.bf16.msra.mxu0 %v4947_v26  ;;  %v4974_v24 = vld [vmem:[%s5813_s1 + $0xb8] sm:$0xff]   ;;  %v275_v26 = vld [vmem:[%s5129_s28 + $0x170] sm:$0xff] }
  0x2d   : > { %2304 = vmatprep.subr.bf16.mxu1 %v5017_v1  ;;  %2882 = vmatprep.subr.bf16.mxu0 %v5017_v1  ;;  %v4112_v41 = vcombine.low %v271_v25, %v275_v26 }
  0x30   : > { %2305 = vmatpush1.bf16.msra.mxu1 %v4948_v27  ;;  %2883 = vmatpush1.bf16.msra.mxu0 %v4949_v28  ;;  %v4975_v27 = vld [vmem:[%s5813_s1 + $0x1b8] sm:$0xff]   ;;  %v4100_v28 = vcombine.low %v261_v10, %v265_v11  ;;  %v4985_v10 = vld [vmem:[%s5813_s1 + $0x1e0] sm:$0xff]  }
  0x31   : > { %2306 = vmatprep.subr.bf16.mxu1 %v5017_v1  ;;  %2884 = vmatprep.subr.bf16.mxu0 %v5017_v1  ;;  %v309_v11 = vld [vmem:[%s5129_s28 + $0x280] sm:$0xff] }
  0x34   : > { %2307 = vmatpush1.bf16.msra.mxu1 %v4950_v29  ;;  %2885 = vmatpush1.bf16.msra.mxu0 %v4951_v30  ;;  %v4104_v29 = vcombine.low %v263_v12, %v267_v13  ;;  %v4109_v30 = vcombine.high %v269_v22, %v273_v23  ;;  %v313_v12 = vld [vmem:[%s5129_s28 + $0x2a0] sm:$0xff]  ;;  %v311_v13 = vld [vmem:[%s5129_s28 + $0x290] sm:$0xff] }
  0x35   : > { %2308 = vmatprep.subr.bf16.mxu1 %v5017_v1  ;;  %2886 = vmatprep.subr.bf16.mxu0 %v5017_v1  ;;  %v323_v22 = vld [vmem:[%s5129_s28 + $0x2f0] sm:$0xff]  ;;  %v4148_v23 = vcombine.low %v309_v11, %v313_v12 }
  0x38   : > { %2309 = vmatpush1.bf16.msra.mxu1 %v4952_v31  ;;  %2887 = vmatpush1.bf16.msra.mxu0 %v4953_v32  ;;  %v4113_v31 = vcombine.high %v271_v25, %v275_v26  ;;  %v4976_v32 = vld [vmem:[%s5813_s1 + $0xc0] sm:$0xff]  }
  0x39   : > { %2310 = vmatprep.subr.bf16.mxu1 %v5017_v1  ;;  %2888 = vmatprep.subr.bf16.mxu0 %v5017_v1 }
  0x3c   : > { %2311 = vmatpush1.bf16.msra.mxu1 %v4954_v33  ;;  %2889 = vmatpush1.bf16.msra.mxu0 %v4955_v34  ;;  %v4977_v33 = vld [vmem:[%s5813_s1 + $0x1c0] sm:$0xff]  }
  0x3d   : > { %2312 = vmatprep.subr.bf16.mxu1 %v5017_v1  ;;  %2890 = vmatprep.subr.bf16.mxu0 %v5017_v1  ;;  %v277_v34 = vld [vmem:[%s5129_s28 + $0x180] sm:$0xff] }
  0x40   : > { %2313 = vmatpush1.bf16.msra.mxu1 %v4956_v35  ;;  %2891 = vmatpush1.bf16.msra.mxu0 %v4957_v36  ;;  %v281_v35 = vld [vmem:[%s5129_s28 + $0x1a0] sm:$0xff]  ;;  %v4978_v36 = vld [vmem:[%s5813_s1 + $0xc8] sm:$0xff]  }
  0x41   : > { %2314 = vmatprep.subr.bf16.mxu1 %v5017_v1  ;;  %2892 = vmatprep.subr.bf16.mxu0 %v5017_v1  ;;  %v4116_v50 = vcombine.low %v277_v34, %v281_v35 }
  0x44   : > { %2315 = vmatpush1.bf16.msra.mxu1 %v4958_v37  ;;  %2893 = vmatpush1.bf16.msra.mxu0 %v4959_v38  ;;  %v279_v37 = vld [vmem:[%s5129_s28 + $0x190] sm:$0xff] }
  0x45   : > { %2573 = vmatprep.subr.bf16.mxu1 %v5017_v1  ;;  %3151 = vmatprep.subr.bf16.mxu0 %v5017_v1  ;;  %v283_v38 = vld [vmem:[%s5129_s28 + $0x1b0] sm:$0xff] }
  0x46   : > { %v4121_v43 = vcombine.high %v279_v37, %v283_v38 }
  0x47   : > { %2317 = vmatmul.mubr.bf16.vlgmr.msra.gmra.mrb[0].mxu1 %v4068_v42  ;;  %2895 = vmatmul.mubr.bf16.vlgmr.msra.gmra.mrb[0].mxu0 %v4072_v44  ;;  %v4117_v42 = vcombine.high %v277_v34, %v281_v35  ;;  %v4980_v44 = vld [vmem:[%s5813_s1 + $0xd0] sm:$0xff]  }
  0x48   : > { %2574 = vmatpush1.bf16.msra.mxu1 %v4960_v45  ;;  %3152 = vmatpush1.bf16.msra.mxu0 %v4961_v46  ;;  %v4981_v45 = vld [vmem:[%s5813_s1 + $0x1d0] sm:$0xff]   ;;  %v285_v46 = vld [vmem:[%s5129_s28 + $0x1c0] sm:$0xff] }
  0x49   : > { %2324 = vmatprep.mubr.bf16.mxu1 %v4077_v47  ;;  %2902 = vmatprep.mubr.bf16.mxu0 %v4081_v48  ;;  %v289_v47 = vld [vmem:[%s5129_s28 + $0x1e0] sm:$0xff]  ;;  %v287_v48 = vld [vmem:[%s5129_s28 + $0x1d0] sm:$0xff] }
  0x4a   : > { %2575 = vmatprep.subr.bf16.mxu1 %v5017_v1  ;;  %3153 = vmatprep.subr.bf16.mxu0 %v5017_v1  ;;  %v4129_v53 = vcombine.high %v287_v48, %v291_v49  ;;  %v4128_v61 = vcombine.low %v287_v48, %v291_v49  ;;  %v345_v48 = vld [vmem:[%s5129_s28 + $0x3a0] sm:$0xff]  ;;  %v343_v49 = vld [vmem:[%s5129_s28 + $0x390] sm:$0xff] }
  0x4c   : > { %2576 = vmatpush1.bf16.msra.mxu1 %v4962_v51  ;;  %3154 = vmatpush1.bf16.msra.mxu0 %v4963_v52  ;;  %v4120_v51 = vcombine.low %v279_v37, %v283_v38  ;;  %v4125_v52 = vcombine.high %v285_v46, %v289_v47  ;;  %v333_v37 = vld [vmem:[%s5129_s28 + $0x340] sm:$0xff] }
  0x4d   : > { %2577 = vmatprep.subr.bf16.mxu1 %v5017_v1  ;;  %3155 = vmatprep.subr.bf16.mxu0 %v5017_v1  ;;  %v337_v38 = vld [vmem:[%s5129_s28 + $0x360] sm:$0xff] }
  0x4f   : > { %2325 = vmatmul.mubr.bf16.gmra.mrb[4].mxu1 %v4076_v55  ;;  %2903 = vmatmul.mubr.bf16.gmra.mrb[4].mxu0 %v4080_v56  ;;  %v4983_v55 = vld [vmem:[%s5813_s1 + $0x1d8] sm:$0xff]   ;;  %v293_v56 = vld [vmem:[%s5129_s28 + $0x200] sm:$0xff] }
  0x50   : > { %2332 = vmatprep.mubr.bf16.mxu1 %v4085_v57  ;;  %2910 = vmatprep.mubr.bf16.mxu0 %v4089_v58  ;;  %v297_v57 = vld [vmem:[%s5129_s28 + $0x220] sm:$0xff]  ;;  %v295_v58 = vld [vmem:[%s5129_s28 + $0x210] sm:$0xff] }
  0x51   : > { %2578 = vmatpush1.bf16.msra.mxu1 %v4964_v59  ;;  %3156 = vmatpush1.bf16.msra.mxu0 %v4965_v60  ;;  %v299_v59 = vld [vmem:[%s5129_s28 + $0x230] sm:$0xff]  ;;  %v4124_v60 = vcombine.low %v285_v46, %v289_v47  ;;  %v4133_v62 = vcombine.high %v293_v56, %v297_v57  ;;  %v341_v47 = vld [vmem:[%s5129_s28 + $0x380] sm:$0xff] }
  0x52   : > { %2579 = vmatprep.subr.bf16.mxu1 %v5017_v1  ;;  %3157 = vmatprep.subr.bf16.mxu0 %v5017_v1  ;;  %v4137_v63 = vcombine.high %v295_v58, %v299_v59  ;;  %v4989_v46 = vld [vmem:[%s5813_s1 + $0x1f0] sm:$0xff]  }
  0x55   : > { %2580 = vmatpush1.bf16.msra.mxu1 %v4966_v2  ;;  %3158 = vmatpush1.bf16.msra.mxu0 %v4967_v3  ;;  %v305_v2 = vld [vmem:[%s5129_s28 + $0x260] sm:$0xff]  ;;  %v303_v3 = vld [vmem:[%s5129_s28 + $0x250] sm:$0xff] }
  0x56   : > { %2581 = vmatprep.subr.bf16.mxu1 %v5017_v1  ;;  %3159 = vmatprep.subr.bf16.mxu0 %v5017_v1 }
  0x57   : > { %2333 = vmatmul.mubr.bf16.gmra.mrb[8].mxu1 %v4084_v4  ;;  %2911 = vmatmul.mubr.bf16.gmra.mrb[8].mxu0 %v4088_v6  ;;  %v307_v4 = vld [vmem:[%s5129_s28 + $0x270] sm:$0xff]  ;;  %v4136_v6 = vcombine.low %v295_v58, %v299_v59  ;;  %v4180_v59 = vcombine.low %v341_v47, %v345_v48 }
  0x58   : > { %2340 = vmatprep.mubr.bf16.mxu1 %v4093_v7  ;;  %2918 = vmatprep.mubr.bf16.mxu0 %v4097_v9  ;;  %v4141_v7 = vcombine.high %v301_v0, %v305_v2  ;;  %v4984_v9 = vld [vmem:[%s5813_s1 + $0xe0] sm:$0xff]   ;;  %v355_v58 = vld [vmem:[%s5129_s28 + $0x3f0] sm:$0xff] }
  0x59   : > { %2582 = vmatpush1.bf16.msra.mxu1 %v4968_v5  ;;  %3160 = vmatpush1.bf16.msra.mxu0 %v4969_v8  ;;  %v4132_v5 = vcombine.low %v293_v56, %v297_v57  ;;  %v4145_v8 = vcombine.high %v303_v3, %v307_v4  ;;  %v353_v56 = vld [vmem:[%s5129_s28 + $0x3e0] sm:$0xff]  ;;  %v351_v57 = vld [vmem:[%s5129_s28 + $0x3d0] sm:$0xff] }
  0x5a   : > { %2583 = vmatprep.subr.bf16.mxu1 %v5017_v1  ;;  %3161 = vmatprep.subr.bf16.mxu0 %v5017_v1 }
  0x5d   : > { %2584 = vmatpush1.bf16.msra.mxu1 %v4970_v14  ;;  %3162 = vmatpush1.bf16.msra.mxu0 %v4971_v15  ;;  %v315_v14 = vld [vmem:[%s5129_s28 + $0x2b0] sm:$0xff]  ;;  %v4140_v15 = vcombine.low %v301_v0, %v305_v2  ;;  %v357_v0 = vld [vmem:[%s5129_s28 + $0x400] sm:$0xff] }
  0x5e   : > { %2585 = vmatprep.subr.bf16.mxu1 %v5017_v1  ;;  %3163 = vmatprep.subr.bf16.mxu0 %v5017_v1  ;;  %v361_v2 = vld [vmem:[%s5129_s28 + $0x420] sm:$0xff] }
  0x5f   : > { %2341 = vmatmul.mubr.bf16.gmra.mrb[12].mxu1 %v4092_v16  ;;  %2919 = vmatmul.mubr.bf16.gmra.mrb[12].mxu0 %v4096_v17  ;;  %v4144_v16 = vcombine.low %v303_v3, %v307_v4  ;;  %v4149_v17 = vcombine.high %v309_v11, %v313_v12  ;;  %v359_v3 = vld [vmem:[%s5129_s28 + $0x410] sm:$0xff] }
  0x60   : > { %2348 = vmatprep.mubr.bf16.mxu1 %v4101_v18  ;;  %2926 = vmatprep.mubr.bf16.mxu0 %v4105_v19  ;;  %v4153_v18 = vcombine.high %v311_v13, %v315_v14  ;;  %v317_v19 = vld [vmem:[%s5129_s28 + $0x2c0] sm:$0xff]  ;;  %v363_v4 = vld [vmem:[%s5129_s28 + $0x430] sm:$0xff] }
  0x61   : > { %2586 = vmatpush1.bf16.msra.mxu1 %v4972_v20  ;;  %3164 = vmatpush1.bf16.msra.mxu0 %v4973_v21  ;;  %v321_v20 = vld [vmem:[%s5129_s28 + $0x2e0] sm:$0xff]  ;;  %v319_v21 = vld [vmem:[%s5129_s28 + $0x2d0] sm:$0xff] }
  0x62   : > { %2587 = vmatprep.subr.bf16.mxu1 %v5017_v1  ;;  %3165 = vmatprep.subr.bf16.mxu0 %v5017_v1  ;;  %v4157_v25 = vcombine.high %v317_v19, %v321_v20  ;;  %v4161_v26 = vcombine.high %v319_v21, %v323_v22  ;;  %v4160_v34 = vcombine.low %v319_v21, %v323_v22  ;;  %v367_v11 = vld [vmem:[%s5129_s28 + $0x450] sm:$0xff] }
  0x63   : > { %v371_v12 = vld [vmem:[%s5129_s28 + $0x470] sm:$0xff] }
  0x64   : > { %v4208_v22 = vcombine.low %v367_v11, %v371_v12 }
  0x65   : > { %2588 = vmatpush1.bf16.msra.mxu1 %v4974_v24  ;;  %3166 = vmatpush1.bf16.msra.mxu0 %v4975_v27  ;;  %v4152_v24 = vcombine.low %v311_v13, %v315_v14  ;;  %v4986_v27 = vld [vmem:[%s5813_s1 + $0xe8] sm:$0xff]   ;;  %v4196_v13 = vcombine.low %v357_v0, %v361_v2  ;;  %v4200_v14 = vcombine.low %v359_v3, %v363_v4 }
  0x66   : > { %2589 = vmatprep.subr.bf16.mxu1 %v5017_v1  ;;  %3167 = vmatprep.subr.bf16.mxu0 %v5017_v1 }
  0x67   : > { %2349 = vmatmul.mubr.bf16.gmra.mrb[16].mxu1 %v4100_v28  ;;  %2927 = vmatmul.mubr.bf16.gmra.mrb[16].mxu0 %v4104_v29  ;;  %v4987_v28 = vld [vmem:[%s5813_s1 + $0x1e8] sm:$0xff]   ;;  %v325_v29 = vld [vmem:[%s5129_s28 + $0x300] sm:$0xff] }
  0x68   : > { %2356 = vmatprep.mubr.bf16.mxu1 %v4109_v30  ;;  %2934 = vmatprep.mubr.bf16.mxu0 %v4113_v31  ;;  %v329_v30 = vld [vmem:[%s5129_s28 + $0x320] sm:$0xff]  ;;  %v327_v31 = vld [vmem:[%s5129_s28 + $0x310] sm:$0xff] }
  0x69   : > { %2590 = vmatpush1.bf16.msra.mxu1 %v4976_v32  ;;  %3168 = vmatpush1.bf16.msra.mxu0 %v4977_v33  ;;  %v331_v32 = vld [vmem:[%s5129_s28 + $0x330] sm:$0xff]  ;;  %v4156_v33 = vcombine.low %v317_v19, %v321_v20  ;;  %v4165_v35 = vcombine.high %v325_v29, %v329_v30 }
  0x6a   : > { %2591 = vmatprep.subr.bf16.mxu1 %v5017_v1  ;;  %3169 = vmatprep.subr.bf16.mxu0 %v5017_v1  ;;  %v375_v19 = vld [vmem:[%s5129_s28 + $0x490] sm:$0xff] }
  0x6b   : > { %v379_v20 = vld [vmem:[%s5129_s28 + $0x4b0] sm:$0xff] }
  0x6d   : > { %2592 = vmatpush1.bf16.msra.mxu1 %v4978_v36  ;;  %3170 = vmatpush1.bf16.msra.mxu0 %v4979_v39  ;;  %v4169_v36 = vcombine.high %v327_v31, %v331_v32  ;;  %v335_v39 = vld [vmem:[%s5129_s28 + $0x350] sm:$0xff] }
  0x6e   : > { %2593 = vmatprep.subr.bf16.mxu1 %v5017_v1  ;;  %3171 = vmatprep.subr.bf16.mxu0 %v5017_v1 }
  0x6f   : > { %2357 = vmatmul.mubr.bf16.gmra.mrb[20].mxu1 %v4108_v40  ;;  %2935 = vmatmul.mubr.bf16.gmra.mrb[20].mxu0 %v4112_v41  ;;  %v339_v40 = vld [vmem:[%s5129_s28 + $0x370] sm:$0xff]  ;;  %v4164_v41 = vcombine.low %v325_v29, %v329_v30  ;;  %v4216_v30 = vcombine.low %v375_v19, %v379_v20 }
  0x70   : > { %2364 = vmatprep.mubr.bf16.mxu1 %v4117_v42  ;;  %2942 = vmatprep.mubr.bf16.mxu0 %v4121_v43  ;;  %v4168_v42 = vcombine.low %v327_v31, %v331_v32  ;;  %v4173_v43 = vcombine.high %v333_v37, %v337_v38 }
  0x71   : > { %2594 = vmatpush1.bf16.msra.mxu1 %v4980_v44  ;;  %3172 = vmatpush1.bf16.msra.mxu0 %v4981_v45  ;;  %v4177_v44 = vcombine.high %v335_v39, %v339_v40  ;;  %v4988_v45 = vld [vmem:[%s5813_s1 + $0xf0] sm:$0xff]  }
  0x72   : > { %2595 = vmatprep.subr.bf16.mxu1 %v5017_v1  ;;  %3173 = vmatprep.subr.bf16.mxu0 %v5017_v1 }
  0x75   : > { %2596 = vmatpush1.bf16.msra.mxu1 %v4982_v54  ;;  %3174 = vmatpush1.bf16.msra.mxu0 %v4983_v55  ;;  %v349_v55 = vld [vmem:[%s5129_s28 + $0x3c0] sm:$0xff] }
  0x76   : > { %2597 = vmatprep.subr.bf16.mxu1 %v5017_v1  ;;  %3175 = vmatprep.subr.bf16.mxu0 %v5017_v1 }
  0x77   : > { %2365 = vmatmul.mubr.bf16.gmra.mrb[24].mxu1 %v4116_v50  ;;  %2943 = vmatmul.mubr.bf16.gmra.mrb[24].mxu0 %v4120_v51  ;;  %v347_v50 = vld [vmem:[%s5129_s28 + $0x3b0] sm:$0xff]  ;;  %v4172_v51 = vcombine.low %v333_v37, %v337_v38 }
  0x78   : > { %2372 = vmatprep.mubr.bf16.mxu1 %v4125_v52  ;;  %2950 = vmatprep.mubr.bf16.mxu0 %v4129_v53  ;;  %v4176_v52 = vcombine.low %v335_v39, %v339_v40  ;;  %v4181_v53 = vcombine.high %v341_v47, %v345_v48  ;;  %v4185_v54 = vcombine.high %v343_v49, %v347_v50 }
  0x79   : > { %2598 = vmatpush1.bf16.msra.mxu1 %v4984_v9  ;;  %3176 = vmatpush1.bf16.msra.mxu0 %v4985_v10  ;;  %v365_v9 = vld [vmem:[%s5129_s28 + $0x440] sm:$0xff] }
  0x7a   : > { %2599 = vmatprep.subr.bf16.mxu1 %v5017_v1  ;;  %3177 = vmatprep.subr.bf16.mxu0 %v5017_v1  ;;  %v369_v10 = vld [vmem:[%s5129_s28 + $0x460] sm:$0xff] }
  0x7b   : > { %v4204_v21 = vcombine.low %v365_v9, %v369_v10 }
  0x7d   : > { %2600 = vmatpush1.bf16.msra.mxu1 %v4986_v27  ;;  %3178 = vmatpush1.bf16.msra.mxu0 %v4987_v28  ;;  %v383_v27 = vld [vmem:[%s5129_s28 + $0x4d0] sm:$0xff] }
  0x7e   : > { %2601 = vmatprep.subr.bf16.mxu1 %v5017_v1  ;;  %3179 = vmatprep.subr.bf16.mxu0 %v5017_v1  ;;  %v387_v28 = vld [vmem:[%s5129_s28 + $0x4f0] sm:$0xff] }
  0x7f   : > { %2373 = vmatmul.mubr.bf16.gmra.mrb[28].mxu1 %v4124_v60  ;;  %2951 = vmatmul.mubr.bf16.gmra.mrb[28].mxu0 %v4128_v61  ;;  %v4184_v60 = vcombine.low %v343_v49, %v347_v50  ;;  %v4189_v61 = vcombine.high %v349_v55, %v353_v56  ;;  %v4225_v32 = vcombine.high %v383_v27, %v387_v28  ;;  %v405_v49 = vld [vmem:[%s5129_s28 + $0x580] sm:$0xff] }
  0x80   : > { %2380 = vmatprep.mubr.bf16.mxu1 %v4133_v62  ;;  %2958 = vmatprep.mubr.bf16.mxu0 %v4137_v63  ;;  %v4193_v62 = vcombine.high %v351_v57, %v355_v58  ;;  %v4991_v63 = vld [vmem:[%s5813_s1 + $0x1f8] sm:$0xff]   ;;  %v4224_v38 = vcombine.low %v383_v27, %v387_v28  ;;  %v409_v50 = vld [vmem:[%s5129_s28 + $0x5a0] sm:$0xff]  ;;  %v447_v27 = vld [vmem:[%s5129_s28 + $0x6d0] sm:$0xff] }
  0x81   : > { %2602 = vmatpush1.bf16.msra.mxu1 %v4988_v45  ;;  %3180 = vmatpush1.bf16.msra.mxu0 %v4989_v46  ;;  %v451_v28 = vld [vmem:[%s5129_s28 + $0x6f0] sm:$0xff] }
  0x82   : > { %2603 = vmatprep.subr.bf16.mxu1 %v5017_v1  ;;  %3181 = vmatprep.subr.bf16.mxu0 %v5017_v1  ;;  %v4990_v1 = vld [vmem:[%s5813_s1 + $0xf8] sm:$0xff]  }
  0x85   : > { %2604 = vmatpush1.bf16.msra.mxu1 %v4990_v1  ;;  %3182 = vmatpush1.bf16.msra.mxu0 %v4991_v63 }
  0x87   : > { %2381 = vmatmul.mubr.bf16.gmra.mrb[32].mxu1 %v4132_v5  ;;  %2959 = vmatmul.mubr.bf16.gmra.mrb[32].mxu0 %v4136_v6  ;;  %v4188_v5 = vcombine.low %v349_v55, %v353_v56  ;;  %v4192_v6 = vcombine.low %v351_v57, %v355_v58  ;;  %v4245_v55 = vcombine.high %v405_v49, %v409_v50  ;;  %v413_v57 = vld [vmem:[%s5129_s28 + $0x5c0] sm:$0xff] }
  0x88   : > { %2388 = vmatprep.mubr.bf16.mxu1 %v4141_v7  ;;  %2966 = vmatprep.mubr.bf16.mxu0 %v4145_v8  ;;  %v4197_v7 = vcombine.high %v357_v0, %v361_v2  ;;  %v4201_v8 = vcombine.high %v359_v3, %v363_v4  ;;  %v417_v58 = vld [vmem:[%s5129_s28 + $0x5e0] sm:$0xff]  ;;  %v423_v3 = vld [vmem:[%s5129_s28 + $0x610] sm:$0xff] }
  0x89   : > { %v4253_v1 = vcombine.high %v413_v57, %v417_v58  ;;  %v421_v0 = vld [vmem:[%s5129_s28 + $0x600] sm:$0xff]  ;;  %v427_v4 = vld [vmem:[%s5129_s28 + $0x630] sm:$0xff] }
  0x8a   : > { %v425_v2 = vld [vmem:[%s5129_s28 + $0x620] sm:$0xff] }
  0x8f   : > { %2389 = vmatmul.mubr.bf16.gmra.mrb[36].mxu1 %v4140_v15  ;;  %2967 = vmatmul.mubr.bf16.gmra.mrb[36].mxu0 %v4144_v16  ;;  %v4205_v15 = vcombine.high %v365_v9, %v369_v10  ;;  %v4209_v16 = vcombine.high %v367_v11, %v371_v12  ;;  %v429_v9 = vld [vmem:[%s5129_s28 + $0x640] sm:$0xff]  ;;  %v431_v11 = vld [vmem:[%s5129_s28 + $0x650] sm:$0xff] }
  0x90   : > { %2396 = vmatprep.mubr.bf16.mxu1 %v4149_v17  ;;  %2974 = vmatprep.mubr.bf16.mxu0 %v4153_v18  ;;  %v373_v17 = vld [vmem:[%s5129_s28 + $0x480] sm:$0xff]  ;;  %v435_v12 = vld [vmem:[%s5129_s28 + $0x670] sm:$0xff] }
  0x91   : > { %v377_v18 = vld [vmem:[%s5129_s28 + $0x4a0] sm:$0xff] }
  0x92   : > { %v4212_v29 = vcombine.low %v373_v17, %v377_v18  ;;  %v433_v10 = vld [vmem:[%s5129_s28 + $0x660] sm:$0xff] }
  0x97   : > { %2397 = vmatmul.mubr.bf16.gmra.mrb[40].mxu1 %v4148_v23  ;;  %2975 = vmatmul.mubr.bf16.gmra.mrb[40].mxu0 %v4152_v24  ;;  %v4213_v23 = vcombine.high %v373_v17, %v377_v18  ;;  %v4217_v24 = vcombine.high %v375_v19, %v379_v20  ;;  %v437_v17 = vld [vmem:[%s5129_s28 + $0x680] sm:$0xff]  ;;  %v439_v19 = vld [vmem:[%s5129_s28 + $0x690] sm:$0xff] }
  0x98   : > { %2404 = vmatprep.mubr.bf16.mxu1 %v4157_v25  ;;  %2982 = vmatprep.mubr.bf16.mxu0 %v4161_v26  ;;  %v381_v25 = vld [vmem:[%s5129_s28 + $0x4c0] sm:$0xff]  ;;  %v443_v20 = vld [vmem:[%s5129_s28 + $0x6b0] sm:$0xff] }
  0x99   : > { %v385_v26 = vld [vmem:[%s5129_s28 + $0x4e0] sm:$0xff] }
  0x9a   : > { %v4221_v31 = vcombine.high %v381_v25, %v385_v26  ;;  %v4220_v37 = vcombine.low %v381_v25, %v385_v26  ;;  %v441_v18 = vld [vmem:[%s5129_s28 + $0x6a0] sm:$0xff] }
  0x9b   : > { %v445_v25 = vld [vmem:[%s5129_s28 + $0x6c0] sm:$0xff] }
  0x9c   : > { %v449_v26 = vld [vmem:[%s5129_s28 + $0x6e0] sm:$0xff] }
  0x9f   : > { %2405 = vmatmul.mubr.bf16.gmra.mrb[44].mxu1 %v4156_v33  ;;  %2983 = vmatmul.mubr.bf16.gmra.mrb[44].mxu0 %v4160_v34  ;;  %v389_v33 = vld [vmem:[%s5129_s28 + $0x500] sm:$0xff] }
  0xa0   : > { %2412 = vmatprep.mubr.bf16.mxu1 %v4165_v35  ;;  %2990 = vmatprep.mubr.bf16.mxu0 %v4169_v36  ;;  %v393_v34 = vld [vmem:[%s5129_s28 + $0x520] sm:$0xff]  ;;  %v391_v35 = vld [vmem:[%s5129_s28 + $0x510] sm:$0xff] }
  0xa1   : > { %v395_v36 = vld [vmem:[%s5129_s28 + $0x530] sm:$0xff]  ;;  %v4229_v39 = vcombine.high %v389_v33, %v393_v34  ;;  %v4228_v45 = vcombine.low %v389_v33, %v393_v34  ;;  %v453_v33 = vld [vmem:[%s5129_s28 + $0x700] sm:$0xff] }
  0xa2   : > { %v4233_v40 = vcombine.high %v391_v35, %v395_v36  ;;  %v4232_v46 = vcombine.low %v391_v35, %v395_v36  ;;  %v457_v34 = vld [vmem:[%s5129_s28 + $0x720] sm:$0xff]  ;;  %v455_v35 = vld [vmem:[%s5129_s28 + $0x710] sm:$0xff] }
  0xa3   : > { %v459_v36 = vld [vmem:[%s5129_s28 + $0x730] sm:$0xff] }
  0xa7   : > { %2413 = vmatmul.mubr.bf16.gmra.mrb[48].mxu1 %v4164_v41  ;;  %2991 = vmatmul.mubr.bf16.gmra.mrb[48].mxu0 %v4168_v42  ;;  %v397_v41 = vld [vmem:[%s5129_s28 + $0x540] sm:$0xff] }
  0xa8   : > { %2420 = vmatprep.mubr.bf16.mxu1 %v4173_v43  ;;  %2998 = vmatprep.mubr.bf16.mxu0 %v4177_v44  ;;  %v401_v42 = vld [vmem:[%s5129_s28 + $0x560] sm:$0xff]  ;;  %v399_v43 = vld [vmem:[%s5129_s28 + $0x550] sm:$0xff] }
  0xa9   : > { %v403_v44 = vld [vmem:[%s5129_s28 + $0x570] sm:$0xff]  ;;  %v4237_v47 = vcombine.high %v397_v41, %v401_v42 }
  0xaa   : > { %v4241_v48 = vcombine.high %v399_v43, %v403_v44 }
  0xaf   : > { %2421 = vmatmul.mubr.bf16.gmra.mrb[52].mxu1 %v4172_v51  ;;  %2999 = vmatmul.mubr.bf16.gmra.mrb[52].mxu0 %v4176_v52  ;;  %v407_v51 = vld [vmem:[%s5129_s28 + $0x590] sm:$0xff] }
  0xb0   : > { %2428 = vmatprep.mubr.bf16.mxu1 %v4181_v53  ;;  %3006 = vmatprep.mubr.bf16.mxu0 %v4185_v54  ;;  %v411_v52 = vld [vmem:[%s5129_s28 + $0x5b0] sm:$0xff]  ;;  %v4236_v53 = vcombine.low %v397_v41, %v401_v42  ;;  %v4240_v54 = vcombine.low %v399_v43, %v403_v44  ;;  %v461_v41 = vld [vmem:[%s5129_s28 + $0x740] sm:$0xff] }
  0xb1   : > { %v4249_v56 = vcombine.high %v407_v51, %v411_v52  ;;  %v465_v42 = vld [vmem:[%s5129_s28 + $0x760] sm:$0xff]  ;;  %v463_v43 = vld [vmem:[%s5129_s28 + $0x750] sm:$0xff] }
  0xb2   : > { %v467_v44 = vld [vmem:[%s5129_s28 + $0x770] sm:$0xff] }
  0xb7   : > { %2429 = vmatmul.mubr.bf16.gmra.mrb[56].mxu1 %v4180_v59  ;;  %3007 = vmatmul.mubr.bf16.gmra.mrb[56].mxu0 %v4184_v60  ;;  %v415_v59 = vld [vmem:[%s5129_s28 + $0x5d0] sm:$0xff] }
  0xb8   : > { %2436 = vmatprep.mubr.bf16.mxu1 %v4189_v61  ;;  %3014 = vmatprep.mubr.bf16.mxu0 %v4193_v62  ;;  %v419_v60 = vld [vmem:[%s5129_s28 + $0x5f0] sm:$0xff]  ;;  %v4244_v61 = vcombine.low %v405_v49, %v409_v50  ;;  %v4248_v62 = vcombine.low %v407_v51, %v411_v52  ;;  %v469_v49 = vld [vmem:[%s5129_s28 + $0x780] sm:$0xff] }
  0xb9   : > { %v4257_v63 = vcombine.high %v415_v59, %v419_v60  ;;  %v473_v50 = vld [vmem:[%s5129_s28 + $0x7a0] sm:$0xff]  ;;  %v471_v51 = vld [vmem:[%s5129_s28 + $0x790] sm:$0xff] }
  0xba   : > { %v475_v52 = vld [vmem:[%s5129_s28 + $0x7b0] sm:$0xff] }
  0xbf   : > { %2437 = vmatmul.mubr.bf16.gmra.mrb[60].mxu1 %v4188_v5  ;;  %3015 = vmatmul.mubr.bf16.gmra.mrb[60].mxu0 %v4192_v6  ;;  %v4252_v5 = vcombine.low %v413_v57, %v417_v58  ;;  %v4256_v6 = vcombine.low %v415_v59, %v419_v60  ;;  %v477_v57 = vld [vmem:[%s5129_s28 + $0x7c0] sm:$0xff]  ;;  %v479_v59 = vld [vmem:[%s5129_s28 + $0x7d0] sm:$0xff] }
  0xc0   : > { %2444 = vmatprep.mubr.bf16.mxu1 %v4197_v7  ;;  %3022 = vmatprep.mubr.bf16.mxu0 %v4201_v8  ;;  %v4261_v7 = vcombine.high %v421_v0, %v425_v2  ;;  %v4265_v8 = vcombine.high %v423_v3, %v427_v4  ;;  %v481_v58 = vld [vmem:[%s5129_s28 + $0x7e0] sm:$0xff]  ;;  %v483_v60 = vld [vmem:[%s5129_s28 + $0x7f0] sm:$0xff] }
  0xc7   : > { %2445 = vmatmul.mubr.bf16.gmra.mrb[64].mxu1 %v4196_v13  ;;  %3023 = vmatmul.mubr.bf16.gmra.mrb[64].mxu0 %v4200_v14  ;;  %v4260_v13 = vcombine.low %v421_v0, %v425_v2  ;;  %v4264_v14 = vcombine.low %v423_v3, %v427_v4  ;;  %v230_v0 = vld [vmem:[%s5129_s28 + $0x8] sm:$0xff]  ;;  %v232_v3 = vld [vmem:[%s5129_s28 + $0x18] sm:$0xff] }
  0xc8   : > { %2452 = vmatprep.mubr.bf16.mxu1 %v4205_v15  ;;  %3030 = vmatprep.mubr.bf16.mxu0 %v4209_v16  ;;  %v4269_v15 = vcombine.high %v429_v9, %v433_v10  ;;  %v4273_v16 = vcombine.high %v431_v11, %v435_v12  ;;  %v234_v2 = vld [vmem:[%s5129_s28 + $0x28] sm:$0xff]  ;;  %v236_v4 = vld [vmem:[%s5129_s28 + $0x38] sm:$0xff] }
  0xcf   : > { %2453 = vmatmul.mubr.bf16.gmra.mrb[68].mxu1 %v4204_v21  ;;  %3031 = vmatmul.mubr.bf16.gmra.mrb[68].mxu0 %v4208_v22  ;;  %v4268_v21 = vcombine.low %v429_v9, %v433_v10  ;;  %v4272_v22 = vcombine.low %v431_v11, %v435_v12  ;;  %v238_v9 = vld [vmem:[%s5129_s28 + $0x48] sm:$0xff]  ;;  %v240_v11 = vld [vmem:[%s5129_s28 + $0x58] sm:$0xff] }
  0xd0   : > { %2460 = vmatprep.mubr.bf16.mxu1 %v4213_v23  ;;  %3038 = vmatprep.mubr.bf16.mxu0 %v4217_v24  ;;  %v4277_v23 = vcombine.high %v437_v17, %v441_v18  ;;  %v4281_v24 = vcombine.high %v439_v19, %v443_v20  ;;  %v242_v10 = vld [vmem:[%s5129_s28 + $0x68] sm:$0xff]  ;;  %v244_v12 = vld [vmem:[%s5129_s28 + $0x78] sm:$0xff] }
  0xd7   : > { %2461 = vmatmul.mubr.bf16.gmra.mrb[72].mxu1 %v4212_v29  ;;  %3039 = vmatmul.mubr.bf16.gmra.mrb[72].mxu0 %v4216_v30  ;;  %v4276_v29 = vcombine.low %v437_v17, %v441_v18  ;;  %v4280_v30 = vcombine.low %v439_v19, %v443_v20  ;;  %v246_v17 = vld [vmem:[%s5129_s28 + $0x88] sm:$0xff]  ;;  %v248_v19 = vld [vmem:[%s5129_s28 + $0x98] sm:$0xff] }
  0xd8   : > { %2468 = vmatprep.mubr.bf16.mxu1 %v4221_v31  ;;  %3046 = vmatprep.mubr.bf16.mxu0 %v4225_v32  ;;  %v4285_v31 = vcombine.high %v445_v25, %v449_v26  ;;  %v4289_v32 = vcombine.high %v447_v27, %v451_v28  ;;  %v250_v18 = vld [vmem:[%s5129_s28 + $0xa8] sm:$0xff]  ;;  %v252_v20 = vld [vmem:[%s5129_s28 + $0xb8] sm:$0xff] }
  0xdf   : > { %2469 = vmatmul.mubr.bf16.gmra.mrb[76].mxu1 %v4220_v37  ;;  %3047 = vmatmul.mubr.bf16.gmra.mrb[76].mxu0 %v4224_v38  ;;  %v4284_v37 = vcombine.low %v445_v25, %v449_v26  ;;  %v4288_v38 = vcombine.low %v447_v27, %v451_v28  ;;  %v254_v25 = vld [vmem:[%s5129_s28 + $0xc8] sm:$0xff]  ;;  %v256_v27 = vld [vmem:[%s5129_s28 + $0xd8] sm:$0xff] }
  0xe0   : > { %2476 = vmatprep.mubr.bf16.mxu1 %v4229_v39  ;;  %3054 = vmatprep.mubr.bf16.mxu0 %v4233_v40  ;;  %v4293_v39 = vcombine.high %v453_v33, %v457_v34  ;;  %v4297_v40 = vcombine.high %v455_v35, %v459_v36  ;;  %v258_v26 = vld [vmem:[%s5129_s28 + $0xe8] sm:$0xff]  ;;  %v260_v28 = vld [vmem:[%s5129_s28 + $0xf8] sm:$0xff] }
  0xe7   : > { %2477 = vmatmul.mubr.bf16.gmra.mrb[80].mxu1 %v4228_v45  ;;  %3055 = vmatmul.mubr.bf16.gmra.mrb[80].mxu0 %v4232_v46  ;;  %v4292_v45 = vcombine.low %v453_v33, %v457_v34  ;;  %v4296_v46 = vcombine.low %v455_v35, %v459_v36  ;;  %v262_v33 = vld [vmem:[%s5129_s28 + $0x108] sm:$0xff]  ;;  %v264_v35 = vld [vmem:[%s5129_s28 + $0x118] sm:$0xff] }
  0xe8   : > { %2484 = vmatprep.mubr.bf16.mxu1 %v4237_v47  ;;  %3062 = vmatprep.mubr.bf16.mxu0 %v4241_v48  ;;  %v4301_v47 = vcombine.high %v461_v41, %v465_v42  ;;  %v4305_v48 = vcombine.high %v463_v43, %v467_v44  ;;  %v266_v34 = vld [vmem:[%s5129_s28 + $0x128] sm:$0xff]  ;;  %v268_v36 = vld [vmem:[%s5129_s28 + $0x138] sm:$0xff] }
  0xef   : > { %2485 = vmatmul.mubr.bf16.gmra.mrb[84].mxu1 %v4236_v53  ;;  %3063 = vmatmul.mubr.bf16.gmra.mrb[84].mxu0 %v4240_v54  ;;  %v4300_v53 = vcombine.low %v461_v41, %v465_v42  ;;  %v4304_v54 = vcombine.low %v463_v43, %v467_v44  ;;  %v270_v41 = vld [vmem:[%s5129_s28 + $0x148] sm:$0xff]  ;;  %v272_v43 = vld [vmem:[%s5129_s28 + $0x158] sm:$0xff] }
  0xf0   : > { %2492 = vmatprep.mubr.bf16.mxu1 %v4245_v55  ;;  %3070 = vmatprep.mubr.bf16.mxu0 %v4249_v56  ;;  %v4309_v55 = vcombine.high %v469_v49, %v473_v50  ;;  %v4313_v56 = vcombine.high %v471_v51, %v475_v52  ;;  %v274_v42 = vld [vmem:[%s5129_s28 + $0x168] sm:$0xff]  ;;  %v276_v44 = vld [vmem:[%s5129_s28 + $0x178] sm:$0xff] }
  0xf7   : > { %2493 = vmatmul.mubr.bf16.gmra.mrb[88].mxu1 %v4244_v61  ;;  %3071 = vmatmul.mubr.bf16.gmra.mrb[88].mxu0 %v4248_v62  ;;  %v4308_v61 = vcombine.low %v469_v49, %v473_v50  ;;  %v4312_v62 = vcombine.low %v471_v51, %v475_v52  ;;  %v278_v49 = vld [vmem:[%s5129_s28 + $0x188] sm:$0xff]  ;;  %v280_v51 = vld [vmem:[%s5129_s28 + $0x198] sm:$0xff] }
  0xf8   : > { %2500 = vmatprep.mubr.bf16.mxu1 %v4253_v1  ;;  %3078 = vmatprep.mubr.bf16.mxu0 %v4257_v63  ;;  %v4317_v1 = vcombine.high %v477_v57, %v481_v58  ;;  %v4321_v63 = vcombine.high %v479_v59, %v483_v60  ;;  %v282_v50 = vld [vmem:[%s5129_s28 + $0x1a8] sm:$0xff]  ;;  %v284_v52 = vld [vmem:[%s5129_s28 + $0x1b8] sm:$0xff] }
  0xff   : > { %2501 = vmatmul.mubr.bf16.gmra.mrb[92].mxu1 %v4252_v5  ;;  %3079 = vmatmul.mubr.bf16.gmra.mrb[92].mxu0 %v4256_v6  ;;  %v4316_v5 = vcombine.low %v477_v57, %v481_v58  ;;  %v4320_v6 = vcombine.low %v479_v59, %v483_v60  ;;  %v286_v57 = vld [vmem:[%s5129_s28 + $0x1c8] sm:$0xff]  ;;  %v288_v59 = vld [vmem:[%s5129_s28 + $0x1d8] sm:$0xff] }
 0x100   : > { %2508 = vmatprep.mubr.bf16.mxu1 %v4261_v7  ;;  %3086 = vmatprep.mubr.bf16.mxu0 %v4265_v8  ;;  %v4071_v7 = vcombine.high %v230_v0, %v234_v2  ;;  %v4075_v8 = vcombine.high %v232_v3, %v236_v4  ;;  %v290_v58 = vld [vmem:[%s5129_s28 + $0x1e8] sm:$0xff]  ;;  %v292_v60 = vld [vmem:[%s5129_s28 + $0x1f8] sm:$0xff] }
 0x107   : > { %2509 = vmatmul.mubr.bf16.gmra.mrb[96].mxu1 %v4260_v13  ;;  %3087 = vmatmul.mubr.bf16.gmra.mrb[96].mxu0 %v4264_v14  ;;  %v4070_v13 = vcombine.low %v230_v0, %v234_v2  ;;  %v4074_v14 = vcombine.low %v232_v3, %v236_v4  ;;  %v294_v0 = vld [vmem:[%s5129_s28 + $0x208] sm:$0xff]  ;;  %v296_v3 = vld [vmem:[%s5129_s28 + $0x218] sm:$0xff] }
 0x108   : > { %2516 = vmatprep.mubr.bf16.mxu1 %v4269_v15  ;;  %3094 = vmatprep.mubr.bf16.mxu0 %v4273_v16  ;;  %v4079_v15 = vcombine.high %v238_v9, %v242_v10  ;;  %v4083_v16 = vcombine.high %v240_v11, %v244_v12  ;;  %v298_v2 = vld [vmem:[%s5129_s28 + $0x228] sm:$0xff]  ;;  %v300_v4 = vld [vmem:[%s5129_s28 + $0x238] sm:$0xff] }
 0x10f   : > { %2517 = vmatmul.mubr.bf16.gmra.mrb[100].mxu1 %v4268_v21  ;;  %3095 = vmatmul.mubr.bf16.gmra.mrb[100].mxu0 %v4272_v22  ;;  %v4078_v21 = vcombine.low %v238_v9, %v242_v10  ;;  %v4082_v22 = vcombine.low %v240_v11, %v244_v12  ;;  %v302_v9 = vld [vmem:[%s5129_s28 + $0x248] sm:$0xff]  ;;  %v304_v11 = vld [vmem:[%s5129_s28 + $0x258] sm:$0xff] }
 0x110   : > { %2524 = vmatprep.mubr.bf16.mxu1 %v4277_v23  ;;  %3102 = vmatprep.mubr.bf16.mxu0 %v4281_v24  ;;  %v4087_v23 = vcombine.high %v246_v17, %v250_v18  ;;  %v4091_v24 = vcombine.high %v248_v19, %v252_v20  ;;  %v306_v10 = vld [vmem:[%s5129_s28 + $0x268] sm:$0xff]  ;;  %v308_v12 = vld [vmem:[%s5129_s28 + $0x278] sm:$0xff] }
 0x117   : > { %2525 = vmatmul.mubr.bf16.gmra.mrb[104].mxu1 %v4276_v29  ;;  %3103 = vmatmul.mubr.bf16.gmra.mrb[104].mxu0 %v4280_v30  ;;  %v4086_v29 = vcombine.low %v246_v17, %v250_v18  ;;  %v4090_v30 = vcombine.low %v248_v19, %v252_v20  ;;  %v310_v17 = vld [vmem:[%s5129_s28 + $0x288] sm:$0xff]  ;;  %v312_v19 = vld [vmem:[%s5129_s28 + $0x298] sm:$0xff] }
 0x118   : > { %2532 = vmatprep.mubr.bf16.mxu1 %v4285_v31  ;;  %3110 = vmatprep.mubr.bf16.mxu0 %v4289_v32  ;;  %v4095_v31 = vcombine.high %v254_v25, %v258_v26  ;;  %v4099_v32 = vcombine.high %v256_v27, %v260_v28  ;;  %v314_v18 = vld [vmem:[%s5129_s28 + $0x2a8] sm:$0xff]  ;;  %v316_v20 = vld [vmem:[%s5129_s28 + $0x2b8] sm:$0xff] }
 0x11f   : > { %2533 = vmatmul.mubr.bf16.gmra.mrb[108].mxu1 %v4284_v37  ;;  %3111 = vmatmul.mubr.bf16.gmra.mrb[108].mxu0 %v4288_v38  ;;  %v4094_v37 = vcombine.low %v254_v25, %v258_v26  ;;  %v4098_v38 = vcombine.low %v256_v27, %v260_v28  ;;  %v318_v25 = vld [vmem:[%s5129_s28 + $0x2c8] sm:$0xff]  ;;  %v320_v27 = vld [vmem:[%s5129_s28 + $0x2d8] sm:$0xff] }
 0x120   : > { %2540 = vmatprep.mubr.bf16.mxu1 %v4293_v39  ;;  %3118 = vmatprep.mubr.bf16.mxu0 %v4297_v40  ;;  %v4103_v39 = vcombine.high %v262_v33, %v266_v34  ;;  %v4107_v40 = vcombine.high %v264_v35, %v268_v36  ;;  %v322_v26 = vld [vmem:[%s5129_s28 + $0x2e8] sm:$0xff]  ;;  %v324_v28 = vld [vmem:[%s5129_s28 + $0x2f8] sm:$0xff] }
 0x127   : > { %2541 = vmatmul.mubr.bf16.gmra.mrb[112].mxu1 %v4292_v45  ;;  %3119 = vmatmul.mubr.bf16.gmra.mrb[112].mxu0 %v4296_v46  ;;  %v4102_v45 = vcombine.low %v262_v33, %v266_v34  ;;  %v4106_v46 = vcombine.low %v264_v35, %v268_v36  ;;  %v326_v33 = vld [vmem:[%s5129_s28 + $0x308] sm:$0xff]  ;;  %v328_v35 = vld [vmem:[%s5129_s28 + $0x318] sm:$0xff] }
 0x128   : > { %2548 = vmatprep.mubr.bf16.mxu1 %v4301_v47  ;;  %3126 = vmatprep.mubr.bf16.mxu0 %v4305_v48  ;;  %v4111_v47 = vcombine.high %v270_v41, %v274_v42  ;;  %v4115_v48 = vcombine.high %v272_v43, %v276_v44  ;;  %v330_v34 = vld [vmem:[%s5129_s28 + $0x328] sm:$0xff]  ;;  %v332_v36 = vld [vmem:[%s5129_s28 + $0x338] sm:$0xff] }
 0x12f   : > { %2549 = vmatmul.mubr.bf16.gmra.mrb[116].mxu1 %v4300_v53  ;;  %3127 = vmatmul.mubr.bf16.gmra.mrb[116].mxu0 %v4304_v54  ;;  %v4110_v53 = vcombine.low %v270_v41, %v274_v42  ;;  %v4114_v54 = vcombine.low %v272_v43, %v276_v44  ;;  %v334_v41 = vld [vmem:[%s5129_s28 + $0x348] sm:$0xff]  ;;  %v336_v43 = vld [vmem:[%s5129_s28 + $0x358] sm:$0xff] }
 0x130   : > { %2556 = vmatprep.mubr.bf16.mxu1 %v4309_v55  ;;  %3134 = vmatprep.mubr.bf16.mxu0 %v4313_v56  ;;  %v4119_v55 = vcombine.high %v278_v49, %v282_v50  ;;  %v4123_v56 = vcombine.high %v280_v51, %v284_v52  ;;  %v338_v42 = vld [vmem:[%s5129_s28 + $0x368] sm:$0xff]  ;;  %v340_v44 = vld [vmem:[%s5129_s28 + $0x378] sm:$0xff] }
 0x137   : > { %2557 = vmatmul.mubr.bf16.gmra.mrb[120].mxu1 %v4308_v61  ;;  %3135 = vmatmul.mubr.bf16.gmra.mrb[120].mxu0 %v4312_v62  ;;  %v4118_v61 = vcombine.low %v278_v49, %v282_v50  ;;  %v4122_v62 = vcombine.low %v280_v51, %v284_v52  ;;  %v342_v49 = vld [vmem:[%s5129_s28 + $0x388] sm:$0xff]  ;;  %v344_v51 = vld [vmem:[%s5129_s28 + $0x398] sm:$0xff] }
 0x138   : > { %2564 = vmatprep.mubr.bf16.mxu1 %v4317_v1  ;;  %3142 = vmatprep.mubr.bf16.mxu0 %v4321_v63  ;;  %v4127_v1 = vcombine.high %v286_v57, %v290_v58  ;;  %v4131_v63 = vcombine.high %v288_v59, %v292_v60  ;;  %v346_v50 = vld [vmem:[%s5129_s28 + $0x3a8] sm:$0xff]  ;;  %v348_v52 = vld [vmem:[%s5129_s28 + $0x3b8] sm:$0xff] }
 0x13f   : > { %2565 = vmatmul.mubr.bf16.gmra.mrb[124].mxu1 %v4316_v5  ;;  %3143 = vmatmul.mubr.bf16.gmra.mrb[124].mxu0 %v4320_v6  ;;  %v4126_v5 = vcombine.low %v286_v57, %v290_v58  ;;  %v4130_v6 = vcombine.low %v288_v59, %v292_v60  ;;  %v350_v57 = vld [vmem:[%s5129_s28 + $0x3c8] sm:$0xff]  ;;  %v352_v59 = vld [vmem:[%s5129_s28 + $0x3d8] sm:$0xff] }
 0x140   : > { %2605 = vmatprep.mubr.bf16.mxu1 %v4071_v7  ;;  %3183 = vmatprep.mubr.bf16.mxu0 %v4075_v8  ;;  %v4135_v7 = vcombine.high %v294_v0, %v298_v2  ;;  %v4139_v8 = vcombine.high %v296_v3, %v300_v4  ;;  %v354_v58 = vld [vmem:[%s5129_s28 + $0x3e8] sm:$0xff]  ;;  %v356_v60 = vld [vmem:[%s5129_s28 + $0x3f8] sm:$0xff] }
 0x147   : > { %2606 = vmatmul.mubr.bf16.vlgmr.msra.gmra.mrb[0].mxu1 %v4070_v13  ;;  %3184 = vmatmul.mubr.bf16.vlgmr.msra.gmra.mrb[0].mxu0 %v4074_v14  ;;  %v4134_v13 = vcombine.low %v294_v0, %v298_v2  ;;  %v4138_v14 = vcombine.low %v296_v3, %v300_v4  ;;  %v358_v0 = vld [vmem:[%s5129_s28 + $0x408] sm:$0xff]  ;;  %v360_v3 = vld [vmem:[%s5129_s28 + $0x418] sm:$0xff] }
 0x148   : > { %2613 = vmatprep.mubr.bf16.mxu1 %v4079_v15  ;;  %3191 = vmatprep.mubr.bf16.mxu0 %v4083_v16  ;;  %v4143_v15 = vcombine.high %v302_v9, %v306_v10  ;;  %v4147_v16 = vcombine.high %v304_v11, %v308_v12  ;;  %v362_v2 = vld [vmem:[%s5129_s28 + $0x428] sm:$0xff]  ;;  %v364_v4 = vld [vmem:[%s5129_s28 + $0x438] sm:$0xff] }
 0x14f   : > { %2614 = vmatmul.mubr.bf16.gmra.mrb[4].mxu1 %v4078_v21  ;;  %3192 = vmatmul.mubr.bf16.gmra.mrb[4].mxu0 %v4082_v22  ;;  %v4142_v21 = vcombine.low %v302_v9, %v306_v10  ;;  %v4146_v22 = vcombine.low %v304_v11, %v308_v12  ;;  %v366_v9 = vld [vmem:[%s5129_s28 + $0x448] sm:$0xff]  ;;  %v368_v11 = vld [vmem:[%s5129_s28 + $0x458] sm:$0xff] }
 0x150   : > { %2621 = vmatprep.mubr.bf16.mxu1 %v4087_v23  ;;  %3199 = vmatprep.mubr.bf16.mxu0 %v4091_v24  ;;  %v4151_v23 = vcombine.high %v310_v17, %v314_v18  ;;  %v4155_v24 = vcombine.high %v312_v19, %v316_v20  ;;  %v370_v10 = vld [vmem:[%s5129_s28 + $0x468] sm:$0xff]  ;;  %v372_v12 = vld [vmem:[%s5129_s28 + $0x478] sm:$0xff] }
 0x157   : > { %2622 = vmatmul.mubr.bf16.gmra.mrb[8].mxu1 %v4086_v29  ;;  %3200 = vmatmul.mubr.bf16.gmra.mrb[8].mxu0 %v4090_v30  ;;  %v4150_v29 = vcombine.low %v310_v17, %v314_v18  ;;  %v4154_v30 = vcombine.low %v312_v19, %v316_v20  ;;  %v374_v17 = vld [vmem:[%s5129_s28 + $0x488] sm:$0xff]  ;;  %v376_v19 = vld [vmem:[%s5129_s28 + $0x498] sm:$0xff] }
 0x158   : > { %2629 = vmatprep.mubr.bf16.mxu1 %v4095_v31  ;;  %3207 = vmatprep.mubr.bf16.mxu0 %v4099_v32  ;;  %v4159_v31 = vcombine.high %v318_v25, %v322_v26  ;;  %v4163_v32 = vcombine.high %v320_v27, %v324_v28  ;;  %v378_v18 = vld [vmem:[%s5129_s28 + $0x4a8] sm:$0xff]  ;;  %v380_v20 = vld [vmem:[%s5129_s28 + $0x4b8] sm:$0xff] }
 0x15f   : > { %2630 = vmatmul.mubr.bf16.gmra.mrb[12].mxu1 %v4094_v37  ;;  %3208 = vmatmul.mubr.bf16.gmra.mrb[12].mxu0 %v4098_v38  ;;  %v4158_v37 = vcombine.low %v318_v25, %v322_v26  ;;  %v4162_v38 = vcombine.low %v320_v27, %v324_v28  ;;  %v382_v25 = vld [vmem:[%s5129_s28 + $0x4c8] sm:$0xff]  ;;  %v384_v27 = vld [vmem:[%s5129_s28 + $0x4d8] sm:$0xff] }
 0x160   : > { %2637 = vmatprep.mubr.bf16.mxu1 %v4103_v39  ;;  %3215 = vmatprep.mubr.bf16.mxu0 %v4107_v40  ;;  %v4167_v39 = vcombine.high %v326_v33, %v330_v34  ;;  %v4171_v40 = vcombine.high %v328_v35, %v332_v36  ;;  %v386_v26 = vld [vmem:[%s5129_s28 + $0x4e8] sm:$0xff]  ;;  %v388_v28 = vld [vmem:[%s5129_s28 + $0x4f8] sm:$0xff] }
 0x167   : > { %2638 = vmatmul.mubr.bf16.gmra.mrb[16].mxu1 %v4102_v45  ;;  %3216 = vmatmul.mubr.bf16.gmra.mrb[16].mxu0 %v4106_v46  ;;  %v4166_v45 = vcombine.low %v326_v33, %v330_v34  ;;  %v4170_v46 = vcombine.low %v328_v35, %v332_v36  ;;  %v390_v33 = vld [vmem:[%s5129_s28 + $0x508] sm:$0xff]  ;;  %v392_v35 = vld [vmem:[%s5129_s28 + $0x518] sm:$0xff] }
 0x168   : > { %2645 = vmatprep.mubr.bf16.mxu1 %v4111_v47  ;;  %3223 = vmatprep.mubr.bf16.mxu0 %v4115_v48  ;;  %v4175_v47 = vcombine.high %v334_v41, %v338_v42  ;;  %v4179_v48 = vcombine.high %v336_v43, %v340_v44  ;;  %v394_v34 = vld [vmem:[%s5129_s28 + $0x528] sm:$0xff]  ;;  %v396_v36 = vld [vmem:[%s5129_s28 + $0x538] sm:$0xff] }
 0x16f   : > { %2646 = vmatmul.mubr.bf16.gmra.mrb[20].mxu1 %v4110_v53  ;;  %3224 = vmatmul.mubr.bf16.gmra.mrb[20].mxu0 %v4114_v54  ;;  %v4174_v53 = vcombine.low %v334_v41, %v338_v42  ;;  %v4178_v54 = vcombine.low %v336_v43, %v340_v44  ;;  %v398_v41 = vld [vmem:[%s5129_s28 + $0x548] sm:$0xff]  ;;  %v400_v43 = vld [vmem:[%s5129_s28 + $0x558] sm:$0xff] }
 0x170   : > { %2653 = vmatprep.mubr.bf16.mxu1 %v4119_v55  ;;  %3231 = vmatprep.mubr.bf16.mxu0 %v4123_v56  ;;  %v4183_v55 = vcombine.high %v342_v49, %v346_v50  ;;  %v4187_v56 = vcombine.high %v344_v51, %v348_v52  ;;  %v402_v42 = vld [vmem:[%s5129_s28 + $0x568] sm:$0xff]  ;;  %v404_v44 = vld [vmem:[%s5129_s28 + $0x578] sm:$0xff] }
 0x177   : > { %2654 = vmatmul.mubr.bf16.gmra.mrb[24].mxu1 %v4118_v61  ;;  %3232 = vmatmul.mubr.bf16.gmra.mrb[24].mxu0 %v4122_v62  ;;  %v4182_v61 = vcombine.low %v342_v49, %v346_v50  ;;  %v4186_v62 = vcombine.low %v344_v51, %v348_v52  ;;  %v406_v49 = vld [vmem:[%s5129_s28 + $0x588] sm:$0xff]  ;;  %v408_v51 = vld [vmem:[%s5129_s28 + $0x598] sm:$0xff] }
 0x178   : > { %2661 = vmatprep.mubr.bf16.mxu1 %v4127_v1  ;;  %3239 = vmatprep.mubr.bf16.mxu0 %v4131_v63  ;;  %v4191_v1 = vcombine.high %v350_v57, %v354_v58  ;;  %v4195_v63 = vcombine.high %v352_v59, %v356_v60  ;;  %v410_v50 = vld [vmem:[%s5129_s28 + $0x5a8] sm:$0xff]  ;;  %v412_v52 = vld [vmem:[%s5129_s28 + $0x5b8] sm:$0xff] }
 0x17f   : > { %2662 = vmatmul.mubr.bf16.gmra.mrb[28].mxu1 %v4126_v5  ;;  %3240 = vmatmul.mubr.bf16.gmra.mrb[28].mxu0 %v4130_v6  ;;  %v4190_v5 = vcombine.low %v350_v57, %v354_v58  ;;  %v4194_v6 = vcombine.low %v352_v59, %v356_v60  ;;  %v414_v57 = vld [vmem:[%s5129_s28 + $0x5c8] sm:$0xff]  ;;  %v416_v59 = vld [vmem:[%s5129_s28 + $0x5d8] sm:$0xff] }
 0x180   : > { %2669 = vmatprep.mubr.bf16.mxu1 %v4135_v7  ;;  %3247 = vmatprep.mubr.bf16.mxu0 %v4139_v8  ;;  %v4199_v7 = vcombine.high %v358_v0, %v362_v2  ;;  %v4203_v8 = vcombine.high %v360_v3, %v364_v4  ;;  %v418_v58 = vld [vmem:[%s5129_s28 + $0x5e8] sm:$0xff]  ;;  %v420_v60 = vld [vmem:[%s5129_s28 + $0x5f8] sm:$0xff] }
 0x187   : > { %2670 = vmatmul.mubr.bf16.gmra.mrb[32].mxu1 %v4134_v13  ;;  %3248 = vmatmul.mubr.bf16.gmra.mrb[32].mxu0 %v4138_v14  ;;  %v4198_v13 = vcombine.low %v358_v0, %v362_v2  ;;  %v4202_v14 = vcombine.low %v360_v3, %v364_v4  ;;  %v422_v0 = vld [vmem:[%s5129_s28 + $0x608] sm:$0xff]  ;;  %v424_v3 = vld [vmem:[%s5129_s28 + $0x618] sm:$0xff] }
 0x188   : > { %2677 = vmatprep.mubr.bf16.mxu1 %v4143_v15  ;;  %3255 = vmatprep.mubr.bf16.mxu0 %v4147_v16  ;;  %v4207_v15 = vcombine.high %v366_v9, %v370_v10  ;;  %v4211_v16 = vcombine.high %v368_v11, %v372_v12  ;;  %v426_v2 = vld [vmem:[%s5129_s28 + $0x628] sm:$0xff]  ;;  %v428_v4 = vld [vmem:[%s5129_s28 + $0x638] sm:$0xff] }
 0x18f   : > { %2678 = vmatmul.mubr.bf16.gmra.mrb[36].mxu1 %v4142_v21  ;;  %3256 = vmatmul.mubr.bf16.gmra.mrb[36].mxu0 %v4146_v22  ;;  %v4206_v21 = vcombine.low %v366_v9, %v370_v10  ;;  %v4210_v22 = vcombine.low %v368_v11, %v372_v12  ;;  %v430_v9 = vld [vmem:[%s5129_s28 + $0x648] sm:$0xff]  ;;  %v432_v11 = vld [vmem:[%s5129_s28 + $0x658] sm:$0xff] }
 0x190   : > { %2685 = vmatprep.mubr.bf16.mxu1 %v4151_v23  ;;  %3263 = vmatprep.mubr.bf16.mxu0 %v4155_v24  ;;  %v4215_v23 = vcombine.high %v374_v17, %v378_v18  ;;  %v4219_v24 = vcombine.high %v376_v19, %v380_v20  ;;  %v434_v10 = vld [vmem:[%s5129_s28 + $0x668] sm:$0xff]  ;;  %v436_v12 = vld [vmem:[%s5129_s28 + $0x678] sm:$0xff] }
 0x197   : > { %2686 = vmatmul.mubr.bf16.gmra.mrb[40].mxu1 %v4150_v29  ;;  %3264 = vmatmul.mubr.bf16.gmra.mrb[40].mxu0 %v4154_v30  ;;  %v4214_v29 = vcombine.low %v374_v17, %v378_v18  ;;  %v4218_v30 = vcombine.low %v376_v19, %v380_v20  ;;  %v438_v17 = vld [vmem:[%s5129_s28 + $0x688] sm:$0xff]  ;;  %v440_v19 = vld [vmem:[%s5129_s28 + $0x698] sm:$0xff] }
 0x198   : > { %2693 = vmatprep.mubr.bf16.mxu1 %v4159_v31  ;;  %3271 = vmatprep.mubr.bf16.mxu0 %v4163_v32  ;;  %v4223_v31 = vcombine.high %v382_v25, %v386_v26  ;;  %v4227_v32 = vcombine.high %v384_v27, %v388_v28  ;;  %v442_v18 = vld [vmem:[%s5129_s28 + $0x6a8] sm:$0xff]  ;;  %v444_v20 = vld [vmem:[%s5129_s28 + $0x6b8] sm:$0xff] }
 0x19f   : > { %2694 = vmatmul.mubr.bf16.gmra.mrb[44].mxu1 %v4158_v37  ;;  %3272 = vmatmul.mubr.bf16.gmra.mrb[44].mxu0 %v4162_v38  ;;  %v4222_v37 = vcombine.low %v382_v25, %v386_v26  ;;  %v4226_v38 = vcombine.low %v384_v27, %v388_v28  ;;  %v446_v25 = vld [vmem:[%s5129_s28 + $0x6c8] sm:$0xff]  ;;  %v448_v27 = vld [vmem:[%s5129_s28 + $0x6d8] sm:$0xff] }
 0x1a0   : > { %2701 = vmatprep.mubr.bf16.mxu1 %v4167_v39  ;;  %3279 = vmatprep.mubr.bf16.mxu0 %v4171_v40  ;;  %v4231_v39 = vcombine.high %v390_v33, %v394_v34  ;;  %v4235_v40 = vcombine.high %v392_v35, %v396_v36  ;;  %v450_v26 = vld [vmem:[%s5129_s28 + $0x6e8] sm:$0xff]  ;;  %v452_v28 = vld [vmem:[%s5129_s28 + $0x6f8] sm:$0xff] }
 0x1a7   : > { %2702 = vmatmul.mubr.bf16.gmra.mrb[48].mxu1 %v4166_v45  ;;  %3280 = vmatmul.mubr.bf16.gmra.mrb[48].mxu0 %v4170_v46  ;;  %v4230_v45 = vcombine.low %v390_v33, %v394_v34  ;;  %v4234_v46 = vcombine.low %v392_v35, %v396_v36  ;;  %v5582_v33 = vld [vmem:[%s5814_s2] ss:$0 sm:$0xff]  ;;  %v454_v34 = vld [vmem:[%s5129_s28 + $0x708] sm:$0xff] }
 0x1a8   : > { %2709 = vmatprep.mubr.bf16.mxu1 %v4175_v47  ;;  %3287 = vmatprep.mubr.bf16.mxu0 %v4179_v48  ;;  %v4239_v47 = vcombine.high %v398_v41, %v402_v42  ;;  %v4243_v48 = vcombine.high %v400_v43, %v404_v44  ;;  %v458_v35 = vld [vmem:[%s5129_s28 + $0x728] sm:$0xff] }
 0x1af   : > { %2710 = vmatmul.mubr.bf16.gmra.mrb[52].mxu1 %v4174_v53  ;;  %3288 = vmatmul.mubr.bf16.gmra.mrb[52].mxu0 %v4178_v54  ;;  %v4238_v53 = vcombine.low %v398_v41, %v402_v42  ;;  %v4242_v54 = vcombine.low %v400_v43, %v404_v44  ;;  %v4286_v42 = vcombine.low %v446_v25, %v450_v26 }
 0x1b0   : > { %2717 = vmatprep.mubr.bf16.mxu1 %v4183_v55  ;;  %3295 = vmatprep.mubr.bf16.mxu0 %v4187_v56  ;;  %v4247_v55 = vcombine.high %v406_v49, %v410_v50  ;;  %v4251_v56 = vcombine.high %v408_v51, %v412_v52 }
 0x1b7   : > { %2718 = vmatmul.mubr.bf16.gmra.mrb[56].mxu1 %v4182_v61  ;;  %3296 = vmatmul.mubr.bf16.gmra.mrb[56].mxu0 %v4186_v62  ;;  %v4246_v61 = vcombine.low %v406_v49, %v410_v50  ;;  %v4250_v62 = vcombine.low %v408_v51, %v412_v52 }
 0x1b8   : > { %2725 = vmatprep.mubr.bf16.mxu1 %v4191_v1  ;;  %3303 = vmatprep.mubr.bf16.mxu0 %v4195_v63  ;;  %v4255_v1 = vcombine.high %v414_v57, %v418_v58  ;;  %v4259_v63 = vcombine.high %v416_v59, %v420_v60 }
 0x1bf   : > { %2726 = vmatmul.mubr.bf16.gmra.mrb[60].mxu1 %v4190_v5  ;;  %3304 = vmatmul.mubr.bf16.gmra.mrb[60].mxu0 %v4194_v6  ;;  %v4254_v5 = vcombine.low %v414_v57, %v418_v58  ;;  %v4258_v6 = vcombine.low %v416_v59, %v420_v60  ;;  %v462_v57 = vld [vmem:[%s5129_s28 + $0x748] sm:$0xff] }
 0x1c0   : > { %2733 = vmatprep.mubr.bf16.mxu1 %v4199_v7  ;;  %3311 = vmatprep.mubr.bf16.mxu0 %v4203_v8  ;;  %v4263_v7 = vcombine.high %v422_v0, %v426_v2  ;;  %v4267_v8 = vcombine.high %v424_v3, %v428_v4  ;;  %v466_v58 = vld [vmem:[%s5129_s28 + $0x768] sm:$0xff] }
 0x1c7   : > { %2734 = vmatmul.mubr.bf16.gmra.mrb[64].mxu1 %v4198_v13  ;;  %3312 = vmatmul.mubr.bf16.gmra.mrb[64].mxu0 %v4202_v14  ;;  %v4262_v13 = vcombine.low %v422_v0, %v426_v2  ;;  %v4266_v14 = vcombine.low %v424_v3, %v428_v4  ;;  %v4294_v3 = vcombine.low %v454_v34, %v458_v35 }
 0x1c8   : > { %2741 = vmatprep.mubr.bf16.mxu1 %v4207_v15  ;;  %3319 = vmatprep.mubr.bf16.mxu0 %v4211_v16  ;;  %v4271_v15 = vcombine.high %v430_v9, %v434_v10  ;;  %v4275_v16 = vcombine.high %v432_v11, %v436_v12 }
 0x1cf   : > { %2742 = vmatmul.mubr.bf16.gmra.mrb[68].mxu1 %v4206_v21  ;;  %3320 = vmatmul.mubr.bf16.gmra.mrb[68].mxu0 %v4210_v22  ;;  %v4270_v21 = vcombine.low %v430_v9, %v434_v10  ;;  %v4274_v22 = vcombine.low %v432_v11, %v436_v12 }
 0x1d0   : > { %2749 = vmatprep.mubr.bf16.mxu1 %v4215_v23  ;;  %3327 = vmatprep.mubr.bf16.mxu0 %v4219_v24  ;;  %v4279_v23 = vcombine.high %v438_v17, %v442_v18  ;;  %v4283_v24 = vcombine.high %v440_v19, %v444_v20 }
 0x1d7   : > { %2750 = vmatmul.mubr.bf16.gmra.mrb[72].mxu1 %v4214_v29  ;;  %3328 = vmatmul.mubr.bf16.gmra.mrb[72].mxu0 %v4218_v30  ;;  %v4278_v29 = vcombine.low %v438_v17, %v442_v18  ;;  %v4282_v30 = vcombine.low %v440_v19, %v444_v20  ;;  %v470_v19 = vld [vmem:[%s5129_s28 + $0x788] sm:$0xff] }
 0x1d8   : > { %2757 = vmatprep.mubr.bf16.mxu1 %v4223_v31  ;;  %3335 = vmatprep.mubr.bf16.mxu0 %v4227_v32  ;;  %v4287_v31 = vcombine.high %v446_v25, %v450_v26  ;;  %v4291_v32 = vcombine.high %v448_v27, %v452_v28  ;;  %v474_v20 = vld [vmem:[%s5129_s28 + $0x7a8] sm:$0xff] }
 0x1df   : > { %2758 = vmatmul.mubr.bf16.gmra.mrb[76].mxu1 %v4222_v37  ;;  %3336 = vmatmul.mubr.bf16.gmra.mrb[76].mxu0 %v4226_v38  ;;  %v456_v37 = vld [vmem:[%s5129_s28 + $0x718] sm:$0xff] }
 0x1e0   : > { %2765 = vmatprep.mubr.bf16.mxu1 %v4231_v39  ;;  %3343 = vmatprep.mubr.bf16.mxu0 %v4235_v40  ;;  %v460_v38 = vld [vmem:[%s5129_s28 + $0x738] sm:$0xff] }
 0x1e1   : > { %v4299_v51 = vcombine.high %v456_v37, %v460_v38 }
 0x1e7   : > { %2766 = vmatmul.mubr.bf16.gmra.mrb[80].mxu1 %v4230_v45  ;;  %3344 = vmatmul.mubr.bf16.gmra.mrb[80].mxu0 %v4234_v46  ;;  %v4290_v45 = vcombine.low %v448_v27, %v452_v28  ;;  %v4295_v46 = vcombine.high %v454_v34, %v458_v35  ;;  %v4311_v35 = vcombine.high %v470_v19, %v474_v20 }
 0x1e8   : > { %2773 = vmatprep.mubr.bf16.mxu1 %v4239_v47  ;;  %3351 = vmatprep.mubr.bf16.mxu0 %v4243_v48 }
 0x1ef   : > { %2774 = vmatmul.mubr.bf16.gmra.mrb[84].mxu1 %v4238_v53  ;;  %3352 = vmatmul.mubr.bf16.gmra.mrb[84].mxu0 %v4242_v54 }
 0x1f0   : > { %2781 = vmatprep.mubr.bf16.mxu1 %v4247_v55  ;;  %3359 = vmatprep.mubr.bf16.mxu0 %v4251_v56 }
 0x1f7   : > { %2782 = vmatmul.mubr.bf16.gmra.mrb[88].mxu1 %v4246_v61  ;;  %3360 = vmatmul.mubr.bf16.gmra.mrb[88].mxu0 %v4250_v62  ;;  %v464_v61 = vld [vmem:[%s5129_s28 + $0x758] sm:$0xff] }
 0x1f8   : > { %2789 = vmatprep.mubr.bf16.mxu1 %v4255_v1  ;;  %3367 = vmatprep.mubr.bf16.mxu0 %v4259_v63  ;;  %v468_v62 = vld [vmem:[%s5129_s28 + $0x778] sm:$0xff] }
 0x1f9   : > { %v4306_v34 = vcombine.low %v464_v61, %v468_v62 }
 0x1ff   : > { %2790 = vmatmul.mubr.bf16.gmra.mrb[92].mxu1 %v4254_v5  ;;  %3368 = vmatmul.mubr.bf16.gmra.mrb[92].mxu0 %v4258_v6 }
 0x200   : > { %2797 = vmatprep.mubr.bf16.mxu1 %v4263_v7  ;;  %3375 = vmatprep.mubr.bf16.mxu0 %v4267_v8  ;;  %v4298_v7 = vcombine.low %v456_v37, %v460_v38  ;;  %v4303_v8 = vcombine.high %v462_v57, %v466_v58 }
 0x207   : > { %2798 = vmatmul.mubr.bf16.gmra.mrb[96].mxu1 %v4262_v13  ;;  %3376 = vmatmul.mubr.bf16.gmra.mrb[96].mxu0 %v4266_v14  ;;  %v4307_v13 = vcombine.high %v464_v61, %v468_v62 }
 0x208   : > { %2805 = vmatprep.mubr.bf16.mxu1 %v4271_v15  ;;  %3383 = vmatprep.mubr.bf16.mxu0 %v4275_v16 }
 0x20f   : > { %2806 = vmatmul.mubr.bf16.gmra.mrb[100].mxu1 %v4270_v21  ;;  %3384 = vmatmul.mubr.bf16.gmra.mrb[100].mxu0 %v4274_v22 }
 0x210   : > { %2813 = vmatprep.mubr.bf16.mxu1 %v4279_v23  ;;  %3391 = vmatprep.mubr.bf16.mxu0 %v4283_v24  ;;  %v472_v23 = vld [vmem:[%s5129_s28 + $0x798] sm:$0xff] }
 0x211   : > { %v476_v24 = vld [vmem:[%s5129_s28 + $0x7b8] sm:$0xff] }
 0x217   : > { %2814 = vmatmul.mubr.bf16.gmra.mrb[104].mxu1 %v4278_v29  ;;  %3392 = vmatmul.mubr.bf16.gmra.mrb[104].mxu0 %v4282_v30  ;;  %v4302_v29 = vcombine.low %v462_v57, %v466_v58 }
 0x218   : > { %2821 = vmatprep.mubr.bf16.mxu1 %v4287_v31  ;;  %3399 = vmatprep.mubr.bf16.mxu0 %v4291_v32 }
 0x21a   : > { %v2607_v36 = vpop.f32.mrb[0].mxu1  ;;  %v3185_v40 = vpop.f32.mrb[0].mxu0 }
 0x21b   : > { %v4519_v39 = vadd.f32 %v5582_v33, %v2607_v36  ;;  %v2609_v41 = vpop.f32.mrb[1].mxu1  ;;  %v3187_v43 = vpop.f32.mrb[1].mxu0 }
 0x21c   : > { %v2610_v44 = vpop.f32.mrb[2].mxu1  ;;  %v3188_v49 = vpop.f32.mrb[2].mxu0 }
 0x21d   : > { %v4520_v47 = vadd.f32 %v4519_v39, %v3185_v40  ;;  %v4521_v48 = vadd.f32 %v5582_v33, %v2610_v44  ;;  %v2612_v50 = vpop.f32.mrb[3].mxu1  ;;  %v3190_v52 = vpop.f32.mrb[3].mxu0  ;;  %v4315_v40 = vcombine.high %v472_v23, %v476_v24 }
 0x21e   : > { %v480_v50 = vld [vmem:[%s5129_s28 + $0x7d8] sm:$0xff] }
 0x21f   : > { %vm3440_vm0 = vcmp.gt.f32.partialorder %v4520_v47, 0.0  ;;  %v3504_v53 = vmul.f32 0.2, %v4520_v47  ;;  %v4522_v54 = vadd.f32 %v4521_v48, %v3188_v49  ;;  %2822 = vmatmul.mubr.bf16.gmra.mrb[108].mxu1 %v4286_v42  ;;  %3400 = vmatmul.mubr.bf16.gmra.mrb[108].mxu0 %v4290_v45 }
 0x220   : > { %2829 = vmatprep.mubr.bf16.mxu1 %v4295_v46  ;;  %3407 = vmatprep.mubr.bf16.mxu0 %v4299_v51  ;;  %v478_v46 = vld [vmem:[%s5129_s28 + $0x7c8] sm:$0xff]  ;;  %v484_v51 = vld [vmem:[%s5129_s28 + $0x7f8] sm:$0xff] }
 0x221   : > { %v3568_v55 = vsel %vm3440_vm0, %v4520_v47, %v3504_v53  ;;  %vm3441_vm2 = vcmp.gt.f32.partialorder %v4522_v54, 0.0  ;;  %v3505_v56 = vmul.f32 0.2, %v4522_v54  ;;  %v482_v47 = vld [vmem:[%s5129_s28 + $0x7e8] sm:$0xff] }
 0x222   : > { %v4455_v59 = vpack.c.bf16 %v3568_v55, %v3568_v55  ;;  %v2615_v60 = vpop.f32.mrb[4].mxu1  ;;  %v3193_v0 = vpop.f32.mrb[4].mxu0  ;;  %v4319_v61 = vcombine.high %v478_v46, %v482_v47 }
 0x223   : > { %v3569_v1 = vsel %vm3441_vm2, %v4522_v54, %v3505_v56  ;;  %v4523_v63 = vadd.f32 %v5582_v33, %v2615_v60  ;;  %v2617_v2 = vpop.f32.mrb[5].mxu1  ;;  %v3195_v5 = vpop.f32.mrb[5].mxu0  ;;  %v4310_v56 = vcombine.low %v470_v19, %v474_v20  ;;  %v4314_v60 = vcombine.low %v472_v23, %v476_v24 }
 0x224   : > { %3889 = vst.msk [vmem:[%s5594_s19] sm:$0xf] %vm3888_vm1, %v4455_v59  ;;  %v4456_v4 = vpack.c.bf16 %v3569_v1, %v3569_v1  ;;  %v2618_v6 = vpop.f32.mrb[6].mxu1  ;;  %v3196_v11 = vpop.f32.mrb[6].mxu0  ;;  %v4323_v2 = vcombine.high %v480_v50, %v484_v51 }
 0x225   : > { %v4524_v9 = vadd.f32 %v4523_v63, %v3193_v0  ;;  %v4525_v10 = vadd.f32 %v5582_v33, %v2618_v6  ;;  %v2620_v12 = vpop.f32.mrb[7].mxu1  ;;  %v3198_v14 = vpop.f32.mrb[7].mxu0 }
 0x226   : > { %3890 = vst.msk [vmem:[%s5594_s19 + $0x4] sm:$0xf] %vm3888_vm1, %v4456_v4  ;;  %v4318_v14 = vcombine.low %v478_v46, %v482_v47 }
 0x227   : > { %vm3442_vm3 = vcmp.gt.f32.partialorder %v4524_v9, 0.0  ;;  %v3506_v15 = vmul.f32 0.2, %v4524_v9  ;;  %v4526_v16 = vadd.f32 %v4525_v10, %v3196_v11  ;;  %2830 = vmatmul.mubr.bf16.gmra.mrb[112].mxu1 %v4294_v3  ;;  %3408 = vmatmul.mubr.bf16.gmra.mrb[112].mxu0 %v4298_v7 }
 0x228   : > { %2837 = vmatprep.mubr.bf16.mxu1 %v4303_v8  ;;  %3415 = vmatprep.mubr.bf16.mxu0 %v4307_v13 }
 0x229   : > { %v3570_v17 = vsel %vm3442_vm3, %v4524_v9, %v3506_v15  ;;  %vm3443_vm4 = vcmp.gt.f32.partialorder %v4526_v16, 0.0  ;;  %v3507_v18 = vmul.f32 0.2, %v4526_v16 }
 0x22a   : > { %v4457_v21 = vpack.c.bf16 %v3570_v17, %v3570_v17  ;;  %v2623_v22 = vpop.f32.mrb[8].mxu1  ;;  %v3201_v27 = vpop.f32.mrb[8].mxu0 }
 0x22b   : > { %v3571_v25 = vsel %vm3443_vm4, %v4526_v16, %v3507_v18  ;;  %v4527_v26 = vadd.f32 %v5582_v33, %v2623_v22  ;;  %v2625_v28 = vpop.f32.mrb[9].mxu1  ;;  %v3203_v31 = vpop.f32.mrb[9].mxu0  ;;  %v4322_v18 = vcombine.low %v480_v50, %v484_v51 }
 0x22c   : > { %3891 = vst.msk [vmem:[%s5594_s19 + $0x8] sm:$0xf] %vm3888_vm1, %v4457_v21  ;;  %v4458_v30 = vpack.c.bf16 %v3571_v25, %v3571_v25  ;;  %v2626_v32 = vpop.f32.mrb[10].mxu1  ;;  %v3204_v38 = vpop.f32.mrb[10].mxu0 }
 0x22d   : > { %v4528_v36 = vadd.f32 %v4527_v26, %v3201_v27  ;;  %v4529_v37 = vadd.f32 %v5582_v33, %v2626_v32  ;;  %v2628_v39 = vpop.f32.mrb[11].mxu1  ;;  %v3206_v41 = vpop.f32.mrb[11].mxu0 }
 0x22e   : > { %3892 = vst.msk [vmem:[%s5594_s19 + $0xc] sm:$0xf] %vm3888_vm1, %v4458_v30 }
 0x22f   : > { %vm3444_vm5 = vcmp.gt.f32.partialorder %v4528_v36, 0.0  ;;  %v3508_v42 = vmul.f32 0.2, %v4528_v36  ;;  %v4530_v43 = vadd.f32 %v4529_v37, %v3204_v38  ;;  %2838 = vmatmul.mubr.bf16.gmra.mrb[116].mxu1 %v4302_v29  ;;  %3416 = vmatmul.mubr.bf16.gmra.mrb[116].mxu0 %v4306_v34 }
 0x230   : > { %2845 = vmatprep.mubr.bf16.mxu1 %v4311_v35  ;;  %3423 = vmatprep.mubr.bf16.mxu0 %v4315_v40 }
 0x231   : > { %v3572_v44 = vsel %vm3444_vm5, %v4528_v36, %v3508_v42  ;;  %vm3445_vm6 = vcmp.gt.f32.partialorder %v4530_v43, 0.0  ;;  %v3509_v45 = vmul.f32 0.2, %v4530_v43 }
 0x232   : > { %v4459_v48 = vpack.c.bf16 %v3572_v44, %v3572_v44  ;;  %v2631_v49 = vpop.f32.mrb[12].mxu1  ;;  %v3209_v54 = vpop.f32.mrb[12].mxu0 }
 0x233   : > { %v3573_v52 = vsel %vm3445_vm6, %v4530_v43, %v3509_v45  ;;  %v4531_v53 = vadd.f32 %v5582_v33, %v2631_v49  ;;  %v2633_v55 = vpop.f32.mrb[13].mxu1  ;;  %v3211_v58 = vpop.f32.mrb[13].mxu0 }
 0x234   : > { %3893 = vst.msk [vmem:[%s5594_s19 + $0x10] sm:$0xf] %vm3888_vm1, %v4459_v48  ;;  %v4460_v57 = vpack.c.bf16 %v3573_v52, %v3573_v52  ;;  %v2634_v59 = vpop.f32.mrb[14].mxu1  ;;  %v3212_v63 = vpop.f32.mrb[14].mxu0 }
 0x235   : > { %v4532_v62 = vadd.f32 %v4531_v53, %v3209_v54  ;;  %v4533_v1 = vadd.f32 %v5582_v33, %v2634_v59  ;;  %v2636_v0 = vpop.f32.mrb[15].mxu1  ;;  %v3214_v3 = vpop.f32.mrb[15].mxu0 }
 0x236   : > { %3894 = vst.msk [vmem:[%s5594_s19 + $0x14] sm:$0xf] %vm3888_vm1, %v4460_v57 }
 0x237   : > { %vm3446_vm7 = vcmp.gt.f32.partialorder %v4532_v62, 0.0  ;;  %v3510_v4 = vmul.f32 0.2, %v4532_v62  ;;  %v4534_v5 = vadd.f32 %v4533_v1, %v3212_v63  ;;  %2846 = vmatmul.mubr.bf16.gmra.mrb[120].mxu1 %v4310_v56  ;;  %3424 = vmatmul.mubr.bf16.gmra.mrb[120].mxu0 %v4314_v60 }
 0x238   : > { %2853 = vmatprep.mubr.bf16.mxu1 %v4319_v61  ;;  %3431 = vmatprep.mubr.bf16.mxu0 %v4323_v2 }
 0x239   : > { %v3574_v6 = vsel %vm3446_vm7, %v4532_v62, %v3510_v4  ;;  %vm3447_vm8 = vcmp.gt.f32.partialorder %v4534_v5, 0.0  ;;  %v3511_v7 = vmul.f32 0.2, %v4534_v5 }
 0x23a   : > { %v4461_v8 = vpack.c.bf16 %v3574_v6, %v3574_v6  ;;  %v2639_v9 = vpop.f32.mrb[16].mxu1  ;;  %v3217_v12 = vpop.f32.mrb[16].mxu0 }
 0x23b   : > { %v3575_v10 = vsel %vm3447_vm8, %v4534_v5, %v3511_v7  ;;  %v4535_v11 = vadd.f32 %v5582_v33, %v2639_v9  ;;  %v2641_v13 = vpop.f32.mrb[17].mxu1  ;;  %v3219_v16 = vpop.f32.mrb[17].mxu0 }
 0x23c   : > { %3895 = vst.msk [vmem:[%s5594_s19 + $0x18] sm:$0xf] %vm3888_vm1, %v4461_v8  ;;  %v4462_v15 = vpack.c.bf16 %v3575_v10, %v3575_v10  ;;  %v2642_v17 = vpop.f32.mrb[18].mxu1  ;;  %v3220_v21 = vpop.f32.mrb[18].mxu0 }
 0x23d   : > { %v4536_v19 = vadd.f32 %v4535_v11, %v3217_v12  ;;  %v4537_v20 = vadd.f32 %v5582_v33, %v2642_v17  ;;  %v2644_v22 = vpop.f32.mrb[19].mxu1  ;;  %v3222_v23 = vpop.f32.mrb[19].mxu0 }
 0x23e   : > { %3896 = vst.msk [vmem:[%s5594_s19 + $0x1c] sm:$0xf] %vm3888_vm1, %v4462_v15 }
 0x23f   : > { %vm3448_vm9 = vcmp.gt.f32.partialorder %v4536_v19, 0.0  ;;  %v3512_v24 = vmul.f32 0.2, %v4536_v19  ;;  %v4538_v25 = vadd.f32 %v4537_v20, %v3220_v21  ;;  %2854 = vmatmul.mubr.bf16.gmra.mrb[124].mxu1 %v4318_v14  ;;  %3432 = vmatmul.mubr.bf16.gmra.mrb[124].mxu0 %v4322_v18 }
 0x241   : > { %v3576_v26 = vsel %vm3448_vm9, %v4536_v19, %v3512_v24  ;;  %vm3449_vm10 = vcmp.gt.f32.partialorder %v4538_v25, 0.0  ;;  %v3513_v27 = vmul.f32 0.2, %v4538_v25 }
 0x242   : > { %v4463_v28 = vpack.c.bf16 %v3576_v26, %v3576_v26  ;;  %v2647_v29 = vpop.f32.mrb[20].mxu1  ;;  %v3225_v32 = vpop.f32.mrb[20].mxu0 }
 0x243   : > { %v3577_v30 = vsel %vm3449_vm10, %v4538_v25, %v3513_v27  ;;  %v4539_v31 = vadd.f32 %v5582_v33, %v2647_v29  ;;  %v2649_v34 = vpop.f32.mrb[21].mxu1  ;;  %v3227_v36 = vpop.f32.mrb[21].mxu0 }
 0x244   : > { %3897 = vst.msk [vmem:[%s5594_s19 + $0x20] sm:$0xf] %vm3888_vm1, %v4463_v28  ;;  %v4464_v35 = vpack.c.bf16 %v3577_v30, %v3577_v30  ;;  %v2650_v37 = vpop.f32.mrb[22].mxu1  ;;  %v3228_v40 = vpop.f32.mrb[22].mxu0 }
 0x245   : > { %v4540_v38 = vadd.f32 %v4539_v31, %v3225_v32  ;;  %v4541_v39 = vadd.f32 %v5582_v33, %v2650_v37  ;;  %v2652_v41 = vpop.f32.mrb[23].mxu1  ;;  %v3230_v42 = vpop.f32.mrb[23].mxu0 }
 0x246   : > { %3898 = vst.msk [vmem:[%s5594_s19 + $0x24] sm:$0xf] %vm3888_vm1, %v4464_v35 }
 0x247   : > { %vm3450_vm11 = vcmp.gt.f32.partialorder %v4540_v38, 0.0  ;;  %v3514_v43 = vmul.f32 0.2, %v4540_v38  ;;  %v4542_v44 = vadd.f32 %v4541_v39, %v3228_v40 }
 0x249   : > { %v3578_v45 = vsel %vm3450_vm11, %v4540_v38, %v3514_v43  ;;  %vm3451_vm12 = vcmp.gt.f32.partialorder %v4542_v44, 0.0  ;;  %v3515_v46 = vmul.f32 0.2, %v4542_v44 }
 0x24a   : > { %v4465_v47 = vpack.c.bf16 %v3578_v45, %v3578_v45  ;;  %v2655_v48 = vpop.f32.mrb[24].mxu1  ;;  %v3233_v51 = vpop.f32.mrb[24].mxu0 }
 0x24b   : > { %v3579_v49 = vsel %vm3451_vm12, %v4542_v44, %v3515_v46  ;;  %v4543_v50 = vadd.f32 %v5582_v33, %v2655_v48  ;;  %v2657_v52 = vpop.f32.mrb[25].mxu1  ;;  %v3235_v54 = vpop.f32.mrb[25].mxu0 }
 0x24c   : > { %3899 = vst.msk [vmem:[%s5594_s19 + $0x28] sm:$0xf] %vm3888_vm1, %v4465_v47  ;;  %v4466_v53 = vpack.c.bf16 %v3579_v49, %v3579_v49  ;;  %v2658_v55 = vpop.f32.mrb[26].mxu1  ;;  %v3236_v58 = vpop.f32.mrb[26].mxu0 }
 0x24d   : > { %v4544_v56 = vadd.f32 %v4543_v50, %v3233_v51  ;;  %v4545_v57 = vadd.f32 %v5582_v33, %v2658_v55  ;;  %v2660_v59 = vpop.f32.mrb[27].mxu1  ;;  %v3238_v60 = vpop.f32.mrb[27].mxu0 }
 0x24e   : > { %3900 = vst.msk [vmem:[%s5594_s19 + $0x2c] sm:$0xf] %vm3888_vm1, %v4466_v53 }
 0x24f   : > { %vm3452_vm13 = vcmp.gt.f32.partialorder %v4544_v56, 0.0  ;;  %v3516_v61 = vmul.f32 0.2, %v4544_v56  ;;  %v4546_v62 = vadd.f32 %v4545_v57, %v3236_v58 }
 0x251   : > { %v3580_v1 = vsel %vm3452_vm13, %v4544_v56, %v3516_v61  ;;  %vm3453_vm14 = vcmp.gt.f32.partialorder %v4546_v62, 0.0  ;;  %v3517_v63 = vmul.f32 0.2, %v4546_v62 }
 0x252   : > { %v4467_v0 = vpack.c.bf16 %v3580_v1, %v3580_v1  ;;  %v2663_v2 = vpop.f32.mrb[28].mxu1  ;;  %v3241_v5 = vpop.f32.mrb[28].mxu0 }
 0x253   : > { %v3581_v3 = vsel %vm3453_vm14, %v4546_v62, %v3517_v63  ;;  %v4547_v4 = vadd.f32 %v5582_v33, %v2663_v2  ;;  %v2665_v6 = vpop.f32.mrb[29].mxu1  ;;  %v3243_v8 = vpop.f32.mrb[29].mxu0 }
 0x254   : > { %3901 = vst.msk [vmem:[%s5594_s19 + $0x30] sm:$0xf] %vm3888_vm1, %v4467_v0  ;;  %v4468_v7 = vpack.c.bf16 %v3581_v3, %v3581_v3  ;;  %v2666_v9 = vpop.f32.mrb[30].mxu1  ;;  %v3244_v12 = vpop.f32.mrb[30].mxu0 }
 0x255   : > { %v4548_v10 = vadd.f32 %v4547_v4, %v3241_v5  ;;  %v4549_v11 = vadd.f32 %v5582_v33, %v2666_v9  ;;  %v2668_v13 = vpop.f32.mrb[31].mxu1  ;;  %v3246_v14 = vpop.f32.mrb[31].mxu0 }
 0x256   : > { %3902 = vst.msk [vmem:[%s5594_s19 + $0x34] sm:$0xf] %vm3888_vm1, %v4468_v7 }
 0x257   : > { %vm3454_vm15 = vcmp.gt.f32.partialorder %v4548_v10, 0.0  ;;  %v3518_v15 = vmul.f32 0.2, %v4548_v10  ;;  %v4550_v16 = vadd.f32 %v4549_v11, %v3244_v12 }
 0x259   : > { %v3582_v17 = vsel %vm3454_vm15, %v4548_v10, %v3518_v15  ;;  %vm3455_vm0 = vcmp.gt.f32.partialorder %v4550_v16, 0.0  ;;  %v3519_v18 = vmul.f32 0.2, %v4550_v16 }
 0x25a   : > { %v4469_v19 = vpack.c.bf16 %v3582_v17, %v3582_v17  ;;  %v2671_v20 = vpop.f32.mrb[32].mxu1  ;;  %v3249_v23 = vpop.f32.mrb[32].mxu0 }
 0x25b   : > { %v3583_v21 = vsel %vm3455_vm0, %v4550_v16, %v3519_v18  ;;  %v4551_v22 = vadd.f32 %v5582_v33, %v2671_v20  ;;  %v2673_v24 = vpop.f32.mrb[33].mxu1  ;;  %v3251_v26 = vpop.f32.mrb[33].mxu0 }
 0x25c   : > { %3903 = vst.msk [vmem:[%s5594_s19 + $0x38] sm:$0xf] %vm3888_vm1, %v4469_v19  ;;  %v4470_v25 = vpack.c.bf16 %v3583_v21, %v3583_v21  ;;  %v2674_v27 = vpop.f32.mrb[34].mxu1  ;;  %v3252_v30 = vpop.f32.mrb[34].mxu0 }
 0x25d   : > { %v4552_v28 = vadd.f32 %v4551_v22, %v3249_v23  ;;  %v4553_v29 = vadd.f32 %v5582_v33, %v2674_v27  ;;  %v2676_v31 = vpop.f32.mrb[35].mxu1  ;;  %v3254_v32 = vpop.f32.mrb[35].mxu0 }
 0x25e   : > { %3904 = vst.msk [vmem:[%s5594_s19 + $0x3c] sm:$0xf] %vm3888_vm1, %v4470_v25 }
 0x25f   : > { %vm3456_vm2 = vcmp.gt.f32.partialorder %v4552_v28, 0.0  ;;  %v3520_v34 = vmul.f32 0.2, %v4552_v28  ;;  %v4554_v35 = vadd.f32 %v4553_v29, %v3252_v30 }
 0x261   : > { %v3584_v36 = vsel %vm3456_vm2, %v4552_v28, %v3520_v34  ;;  %vm3457_vm3 = vcmp.gt.f32.partialorder %v4554_v35, 0.0  ;;  %v3521_v37 = vmul.f32 0.2, %v4554_v35 }
 0x262   : > { %v4471_v38 = vpack.c.bf16 %v3584_v36, %v3584_v36  ;;  %v2679_v39 = vpop.f32.mrb[36].mxu1  ;;  %v3257_v42 = vpop.f32.mrb[36].mxu0 }
 0x263   : > { %v3585_v40 = vsel %vm3457_vm3, %v4554_v35, %v3521_v37  ;;  %v4555_v41 = vadd.f32 %v5582_v33, %v2679_v39  ;;  %v2681_v43 = vpop.f32.mrb[37].mxu1  ;;  %v3259_v45 = vpop.f32.mrb[37].mxu0 }
 0x264   : > { %3905 = vst.msk [vmem:[%s5594_s19 + $0x40] sm:$0xf] %vm3888_vm1, %v4471_v38  ;;  %v4472_v44 = vpack.c.bf16 %v3585_v40, %v3585_v40  ;;  %v2682_v46 = vpop.f32.mrb[38].mxu1  ;;  %v3260_v49 = vpop.f32.mrb[38].mxu0 }
 0x265   : > { %v4556_v47 = vadd.f32 %v4555_v41, %v3257_v42  ;;  %v4557_v48 = vadd.f32 %v5582_v33, %v2682_v46  ;;  %v2684_v50 = vpop.f32.mrb[39].mxu1  ;;  %v3262_v51 = vpop.f32.mrb[39].mxu0 }
 0x266   : > { %3906 = vst.msk [vmem:[%s5594_s19 + $0x44] sm:$0xf] %vm3888_vm1, %v4472_v44 }
 0x267   : > { %vm3458_vm4 = vcmp.gt.f32.partialorder %v4556_v47, 0.0  ;;  %v3522_v52 = vmul.f32 0.2, %v4556_v47  ;;  %v4558_v53 = vadd.f32 %v4557_v48, %v3260_v49 }
 0x269   : > { %v3586_v54 = vsel %vm3458_vm4, %v4556_v47, %v3522_v52  ;;  %vm3459_vm5 = vcmp.gt.f32.partialorder %v4558_v53, 0.0  ;;  %v3523_v55 = vmul.f32 0.2, %v4558_v53 }
 0x26a   : > { %v4473_v56 = vpack.c.bf16 %v3586_v54, %v3586_v54  ;;  %v2687_v57 = vpop.f32.mrb[40].mxu1  ;;  %v3265_v60 = vpop.f32.mrb[40].mxu0 }
 0x26b   : > { %v3587_v58 = vsel %vm3459_vm5, %v4558_v53, %v3523_v55  ;;  %v4559_v59 = vadd.f32 %v5582_v33, %v2687_v57  ;;  %v2689_v61 = vpop.f32.mrb[41].mxu1  ;;  %v3267_v1 = vpop.f32.mrb[41].mxu0 }
 0x26c   : > { %3907 = vst.msk [vmem:[%s5594_s19 + $0x48] sm:$0xf] %vm3888_vm1, %v4473_v56  ;;  %v4474_v62 = vpack.c.bf16 %v3587_v58, %v3587_v58  ;;  %v2690_v63 = vpop.f32.mrb[42].mxu1  ;;  %v3268_v3 = vpop.f32.mrb[42].mxu0 }
 0x26d   : > { %v4560_v0 = vadd.f32 %v4559_v59, %v3265_v60  ;;  %v4561_v2 = vadd.f32 %v5582_v33, %v2690_v63  ;;  %v2692_v4 = vpop.f32.mrb[43].mxu1  ;;  %v3270_v5 = vpop.f32.mrb[43].mxu0 }
 0x26e   : > { %3908 = vst.msk [vmem:[%s5594_s19 + $0x4c] sm:$0xf] %vm3888_vm1, %v4474_v62 }
 0x26f   : > { %vm3460_vm6 = vcmp.gt.f32.partialorder %v4560_v0, 0.0  ;;  %v3524_v6 = vmul.f32 0.2, %v4560_v0  ;;  %v4562_v7 = vadd.f32 %v4561_v2, %v3268_v3 }
 0x271   : > { %v3588_v8 = vsel %vm3460_vm6, %v4560_v0, %v3524_v6  ;;  %vm3461_vm7 = vcmp.gt.f32.partialorder %v4562_v7, 0.0  ;;  %v3525_v9 = vmul.f32 0.2, %v4562_v7 }
 0x272   : > { %v4475_v10 = vpack.c.bf16 %v3588_v8, %v3588_v8  ;;  %v2695_v11 = vpop.f32.mrb[44].mxu1  ;;  %v3273_v14 = vpop.f32.mrb[44].mxu0 }
 0x273   : > { %v3589_v12 = vsel %vm3461_vm7, %v4562_v7, %v3525_v9  ;;  %v4563_v13 = vadd.f32 %v5582_v33, %v2695_v11  ;;  %v2697_v15 = vpop.f32.mrb[45].mxu1  ;;  %v3275_v17 = vpop.f32.mrb[45].mxu0 }
 0x274   : > { %3909 = vst.msk [vmem:[%s5594_s19 + $0x50] sm:$0xf] %vm3888_vm1, %v4475_v10  ;;  %v4476_v16 = vpack.c.bf16 %v3589_v12, %v3589_v12  ;;  %v2698_v18 = vpop.f32.mrb[46].mxu1  ;;  %v3276_v21 = vpop.f32.mrb[46].mxu0 }
 0x275   : > { %v4564_v19 = vadd.f32 %v4563_v13, %v3273_v14  ;;  %v4565_v20 = vadd.f32 %v5582_v33, %v2698_v18  ;;  %v2700_v22 = vpop.f32.mrb[47].mxu1  ;;  %v3278_v23 = vpop.f32.mrb[47].mxu0 }
 0x276   : > { %3910 = vst.msk [vmem:[%s5594_s19 + $0x54] sm:$0xf] %vm3888_vm1, %v4476_v16 }
 0x277   : > { %vm3462_vm8 = vcmp.gt.f32.partialorder %v4564_v19, 0.0  ;;  %v3526_v24 = vmul.f32 0.2, %v4564_v19  ;;  %v4566_v25 = vadd.f32 %v4565_v20, %v3276_v21 }
 0x279   : > { %v3590_v26 = vsel %vm3462_vm8, %v4564_v19, %v3526_v24  ;;  %vm3463_vm9 = vcmp.gt.f32.partialorder %v4566_v25, 0.0  ;;  %v3527_v27 = vmul.f32 0.2, %v4566_v25 }
 0x27a   : > { %v4477_v28 = vpack.c.bf16 %v3590_v26, %v3590_v26  ;;  %v2703_v29 = vpop.f32.mrb[48].mxu1  ;;  %v3281_v32 = vpop.f32.mrb[48].mxu0 }
 0x27b   : > { %v3591_v30 = vsel %vm3463_vm9, %v4566_v25, %v3527_v27  ;;  %v4567_v31 = vadd.f32 %v5582_v33, %v2703_v29  ;;  %v2705_v34 = vpop.f32.mrb[49].mxu1  ;;  %v3283_v36 = vpop.f32.mrb[49].mxu0 }
 0x27c   : > { %3911 = vst.msk [vmem:[%s5594_s19 + $0x58] sm:$0xf] %vm3888_vm1, %v4477_v28  ;;  %v4478_v35 = vpack.c.bf16 %v3591_v30, %v3591_v30  ;;  %v2706_v37 = vpop.f32.mrb[50].mxu1  ;;  %v3284_v40 = vpop.f32.mrb[50].mxu0 }
 0x27d   : > { %v4568_v38 = vadd.f32 %v4567_v31, %v3281_v32  ;;  %v4569_v39 = vadd.f32 %v5582_v33, %v2706_v37  ;;  %v2708_v41 = vpop.f32.mrb[51].mxu1  ;;  %v3286_v42 = vpop.f32.mrb[51].mxu0 }
 0x27e   : > { %3912 = vst.msk [vmem:[%s5594_s19 + $0x5c] sm:$0xf] %vm3888_vm1, %v4478_v35 }
 0x27f   : > { %vm3464_vm10 = vcmp.gt.f32.partialorder %v4568_v38, 0.0  ;;  %v3528_v43 = vmul.f32 0.2, %v4568_v38  ;;  %v4570_v44 = vadd.f32 %v4569_v39, %v3284_v40 }
 0x281   : > { %v3592_v45 = vsel %vm3464_vm10, %v4568_v38, %v3528_v43  ;;  %vm3465_vm11 = vcmp.gt.f32.partialorder %v4570_v44, 0.0  ;;  %v3529_v46 = vmul.f32 0.2, %v4570_v44 }
 0x282   : > { %v4479_v47 = vpack.c.bf16 %v3592_v45, %v3592_v45  ;;  %v2711_v48 = vpop.f32.mrb[52].mxu1  ;;  %v3289_v51 = vpop.f32.mrb[52].mxu0 }
 0x283   : > { %v3593_v49 = vsel %vm3465_vm11, %v4570_v44, %v3529_v46  ;;  %v4571_v50 = vadd.f32 %v5582_v33, %v2711_v48  ;;  %v2713_v52 = vpop.f32.mrb[53].mxu1  ;;  %v3291_v54 = vpop.f32.mrb[53].mxu0 }
 0x284   : > { %3913 = vst.msk [vmem:[%s5594_s19 + $0x60] sm:$0xf] %vm3888_vm1, %v4479_v47  ;;  %v4480_v53 = vpack.c.bf16 %v3593_v49, %v3593_v49  ;;  %v2714_v55 = vpop.f32.mrb[54].mxu1  ;;  %v3292_v58 = vpop.f32.mrb[54].mxu0 }
 0x285   : > { %v4572_v56 = vadd.f32 %v4571_v50, %v3289_v51  ;;  %v4573_v57 = vadd.f32 %v5582_v33, %v2714_v55  ;;  %v2716_v59 = vpop.f32.mrb[55].mxu1  ;;  %v3294_v60 = vpop.f32.mrb[55].mxu0 }
 0x286   : > { %3914 = vst.msk [vmem:[%s5594_s19 + $0x64] sm:$0xf] %vm3888_vm1, %v4480_v53 }
 0x287   : > { %vm3466_vm12 = vcmp.gt.f32.partialorder %v4572_v56, 0.0  ;;  %v3530_v61 = vmul.f32 0.2, %v4572_v56  ;;  %v4574_v62 = vadd.f32 %v4573_v57, %v3292_v58 }
 0x289   : > { %v3594_v1 = vsel %vm3466_vm12, %v4572_v56, %v3530_v61  ;;  %vm3467_vm13 = vcmp.gt.f32.partialorder %v4574_v62, 0.0  ;;  %v3531_v63 = vmul.f32 0.2, %v4574_v62 }
 0x28a   : > { %v4481_v0 = vpack.c.bf16 %v3594_v1, %v3594_v1  ;;  %v2719_v2 = vpop.f32.mrb[56].mxu1  ;;  %v3297_v5 = vpop.f32.mrb[56].mxu0 }
 0x28b   : > { %v3595_v3 = vsel %vm3467_vm13, %v4574_v62, %v3531_v63  ;;  %v4575_v4 = vadd.f32 %v5582_v33, %v2719_v2  ;;  %v2721_v6 = vpop.f32.mrb[57].mxu1  ;;  %v3299_v8 = vpop.f32.mrb[57].mxu0 }
 0x28c   : > { %3915 = vst.msk [vmem:[%s5594_s19 + $0x68] sm:$0xf] %vm3888_vm1, %v4481_v0  ;;  %v4482_v7 = vpack.c.bf16 %v3595_v3, %v3595_v3  ;;  %v2722_v9 = vpop.f32.mrb[58].mxu1  ;;  %v3300_v12 = vpop.f32.mrb[58].mxu0 }
 0x28d   : > { %v4576_v10 = vadd.f32 %v4575_v4, %v3297_v5  ;;  %v4577_v11 = vadd.f32 %v5582_v33, %v2722_v9  ;;  %v2724_v13 = vpop.f32.mrb[59].mxu1  ;;  %v3302_v14 = vpop.f32.mrb[59].mxu0 }
 0x28e   : > { %3916 = vst.msk [vmem:[%s5594_s19 + $0x6c] sm:$0xf] %vm3888_vm1, %v4482_v7 }
 0x28f   : > { %vm3468_vm14 = vcmp.gt.f32.partialorder %v4576_v10, 0.0  ;;  %v3532_v15 = vmul.f32 0.2, %v4576_v10  ;;  %v4578_v16 = vadd.f32 %v4577_v11, %v3300_v12 }
 0x291   : > { %v3596_v17 = vsel %vm3468_vm14, %v4576_v10, %v3532_v15  ;;  %vm3469_vm15 = vcmp.gt.f32.partialorder %v4578_v16, 0.0  ;;  %v3533_v18 = vmul.f32 0.2, %v4578_v16 }
 0x292   : > { %v4483_v19 = vpack.c.bf16 %v3596_v17, %v3596_v17  ;;  %v2727_v20 = vpop.f32.mrb[60].mxu1  ;;  %v3305_v23 = vpop.f32.mrb[60].mxu0 }
 0x293   : > { %v3597_v21 = vsel %vm3469_vm15, %v4578_v16, %v3533_v18  ;;  %v4579_v22 = vadd.f32 %v5582_v33, %v2727_v20  ;;  %v2729_v24 = vpop.f32.mrb[61].mxu1  ;;  %v3307_v26 = vpop.f32.mrb[61].mxu0 }
 0x294   : > { %3917 = vst.msk [vmem:[%s5594_s19 + $0x70] sm:$0xf] %vm3888_vm1, %v4483_v19  ;;  %v4484_v25 = vpack.c.bf16 %v3597_v21, %v3597_v21  ;;  %v2730_v27 = vpop.f32.mrb[62].mxu1  ;;  %v3308_v30 = vpop.f32.mrb[62].mxu0 }
 0x295   : > { %v4580_v28 = vadd.f32 %v4579_v22, %v3305_v23  ;;  %v4581_v29 = vadd.f32 %v5582_v33, %v2730_v27  ;;  %v2732_v31 = vpop.f32.mrb[63].mxu1  ;;  %v3310_v32 = vpop.f32.mrb[63].mxu0 }
 0x296   : > { %3918 = vst.msk [vmem:[%s5594_s19 + $0x74] sm:$0xf] %vm3888_vm1, %v4484_v25 }
 0x297   : > { %vm3470_vm0 = vcmp.gt.f32.partialorder %v4580_v28, 0.0  ;;  %v3534_v34 = vmul.f32 0.2, %v4580_v28  ;;  %v4582_v35 = vadd.f32 %v4581_v29, %v3308_v30 }
 0x299   : > { %v3598_v36 = vsel %vm3470_vm0, %v4580_v28, %v3534_v34  ;;  %vm3471_vm2 = vcmp.gt.f32.partialorder %v4582_v35, 0.0  ;;  %v3535_v37 = vmul.f32 0.2, %v4582_v35 }
 0x29a   : > { %v4485_v38 = vpack.c.bf16 %v3598_v36, %v3598_v36  ;;  %v2735_v39 = vpop.f32.mrb[64].mxu1  ;;  %v3313_v42 = vpop.f32.mrb[64].mxu0 }
 0x29b   : > { %v3599_v40 = vsel %vm3471_vm2, %v4582_v35, %v3535_v37  ;;  %v4583_v41 = vadd.f32 %v5582_v33, %v2735_v39  ;;  %v2737_v43 = vpop.f32.mrb[65].mxu1  ;;  %v3315_v45 = vpop.f32.mrb[65].mxu0 }
 0x29c   : > { %3919 = vst.msk [vmem:[%s5594_s19 + $0x78] sm:$0xf] %vm3888_vm1, %v4485_v38  ;;  %v4486_v44 = vpack.c.bf16 %v3599_v40, %v3599_v40  ;;  %v2738_v46 = vpop.f32.mrb[66].mxu1  ;;  %v3316_v49 = vpop.f32.mrb[66].mxu0 }
 0x29d   : > { %v4584_v47 = vadd.f32 %v4583_v41, %v3313_v42  ;;  %v4585_v48 = vadd.f32 %v5582_v33, %v2738_v46  ;;  %v2740_v50 = vpop.f32.mrb[67].mxu1  ;;  %v3318_v51 = vpop.f32.mrb[67].mxu0 }
 0x29e   : > { %3920 = vst.msk [vmem:[%s5594_s19 + $0x7c] sm:$0xf] %vm3888_vm1, %v4486_v44 }
 0x29f   : > { %vm3472_vm3 = vcmp.gt.f32.partialorder %v4584_v47, 0.0  ;;  %v3536_v52 = vmul.f32 0.2, %v4584_v47  ;;  %v4586_v53 = vadd.f32 %v4585_v48, %v3316_v49 }
 0x2a1   : > { %v3600_v54 = vsel %vm3472_vm3, %v4584_v47, %v3536_v52  ;;  %vm3473_vm4 = vcmp.gt.f32.partialorder %v4586_v53, 0.0  ;;  %v3537_v55 = vmul.f32 0.2, %v4586_v53 }
 0x2a2   : > { %v4487_v56 = vpack.c.bf16 %v3600_v54, %v3600_v54  ;;  %v2743_v57 = vpop.f32.mrb[68].mxu1  ;;  %v3321_v60 = vpop.f32.mrb[68].mxu0 }
 0x2a3   : > { %v3601_v58 = vsel %vm3473_vm4, %v4586_v53, %v3537_v55  ;;  %v4587_v59 = vadd.f32 %v5582_v33, %v2743_v57  ;;  %v2745_v61 = vpop.f32.mrb[69].mxu1  ;;  %v3323_v1 = vpop.f32.mrb[69].mxu0 }
 0x2a4   : > { %3921 = vst.msk [vmem:[%s5594_s19 + $0x80] sm:$0xf] %vm3888_vm1, %v4487_v56  ;;  %v4488_v62 = vpack.c.bf16 %v3601_v58, %v3601_v58  ;;  %v2746_v63 = vpop.f32.mrb[70].mxu1  ;;  %v3324_v3 = vpop.f32.mrb[70].mxu0 }
 0x2a5   : > { %v4588_v0 = vadd.f32 %v4587_v59, %v3321_v60  ;;  %v4589_v2 = vadd.f32 %v5582_v33, %v2746_v63  ;;  %v2748_v4 = vpop.f32.mrb[71].mxu1  ;;  %v3326_v5 = vpop.f32.mrb[71].mxu0 }
 0x2a6   : > { %3922 = vst.msk [vmem:[%s5594_s19 + $0x84] sm:$0xf] %vm3888_vm1, %v4488_v62 }
 0x2a7   : > { %vm3474_vm5 = vcmp.gt.f32.partialorder %v4588_v0, 0.0  ;;  %v3538_v6 = vmul.f32 0.2, %v4588_v0  ;;  %v4590_v7 = vadd.f32 %v4589_v2, %v3324_v3 }
 0x2a9   : > { %v3602_v8 = vsel %vm3474_vm5, %v4588_v0, %v3538_v6  ;;  %vm3475_vm6 = vcmp.gt.f32.partialorder %v4590_v7, 0.0  ;;  %v3539_v9 = vmul.f32 0.2, %v4590_v7 }
 0x2aa   : > { %v4489_v10 = vpack.c.bf16 %v3602_v8, %v3602_v8  ;;  %v2751_v11 = vpop.f32.mrb[72].mxu1  ;;  %v3329_v14 = vpop.f32.mrb[72].mxu0 }
 0x2ab   : > { %v3603_v12 = vsel %vm3475_vm6, %v4590_v7, %v3539_v9  ;;  %v4591_v13 = vadd.f32 %v5582_v33, %v2751_v11  ;;  %v2753_v15 = vpop.f32.mrb[73].mxu1  ;;  %v3331_v17 = vpop.f32.mrb[73].mxu0 }
 0x2ac   : > { %3923 = vst.msk [vmem:[%s5594_s19 + $0x88] sm:$0xf] %vm3888_vm1, %v4489_v10  ;;  %v4490_v16 = vpack.c.bf16 %v3603_v12, %v3603_v12  ;;  %v2754_v18 = vpop.f32.mrb[74].mxu1  ;;  %v3332_v21 = vpop.f32.mrb[74].mxu0 }
 0x2ad   : > { %v4592_v19 = vadd.f32 %v4591_v13, %v3329_v14  ;;  %v4593_v20 = vadd.f32 %v5582_v33, %v2754_v18  ;;  %v2756_v22 = vpop.f32.mrb[75].mxu1  ;;  %v3334_v23 = vpop.f32.mrb[75].mxu0 }
 0x2ae   : > { %3924 = vst.msk [vmem:[%s5594_s19 + $0x8c] sm:$0xf] %vm3888_vm1, %v4490_v16 }
 0x2af   : > { %vm3476_vm7 = vcmp.gt.f32.partialorder %v4592_v19, 0.0  ;;  %v3540_v24 = vmul.f32 0.2, %v4592_v19  ;;  %v4594_v25 = vadd.f32 %v4593_v20, %v3332_v21 }
 0x2b1   : > { %v3604_v26 = vsel %vm3476_vm7, %v4592_v19, %v3540_v24  ;;  %vm3477_vm8 = vcmp.gt.f32.partialorder %v4594_v25, 0.0  ;;  %v3541_v27 = vmul.f32 0.2, %v4594_v25 }
 0x2b2   : > { %v4491_v28 = vpack.c.bf16 %v3604_v26, %v3604_v26  ;;  %v2759_v29 = vpop.f32.mrb[76].mxu1  ;;  %v3337_v32 = vpop.f32.mrb[76].mxu0 }
 0x2b3   : > { %v3605_v30 = vsel %vm3477_vm8, %v4594_v25, %v3541_v27  ;;  %v4595_v31 = vadd.f32 %v5582_v33, %v2759_v29  ;;  %v2761_v34 = vpop.f32.mrb[77].mxu1  ;;  %v3339_v36 = vpop.f32.mrb[77].mxu0 }
 0x2b4   : > { %3925 = vst.msk [vmem:[%s5594_s19 + $0x90] sm:$0xf] %vm3888_vm1, %v4491_v28  ;;  %v4492_v35 = vpack.c.bf16 %v3605_v30, %v3605_v30  ;;  %v2762_v37 = vpop.f32.mrb[78].mxu1  ;;  %v3340_v40 = vpop.f32.mrb[78].mxu0 }
 0x2b5   : > { %v4596_v38 = vadd.f32 %v4595_v31, %v3337_v32  ;;  %v4597_v39 = vadd.f32 %v5582_v33, %v2762_v37  ;;  %v2764_v41 = vpop.f32.mrb[79].mxu1  ;;  %v3342_v42 = vpop.f32.mrb[79].mxu0 }
 0x2b6   : > { %3926 = vst.msk [vmem:[%s5594_s19 + $0x94] sm:$0xf] %vm3888_vm1, %v4492_v35 }
 0x2b7   : > { %vm3478_vm9 = vcmp.gt.f32.partialorder %v4596_v38, 0.0  ;;  %v3542_v43 = vmul.f32 0.2, %v4596_v38  ;;  %v4598_v44 = vadd.f32 %v4597_v39, %v3340_v40 }
 0x2b9   : > { %v3606_v45 = vsel %vm3478_vm9, %v4596_v38, %v3542_v43  ;;  %vm3479_vm10 = vcmp.gt.f32.partialorder %v4598_v44, 0.0  ;;  %v3543_v46 = vmul.f32 0.2, %v4598_v44 }
 0x2ba   : > { %v4493_v47 = vpack.c.bf16 %v3606_v45, %v3606_v45  ;;  %v2767_v48 = vpop.f32.mrb[80].mxu1  ;;  %v3345_v51 = vpop.f32.mrb[80].mxu0 }
 0x2bb   : > { %v3607_v49 = vsel %vm3479_vm10, %v4598_v44, %v3543_v46  ;;  %v4599_v50 = vadd.f32 %v5582_v33, %v2767_v48  ;;  %v2769_v52 = vpop.f32.mrb[81].mxu1  ;;  %v3347_v54 = vpop.f32.mrb[81].mxu0 }
 0x2bc   : > { %3927 = vst.msk [vmem:[%s5594_s19 + $0x98] sm:$0xf] %vm3888_vm1, %v4493_v47  ;;  %v4494_v53 = vpack.c.bf16 %v3607_v49, %v3607_v49  ;;  %v2770_v55 = vpop.f32.mrb[82].mxu1  ;;  %v3348_v58 = vpop.f32.mrb[82].mxu0 }
 0x2bd   : > { %v4600_v56 = vadd.f32 %v4599_v50, %v3345_v51  ;;  %v4601_v57 = vadd.f32 %v5582_v33, %v2770_v55  ;;  %v2772_v59 = vpop.f32.mrb[83].mxu1  ;;  %v3350_v60 = vpop.f32.mrb[83].mxu0  ;;  %v5731_v33 = vld [vmem:[%s5814_s2] ss:$0 sm:$0xff] }
 0x2be   : > { %3928 = vst.msk [vmem:[%s5594_s19 + $0x9c] sm:$0xf] %vm3888_vm1, %v4494_v53 }
 0x2bf   : > { %vm3480_vm11 = vcmp.gt.f32.partialorder %v4600_v56, 0.0  ;;  %v3544_v61 = vmul.f32 0.2, %v4600_v56  ;;  %v4602_v62 = vadd.f32 %v4601_v57, %v3348_v58 }
 0x2c1   : > { %v3608_v1 = vsel %vm3480_vm11, %v4600_v56, %v3544_v61  ;;  %vm3481_vm12 = vcmp.gt.f32.partialorder %v4602_v62, 0.0  ;;  %v3545_v63 = vmul.f32 0.2, %v4602_v62 }
 0x2c2   : > { %v4495_v0 = vpack.c.bf16 %v3608_v1, %v3608_v1  ;;  %v2775_v2 = vpop.f32.mrb[84].mxu1  ;;  %v3353_v5 = vpop.f32.mrb[84].mxu0 }
 0x2c3   : > { %v3609_v3 = vsel %vm3481_vm12, %v4602_v62, %v3545_v63  ;;  %v4603_v4 = vadd.f32 %v5731_v33, %v2775_v2  ;;  %v2777_v6 = vpop.f32.mrb[85].mxu1  ;;  %v3355_v8 = vpop.f32.mrb[85].mxu0 }
 0x2c4   : > { %3929 = vst.msk [vmem:[%s5594_s19 + $0xa0] sm:$0xf] %vm3888_vm1, %v4495_v0  ;;  %v4496_v7 = vpack.c.bf16 %v3609_v3, %v3609_v3  ;;  %v2778_v9 = vpop.f32.mrb[86].mxu1  ;;  %v3356_v12 = vpop.f32.mrb[86].mxu0 }
 0x2c5   : > { %v4604_v10 = vadd.f32 %v4603_v4, %v3353_v5  ;;  %v4605_v11 = vadd.f32 %v5731_v33, %v2778_v9  ;;  %v2780_v13 = vpop.f32.mrb[87].mxu1  ;;  %v3358_v14 = vpop.f32.mrb[87].mxu0 }
 0x2c6   : > { %3930 = vst.msk [vmem:[%s5594_s19 + $0xa4] sm:$0xf] %vm3888_vm1, %v4496_v7 }
 0x2c7   : > { %vm3482_vm13 = vcmp.gt.f32.partialorder %v4604_v10, 0.0  ;;  %v3546_v15 = vmul.f32 0.2, %v4604_v10  ;;  %v4606_v16 = vadd.f32 %v4605_v11, %v3356_v12 }
 0x2c9   : > { %v3610_v17 = vsel %vm3482_vm13, %v4604_v10, %v3546_v15  ;;  %vm3483_vm14 = vcmp.gt.f32.partialorder %v4606_v16, 0.0  ;;  %v3547_v18 = vmul.f32 0.2, %v4606_v16 }
 0x2ca   : > { %v4497_v19 = vpack.c.bf16 %v3610_v17, %v3610_v17  ;;  %v2783_v20 = vpop.f32.mrb[88].mxu1  ;;  %v3361_v23 = vpop.f32.mrb[88].mxu0 }
 0x2cb   : > { %v3611_v21 = vsel %vm3483_vm14, %v4606_v16, %v3547_v18  ;;  %v4607_v22 = vadd.f32 %v5731_v33, %v2783_v20  ;;  %v2785_v24 = vpop.f32.mrb[89].mxu1  ;;  %v3363_v26 = vpop.f32.mrb[89].mxu0 }
 0x2cc   : > { %3931 = vst.msk [vmem:[%s5594_s19 + $0xa8] sm:$0xf] %vm3888_vm1, %v4497_v19  ;;  %v4498_v25 = vpack.c.bf16 %v3611_v21, %v3611_v21  ;;  %v2786_v27 = vpop.f32.mrb[90].mxu1  ;;  %v3364_v30 = vpop.f32.mrb[90].mxu0 }
 0x2cd   : > { %v4608_v28 = vadd.f32 %v4607_v22, %v3361_v23  ;;  %v4609_v29 = vadd.f32 %v5731_v33, %v2786_v27  ;;  %v2788_v31 = vpop.f32.mrb[91].mxu1  ;;  %v3366_v32 = vpop.f32.mrb[91].mxu0 }
 0x2ce   : > { %3932 = vst.msk [vmem:[%s5594_s19 + $0xac] sm:$0xf] %vm3888_vm1, %v4498_v25 }
 0x2cf   : > { %vm3484_vm15 = vcmp.gt.f32.partialorder %v4608_v28, 0.0  ;;  %v3548_v34 = vmul.f32 0.2, %v4608_v28  ;;  %v4610_v35 = vadd.f32 %v4609_v29, %v3364_v30 }
 0x2d1   : > { %v3612_v36 = vsel %vm3484_vm15, %v4608_v28, %v3548_v34  ;;  %vm3485_vm0 = vcmp.gt.f32.partialorder %v4610_v35, 0.0  ;;  %v3549_v37 = vmul.f32 0.2, %v4610_v35 }
 0x2d2   : > { %v4499_v38 = vpack.c.bf16 %v3612_v36, %v3612_v36  ;;  %v2791_v39 = vpop.f32.mrb[92].mxu1  ;;  %v3369_v42 = vpop.f32.mrb[92].mxu0 }
 0x2d3   : > { %v3613_v40 = vsel %vm3485_vm0, %v4610_v35, %v3549_v37  ;;  %v4611_v41 = vadd.f32 %v5731_v33, %v2791_v39  ;;  %v2793_v43 = vpop.f32.mrb[93].mxu1  ;;  %v3371_v45 = vpop.f32.mrb[93].mxu0 }
 0x2d4   : > { %3933 = vst.msk [vmem:[%s5594_s19 + $0xb0] sm:$0xf] %vm3888_vm1, %v4499_v38  ;;  %v4500_v44 = vpack.c.bf16 %v3613_v40, %v3613_v40  ;;  %v2794_v46 = vpop.f32.mrb[94].mxu1  ;;  %v3372_v49 = vpop.f32.mrb[94].mxu0 }
 0x2d5   : > { %v4612_v47 = vadd.f32 %v4611_v41, %v3369_v42  ;;  %v4613_v48 = vadd.f32 %v5731_v33, %v2794_v46  ;;  %v2796_v50 = vpop.f32.mrb[95].mxu1  ;;  %v3374_v51 = vpop.f32.mrb[95].mxu0 }
 0x2d6   : > { %3934 = vst.msk [vmem:[%s5594_s19 + $0xb4] sm:$0xf] %vm3888_vm1, %v4500_v44 }
 0x2d7   : > { %vm3486_vm2 = vcmp.gt.f32.partialorder %v4612_v47, 0.0  ;;  %v3550_v52 = vmul.f32 0.2, %v4612_v47  ;;  %v4614_v53 = vadd.f32 %v4613_v48, %v3372_v49 }
 0x2d9   : > { %v3614_v54 = vsel %vm3486_vm2, %v4612_v47, %v3550_v52  ;;  %vm3487_vm3 = vcmp.gt.f32.partialorder %v4614_v53, 0.0  ;;  %v3551_v55 = vmul.f32 0.2, %v4614_v53 }
 0x2da   : > { %v4501_v56 = vpack.c.bf16 %v3614_v54, %v3614_v54  ;;  %v2799_v57 = vpop.f32.mrb[96].mxu1  ;;  %v3377_v60 = vpop.f32.mrb[96].mxu0 }
 0x2db   : > { %v3615_v58 = vsel %vm3487_vm3, %v4614_v53, %v3551_v55  ;;  %v4615_v59 = vadd.f32 %v5731_v33, %v2799_v57  ;;  %v2801_v61 = vpop.f32.mrb[97].mxu1  ;;  %v3379_v1 = vpop.f32.mrb[97].mxu0 }
 0x2dc   : > { %3935 = vst.msk [vmem:[%s5594_s19 + $0xb8] sm:$0xf] %vm3888_vm1, %v4501_v56  ;;  %v4502_v62 = vpack.c.bf16 %v3615_v58, %v3615_v58  ;;  %v2802_v63 = vpop.f32.mrb[98].mxu1  ;;  %v3380_v3 = vpop.f32.mrb[98].mxu0 }
 0x2dd   : > { %v4616_v0 = vadd.f32 %v4615_v59, %v3377_v60  ;;  %v4617_v2 = vadd.f32 %v5731_v33, %v2802_v63  ;;  %v2804_v4 = vpop.f32.mrb[99].mxu1  ;;  %v3382_v5 = vpop.f32.mrb[99].mxu0 }
 0x2de   : > { %3936 = vst.msk [vmem:[%s5594_s19 + $0xbc] sm:$0xf] %vm3888_vm1, %v4502_v62 }
 0x2df   : > { %vm3488_vm4 = vcmp.gt.f32.partialorder %v4616_v0, 0.0  ;;  %v3552_v6 = vmul.f32 0.2, %v4616_v0  ;;  %v4618_v7 = vadd.f32 %v4617_v2, %v3380_v3 }
 0x2e1   : > { %v3616_v8 = vsel %vm3488_vm4, %v4616_v0, %v3552_v6  ;;  %vm3489_vm5 = vcmp.gt.f32.partialorder %v4618_v7, 0.0  ;;  %v3553_v9 = vmul.f32 0.2, %v4618_v7 }
 0x2e2   : > { %v4503_v10 = vpack.c.bf16 %v3616_v8, %v3616_v8  ;;  %v2807_v11 = vpop.f32.mrb[100].mxu1  ;;  %v3385_v14 = vpop.f32.mrb[100].mxu0 }
 0x2e3   : > { %v3617_v12 = vsel %vm3489_vm5, %v4618_v7, %v3553_v9  ;;  %v4619_v13 = vadd.f32 %v5731_v33, %v2807_v11  ;;  %v2809_v15 = vpop.f32.mrb[101].mxu1  ;;  %v3387_v17 = vpop.f32.mrb[101].mxu0 }
 0x2e4   : > { %3937 = vst.msk [vmem:[%s5594_s19 + $0xc0] sm:$0xf] %vm3888_vm1, %v4503_v10  ;;  %v4504_v16 = vpack.c.bf16 %v3617_v12, %v3617_v12  ;;  %v2810_v18 = vpop.f32.mrb[102].mxu1  ;;  %v3388_v21 = vpop.f32.mrb[102].mxu0 }
 0x2e5   : > { %v4620_v19 = vadd.f32 %v4619_v13, %v3385_v14  ;;  %v4621_v20 = vadd.f32 %v5731_v33, %v2810_v18  ;;  %v2812_v22 = vpop.f32.mrb[103].mxu1  ;;  %v3390_v23 = vpop.f32.mrb[103].mxu0 }
 0x2e6   : > { %3938 = vst.msk [vmem:[%s5594_s19 + $0xc4] sm:$0xf] %vm3888_vm1, %v4504_v16 }
 0x2e7   : > { %vm3490_vm6 = vcmp.gt.f32.partialorder %v4620_v19, 0.0  ;;  %v3554_v24 = vmul.f32 0.2, %v4620_v19  ;;  %v4622_v25 = vadd.f32 %v4621_v20, %v3388_v21 }
 0x2e9   : > { %v3618_v26 = vsel %vm3490_vm6, %v4620_v19, %v3554_v24  ;;  %vm3491_vm7 = vcmp.gt.f32.partialorder %v4622_v25, 0.0  ;;  %v3555_v27 = vmul.f32 0.2, %v4622_v25 }
 0x2ea   : > { %v4505_v28 = vpack.c.bf16 %v3618_v26, %v3618_v26  ;;  %v2815_v29 = vpop.f32.mrb[104].mxu1  ;;  %v3393_v32 = vpop.f32.mrb[104].mxu0 }
 0x2eb   : > { %v3619_v30 = vsel %vm3491_vm7, %v4622_v25, %v3555_v27  ;;  %v4623_v31 = vadd.f32 %v5731_v33, %v2815_v29  ;;  %v2817_v34 = vpop.f32.mrb[105].mxu1  ;;  %v3395_v36 = vpop.f32.mrb[105].mxu0 }
 0x2ec   : > { %3939 = vst.msk [vmem:[%s5594_s19 + $0xc8] sm:$0xf] %vm3888_vm1, %v4505_v28  ;;  %v4506_v35 = vpack.c.bf16 %v3619_v30, %v3619_v30  ;;  %v2818_v37 = vpop.f32.mrb[106].mxu1  ;;  %v3396_v40 = vpop.f32.mrb[106].mxu0 }
 0x2ed   : > { %v4624_v38 = vadd.f32 %v4623_v31, %v3393_v32  ;;  %v4625_v39 = vadd.f32 %v5731_v33, %v2818_v37  ;;  %v2820_v41 = vpop.f32.mrb[107].mxu1  ;;  %v3398_v42 = vpop.f32.mrb[107].mxu0 }
 0x2ee   : > { %3940 = vst.msk [vmem:[%s5594_s19 + $0xcc] sm:$0xf] %vm3888_vm1, %v4506_v35 }
 0x2ef   : > { %vm3492_vm8 = vcmp.gt.f32.partialorder %v4624_v38, 0.0  ;;  %v3556_v43 = vmul.f32 0.2, %v4624_v38  ;;  %v4626_v44 = vadd.f32 %v4625_v39, %v3396_v40 }
 0x2f1   : > { %v3620_v45 = vsel %vm3492_vm8, %v4624_v38, %v3556_v43  ;;  %vm3493_vm9 = vcmp.gt.f32.partialorder %v4626_v44, 0.0  ;;  %v3557_v46 = vmul.f32 0.2, %v4626_v44 }
 0x2f2   : > { %v4507_v47 = vpack.c.bf16 %v3620_v45, %v3620_v45  ;;  %v2823_v48 = vpop.f32.mrb[108].mxu1  ;;  %v3401_v51 = vpop.f32.mrb[108].mxu0 }
 0x2f3   : > { %v3621_v49 = vsel %vm3493_vm9, %v4626_v44, %v3557_v46  ;;  %v4627_v50 = vadd.f32 %v5731_v33, %v2823_v48  ;;  %v2825_v52 = vpop.f32.mrb[109].mxu1  ;;  %v3403_v54 = vpop.f32.mrb[109].mxu0 }
 0x2f4   : > { %3941 = vst.msk [vmem:[%s5594_s19 + $0xd0] sm:$0xf] %vm3888_vm1, %v4507_v47  ;;  %v4508_v53 = vpack.c.bf16 %v3621_v49, %v3621_v49  ;;  %v2826_v55 = vpop.f32.mrb[110].mxu1  ;;  %v3404_v58 = vpop.f32.mrb[110].mxu0 }
 0x2f5   : > { %v4628_v56 = vadd.f32 %v4627_v50, %v3401_v51  ;;  %v4629_v57 = vadd.f32 %v5731_v33, %v2826_v55  ;;  %v2828_v59 = vpop.f32.mrb[111].mxu1  ;;  %v3406_v60 = vpop.f32.mrb[111].mxu0 }
 0x2f6   : > { %3942 = vst.msk [vmem:[%s5594_s19 + $0xd4] sm:$0xf] %vm3888_vm1, %v4508_v53 }
 0x2f7   : > { %vm3494_vm10 = vcmp.gt.f32.partialorder %v4628_v56, 0.0  ;;  %v3558_v61 = vmul.f32 0.2, %v4628_v56  ;;  %v4630_v62 = vadd.f32 %v4629_v57, %v3404_v58 }
 0x2f9   : > { %v3622_v1 = vsel %vm3494_vm10, %v4628_v56, %v3558_v61  ;;  %vm3495_vm11 = vcmp.gt.f32.partialorder %v4630_v62, 0.0  ;;  %v3559_v63 = vmul.f32 0.2, %v4630_v62 }
 0x2fa   : > { %v4509_v0 = vpack.c.bf16 %v3622_v1, %v3622_v1  ;;  %v2831_v2 = vpop.f32.mrb[112].mxu1  ;;  %v3409_v5 = vpop.f32.mrb[112].mxu0 }
 0x2fb   : > { %v3623_v3 = vsel %vm3495_vm11, %v4630_v62, %v3559_v63  ;;  %v4631_v4 = vadd.f32 %v5731_v33, %v2831_v2  ;;  %v2833_v6 = vpop.f32.mrb[113].mxu1  ;;  %v3411_v8 = vpop.f32.mrb[113].mxu0 }
 0x2fc   : > { %3943 = vst.msk [vmem:[%s5594_s19 + $0xd8] sm:$0xf] %vm3888_vm1, %v4509_v0  ;;  %v4510_v7 = vpack.c.bf16 %v3623_v3, %v3623_v3  ;;  %v2834_v9 = vpop.f32.mrb[114].mxu1  ;;  %v3412_v12 = vpop.f32.mrb[114].mxu0 }
 0x2fd   : > { %v4632_v10 = vadd.f32 %v4631_v4, %v3409_v5  ;;  %v4633_v11 = vadd.f32 %v5731_v33, %v2834_v9  ;;  %v2836_v13 = vpop.f32.mrb[115].mxu1  ;;  %v3414_v14 = vpop.f32.mrb[115].mxu0 }
 0x2fe   : > { %3944 = vst.msk [vmem:[%s5594_s19 + $0xdc] sm:$0xf] %vm3888_vm1, %v4510_v7 }
 0x2ff   : > { %vm3496_vm12 = vcmp.gt.f32.partialorder %v4632_v10, 0.0  ;;  %v3560_v15 = vmul.f32 0.2, %v4632_v10  ;;  %v4634_v16 = vadd.f32 %v4633_v11, %v3412_v12 }
 0x301   : > { %v3624_v17 = vsel %vm3496_vm12, %v4632_v10, %v3560_v15  ;;  %vm3497_vm13 = vcmp.gt.f32.partialorder %v4634_v16, 0.0  ;;  %v3561_v18 = vmul.f32 0.2, %v4634_v16 }
 0x302   : > { %v4511_v19 = vpack.c.bf16 %v3624_v17, %v3624_v17  ;;  %v2839_v20 = vpop.f32.mrb[116].mxu1  ;;  %v3417_v23 = vpop.f32.mrb[116].mxu0 }
 0x303   : > { %v3625_v21 = vsel %vm3497_vm13, %v4634_v16, %v3561_v18  ;;  %v4635_v22 = vadd.f32 %v5731_v33, %v2839_v20  ;;  %v2841_v24 = vpop.f32.mrb[117].mxu1  ;;  %v3419_v26 = vpop.f32.mrb[117].mxu0 }
 0x304   : > { %3945 = vst.msk [vmem:[%s5594_s19 + $0xe0] sm:$0xf] %vm3888_vm1, %v4511_v19  ;;  %v4512_v25 = vpack.c.bf16 %v3625_v21, %v3625_v21  ;;  %v2842_v27 = vpop.f32.mrb[118].mxu1  ;;  %v3420_v30 = vpop.f32.mrb[118].mxu0 }
 0x305   : > { %v4636_v28 = vadd.f32 %v4635_v22, %v3417_v23  ;;  %v4637_v29 = vadd.f32 %v5731_v33, %v2842_v27  ;;  %v2844_v31 = vpop.f32.mrb[119].mxu1  ;;  %v3422_v32 = vpop.f32.mrb[119].mxu0 }
 0x306   : > { %3946 = vst.msk [vmem:[%s5594_s19 + $0xe4] sm:$0xf] %vm3888_vm1, %v4512_v25 }
 0x307   : > { %vm3498_vm14 = vcmp.gt.f32.partialorder %v4636_v28, 0.0  ;;  %v3562_v34 = vmul.f32 0.2, %v4636_v28  ;;  %v4638_v35 = vadd.f32 %v4637_v29, %v3420_v30 }
 0x309   : > { %v3626_v36 = vsel %vm3498_vm14, %v4636_v28, %v3562_v34  ;;  %vm3499_vm15 = vcmp.gt.f32.partialorder %v4638_v35, 0.0  ;;  %v3563_v37 = vmul.f32 0.2, %v4638_v35 }
 0x30a   : > { %v4513_v38 = vpack.c.bf16 %v3626_v36, %v3626_v36  ;;  %v2847_v39 = vpop.f32.mrb[120].mxu1  ;;  %v3425_v42 = vpop.f32.mrb[120].mxu0 }
 0x30b   : > { %v3627_v40 = vsel %vm3499_vm15, %v4638_v35, %v3563_v37  ;;  %v4639_v41 = vadd.f32 %v5731_v33, %v2847_v39  ;;  %v2849_v43 = vpop.f32.mrb[121].mxu1  ;;  %v3427_v45 = vpop.f32.mrb[121].mxu0 }
 0x30c   : > { %3947 = vst.msk [vmem:[%s5594_s19 + $0xe8] sm:$0xf] %vm3888_vm1, %v4513_v38  ;;  %v4514_v44 = vpack.c.bf16 %v3627_v40, %v3627_v40  ;;  %v2850_v46 = vpop.f32.mrb[122].mxu1  ;;  %v3428_v49 = vpop.f32.mrb[122].mxu0 }
 0x30d   : > { %v4640_v47 = vadd.f32 %v4639_v41, %v3425_v42  ;;  %v4641_v48 = vadd.f32 %v5731_v33, %v2850_v46  ;;  %v2852_v50 = vpop.f32.mrb[123].mxu1  ;;  %v3430_v51 = vpop.f32.mrb[123].mxu0 }
 0x30e   : > { %3948 = vst.msk [vmem:[%s5594_s19 + $0xec] sm:$0xf] %vm3888_vm1, %v4514_v44 }
 0x30f   : > { %vm3500_vm0 = vcmp.gt.f32.partialorder %v4640_v47, 0.0  ;;  %v3564_v52 = vmul.f32 0.2, %v4640_v47  ;;  %v4642_v53 = vadd.f32 %v4641_v48, %v3428_v49 }
 0x311   : > { %v3628_v54 = vsel %vm3500_vm0, %v4640_v47, %v3564_v52  ;;  %vm3501_vm2 = vcmp.gt.f32.partialorder %v4642_v53, 0.0  ;;  %v3565_v55 = vmul.f32 0.2, %v4642_v53 }
 0x312   : > { %v4515_v56 = vpack.c.bf16 %v3628_v54, %v3628_v54  ;;  %v2855_v57 = vpop.f32.mrb[124].mxu1  ;;  %v3433_v60 = vpop.f32.mrb[124].mxu0 }
 0x313   : > { %v3629_v58 = vsel %vm3501_vm2, %v4642_v53, %v3565_v55  ;;  %v4643_v59 = vadd.f32 %v5731_v33, %v2855_v57  ;;  %v2857_v61 = vpop.f32.mrb[125].mxu1  ;;  %v3435_v1 = vpop.f32.mrb[125].mxu0 }
 0x314   : > { %3949 = vst.msk [vmem:[%s5594_s19 + $0xf0] sm:$0xf] %vm3888_vm1, %v4515_v56  ;;  %v4516_v62 = vpack.c.bf16 %v3629_v58, %v3629_v58  ;;  %v2858_v63 = vpop.f32.mrb[126].mxu1  ;;  %v3436_v3 = vpop.f32.mrb[126].mxu0 }
 0x315   : > { %v4644_v0 = vadd.f32 %v4643_v59, %v3433_v60  ;;  %v4645_v2 = vadd.f32 %v5731_v33, %v2858_v63  ;;  %v2860_v4 = vpop.f32.mrb[127].mxu1  ;;  %v3438_v5 = vpop.f32.mrb[127].mxu0 }
 0x316   : > { %3950 = vst.msk [vmem:[%s5594_s19 + $0xf4] sm:$0xf] %vm3888_vm1, %v4516_v62 }
 0x317   : > { %vm3502_vm3 = vcmp.gt.f32.partialorder %v4644_v0, 0.0  ;;  %v3566_v6 = vmul.f32 0.2, %v4644_v0  ;;  %v4646_v7 = vadd.f32 %v4645_v2, %v3436_v3 }
 0x319   : > { %v3630_v8 = vsel %vm3502_vm3, %v4644_v0, %v3566_v6  ;;  %vm3503_vm4 = vcmp.gt.f32.partialorder %v4646_v7, 0.0  ;;  %v3567_v9 = vmul.f32 0.2, %v4646_v7 }
 0x31a   : > { %v4517_v10 = vpack.c.bf16 %v3630_v8, %v3630_v8 }
 0x31b   : > { %v3631_v11 = vsel %vm3503_vm4, %v4646_v7, %v3567_v9 }
 0x31c   : > { %3951 = vst.msk [vmem:[%s5594_s19 + $0xf8] sm:$0xf] %vm3888_vm1, %v4517_v10  ;;  %v4518_v12 = vpack.c.bf16 %v3631_v11, %v3631_v11 }
 0x31e   : > { %3952 = vst.msk [vmem:[%s5594_s19 + $0xfc] sm:$0xf] %vm3888_vm1, %v4518_v12 }
 0x31f PF: > { %s13_s14 = sadd.s32 1, %s5015_s14   ;;  %s5816_s12 = smov %s5011_s13 }
 0x320   : > { %p10_p5 = scmp.ge.s32.totalorder %s13_s14, 4   ;;  %s5817_s13 = smov %s5819_s15 }
 0x322   :  { %12 = sbr.rel (!%p10_p5) target bundleno = 2 (0x2), region = 68 }

// kernel: voxel_processing.18
= control target key start
LH: loop header
LB: loop body
LE: loop exit
PB: predicated region body
PF: predicated region fallthrough
CT: control target
= control target key end

     0   :  { %vm1418_vm1 = vcmask 125952   ;;  %s2457_s1 = inlined_call_operand.vmem [shape: bf16[1024,16], index: 1, kind: input, shape index: {}]   ;;  %s2458_s0 = inlined_call_operand.vmem [shape: bf16[128,1024], index: 0, kind: input, shape index: {}]   ;;  %s2459_s2 = inlined_call_operand.vmem [shape: f32[1,16], index: 2, kind: input, shape index: {}]   ;;  %s2460_s3 = inlined_call_operand.vmem [shape: bf16[128,16], index: 3, kind: output, shape index: {}]  }
   0x1   :  { %v1856_v0 = vld [vmem:[%s2457_s1 + $0x40] sm:$0xff]   ;;  %v1860_v4 = vld [vmem:[%s2457_s1 + $0x48] sm:$0xff]   ;;  %v1864_v8 = vld [vmem:[%s2457_s1 + $0x50] sm:$0xff]  }
   0x2   :  { %v1857_v1 = vld [vmem:[%s2457_s1 + $0xc0] sm:$0xff]   ;;  %1600 = vmatprep.subr.bf16.mxu0 %v1856_v0  ;;  %v1861_v5 = vld [vmem:[%s2457_s1 + $0xc8] sm:$0xff]   ;;  %v1865_v9 = vld [vmem:[%s2457_s1 + $0xd0] sm:$0xff]  }
   0x3   :  { %v1858_v2 = vld [vmem:[%s2457_s1] sm:$0xff]   ;;  %1664 = vmatprep.subr.bf16.mxu1 %v1857_v1  ;;  %v1862_v6 = vld [vmem:[%s2457_s1 + $0x8] sm:$0xff]   ;;  %v1866_v10 = vld [vmem:[%s2457_s1 + $0x10] sm:$0xff]  }
   0x4   :  { %v1859_v3 = vld [vmem:[%s2457_s1 + $0x80] sm:$0xff]   ;;  %1601 = vmatpush3.bf16.msra.mxu0 %v1858_v2  ;;  %v1863_v7 = vld [vmem:[%s2457_s1 + $0x88] sm:$0xff]   ;;  %v1867_v11 = vld [vmem:[%s2457_s1 + $0x90] sm:$0xff]  }
   0x5   :  { %1665 = vmatpush3.bf16.msra.mxu1 %v1859_v3  ;;  %1602 = vmatprep.subr.bf16.mxu0 %v1860_v4  ;;  %v1868_v12 = vld [vmem:[%s2457_s1 + $0x58] sm:$0xff]   ;;  %v1872_v16 = vld [vmem:[%s2457_s1 + $0x60] sm:$0xff]   ;;  %v1876_v20 = vld [vmem:[%s2457_s1 + $0x68] sm:$0xff]  }
   0x6   :  { %1666 = vmatprep.subr.bf16.mxu1 %v1861_v5  ;;  %v1869_v13 = vld [vmem:[%s2457_s1 + $0xd8] sm:$0xff]   ;;  %v1873_v17 = vld [vmem:[%s2457_s1 + $0xe0] sm:$0xff]   ;;  %v1877_v21 = vld [vmem:[%s2457_s1 + $0xe8] sm:$0xff]  }
   0x7   :  { %v1870_v14 = vld [vmem:[%s2457_s1 + $0x18] sm:$0xff]   ;;  %v1874_v18 = vld [vmem:[%s2457_s1 + $0x20] sm:$0xff]   ;;  %v1878_v22 = vld [vmem:[%s2457_s1 + $0x28] sm:$0xff]  }
   0x8   :  { %1603 = vmatpush3.bf16.msra.mxu0 %v1862_v6  ;;  %v1871_v15 = vld [vmem:[%s2457_s1 + $0x98] sm:$0xff]   ;;  %v1875_v19 = vld [vmem:[%s2457_s1 + $0xa0] sm:$0xff]   ;;  %v1879_v23 = vld [vmem:[%s2457_s1 + $0xa8] sm:$0xff]  }
   0x9   :  { %1667 = vmatpush3.bf16.msra.mxu1 %v1863_v7  ;;  %1604 = vmatprep.subr.bf16.mxu0 %v1864_v8  ;;  %v1880_v24 = vld [vmem:[%s2457_s1 + $0x70] sm:$0xff]   ;;  %v1884_v28 = vld [vmem:[%s2457_s1 + $0x78] sm:$0xff]   ;;  %v15_v32 = vld [vmem:[%s2458_s0] sm:$0xff] }
   0xa   :  { %1668 = vmatprep.subr.bf16.mxu1 %v1865_v9  ;;  %v1881_v25 = vld [vmem:[%s2457_s1 + $0xf0] sm:$0xff]   ;;  %v1885_v29 = vld [vmem:[%s2457_s1 + $0xf8] sm:$0xff]   ;;  %v19_v33 = vld [vmem:[%s2458_s0 + $0x20] sm:$0xff] }
   0xb   :  { %v1882_v26 = vld [vmem:[%s2457_s1 + $0x30] sm:$0xff]   ;;  %v1886_v30 = vld [vmem:[%s2457_s1 + $0x38] sm:$0xff]   ;;  %v16_v34 = vld [vmem:[%s2458_s0 + $0x8] sm:$0xff]  ;;  %v1440_v35 = vcombine.low %v15_v32, %v19_v33  ;;  %v1441_v36 = vcombine.high %v15_v32, %v19_v33 }
   0xc   :  { %1605 = vmatpush3.bf16.msra.mxu0 %v1866_v10  ;;  %v1883_v27 = vld [vmem:[%s2457_s1 + $0xb0] sm:$0xff]   ;;  %v1887_v31 = vld [vmem:[%s2457_s1 + $0xb8] sm:$0xff]   ;;  %v20_v37 = vld [vmem:[%s2458_s0 + $0x28] sm:$0xff] }
   0xd   :  { %1669 = vmatpush3.bf16.msra.mxu1 %v1867_v11  ;;  %1606 = vmatprep.subr.bf16.mxu0 %v1868_v12  ;;  %v1442_v38 = vcombine.low %v16_v34, %v20_v37  ;;  %v1443_v39 = vcombine.high %v16_v34, %v20_v37  ;;  %v1888_v40 = vld [vmem:[%s2457_s1 + $0x140] sm:$0xff]   ;;  %v24_v47 = vld [vmem:[%s2458_s0 + $0x48] sm:$0xff]  ;;  %v1896_v62 = vld [vmem:[%s2457_s1 + $0x150] sm:$0xff]  }
   0xe   :  { %1670 = vmatprep.subr.bf16.mxu1 %v1869_v13  ;;  %950 = vmatprep.mubr.bf16.mxu0 %v1441_v36  ;;  %v1889_v41 = vld [vmem:[%s2457_s1 + $0x100] sm:$0xff]   ;;  %v28_v48 = vld [vmem:[%s2458_s0 + $0x68] sm:$0xff]  ;;  %v1897_v63 = vld [vmem:[%s2457_s1 + $0x110] sm:$0xff]  }
   0xf   :  { %1047 = vmatprep.mubr.bf16.mxu1 %v1443_v39  ;;  %v1890_v42 = vld [vmem:[%s2457_s1 + $0x1c0] sm:$0xff]   ;;  %v1451_v49 = vcombine.high %v24_v47, %v28_v48  ;;  %v1892_v50 = vld [vmem:[%s2457_s1 + $0x148] sm:$0xff]   ;;  %v1450_v53 = vcombine.low %v24_v47, %v28_v48  ;;  %v1898_v0 = vld [vmem:[%s2457_s1 + $0x1d0] sm:$0xff]  }
  0x10   :  { %1607 = vmatpush3.bf16.msra.mxu0 %v1870_v14  ;;  %v1891_v43 = vld [vmem:[%s2457_s1 + $0x180] sm:$0xff]   ;;  %v1893_v52 = vld [vmem:[%s2457_s1 + $0x108] sm:$0xff]   ;;  %v1899_v1 = vld [vmem:[%s2457_s1 + $0x190] sm:$0xff]  }
  0x11   :  { %1671 = vmatpush3.bf16.msra.mxu1 %v1871_v15  ;;  %1608 = vmatprep.subr.bf16.mxu0 %v1872_v16  ;;  %v23_v44 = vld [vmem:[%s2458_s0 + $0x40] sm:$0xff]  ;;  %v1894_v54 = vld [vmem:[%s2457_s1 + $0x1c8] sm:$0xff]   ;;  %v1900_v10 = vld [vmem:[%s2457_s1 + $0x158] sm:$0xff]  }
  0x12   :  { %1672 = vmatprep.subr.bf16.mxu1 %v1873_v17  ;;  %v27_v45 = vld [vmem:[%s2458_s0 + $0x60] sm:$0xff]  ;;  %v1895_v55 = vld [vmem:[%s2457_s1 + $0x188] sm:$0xff]   ;;  %v1901_v11 = vld [vmem:[%s2457_s1 + $0x118] sm:$0xff]  }
  0x13   :  { %v1449_v46 = vcombine.high %v23_v44, %v27_v45  ;;  %v1448_v51 = vcombine.low %v23_v44, %v27_v45  ;;  %v31_v56 = vld [vmem:[%s2458_s0 + $0x80] sm:$0xff]  ;;  %v32_v58 = vld [vmem:[%s2458_s0 + $0x88] sm:$0xff]  ;;  %v1902_v12 = vld [vmem:[%s2457_s1 + $0x1d8] sm:$0xff]  }
  0x14   :  { %1609 = vmatpush3.bf16.msra.mxu0 %v1874_v18  ;;  %v35_v57 = vld [vmem:[%s2458_s0 + $0xa0] sm:$0xff]  ;;  %v36_v59 = vld [vmem:[%s2458_s0 + $0xa8] sm:$0xff]  ;;  %v1903_v13 = vld [vmem:[%s2457_s1 + $0x198] sm:$0xff]  }
  0x15   :  { %1673 = vmatpush3.bf16.msra.mxu1 %v1875_v19  ;;  %1610 = vmatprep.subr.bf16.mxu0 %v1876_v20  ;;  %v1457_v60 = vcombine.high %v31_v56, %v35_v57  ;;  %v1459_v61 = vcombine.high %v32_v58, %v36_v59  ;;  %v1456_v2 = vcombine.low %v31_v56, %v35_v57  ;;  %v39_v3 = vld [vmem:[%s2458_s0 + $0xc0] sm:$0xff]  ;;  %v40_v5 = vld [vmem:[%s2458_s0 + $0xc8] sm:$0xff]  ;;  %v1913_v39 = vld [vmem:[%s2457_s1 + $0x130] sm:$0xff]  }
  0x16   :  { %1674 = vmatprep.subr.bf16.mxu1 %v1877_v21  ;;  %v43_v4 = vld [vmem:[%s2458_s0 + $0xe0] sm:$0xff]  ;;  %v1458_v6 = vcombine.low %v32_v58, %v36_v59  ;;  %v44_v8 = vld [vmem:[%s2458_s0 + $0xe8] sm:$0xff]  ;;  %v1917_v48 = vld [vmem:[%s2457_s1 + $0x138] sm:$0xff]  }
  0x17   :  { %v1465_v7 = vcombine.high %v39_v3, %v43_v4  ;;  %v1467_v9 = vcombine.high %v40_v5, %v44_v8  ;;  %v47_v14 = vld [vmem:[%s2458_s0 + $0x100] sm:$0xff]  ;;  %v48_v16 = vld [vmem:[%s2458_s0 + $0x108] sm:$0xff]  ;;  %v1464_v19 = vcombine.low %v39_v3, %v43_v4  ;;  %v1466_v21 = vcombine.low %v40_v5, %v44_v8  ;;  %v26_v8 = vld [vmem:[%s2458_s0 + $0x58] sm:$0xff] }
  0x18   :  { %1611 = vmatpush3.bf16.msra.mxu0 %v1878_v22  ;;  %v51_v15 = vld [vmem:[%s2458_s0 + $0x120] sm:$0xff]  ;;  %v52_v17 = vld [vmem:[%s2458_s0 + $0x128] sm:$0xff] }
  0x19   :  { %1675 = vmatpush3.bf16.msra.mxu1 %v1879_v23  ;;  %1612 = vmatprep.subr.bf16.mxu0 %v1880_v24  ;;  %v1904_v18 = vld [vmem:[%s2457_s1 + $0x160] sm:$0xff]   ;;  %v1473_v22 = vcombine.high %v47_v14, %v51_v15  ;;  %v1475_v24 = vcombine.high %v48_v16, %v52_v17  ;;  %v1910_v32 = vld [vmem:[%s2457_s1 + $0x1e8] sm:$0xff]   ;;  %v1472_v34 = vcombine.low %v47_v14, %v51_v15  ;;  %v33_v14 = vld [vmem:[%s2458_s0 + $0x90] sm:$0xff] }
  0x1a   :  { %1676 = vmatprep.subr.bf16.mxu1 %v1881_v25  ;;  %v1905_v20 = vld [vmem:[%s2457_s1 + $0x120] sm:$0xff]   ;;  %v1911_v33 = vld [vmem:[%s2457_s1 + $0x1a8] sm:$0xff]   ;;  %v37_v15 = vld [vmem:[%s2458_s0 + $0xb0] sm:$0xff] }
  0x1b   :  { %v1906_v23 = vld [vmem:[%s2457_s1 + $0x1e0] sm:$0xff]   ;;  %v64_v44 = vld [vmem:[%s2458_s0 + $0x188] sm:$0xff] }
  0x1c   :  { %1613 = vmatpush3.bf16.msra.mxu0 %v1882_v26  ;;  %v1907_v25 = vld [vmem:[%s2457_s1 + $0x1a0] sm:$0xff]   ;;  %v68_v45 = vld [vmem:[%s2458_s0 + $0x1a8] sm:$0xff] }
  0x1d   :  { %1677 = vmatpush3.bf16.msra.mxu1 %v1883_v27  ;;  %1614 = vmatprep.subr.bf16.mxu0 %v1884_v28  ;;  %v55_v26 = vld [vmem:[%s2458_s0 + $0x140] sm:$0xff]  ;;  %v1908_v28 = vld [vmem:[%s2457_s1 + $0x168] sm:$0xff]   ;;  %v1490_v59 = vcombine.low %v64_v44, %v68_v45 }
  0x1e   :  { %1678 = vmatprep.subr.bf16.mxu1 %v1885_v29  ;;  %v59_v27 = vld [vmem:[%s2458_s0 + $0x160] sm:$0xff]  ;;  %v56_v29 = vld [vmem:[%s2458_s0 + $0x148] sm:$0xff] }
  0x1f   :  { %v1481_v36 = vcombine.high %v55_v26, %v59_v27  ;;  %v1480_v47 = vcombine.low %v55_v26, %v59_v27  ;;  %v72_v56 = vld [vmem:[%s2458_s0 + $0x1c8] sm:$0xff]  ;;  %v1460_v26 = vcombine.low %v33_v14, %v37_v15 }
  0x20   :  { %1615 = vmatpush3.bf16.msra.mxu0 %v1886_v30  ;;  %v60_v30 = vld [vmem:[%s2458_s0 + $0x168] sm:$0xff] }
  0x21   :  { %1679 = vmatpush3.bf16.msra.mxu1 %v1887_v31  ;;  %1728 = vmatprep.subr.bf16.mxu0 %v1888_v40  ;;  %v1909_v31 = vld [vmem:[%s2457_s1 + $0x128] sm:$0xff]   ;;  %v1483_v37 = vcombine.high %v56_v29, %v60_v30  ;;  %v1914_v40 = vld [vmem:[%s2457_s1 + $0x1f0] sm:$0xff]  }
  0x22   :  { %1792 = vmatprep.subr.bf16.mxu1 %v1890_v42  ;;  %v67_v42 = vld [vmem:[%s2458_s0 + $0x1a0] sm:$0xff]  ;;  %v76_v57 = vld [vmem:[%s2458_s0 + $0x1e8] sm:$0xff] }
  0x23   :  { %951 = vmatmul.mubr.bf16.vlgmr.msra.gmra.mrb[0].mxu0 %v1440_v35  ;;  %v1474_v35 = vcombine.low %v48_v16, %v52_v17  ;;  %v1498_v3 = vcombine.low %v72_v56, %v76_v57  ;;  %v34_v16 = vld [vmem:[%s2458_s0 + $0x98] sm:$0xff] }
  0x24   :  { %1048 = vmatmul.mubr.bf16.vlgmr.msra.gmra.mrb[0].mxu1 %v1442_v38  ;;  %1729 = vmatpush3.bf16.msra.mxu0 %v1889_v41  ;;  %v1912_v38 = vld [vmem:[%s2457_s1 + $0x170] sm:$0xff]   ;;  %v63_v41 = vld [vmem:[%s2458_s0 + $0x180] sm:$0xff]  ;;  %v38_v17 = vld [vmem:[%s2458_s0 + $0xb8] sm:$0xff] }
  0x25   :  { %1793 = vmatpush3.bf16.msra.mxu1 %v1891_v43  ;;  %958 = vmatprep.mubr.bf16.mxu0 %v1449_v46  ;;  %v1915_v43 = vld [vmem:[%s2457_s1 + $0x1b0] sm:$0xff]   ;;  %v1916_v46 = vld [vmem:[%s2457_s1 + $0x178] sm:$0xff]   ;;  %v1488_v58 = vcombine.low %v63_v41, %v67_v42  ;;  %v1462_v27 = vcombine.low %v34_v16, %v38_v17 }
  0x26   :  { %1055 = vmatprep.mubr.bf16.mxu1 %v1451_v49  ;;  %1730 = vmatprep.subr.bf16.mxu0 %v1892_v50  ;;  %v1482_v49 = vcombine.low %v56_v29, %v60_v30  ;;  %v1489_v50 = vcombine.high %v63_v41, %v67_v42  ;;  %v49_v30 = vld [vmem:[%s2458_s0 + $0x110] sm:$0xff]  ;;  %v62_v41 = vld [vmem:[%s2458_s0 + $0x178] sm:$0xff] }
  0x27   :  { %1794 = vmatprep.subr.bf16.mxu1 %v1894_v54  ;;  %v71_v54 = vld [vmem:[%s2458_s0 + $0x1c0] sm:$0xff] }
  0x28   :  { %1731 = vmatpush3.bf16.msra.mxu0 %v1893_v52  ;;  %v1491_v52 = vcombine.high %v64_v44, %v68_v45 }
  0x29   :  { %1795 = vmatpush3.bf16.msra.mxu1 %v1895_v55  ;;  %1732 = vmatprep.subr.bf16.mxu0 %v1896_v62  ;;  %v75_v55 = vld [vmem:[%s2458_s0 + $0x1e0] sm:$0xff]  ;;  %v17_v62 = vld [vmem:[%s2458_s0 + $0x10] sm:$0xff] }
  0x2a   :  { %1796 = vmatprep.subr.bf16.mxu1 %v1898_v0  ;;  %v18_v0 = vld [vmem:[%s2458_s0 + $0x18] sm:$0xff] }
  0x2b   :  { %959 = vmatmul.mubr.bf16.gmra.mrb[4].mxu0 %v1448_v51  ;;  %v1918_v51 = vld [vmem:[%s2457_s1 + $0x1f8] sm:$0xff]  }
  0x2c   :  { %1056 = vmatmul.mubr.bf16.gmra.mrb[4].mxu1 %v1450_v53  ;;  %966 = vmatprep.mubr.bf16.mxu0 %v1457_v60  ;;  %v1919_v53 = vld [vmem:[%s2457_s1 + $0x1b8] sm:$0xff]   ;;  %v1497_v60 = vcombine.high %v71_v54, %v75_v55 }
  0x2d   :  { %1063 = vmatprep.mubr.bf16.mxu1 %v1459_v61  ;;  %1733 = vmatpush3.bf16.msra.mxu0 %v1897_v63  ;;  %v1499_v61 = vcombine.high %v72_v56, %v76_v57  ;;  %v21_v63 = vld [vmem:[%s2458_s0 + $0x30] sm:$0xff]  ;;  %v74_v56 = vld [vmem:[%s2458_s0 + $0x1d8] sm:$0xff] }
  0x2e   :  { %1797 = vmatpush3.bf16.msra.mxu1 %v1899_v1  ;;  %1734 = vmatprep.subr.bf16.mxu0 %v1900_v10  ;;  %v22_v1 = vld [vmem:[%s2458_s0 + $0x38] sm:$0xff]  ;;  %v1445_v4 = vcombine.high %v17_v62, %v21_v63  ;;  %v1444_v10 = vcombine.low %v17_v62, %v21_v63 }
  0x2f   :  { %1798 = vmatprep.subr.bf16.mxu1 %v1902_v12  ;;  %v1447_v5 = vcombine.high %v18_v0, %v22_v1  ;;  %v78_v57 = vld [vmem:[%s2458_s0 + $0x1f8] sm:$0xff] }
  0x30   :  { %v1502_v63 = vcombine.low %v74_v56, %v78_v57 }
  0x31   :  { %1735 = vmatpush3.bf16.msra.mxu0 %v1901_v11  ;;  %v1446_v11 = vcombine.low %v18_v0, %v22_v1 }
  0x32   :  { %1799 = vmatpush3.bf16.msra.mxu1 %v1903_v13  ;;  %1736 = vmatprep.subr.bf16.mxu0 %v1904_v18 }
  0x33   :  { %967 = vmatmul.mubr.bf16.gmra.mrb[8].mxu0 %v1456_v2  ;;  %1800 = vmatprep.subr.bf16.mxu1 %v1906_v23  ;;  %v1496_v2 = vcombine.low %v71_v54, %v75_v55  ;;  %v45_v23 = vld [vmem:[%s2458_s0 + $0xf0] sm:$0xff] }
  0x34   :  { %1064 = vmatmul.mubr.bf16.gmra.mrb[8].mxu1 %v1458_v6  ;;  %974 = vmatprep.mubr.bf16.mxu0 %v1465_v7  ;;  %v25_v6 = vld [vmem:[%s2458_s0 + $0x50] sm:$0xff] }
  0x35   :  { %1071 = vmatprep.mubr.bf16.mxu1 %v1467_v9  ;;  %1737 = vmatpush3.bf16.msra.mxu0 %v1905_v20  ;;  %v29_v7 = vld [vmem:[%s2458_s0 + $0x70] sm:$0xff]  ;;  %v30_v9 = vld [vmem:[%s2458_s0 + $0x78] sm:$0xff]  ;;  %v1461_v20 = vcombine.high %v33_v14, %v37_v15 }
  0x36   :  { %1801 = vmatpush3.bf16.msra.mxu1 %v1907_v25  ;;  %1738 = vmatprep.subr.bf16.mxu0 %v1908_v28  ;;  %v1453_v12 = vcombine.high %v25_v6, %v29_v7  ;;  %v1455_v13 = vcombine.high %v26_v8, %v30_v9  ;;  %v1452_v18 = vcombine.low %v25_v6, %v29_v7  ;;  %v46_v25 = vld [vmem:[%s2458_s0 + $0xf8] sm:$0xff]  ;;  %v73_v54 = vld [vmem:[%s2458_s0 + $0x1d0] sm:$0xff] }
  0x37   :  { %1802 = vmatprep.subr.bf16.mxu1 %v1910_v32  ;;  %v50_v32 = vld [vmem:[%s2458_s0 + $0x118] sm:$0xff]  ;;  %v77_v55 = vld [vmem:[%s2458_s0 + $0x1f0] sm:$0xff] }
  0x38   :  { %v1500_v62 = vcombine.low %v73_v54, %v77_v55 }
  0x39   :  { %1739 = vmatpush3.bf16.msra.mxu0 %v1909_v31  ;;  %v53_v31 = vld [vmem:[%s2458_s0 + $0x130] sm:$0xff] }
  0x3a   :  { %1803 = vmatpush3.bf16.msra.mxu1 %v1911_v33  ;;  %1740 = vmatprep.subr.bf16.mxu0 %v1912_v38  ;;  %v54_v33 = vld [vmem:[%s2458_s0 + $0x138] sm:$0xff]  ;;  %v57_v38 = vld [vmem:[%s2458_s0 + $0x150] sm:$0xff]  ;;  %v1476_v42 = vcombine.low %v49_v30, %v53_v31 }
  0x3b   :  { %975 = vmatmul.mubr.bf16.gmra.mrb[12].mxu0 %v1464_v19  ;;  %1804 = vmatprep.subr.bf16.mxu1 %v1914_v40  ;;  %v1454_v19 = vcombine.low %v26_v8, %v30_v9  ;;  %v58_v40 = vld [vmem:[%s2458_s0 + $0x158] sm:$0xff] }
  0x3c   :  { %1072 = vmatmul.mubr.bf16.gmra.mrb[12].mxu1 %v1466_v21  ;;  %982 = vmatprep.mubr.bf16.mxu0 %v1473_v22  ;;  %v1463_v21 = vcombine.high %v34_v16, %v38_v17  ;;  %v41_v22 = vld [vmem:[%s2458_s0 + $0xd0] sm:$0xff]  ;;  %v1487_v45 = vcombine.high %v58_v40, %v62_v41 }
  0x3d   :  { %1079 = vmatprep.mubr.bf16.mxu1 %v1475_v24  ;;  %1741 = vmatpush3.bf16.msra.mxu0 %v1913_v39  ;;  %v42_v24 = vld [vmem:[%s2458_s0 + $0xd8] sm:$0xff]  ;;  %v1469_v28 = vcombine.high %v41_v22, %v45_v23  ;;  %v61_v39 = vld [vmem:[%s2458_s0 + $0x170] sm:$0xff] }
  0x3e   :  { %1805 = vmatpush3.bf16.msra.mxu1 %v1915_v43  ;;  %1742 = vmatprep.subr.bf16.mxu0 %v1916_v46  ;;  %v1471_v29 = vcombine.high %v42_v24, %v46_v25  ;;  %v1478_v43 = vcombine.low %v50_v32, %v54_v33  ;;  %v1485_v44 = vcombine.high %v57_v38, %v61_v39  ;;  %v65_v46 = vld [vmem:[%s2458_s0 + $0x190] sm:$0xff] }
  0x3f   :  { %1806 = vmatprep.subr.bf16.mxu1 %v1918_v51  ;;  %v1486_v51 = vcombine.low %v58_v40, %v62_v41 }
  0x41   :  { %1743 = vmatpush3.bf16.msra.mxu0 %v1917_v48  ;;  %v66_v48 = vld [vmem:[%s2458_s0 + $0x198] sm:$0xff] }
  0x42   :  { %1807 = vmatpush3.bf16.msra.mxu1 %v1919_v53 }
  0x43   :  { %983 = vmatmul.mubr.bf16.gmra.mrb[16].mxu0 %v1472_v34  ;;  %v1468_v34 = vcombine.low %v41_v22, %v45_v23 }
  0x44   :  { %1080 = vmatmul.mubr.bf16.gmra.mrb[16].mxu1 %v1474_v35  ;;  %990 = vmatprep.mubr.bf16.mxu0 %v1481_v36  ;;  %v1470_v35 = vcombine.low %v42_v24, %v46_v25  ;;  %v1477_v36 = vcombine.high %v49_v30, %v53_v31 }
  0x45   :  { %1087 = vmatprep.mubr.bf16.mxu1 %v1483_v37  ;;  %v1479_v37 = vcombine.high %v50_v32, %v54_v33 }
  0x4b   :  { %991 = vmatmul.mubr.bf16.gmra.mrb[20].mxu0 %v1480_v47  ;;  %v69_v47 = vld [vmem:[%s2458_s0 + $0x1b0] sm:$0xff] }
  0x4c   :  { %1088 = vmatmul.mubr.bf16.gmra.mrb[20].mxu1 %v1482_v49  ;;  %998 = vmatprep.mubr.bf16.mxu0 %v1489_v50  ;;  %v70_v49 = vld [vmem:[%s2458_s0 + $0x1b8] sm:$0xff]  ;;  %v1484_v50 = vcombine.low %v57_v38, %v61_v39 }
  0x4d   :  { %1095 = vmatprep.mubr.bf16.mxu1 %v1491_v52  ;;  %v1493_v52 = vcombine.high %v65_v46, %v69_v47  ;;  %v1495_v53 = vcombine.high %v66_v48, %v70_v49 }
  0x53   :  { %999 = vmatmul.mubr.bf16.gmra.mrb[24].mxu0 %v1488_v58  ;;  %v1492_v58 = vcombine.low %v65_v46, %v69_v47 }
  0x54   :  { %1096 = vmatmul.mubr.bf16.gmra.mrb[24].mxu1 %v1490_v59  ;;  %1006 = vmatprep.mubr.bf16.mxu0 %v1497_v60  ;;  %v1494_v59 = vcombine.low %v66_v48, %v70_v49  ;;  %v1501_v60 = vcombine.high %v73_v54, %v77_v55 }
  0x55   :  { %1103 = vmatprep.mubr.bf16.mxu1 %v1499_v61  ;;  %v1503_v61 = vcombine.high %v74_v56, %v78_v57 }
  0x5b   :  { %1007 = vmatmul.mubr.bf16.gmra.mrb[28].mxu0 %v1496_v2  ;;  %v2327_v2 = vld [vmem:[%s2459_s2] ss:$0 sm:$0xff] }
  0x5c   :  { %1104 = vmatmul.mubr.bf16.gmra.mrb[28].mxu1 %v1498_v3  ;;  %1144 = vmatprep.mubr.bf16.mxu0 %v1445_v4 }
  0x5d   :  { %1241 = vmatprep.mubr.bf16.mxu1 %v1447_v5 }
  0x63   :  { %1145 = vmatmul.mubr.bf16.vlgmr.msra.gmra.mrb[32].mxu0 %v1444_v10 }
  0x64   :  { %1242 = vmatmul.mubr.bf16.vlgmr.msra.gmra.mrb[32].mxu1 %v1446_v11  ;;  %1152 = vmatprep.mubr.bf16.mxu0 %v1453_v12 }
  0x65   :  { %1249 = vmatprep.mubr.bf16.mxu1 %v1455_v13 }
  0x6b   :  { %1153 = vmatmul.mubr.bf16.gmra.mrb[36].mxu0 %v1452_v18 }
  0x6c   :  { %1250 = vmatmul.mubr.bf16.gmra.mrb[36].mxu1 %v1454_v19  ;;  %1160 = vmatprep.mubr.bf16.mxu0 %v1461_v20 }
  0x6d   :  { %1257 = vmatprep.mubr.bf16.mxu1 %v1463_v21 }
  0x73   :  { %1161 = vmatmul.mubr.bf16.gmra.mrb[40].mxu0 %v1460_v26 }
  0x74   :  { %1258 = vmatmul.mubr.bf16.gmra.mrb[40].mxu1 %v1462_v27  ;;  %1168 = vmatprep.mubr.bf16.mxu0 %v1469_v28 }
  0x75   :  { %1265 = vmatprep.mubr.bf16.mxu1 %v1471_v29 }
  0x7b   :  { %1169 = vmatmul.mubr.bf16.gmra.mrb[44].mxu0 %v1468_v34 }
  0x7c   :  { %1266 = vmatmul.mubr.bf16.gmra.mrb[44].mxu1 %v1470_v35  ;;  %1176 = vmatprep.mubr.bf16.mxu0 %v1477_v36 }
  0x7d   :  { %1273 = vmatprep.mubr.bf16.mxu1 %v1479_v37 }
  0x83   :  { %1177 = vmatmul.mubr.bf16.gmra.mrb[48].mxu0 %v1476_v42 }
  0x84   :  { %1274 = vmatmul.mubr.bf16.gmra.mrb[48].mxu1 %v1478_v43  ;;  %1184 = vmatprep.mubr.bf16.mxu0 %v1485_v44 }
  0x85   :  { %1281 = vmatprep.mubr.bf16.mxu1 %v1487_v45 }
  0x8b   :  { %1185 = vmatmul.mubr.bf16.gmra.mrb[52].mxu0 %v1484_v50 }
  0x8c   :  { %1282 = vmatmul.mubr.bf16.gmra.mrb[52].mxu1 %v1486_v51  ;;  %1192 = vmatprep.mubr.bf16.mxu0 %v1493_v52 }
  0x8d   :  { %1289 = vmatprep.mubr.bf16.mxu1 %v1495_v53 }
  0x93   :  { %1193 = vmatmul.mubr.bf16.gmra.mrb[56].mxu0 %v1492_v58 }
  0x94   :  { %1290 = vmatmul.mubr.bf16.gmra.mrb[56].mxu1 %v1494_v59  ;;  %1200 = vmatprep.mubr.bf16.mxu0 %v1501_v60 }
  0x95   :  { %1297 = vmatprep.mubr.bf16.mxu1 %v1503_v61 }
  0x9b   :  { %1201 = vmatmul.mubr.bf16.gmra.mrb[60].mxu0 %v1500_v62 }
  0x9c   :  { %1298 = vmatmul.mubr.bf16.gmra.mrb[60].mxu1 %v1502_v63 }
  0xf6   :  { %v1616_v0 = vpop.f32.mrb[0].mxu0 }
  0xf7   :  { %v1680_v1 = vpop.f32.mrb[0].mxu1  ;;  %v1617_v3 = vpop.f32.mrb[1].mxu0 }
  0xf8   :  { %v1618_v4 = vadd.f32 %v1617_v3, %v1616_v0  ;;  %v1681_v5 = vpop.f32.mrb[1].mxu1  ;;  %v1619_v6 = vpop.f32.mrb[2].mxu0 }
  0xf9   :  { %v1682_v7 = vadd.f32 %v1681_v5, %v1680_v1  ;;  %v1683_v8 = vpop.f32.mrb[2].mxu1  ;;  %v1620_v9 = vpop.f32.mrb[3].mxu0 }
  0xfa   :  { %v953_v10 = vadd.f32 %v1618_v4, %v2327_v2  ;;  %v1621_v11 = vadd.f32 %v1620_v9, %v1619_v6  ;;  %v1684_v12 = vpop.f32.mrb[3].mxu1 }
  0xfb   :  { %v1685_v13 = vadd.f32 %v1684_v12, %v1683_v8 }
  0xfc   :  { %v2330_v14 = vadd.f32 %v1682_v7, %v953_v10  ;;  %v956_v15 = vadd.f32 %v1621_v11, %v2327_v2 }
  0xfe   :  { %v2333_v16 = vadd.f32 %v1685_v13, %v956_v15  ;;  %v1622_v17 = vpop.f32.mrb[4].mxu0 }
  0xff   :  { %v1686_v18 = vpop.f32.mrb[4].mxu1  ;;  %v1623_v19 = vpop.f32.mrb[5].mxu0 }
 0x100   :  { %v1624_v20 = vadd.f32 %v1623_v19, %v1622_v17  ;;  %v1687_v21 = vpop.f32.mrb[5].mxu1  ;;  %v1625_v22 = vpop.f32.mrb[6].mxu0 }
 0x101   :  { %v1688_v23 = vadd.f32 %v1687_v21, %v1686_v18  ;;  %v1689_v24 = vpop.f32.mrb[6].mxu1  ;;  %v1626_v25 = vpop.f32.mrb[7].mxu0 }
 0x102   :  { %v961_v26 = vadd.f32 %v1624_v20, %v2327_v2  ;;  %v1627_v27 = vadd.f32 %v1626_v25, %v1625_v22  ;;  %v1690_v28 = vpop.f32.mrb[7].mxu1 }
 0x103   :  { %v1691_v29 = vadd.f32 %v1690_v28, %v1689_v24 }
 0x104   :  { %v2336_v30 = vadd.f32 %v1688_v23, %v961_v26  ;;  %v964_v31 = vadd.f32 %v1627_v27, %v2327_v2 }
 0x106   :  { %v2339_v32 = vadd.f32 %v1691_v29, %v964_v31  ;;  %v1628_v33 = vpop.f32.mrb[8].mxu0 }
 0x107   :  { %v1692_v34 = vpop.f32.mrb[8].mxu1  ;;  %v1629_v35 = vpop.f32.mrb[9].mxu0 }
 0x108   :  { %v1630_v36 = vadd.f32 %v1629_v35, %v1628_v33  ;;  %v1693_v37 = vpop.f32.mrb[9].mxu1  ;;  %v1631_v38 = vpop.f32.mrb[10].mxu0 }
 0x109   :  { %v1694_v39 = vadd.f32 %v1693_v37, %v1692_v34  ;;  %v1695_v40 = vpop.f32.mrb[10].mxu1  ;;  %v1632_v41 = vpop.f32.mrb[11].mxu0 }
 0x10a   :  { %v969_v42 = vadd.f32 %v1630_v36, %v2327_v2  ;;  %v1633_v43 = vadd.f32 %v1632_v41, %v1631_v38  ;;  %v1696_v44 = vpop.f32.mrb[11].mxu1 }
 0x10b   :  { %v1697_v45 = vadd.f32 %v1696_v44, %v1695_v40 }
 0x10c   :  { %v2342_v46 = vadd.f32 %v1694_v39, %v969_v42  ;;  %v972_v47 = vadd.f32 %v1633_v43, %v2327_v2 }
 0x10e   :  { %v2345_v48 = vadd.f32 %v1697_v45, %v972_v47  ;;  %v1634_v49 = vpop.f32.mrb[12].mxu0 }
 0x10f   :  { %v1698_v50 = vpop.f32.mrb[12].mxu1  ;;  %v1635_v51 = vpop.f32.mrb[13].mxu0 }
 0x110   :  { %v1636_v52 = vadd.f32 %v1635_v51, %v1634_v49  ;;  %v1699_v53 = vpop.f32.mrb[13].mxu1  ;;  %v1637_v54 = vpop.f32.mrb[14].mxu0 }
 0x111   :  { %v1700_v55 = vadd.f32 %v1699_v53, %v1698_v50  ;;  %v1701_v56 = vpop.f32.mrb[14].mxu1  ;;  %v1638_v57 = vpop.f32.mrb[15].mxu0 }
 0x112   :  { %v977_v58 = vadd.f32 %v1636_v52, %v2327_v2  ;;  %v1639_v59 = vadd.f32 %v1638_v57, %v1637_v54  ;;  %v1702_v60 = vpop.f32.mrb[15].mxu1 }
 0x113   :  { %v1703_v61 = vadd.f32 %v1702_v60, %v1701_v56 }
 0x114   :  { %v2348_v62 = vadd.f32 %v1700_v55, %v977_v58  ;;  %v980_v63 = vadd.f32 %v1639_v59, %v2327_v2 }
 0x116   :  { %v2351_v0 = vadd.f32 %v1703_v61, %v980_v63  ;;  %v1640_v1 = vpop.f32.mrb[16].mxu0 }
 0x117   :  { %v1704_v3 = vpop.f32.mrb[16].mxu1  ;;  %v1641_v4 = vpop.f32.mrb[17].mxu0 }
 0x118   :  { %v1642_v5 = vadd.f32 %v1641_v4, %v1640_v1  ;;  %v1705_v6 = vpop.f32.mrb[17].mxu1  ;;  %v1643_v7 = vpop.f32.mrb[18].mxu0 }
 0x119   :  { %v1706_v8 = vadd.f32 %v1705_v6, %v1704_v3  ;;  %v1707_v9 = vpop.f32.mrb[18].mxu1  ;;  %v1644_v10 = vpop.f32.mrb[19].mxu0 }
 0x11a   :  { %v985_v11 = vadd.f32 %v1642_v5, %v2327_v2  ;;  %v1645_v12 = vadd.f32 %v1644_v10, %v1643_v7  ;;  %v1708_v13 = vpop.f32.mrb[19].mxu1 }
 0x11b   :  { %v1709_v15 = vadd.f32 %v1708_v13, %v1707_v9 }
 0x11c   :  { %v2354_v17 = vadd.f32 %v1706_v8, %v985_v11  ;;  %v988_v18 = vadd.f32 %v1645_v12, %v2327_v2 }
 0x11e   :  { %v2357_v19 = vadd.f32 %v1709_v15, %v988_v18  ;;  %v1646_v20 = vpop.f32.mrb[20].mxu0 }
 0x11f   :  { %v1710_v21 = vpop.f32.mrb[20].mxu1  ;;  %v1647_v22 = vpop.f32.mrb[21].mxu0 }
 0x120   :  { %v1648_v23 = vadd.f32 %v1647_v22, %v1646_v20  ;;  %v1711_v24 = vpop.f32.mrb[21].mxu1  ;;  %v1649_v25 = vpop.f32.mrb[22].mxu0 }
 0x121   :  { %v1712_v26 = vadd.f32 %v1711_v24, %v1710_v21  ;;  %v1713_v27 = vpop.f32.mrb[22].mxu1  ;;  %v1650_v28 = vpop.f32.mrb[23].mxu0 }
 0x122   :  { %v993_v29 = vadd.f32 %v1648_v23, %v2327_v2  ;;  %v1651_v31 = vadd.f32 %v1650_v28, %v1649_v25  ;;  %v1714_v33 = vpop.f32.mrb[23].mxu1 }
 0x123   :  { %v1715_v34 = vadd.f32 %v1714_v33, %v1713_v27 }
 0x124   :  { %v2360_v35 = vadd.f32 %v1712_v26, %v993_v29  ;;  %v996_v36 = vadd.f32 %v1651_v31, %v2327_v2 }
 0x126   :  { %v2363_v37 = vadd.f32 %v1715_v34, %v996_v36  ;;  %v1652_v38 = vpop.f32.mrb[24].mxu0 }
 0x127   :  { %v1716_v39 = vpop.f32.mrb[24].mxu1  ;;  %v1653_v40 = vpop.f32.mrb[25].mxu0 }
 0x128   :  { %v1654_v41 = vadd.f32 %v1653_v40, %v1652_v38  ;;  %v1717_v42 = vpop.f32.mrb[25].mxu1  ;;  %v1655_v43 = vpop.f32.mrb[26].mxu0 }
 0x129   :  { %v1718_v44 = vadd.f32 %v1717_v42, %v1716_v39  ;;  %v1719_v45 = vpop.f32.mrb[26].mxu1  ;;  %v1656_v47 = vpop.f32.mrb[27].mxu0 }
 0x12a   :  { %v1001_v49 = vadd.f32 %v1654_v41, %v2327_v2  ;;  %v1657_v50 = vadd.f32 %v1656_v47, %v1655_v43  ;;  %v1720_v51 = vpop.f32.mrb[27].mxu1 }
 0x12b   :  { %v1721_v52 = vadd.f32 %v1720_v51, %v1719_v45 }
 0x12c   :  { %v2366_v53 = vadd.f32 %v1718_v44, %v1001_v49  ;;  %v1004_v54 = vadd.f32 %v1657_v50, %v2327_v2 }
 0x12e   :  { %v2369_v55 = vadd.f32 %v1721_v52, %v1004_v54  ;;  %v1658_v56 = vpop.f32.mrb[28].mxu0 }
 0x12f   :  { %v1722_v57 = vpop.f32.mrb[28].mxu1  ;;  %v1659_v58 = vpop.f32.mrb[29].mxu0 }
 0x130   :  { %v1660_v59 = vadd.f32 %v1659_v58, %v1658_v56  ;;  %v1723_v60 = vpop.f32.mrb[29].mxu1  ;;  %v1661_v61 = vpop.f32.mrb[30].mxu0 }
 0x131   :  { %v1724_v63 = vadd.f32 %v1723_v60, %v1722_v57  ;;  %v1725_v1 = vpop.f32.mrb[30].mxu1  ;;  %v1662_v3 = vpop.f32.mrb[31].mxu0 }
 0x132   :  { %v1009_v4 = vadd.f32 %v1660_v59, %v2327_v2  ;;  %v1663_v5 = vadd.f32 %v1662_v3, %v1661_v61  ;;  %v1726_v6 = vpop.f32.mrb[31].mxu1 }
 0x133   :  { %v1727_v7 = vadd.f32 %v1726_v6, %v1725_v1 }
 0x134   :  { %v2372_v8 = vadd.f32 %v1724_v63, %v1009_v4  ;;  %v1012_v9 = vadd.f32 %v1663_v5, %v2327_v2 }
 0x136   :  { %v2375_v10 = vadd.f32 %v1727_v7, %v1012_v9  ;;  %v1744_v11 = vpop.f32.mrb[32].mxu0 }
 0x137   :  { %v1808_v12 = vpop.f32.mrb[32].mxu1  ;;  %v1745_v13 = vpop.f32.mrb[33].mxu0 }
 0x138   :  { %v1746_v15 = vadd.f32 %v1745_v13, %v1744_v11  ;;  %v1809_v18 = vpop.f32.mrb[33].mxu1  ;;  %v1747_v20 = vpop.f32.mrb[34].mxu0 }
 0x139   :  { %v1810_v21 = vadd.f32 %v1809_v18, %v1808_v12  ;;  %v1811_v22 = vpop.f32.mrb[34].mxu1  ;;  %v1748_v23 = vpop.f32.mrb[35].mxu0 }
 0x13a   :  { %v1147_v24 = vadd.f32 %v1746_v15, %v2330_v14  ;;  %v1749_v25 = vadd.f32 %v1748_v23, %v1747_v20  ;;  %v1812_v26 = vpop.f32.mrb[35].mxu1 }
 0x13b   :  { %v1813_v27 = vadd.f32 %v1812_v26, %v1811_v22 }
 0x13c   :  { %v1244_v28 = vadd.f32 %v1810_v21, %v1147_v24  ;;  %v1150_v29 = vadd.f32 %v1749_v25, %v2333_v16 }
 0x13e   :  { %vm1306_vm0 = vcmp.gt.f32.partialorder %v1244_v28, 0.0  ;;  %v1322_v2 = vmul.f32 0.2, %v1244_v28  ;;  %v1247_v31 = vadd.f32 %v1813_v27, %v1150_v29  ;;  %v1750_v33 = vpop.f32.mrb[36].mxu0 }
 0x13f   :  { %v1814_v34 = vpop.f32.mrb[36].mxu1  ;;  %v1751_v36 = vpop.f32.mrb[37].mxu0 }
 0x140   :  { %v1338_v38 = vsel %vm1306_vm0, %v1244_v28, %v1322_v2  ;;  %vm1307_vm2 = vcmp.gt.f32.partialorder %v1247_v31, 0.0  ;;  %v1323_v39 = vmul.f32 0.2, %v1247_v31  ;;  %v1752_v40 = vadd.f32 %v1751_v36, %v1750_v33  ;;  %v1815_v41 = vpop.f32.mrb[37].mxu1  ;;  %v1753_v42 = vpop.f32.mrb[38].mxu0 }
 0x141   :  { %v1584_v14 = vpack.c.bf16 %v1338_v38, %v1338_v38  ;;  %v1816_v43 = vadd.f32 %v1815_v41, %v1814_v34  ;;  %v1817_v44 = vpop.f32.mrb[38].mxu1  ;;  %v1754_v45 = vpop.f32.mrb[39].mxu0 }
 0x142   :  { %v1339_v47 = vsel %vm1307_vm2, %v1247_v31, %v1323_v39  ;;  %v1155_v16 = vadd.f32 %v1752_v40, %v2336_v30  ;;  %v1755_v49 = vadd.f32 %v1754_v45, %v1753_v42  ;;  %v1818_v50 = vpop.f32.mrb[39].mxu1 }
 0x143   :  { %1419 = vst.msk [vmem:[%s2460_s3] sm:$0xf] %vm1418_vm1, %v1584_v14  ;;  %v1585_v51 = vpack.c.bf16 %v1339_v47, %v1339_v47  ;;  %v1819_v52 = vadd.f32 %v1818_v50, %v1817_v44 }
 0x144   :  { %v1252_v54 = vadd.f32 %v1816_v43, %v1155_v16  ;;  %v1158_v56 = vadd.f32 %v1755_v49, %v2339_v32 }
 0x145   :  { %1420 = vst.msk [vmem:[%s2460_s3 + $0x4] sm:$0xf] %vm1418_vm1, %v1585_v51 }
 0x146   :  { %vm1308_vm3 = vcmp.gt.f32.partialorder %v1252_v54, 0.0  ;;  %v1324_v57 = vmul.f32 0.2, %v1252_v54  ;;  %v1255_v30 = vadd.f32 %v1819_v52, %v1158_v56  ;;  %v1756_v58 = vpop.f32.mrb[40].mxu0 }
 0x147   :  { %v1820_v59 = vpop.f32.mrb[40].mxu1  ;;  %v1757_v60 = vpop.f32.mrb[41].mxu0 }
 0x148   :  { %v1340_v61 = vsel %vm1308_vm3, %v1252_v54, %v1324_v57  ;;  %vm1309_vm4 = vcmp.gt.f32.partialorder %v1255_v30, 0.0  ;;  %v1325_v63 = vmul.f32 0.2, %v1255_v30  ;;  %v1758_v1 = vadd.f32 %v1757_v60, %v1756_v58  ;;  %v1821_v3 = vpop.f32.mrb[41].mxu1  ;;  %v1759_v4 = vpop.f32.mrb[42].mxu0 }
 0x149   :  { %v1586_v5 = vpack.c.bf16 %v1340_v61, %v1340_v61  ;;  %v1822_v6 = vadd.f32 %v1821_v3, %v1820_v59  ;;  %v1823_v32 = vpop.f32.mrb[42].mxu1  ;;  %v1760_v7 = vpop.f32.mrb[43].mxu0 }
 0x14a   :  { %v1341_v9 = vsel %vm1309_vm4, %v1255_v30, %v1325_v63  ;;  %v1163_v11 = vadd.f32 %v1758_v1, %v2342_v46  ;;  %v1761_v12 = vadd.f32 %v1760_v7, %v1759_v4  ;;  %v1824_v13 = vpop.f32.mrb[43].mxu1 }
 0x14b   :  { %1421 = vst.msk [vmem:[%s2460_s3 + $0x8] sm:$0xf] %vm1418_vm1, %v1586_v5  ;;  %v1587_v15 = vpack.c.bf16 %v1341_v9, %v1341_v9  ;;  %v1825_v18 = vadd.f32 %v1824_v13, %v1823_v32 }
 0x14c   :  { %v1260_v20 = vadd.f32 %v1822_v6, %v1163_v11  ;;  %v1166_v21 = vadd.f32 %v1761_v12, %v2345_v48 }
 0x14d   :  { %1422 = vst.msk [vmem:[%s2460_s3 + $0xc] sm:$0xf] %vm1418_vm1, %v1587_v15 }
 0x14e   :  { %vm1310_vm5 = vcmp.gt.f32.partialorder %v1260_v20, 0.0  ;;  %v1326_v22 = vmul.f32 0.2, %v1260_v20  ;;  %v1263_v46 = vadd.f32 %v1825_v18, %v1166_v21  ;;  %v1762_v23 = vpop.f32.mrb[44].mxu0 }
 0x14f   :  { %v1826_v24 = vpop.f32.mrb[44].mxu1  ;;  %v1763_v25 = vpop.f32.mrb[45].mxu0 }
 0x150   :  { %v1342_v26 = vsel %vm1310_vm5, %v1260_v20, %v1326_v22  ;;  %vm1311_vm6 = vcmp.gt.f32.partialorder %v1263_v46, 0.0  ;;  %v1327_v27 = vmul.f32 0.2, %v1263_v46  ;;  %v1764_v28 = vadd.f32 %v1763_v25, %v1762_v23  ;;  %v1827_v29 = vpop.f32.mrb[45].mxu1  ;;  %v1765_v2 = vpop.f32.mrb[46].mxu0 }
 0x151   :  { %v1588_v31 = vpack.c.bf16 %v1342_v26, %v1342_v26  ;;  %v1828_v33 = vadd.f32 %v1827_v29, %v1826_v24  ;;  %v1829_v48 = vpop.f32.mrb[46].mxu1  ;;  %v1766_v34 = vpop.f32.mrb[47].mxu0 }
 0x152   :  { %v1343_v36 = vsel %vm1311_vm6, %v1263_v46, %v1327_v27  ;;  %v1171_v38 = vadd.f32 %v1764_v28, %v2348_v62  ;;  %v1767_v39 = vadd.f32 %v1766_v34, %v1765_v2  ;;  %v1830_v40 = vpop.f32.mrb[47].mxu1 }
 0x153   :  { %1423 = vst.msk [vmem:[%s2460_s3 + $0x10] sm:$0xf] %vm1418_vm1, %v1588_v31  ;;  %v1589_v41 = vpack.c.bf16 %v1343_v36, %v1343_v36  ;;  %v1831_v42 = vadd.f32 %v1830_v40, %v1829_v48 }
 0x154   :  { %v1268_v14 = vadd.f32 %v1828_v33, %v1171_v38  ;;  %v1174_v43 = vadd.f32 %v1767_v39, %v2351_v0 }
 0x155   :  { %1424 = vst.msk [vmem:[%s2460_s3 + $0x14] sm:$0xf] %vm1418_vm1, %v1589_v41 }
 0x156   :  { %vm1312_vm7 = vcmp.gt.f32.partialorder %v1268_v14, 0.0  ;;  %v1328_v44 = vmul.f32 0.2, %v1268_v14  ;;  %v1271_v62 = vadd.f32 %v1831_v42, %v1174_v43  ;;  %v1768_v45 = vpop.f32.mrb[48].mxu0 }
 0x157   :  { %v1832_v47 = vpop.f32.mrb[48].mxu1  ;;  %v1769_v16 = vpop.f32.mrb[49].mxu0 }
 0x158   :  { %v1344_v49 = vsel %vm1312_vm7, %v1268_v14, %v1328_v44  ;;  %vm1313_vm8 = vcmp.gt.f32.partialorder %v1271_v62, 0.0  ;;  %v1329_v50 = vmul.f32 0.2, %v1271_v62  ;;  %v1770_v51 = vadd.f32 %v1769_v16, %v1768_v45  ;;  %v1833_v52 = vpop.f32.mrb[49].mxu1  ;;  %v1771_v54 = vpop.f32.mrb[50].mxu0 }
 0x159   :  { %v1590_v56 = vpack.c.bf16 %v1344_v49, %v1344_v49  ;;  %v1834_v57 = vadd.f32 %v1833_v52, %v1832_v47  ;;  %v1835_v0 = vpop.f32.mrb[50].mxu1  ;;  %v1772_v30 = vpop.f32.mrb[51].mxu0 }
 0x15a   :  { %v1345_v58 = vsel %vm1313_vm8, %v1271_v62, %v1329_v50  ;;  %v1179_v59 = vadd.f32 %v1770_v51, %v2354_v17  ;;  %v1773_v60 = vadd.f32 %v1772_v30, %v1771_v54  ;;  %v1836_v61 = vpop.f32.mrb[51].mxu1 }
 0x15b   :  { %1425 = vst.msk [vmem:[%s2460_s3 + $0x18] sm:$0xf] %vm1418_vm1, %v1590_v56  ;;  %v1591_v63 = vpack.c.bf16 %v1345_v58, %v1345_v58  ;;  %v1837_v1 = vadd.f32 %v1836_v61, %v1835_v0 }
 0x15c   :  { %v1276_v3 = vadd.f32 %v1834_v57, %v1179_v59  ;;  %v1182_v4 = vadd.f32 %v1773_v60, %v2357_v19 }
 0x15d   :  { %1426 = vst.msk [vmem:[%s2460_s3 + $0x1c] sm:$0xf] %vm1418_vm1, %v1591_v63 }
 0x15e   :  { %vm1314_vm9 = vcmp.gt.f32.partialorder %v1276_v3, 0.0  ;;  %v1330_v5 = vmul.f32 0.2, %v1276_v3  ;;  %v1279_v17 = vadd.f32 %v1837_v1, %v1182_v4  ;;  %v1774_v6 = vpop.f32.mrb[52].mxu0 }
 0x15f   :  { %v1838_v32 = vpop.f32.mrb[52].mxu1  ;;  %v1775_v7 = vpop.f32.mrb[53].mxu0 }
 0x160   :  { %v1346_v9 = vsel %vm1314_vm9, %v1276_v3, %v1330_v5  ;;  %vm1315_vm10 = vcmp.gt.f32.partialorder %v1279_v17, 0.0  ;;  %v1331_v11 = vmul.f32 0.2, %v1279_v17  ;;  %v1776_v12 = vadd.f32 %v1775_v7, %v1774_v6  ;;  %v1839_v13 = vpop.f32.mrb[53].mxu1  ;;  %v1777_v15 = vpop.f32.mrb[54].mxu0 }
 0x161   :  { %v1592_v18 = vpack.c.bf16 %v1346_v9, %v1346_v9  ;;  %v1840_v20 = vadd.f32 %v1839_v13, %v1838_v32  ;;  %v1841_v19 = vpop.f32.mrb[54].mxu1  ;;  %v1778_v21 = vpop.f32.mrb[55].mxu0 }
 0x162   :  { %v1347_v22 = vsel %vm1315_vm10, %v1279_v17, %v1331_v11  ;;  %v1187_v46 = vadd.f32 %v1776_v12, %v2360_v35  ;;  %v1779_v23 = vadd.f32 %v1778_v21, %v1777_v15  ;;  %v1842_v24 = vpop.f32.mrb[55].mxu1 }
 0x163   :  { %1427 = vst.msk [vmem:[%s2460_s3 + $0x20] sm:$0xf] %vm1418_vm1, %v1592_v18  ;;  %v1593_v25 = vpack.c.bf16 %v1347_v22, %v1347_v22  ;;  %v1843_v26 = vadd.f32 %v1842_v24, %v1841_v19 }
 0x164   :  { %v1284_v27 = vadd.f32 %v1840_v20, %v1187_v46  ;;  %v1190_v28 = vadd.f32 %v1779_v23, %v2363_v37 }
 0x165   :  { %1428 = vst.msk [vmem:[%s2460_s3 + $0x24] sm:$0xf] %vm1418_vm1, %v1593_v25 }
 0x166   :  { %vm1316_vm11 = vcmp.gt.f32.partialorder %v1284_v27, 0.0  ;;  %v1332_v29 = vmul.f32 0.2, %v1284_v27  ;;  %v1287_v35 = vadd.f32 %v1843_v26, %v1190_v28  ;;  %v1780_v2 = vpop.f32.mrb[56].mxu0 }
 0x167   :  { %v1844_v31 = vpop.f32.mrb[56].mxu1  ;;  %v1781_v33 = vpop.f32.mrb[57].mxu0 }
 0x168   :  { %v1348_v48 = vsel %vm1316_vm11, %v1284_v27, %v1332_v29  ;;  %vm1317_vm12 = vcmp.gt.f32.partialorder %v1287_v35, 0.0  ;;  %v1333_v34 = vmul.f32 0.2, %v1287_v35  ;;  %v1782_v36 = vadd.f32 %v1781_v33, %v1780_v2  ;;  %v1845_v38 = vpop.f32.mrb[57].mxu1  ;;  %v1783_v39 = vpop.f32.mrb[58].mxu0 }
 0x169   :  { %v1594_v40 = vpack.c.bf16 %v1348_v48, %v1348_v48  ;;  %v1846_v41 = vadd.f32 %v1845_v38, %v1844_v31  ;;  %v1847_v37 = vpop.f32.mrb[58].mxu1  ;;  %v1784_v42 = vpop.f32.mrb[59].mxu0 }
 0x16a   :  { %v1349_v14 = vsel %vm1317_vm12, %v1287_v35, %v1333_v34  ;;  %v1195_v43 = vadd.f32 %v1782_v36, %v2366_v53  ;;  %v1785_v44 = vadd.f32 %v1784_v42, %v1783_v39  ;;  %v1848_v62 = vpop.f32.mrb[59].mxu1 }
 0x16b   :  { %1429 = vst.msk [vmem:[%s2460_s3 + $0x28] sm:$0xf] %vm1418_vm1, %v1594_v40  ;;  %v1595_v45 = vpack.c.bf16 %v1349_v14, %v1349_v14  ;;  %v1849_v47 = vadd.f32 %v1848_v62, %v1847_v37 }
 0x16c   :  { %v1292_v16 = vadd.f32 %v1846_v41, %v1195_v43  ;;  %v1198_v49 = vadd.f32 %v1785_v44, %v2369_v55 }
 0x16d   :  { %1430 = vst.msk [vmem:[%s2460_s3 + $0x2c] sm:$0xf] %vm1418_vm1, %v1595_v45 }
 0x16e   :  { %vm1318_vm13 = vcmp.gt.f32.partialorder %v1292_v16, 0.0  ;;  %v1334_v50 = vmul.f32 0.2, %v1292_v16  ;;  %v1295_v53 = vadd.f32 %v1849_v47, %v1198_v49  ;;  %v1786_v51 = vpop.f32.mrb[60].mxu0 }
 0x16f   :  { %v1850_v52 = vpop.f32.mrb[60].mxu1  ;;  %v1787_v54 = vpop.f32.mrb[61].mxu0 }
 0x170   :  { %v1350_v56 = vsel %vm1318_vm13, %v1292_v16, %v1334_v50  ;;  %vm1319_vm14 = vcmp.gt.f32.partialorder %v1295_v53, 0.0  ;;  %v1335_v57 = vmul.f32 0.2, %v1295_v53  ;;  %v1788_v0 = vadd.f32 %v1787_v54, %v1786_v51  ;;  %v1851_v30 = vpop.f32.mrb[61].mxu1  ;;  %v1789_v58 = vpop.f32.mrb[62].mxu0 }
 0x171   :  { %v1596_v59 = vpack.c.bf16 %v1350_v56, %v1350_v56  ;;  %v1852_v60 = vadd.f32 %v1851_v30, %v1850_v52  ;;  %v1853_v55 = vpop.f32.mrb[62].mxu1  ;;  %v1790_v61 = vpop.f32.mrb[63].mxu0 }
 0x172   :  { %v1351_v63 = vsel %vm1319_vm14, %v1295_v53, %v1335_v57  ;;  %v1203_v1 = vadd.f32 %v1788_v0, %v2372_v8  ;;  %v1791_v3 = vadd.f32 %v1790_v61, %v1789_v58  ;;  %v1854_v4 = vpop.f32.mrb[63].mxu1 }
 0x173   :  { %1431 = vst.msk [vmem:[%s2460_s3 + $0x30] sm:$0xf] %vm1418_vm1, %v1596_v59  ;;  %v1597_v5 = vpack.c.bf16 %v1351_v63, %v1351_v63  ;;  %v1855_v17 = vadd.f32 %v1854_v4, %v1853_v55 }
 0x174   :  { %v1300_v6 = vadd.f32 %v1852_v60, %v1203_v1  ;;  %v1206_v32 = vadd.f32 %v1791_v3, %v2375_v10 }
 0x175   :  { %1432 = vst.msk [vmem:[%s2460_s3 + $0x34] sm:$0xf] %vm1418_vm1, %v1597_v5 }
 0x176   :  { %vm1320_vm15 = vcmp.gt.f32.partialorder %v1300_v6, 0.0  ;;  %v1336_v7 = vmul.f32 0.2, %v1300_v6  ;;  %v1303_v8 = vadd.f32 %v1855_v17, %v1206_v32 }
 0x178   :  { %v1352_v9 = vsel %vm1320_vm15, %v1300_v6, %v1336_v7  ;;  %vm1321_vm0 = vcmp.gt.f32.partialorder %v1303_v8, 0.0  ;;  %v1337_v11 = vmul.f32 0.2, %v1303_v8 }
 0x179   :  { %v1598_v12 = vpack.c.bf16 %v1352_v9, %v1352_v9 }
 0x17a   :  { %v1353_v13 = vsel %vm1321_vm0, %v1303_v8, %v1337_v11 }
 0x17b   :  { %1433 = vst.msk [vmem:[%s2460_s3 + $0x38] sm:$0xf] %vm1418_vm1, %v1598_v12  ;;  %v1599_v15 = vpack.c.bf16 %v1353_v13, %v1353_v13 }
 0x17d   :  { %1434 = vst.msk [vmem:[%s2460_s3 + $0x3c] sm:$0xf] %vm1418_vm1, %v1599_v15 }

// kernel: voxel_processing.19
= control target key start
LH: loop header
LB: loop body
LE: loop exit
PB: predicated region body
PF: predicated region fallthrough
CT: control target
= control target key end

     0   :  { %vm1418_vm1 = vcmask 257024   ;;  %s2457_s1 = inlined_call_operand.vmem [shape: bf16[1024,32], index: 1, kind: input, shape index: {}]   ;;  %s2458_s0 = inlined_call_operand.vmem [shape: bf16[128,1024], index: 0, kind: input, shape index: {}]   ;;  %s2459_s2 = inlined_call_operand.vmem [shape: f32[1,32], index: 2, kind: input, shape index: {}]   ;;  %s2460_s3 = inlined_call_operand.vmem [shape: bf16[128,32], index: 3, kind: output, shape index: {}]  }
   0x1   :  { %v1856_v0 = vld [vmem:[%s2457_s1 + $0x40] sm:$0xff]   ;;  %v1860_v4 = vld [vmem:[%s2457_s1 + $0x48] sm:$0xff]   ;;  %v1864_v8 = vld [vmem:[%s2457_s1 + $0x50] sm:$0xff]  }
   0x2   :  { %v1857_v1 = vld [vmem:[%s2457_s1 + $0xc0] sm:$0xff]   ;;  %1600 = vmatprep.subr.bf16.mxu0 %v1856_v0  ;;  %v1861_v5 = vld [vmem:[%s2457_s1 + $0xc8] sm:$0xff]   ;;  %v1865_v9 = vld [vmem:[%s2457_s1 + $0xd0] sm:$0xff]  }
   0x3   :  { %v1858_v2 = vld [vmem:[%s2457_s1] sm:$0xff]   ;;  %1664 = vmatprep.subr.bf16.mxu1 %v1857_v1  ;;  %v1862_v6 = vld [vmem:[%s2457_s1 + $0x8] sm:$0xff]   ;;  %v1866_v10 = vld [vmem:[%s2457_s1 + $0x10] sm:$0xff]  }
   0x4   :  { %v1859_v3 = vld [vmem:[%s2457_s1 + $0x80] sm:$0xff]   ;;  %1601 = vmatpush3.bf16.msra.mxu0 %v1858_v2  ;;  %v1863_v7 = vld [vmem:[%s2457_s1 + $0x88] sm:$0xff]   ;;  %v1867_v11 = vld [vmem:[%s2457_s1 + $0x90] sm:$0xff]  }
   0x5   :  { %1665 = vmatpush3.bf16.msra.mxu1 %v1859_v3  ;;  %1602 = vmatprep.subr.bf16.mxu0 %v1860_v4  ;;  %v1868_v12 = vld [vmem:[%s2457_s1 + $0x58] sm:$0xff]   ;;  %v1872_v16 = vld [vmem:[%s2457_s1 + $0x60] sm:$0xff]   ;;  %v1876_v20 = vld [vmem:[%s2457_s1 + $0x68] sm:$0xff]  }
   0x6   :  { %1666 = vmatprep.subr.bf16.mxu1 %v1861_v5  ;;  %v1869_v13 = vld [vmem:[%s2457_s1 + $0xd8] sm:$0xff]   ;;  %v1873_v17 = vld [vmem:[%s2457_s1 + $0xe0] sm:$0xff]   ;;  %v1877_v21 = vld [vmem:[%s2457_s1 + $0xe8] sm:$0xff]  }
   0x7   :  { %v1870_v14 = vld [vmem:[%s2457_s1 + $0x18] sm:$0xff]   ;;  %v1874_v18 = vld [vmem:[%s2457_s1 + $0x20] sm:$0xff]   ;;  %v1878_v22 = vld [vmem:[%s2457_s1 + $0x28] sm:$0xff]  }
   0x8   :  { %1603 = vmatpush3.bf16.msra.mxu0 %v1862_v6  ;;  %v1871_v15 = vld [vmem:[%s2457_s1 + $0x98] sm:$0xff]   ;;  %v1875_v19 = vld [vmem:[%s2457_s1 + $0xa0] sm:$0xff]   ;;  %v1879_v23 = vld [vmem:[%s2457_s1 + $0xa8] sm:$0xff]  }
   0x9   :  { %1667 = vmatpush3.bf16.msra.mxu1 %v1863_v7  ;;  %1604 = vmatprep.subr.bf16.mxu0 %v1864_v8  ;;  %v1880_v24 = vld [vmem:[%s2457_s1 + $0x70] sm:$0xff]   ;;  %v1884_v28 = vld [vmem:[%s2457_s1 + $0x78] sm:$0xff]   ;;  %v15_v32 = vld [vmem:[%s2458_s0] sm:$0xff] }
   0xa   :  { %1668 = vmatprep.subr.bf16.mxu1 %v1865_v9  ;;  %v1881_v25 = vld [vmem:[%s2457_s1 + $0xf0] sm:$0xff]   ;;  %v1885_v29 = vld [vmem:[%s2457_s1 + $0xf8] sm:$0xff]   ;;  %v19_v33 = vld [vmem:[%s2458_s0 + $0x20] sm:$0xff] }
   0xb   :  { %v1882_v26 = vld [vmem:[%s2457_s1 + $0x30] sm:$0xff]   ;;  %v1886_v30 = vld [vmem:[%s2457_s1 + $0x38] sm:$0xff]   ;;  %v16_v34 = vld [vmem:[%s2458_s0 + $0x8] sm:$0xff]  ;;  %v1440_v35 = vcombine.low %v15_v32, %v19_v33  ;;  %v1441_v36 = vcombine.high %v15_v32, %v19_v33 }
   0xc   :  { %1605 = vmatpush3.bf16.msra.mxu0 %v1866_v10  ;;  %v1883_v27 = vld [vmem:[%s2457_s1 + $0xb0] sm:$0xff]   ;;  %v1887_v31 = vld [vmem:[%s2457_s1 + $0xb8] sm:$0xff]   ;;  %v20_v37 = vld [vmem:[%s2458_s0 + $0x28] sm:$0xff] }
   0xd   :  { %1669 = vmatpush3.bf16.msra.mxu1 %v1867_v11  ;;  %1606 = vmatprep.subr.bf16.mxu0 %v1868_v12  ;;  %v1442_v38 = vcombine.low %v16_v34, %v20_v37  ;;  %v1443_v39 = vcombine.high %v16_v34, %v20_v37  ;;  %v1888_v40 = vld [vmem:[%s2457_s1 + $0x140] sm:$0xff]   ;;  %v24_v47 = vld [vmem:[%s2458_s0 + $0x48] sm:$0xff]  ;;  %v1896_v62 = vld [vmem:[%s2457_s1 + $0x150] sm:$0xff]  }
   0xe   :  { %1670 = vmatprep.subr.bf16.mxu1 %v1869_v13  ;;  %950 = vmatprep.mubr.bf16.mxu0 %v1441_v36  ;;  %v1889_v41 = vld [vmem:[%s2457_s1 + $0x100] sm:$0xff]   ;;  %v28_v48 = vld [vmem:[%s2458_s0 + $0x68] sm:$0xff]  ;;  %v1897_v63 = vld [vmem:[%s2457_s1 + $0x110] sm:$0xff]  }
   0xf   :  { %1047 = vmatprep.mubr.bf16.mxu1 %v1443_v39  ;;  %v1890_v42 = vld [vmem:[%s2457_s1 + $0x1c0] sm:$0xff]   ;;  %v1451_v49 = vcombine.high %v24_v47, %v28_v48  ;;  %v1892_v50 = vld [vmem:[%s2457_s1 + $0x148] sm:$0xff]   ;;  %v1450_v53 = vcombine.low %v24_v47, %v28_v48  ;;  %v1898_v0 = vld [vmem:[%s2457_s1 + $0x1d0] sm:$0xff]  }
  0x10   :  { %1607 = vmatpush3.bf16.msra.mxu0 %v1870_v14  ;;  %v1891_v43 = vld [vmem:[%s2457_s1 + $0x180] sm:$0xff]   ;;  %v1893_v52 = vld [vmem:[%s2457_s1 + $0x108] sm:$0xff]   ;;  %v1899_v1 = vld [vmem:[%s2457_s1 + $0x190] sm:$0xff]  }
  0x11   :  { %1671 = vmatpush3.bf16.msra.mxu1 %v1871_v15  ;;  %1608 = vmatprep.subr.bf16.mxu0 %v1872_v16  ;;  %v23_v44 = vld [vmem:[%s2458_s0 + $0x40] sm:$0xff]  ;;  %v1894_v54 = vld [vmem:[%s2457_s1 + $0x1c8] sm:$0xff]   ;;  %v1900_v10 = vld [vmem:[%s2457_s1 + $0x158] sm:$0xff]  }
  0x12   :  { %1672 = vmatprep.subr.bf16.mxu1 %v1873_v17  ;;  %v27_v45 = vld [vmem:[%s2458_s0 + $0x60] sm:$0xff]  ;;  %v1895_v55 = vld [vmem:[%s2457_s1 + $0x188] sm:$0xff]   ;;  %v1901_v11 = vld [vmem:[%s2457_s1 + $0x118] sm:$0xff]  }
  0x13   :  { %v1449_v46 = vcombine.high %v23_v44, %v27_v45  ;;  %v1448_v51 = vcombine.low %v23_v44, %v27_v45  ;;  %v31_v56 = vld [vmem:[%s2458_s0 + $0x80] sm:$0xff]  ;;  %v32_v58 = vld [vmem:[%s2458_s0 + $0x88] sm:$0xff]  ;;  %v1902_v12 = vld [vmem:[%s2457_s1 + $0x1d8] sm:$0xff]  }
  0x14   :  { %1609 = vmatpush3.bf16.msra.mxu0 %v1874_v18  ;;  %v35_v57 = vld [vmem:[%s2458_s0 + $0xa0] sm:$0xff]  ;;  %v36_v59 = vld [vmem:[%s2458_s0 + $0xa8] sm:$0xff]  ;;  %v1903_v13 = vld [vmem:[%s2457_s1 + $0x198] sm:$0xff]  }
  0x15   :  { %1673 = vmatpush3.bf16.msra.mxu1 %v1875_v19  ;;  %1610 = vmatprep.subr.bf16.mxu0 %v1876_v20  ;;  %v1457_v60 = vcombine.high %v31_v56, %v35_v57  ;;  %v1459_v61 = vcombine.high %v32_v58, %v36_v59  ;;  %v1456_v2 = vcombine.low %v31_v56, %v35_v57  ;;  %v39_v3 = vld [vmem:[%s2458_s0 + $0xc0] sm:$0xff]  ;;  %v40_v5 = vld [vmem:[%s2458_s0 + $0xc8] sm:$0xff]  ;;  %v1913_v39 = vld [vmem:[%s2457_s1 + $0x130] sm:$0xff]  }
  0x16   :  { %1674 = vmatprep.subr.bf16.mxu1 %v1877_v21  ;;  %v43_v4 = vld [vmem:[%s2458_s0 + $0xe0] sm:$0xff]  ;;  %v1458_v6 = vcombine.low %v32_v58, %v36_v59  ;;  %v44_v8 = vld [vmem:[%s2458_s0 + $0xe8] sm:$0xff]  ;;  %v1917_v48 = vld [vmem:[%s2457_s1 + $0x138] sm:$0xff]  }
  0x17   :  { %v1465_v7 = vcombine.high %v39_v3, %v43_v4  ;;  %v1467_v9 = vcombine.high %v40_v5, %v44_v8  ;;  %v47_v14 = vld [vmem:[%s2458_s0 + $0x100] sm:$0xff]  ;;  %v48_v16 = vld [vmem:[%s2458_s0 + $0x108] sm:$0xff]  ;;  %v1464_v19 = vcombine.low %v39_v3, %v43_v4  ;;  %v1466_v21 = vcombine.low %v40_v5, %v44_v8  ;;  %v26_v8 = vld [vmem:[%s2458_s0 + $0x58] sm:$0xff] }
  0x18   :  { %1611 = vmatpush3.bf16.msra.mxu0 %v1878_v22  ;;  %v51_v15 = vld [vmem:[%s2458_s0 + $0x120] sm:$0xff]  ;;  %v52_v17 = vld [vmem:[%s2458_s0 + $0x128] sm:$0xff] }
  0x19   :  { %1675 = vmatpush3.bf16.msra.mxu1 %v1879_v23  ;;  %1612 = vmatprep.subr.bf16.mxu0 %v1880_v24  ;;  %v1904_v18 = vld [vmem:[%s2457_s1 + $0x160] sm:$0xff]   ;;  %v1473_v22 = vcombine.high %v47_v14, %v51_v15  ;;  %v1475_v24 = vcombine.high %v48_v16, %v52_v17  ;;  %v1910_v32 = vld [vmem:[%s2457_s1 + $0x1e8] sm:$0xff]   ;;  %v1472_v34 = vcombine.low %v47_v14, %v51_v15  ;;  %v33_v14 = vld [vmem:[%s2458_s0 + $0x90] sm:$0xff] }
  0x1a   :  { %1676 = vmatprep.subr.bf16.mxu1 %v1881_v25  ;;  %v1905_v20 = vld [vmem:[%s2457_s1 + $0x120] sm:$0xff]   ;;  %v1911_v33 = vld [vmem:[%s2457_s1 + $0x1a8] sm:$0xff]   ;;  %v37_v15 = vld [vmem:[%s2458_s0 + $0xb0] sm:$0xff] }
  0x1b   :  { %v1906_v23 = vld [vmem:[%s2457_s1 + $0x1e0] sm:$0xff]   ;;  %v64_v44 = vld [vmem:[%s2458_s0 + $0x188] sm:$0xff] }
  0x1c   :  { %1613 = vmatpush3.bf16.msra.mxu0 %v1882_v26  ;;  %v1907_v25 = vld [vmem:[%s2457_s1 + $0x1a0] sm:$0xff]   ;;  %v68_v45 = vld [vmem:[%s2458_s0 + $0x1a8] sm:$0xff] }
  0x1d   :  { %1677 = vmatpush3.bf16.msra.mxu1 %v1883_v27  ;;  %1614 = vmatprep.subr.bf16.mxu0 %v1884_v28  ;;  %v55_v26 = vld [vmem:[%s2458_s0 + $0x140] sm:$0xff]  ;;  %v1908_v28 = vld [vmem:[%s2457_s1 + $0x168] sm:$0xff]   ;;  %v1490_v59 = vcombine.low %v64_v44, %v68_v45 }
  0x1e   :  { %1678 = vmatprep.subr.bf16.mxu1 %v1885_v29  ;;  %v59_v27 = vld [vmem:[%s2458_s0 + $0x160] sm:$0xff]  ;;  %v56_v29 = vld [vmem:[%s2458_s0 + $0x148] sm:$0xff] }
  0x1f   :  { %v1481_v36 = vcombine.high %v55_v26, %v59_v27  ;;  %v1480_v47 = vcombine.low %v55_v26, %v59_v27  ;;  %v72_v56 = vld [vmem:[%s2458_s0 + $0x1c8] sm:$0xff]  ;;  %v1460_v26 = vcombine.low %v33_v14, %v37_v15 }
  0x20   :  { %1615 = vmatpush3.bf16.msra.mxu0 %v1886_v30  ;;  %v60_v30 = vld [vmem:[%s2458_s0 + $0x168] sm:$0xff] }
  0x21   :  { %1679 = vmatpush3.bf16.msra.mxu1 %v1887_v31  ;;  %1728 = vmatprep.subr.bf16.mxu0 %v1888_v40  ;;  %v1909_v31 = vld [vmem:[%s2457_s1 + $0x128] sm:$0xff]   ;;  %v1483_v37 = vcombine.high %v56_v29, %v60_v30  ;;  %v1914_v40 = vld [vmem:[%s2457_s1 + $0x1f0] sm:$0xff]  }
  0x22   :  { %1792 = vmatprep.subr.bf16.mxu1 %v1890_v42  ;;  %v67_v42 = vld [vmem:[%s2458_s0 + $0x1a0] sm:$0xff]  ;;  %v76_v57 = vld [vmem:[%s2458_s0 + $0x1e8] sm:$0xff] }
  0x23   :  { %951 = vmatmul.mubr.bf16.vlgmr.msra.gmra.mrb[0].mxu0 %v1440_v35  ;;  %v1474_v35 = vcombine.low %v48_v16, %v52_v17  ;;  %v1498_v3 = vcombine.low %v72_v56, %v76_v57  ;;  %v34_v16 = vld [vmem:[%s2458_s0 + $0x98] sm:$0xff] }
  0x24   :  { %1048 = vmatmul.mubr.bf16.vlgmr.msra.gmra.mrb[0].mxu1 %v1442_v38  ;;  %1729 = vmatpush3.bf16.msra.mxu0 %v1889_v41  ;;  %v1912_v38 = vld [vmem:[%s2457_s1 + $0x170] sm:$0xff]   ;;  %v63_v41 = vld [vmem:[%s2458_s0 + $0x180] sm:$0xff]  ;;  %v38_v17 = vld [vmem:[%s2458_s0 + $0xb8] sm:$0xff] }
  0x25   :  { %1793 = vmatpush3.bf16.msra.mxu1 %v1891_v43  ;;  %958 = vmatprep.mubr.bf16.mxu0 %v1449_v46  ;;  %v1915_v43 = vld [vmem:[%s2457_s1 + $0x1b0] sm:$0xff]   ;;  %v1916_v46 = vld [vmem:[%s2457_s1 + $0x178] sm:$0xff]   ;;  %v1488_v58 = vcombine.low %v63_v41, %v67_v42  ;;  %v1462_v27 = vcombine.low %v34_v16, %v38_v17 }
  0x26   :  { %1055 = vmatprep.mubr.bf16.mxu1 %v1451_v49  ;;  %1730 = vmatprep.subr.bf16.mxu0 %v1892_v50  ;;  %v1482_v49 = vcombine.low %v56_v29, %v60_v30  ;;  %v1489_v50 = vcombine.high %v63_v41, %v67_v42  ;;  %v49_v30 = vld [vmem:[%s2458_s0 + $0x110] sm:$0xff]  ;;  %v62_v41 = vld [vmem:[%s2458_s0 + $0x178] sm:$0xff] }
  0x27   :  { %1794 = vmatprep.subr.bf16.mxu1 %v1894_v54  ;;  %v71_v54 = vld [vmem:[%s2458_s0 + $0x1c0] sm:$0xff] }
  0x28   :  { %1731 = vmatpush3.bf16.msra.mxu0 %v1893_v52  ;;  %v1491_v52 = vcombine.high %v64_v44, %v68_v45 }
  0x29   :  { %1795 = vmatpush3.bf16.msra.mxu1 %v1895_v55  ;;  %1732 = vmatprep.subr.bf16.mxu0 %v1896_v62  ;;  %v75_v55 = vld [vmem:[%s2458_s0 + $0x1e0] sm:$0xff]  ;;  %v17_v62 = vld [vmem:[%s2458_s0 + $0x10] sm:$0xff] }
  0x2a   :  { %1796 = vmatprep.subr.bf16.mxu1 %v1898_v0  ;;  %v18_v0 = vld [vmem:[%s2458_s0 + $0x18] sm:$0xff] }
  0x2b   :  { %959 = vmatmul.mubr.bf16.gmra.mrb[4].mxu0 %v1448_v51  ;;  %v1918_v51 = vld [vmem:[%s2457_s1 + $0x1f8] sm:$0xff]  }
  0x2c   :  { %1056 = vmatmul.mubr.bf16.gmra.mrb[4].mxu1 %v1450_v53  ;;  %966 = vmatprep.mubr.bf16.mxu0 %v1457_v60  ;;  %v1919_v53 = vld [vmem:[%s2457_s1 + $0x1b8] sm:$0xff]   ;;  %v1497_v60 = vcombine.high %v71_v54, %v75_v55 }
  0x2d   :  { %1063 = vmatprep.mubr.bf16.mxu1 %v1459_v61  ;;  %1733 = vmatpush3.bf16.msra.mxu0 %v1897_v63  ;;  %v1499_v61 = vcombine.high %v72_v56, %v76_v57  ;;  %v21_v63 = vld [vmem:[%s2458_s0 + $0x30] sm:$0xff]  ;;  %v74_v56 = vld [vmem:[%s2458_s0 + $0x1d8] sm:$0xff] }
  0x2e   :  { %1797 = vmatpush3.bf16.msra.mxu1 %v1899_v1  ;;  %1734 = vmatprep.subr.bf16.mxu0 %v1900_v10  ;;  %v22_v1 = vld [vmem:[%s2458_s0 + $0x38] sm:$0xff]  ;;  %v1445_v4 = vcombine.high %v17_v62, %v21_v63  ;;  %v1444_v10 = vcombine.low %v17_v62, %v21_v63 }
  0x2f   :  { %1798 = vmatprep.subr.bf16.mxu1 %v1902_v12  ;;  %v1447_v5 = vcombine.high %v18_v0, %v22_v1  ;;  %v78_v57 = vld [vmem:[%s2458_s0 + $0x1f8] sm:$0xff] }
  0x30   :  { %v1502_v63 = vcombine.low %v74_v56, %v78_v57 }
  0x31   :  { %1735 = vmatpush3.bf16.msra.mxu0 %v1901_v11  ;;  %v1446_v11 = vcombine.low %v18_v0, %v22_v1 }
  0x32   :  { %1799 = vmatpush3.bf16.msra.mxu1 %v1903_v13  ;;  %1736 = vmatprep.subr.bf16.mxu0 %v1904_v18 }
  0x33   :  { %967 = vmatmul.mubr.bf16.gmra.mrb[8].mxu0 %v1456_v2  ;;  %1800 = vmatprep.subr.bf16.mxu1 %v1906_v23  ;;  %v1496_v2 = vcombine.low %v71_v54, %v75_v55  ;;  %v45_v23 = vld [vmem:[%s2458_s0 + $0xf0] sm:$0xff] }
  0x34   :  { %1064 = vmatmul.mubr.bf16.gmra.mrb[8].mxu1 %v1458_v6  ;;  %974 = vmatprep.mubr.bf16.mxu0 %v1465_v7  ;;  %v25_v6 = vld [vmem:[%s2458_s0 + $0x50] sm:$0xff] }
  0x35   :  { %1071 = vmatprep.mubr.bf16.mxu1 %v1467_v9  ;;  %1737 = vmatpush3.bf16.msra.mxu0 %v1905_v20  ;;  %v29_v7 = vld [vmem:[%s2458_s0 + $0x70] sm:$0xff]  ;;  %v30_v9 = vld [vmem:[%s2458_s0 + $0x78] sm:$0xff]  ;;  %v1461_v20 = vcombine.high %v33_v14, %v37_v15 }
  0x36   :  { %1801 = vmatpush3.bf16.msra.mxu1 %v1907_v25  ;;  %1738 = vmatprep.subr.bf16.mxu0 %v1908_v28  ;;  %v1453_v12 = vcombine.high %v25_v6, %v29_v7  ;;  %v1455_v13 = vcombine.high %v26_v8, %v30_v9  ;;  %v1452_v18 = vcombine.low %v25_v6, %v29_v7  ;;  %v46_v25 = vld [vmem:[%s2458_s0 + $0xf8] sm:$0xff]  ;;  %v73_v54 = vld [vmem:[%s2458_s0 + $0x1d0] sm:$0xff] }
  0x37   :  { %1802 = vmatprep.subr.bf16.mxu1 %v1910_v32  ;;  %v50_v32 = vld [vmem:[%s2458_s0 + $0x118] sm:$0xff]  ;;  %v77_v55 = vld [vmem:[%s2458_s0 + $0x1f0] sm:$0xff] }
  0x38   :  { %v1500_v62 = vcombine.low %v73_v54, %v77_v55 }
  0x39   :  { %1739 = vmatpush3.bf16.msra.mxu0 %v1909_v31  ;;  %v53_v31 = vld [vmem:[%s2458_s0 + $0x130] sm:$0xff] }
  0x3a   :  { %1803 = vmatpush3.bf16.msra.mxu1 %v1911_v33  ;;  %1740 = vmatprep.subr.bf16.mxu0 %v1912_v38  ;;  %v54_v33 = vld [vmem:[%s2458_s0 + $0x138] sm:$0xff]  ;;  %v57_v38 = vld [vmem:[%s2458_s0 + $0x150] sm:$0xff]  ;;  %v1476_v42 = vcombine.low %v49_v30, %v53_v31 }
  0x3b   :  { %975 = vmatmul.mubr.bf16.gmra.mrb[12].mxu0 %v1464_v19  ;;  %1804 = vmatprep.subr.bf16.mxu1 %v1914_v40  ;;  %v1454_v19 = vcombine.low %v26_v8, %v30_v9  ;;  %v58_v40 = vld [vmem:[%s2458_s0 + $0x158] sm:$0xff] }
  0x3c   :  { %1072 = vmatmul.mubr.bf16.gmra.mrb[12].mxu1 %v1466_v21  ;;  %982 = vmatprep.mubr.bf16.mxu0 %v1473_v22  ;;  %v1463_v21 = vcombine.high %v34_v16, %v38_v17  ;;  %v41_v22 = vld [vmem:[%s2458_s0 + $0xd0] sm:$0xff]  ;;  %v1487_v45 = vcombine.high %v58_v40, %v62_v41 }
  0x3d   :  { %1079 = vmatprep.mubr.bf16.mxu1 %v1475_v24  ;;  %1741 = vmatpush3.bf16.msra.mxu0 %v1913_v39  ;;  %v42_v24 = vld [vmem:[%s2458_s0 + $0xd8] sm:$0xff]  ;;  %v1469_v28 = vcombine.high %v41_v22, %v45_v23  ;;  %v61_v39 = vld [vmem:[%s2458_s0 + $0x170] sm:$0xff] }
  0x3e   :  { %1805 = vmatpush3.bf16.msra.mxu1 %v1915_v43  ;;  %1742 = vmatprep.subr.bf16.mxu0 %v1916_v46  ;;  %v1471_v29 = vcombine.high %v42_v24, %v46_v25  ;;  %v1478_v43 = vcombine.low %v50_v32, %v54_v33  ;;  %v1485_v44 = vcombine.high %v57_v38, %v61_v39  ;;  %v65_v46 = vld [vmem:[%s2458_s0 + $0x190] sm:$0xff] }
  0x3f   :  { %1806 = vmatprep.subr.bf16.mxu1 %v1918_v51  ;;  %v1486_v51 = vcombine.low %v58_v40, %v62_v41 }
  0x41   :  { %1743 = vmatpush3.bf16.msra.mxu0 %v1917_v48  ;;  %v66_v48 = vld [vmem:[%s2458_s0 + $0x198] sm:$0xff] }
  0x42   :  { %1807 = vmatpush3.bf16.msra.mxu1 %v1919_v53 }
  0x43   :  { %983 = vmatmul.mubr.bf16.gmra.mrb[16].mxu0 %v1472_v34  ;;  %v1468_v34 = vcombine.low %v41_v22, %v45_v23 }
  0x44   :  { %1080 = vmatmul.mubr.bf16.gmra.mrb[16].mxu1 %v1474_v35  ;;  %990 = vmatprep.mubr.bf16.mxu0 %v1481_v36  ;;  %v1470_v35 = vcombine.low %v42_v24, %v46_v25  ;;  %v1477_v36 = vcombine.high %v49_v30, %v53_v31 }
  0x45   :  { %1087 = vmatprep.mubr.bf16.mxu1 %v1483_v37  ;;  %v1479_v37 = vcombine.high %v50_v32, %v54_v33 }
  0x4b   :  { %991 = vmatmul.mubr.bf16.gmra.mrb[20].mxu0 %v1480_v47  ;;  %v69_v47 = vld [vmem:[%s2458_s0 + $0x1b0] sm:$0xff] }
  0x4c   :  { %1088 = vmatmul.mubr.bf16.gmra.mrb[20].mxu1 %v1482_v49  ;;  %998 = vmatprep.mubr.bf16.mxu0 %v1489_v50  ;;  %v70_v49 = vld [vmem:[%s2458_s0 + $0x1b8] sm:$0xff]  ;;  %v1484_v50 = vcombine.low %v57_v38, %v61_v39 }
  0x4d   :  { %1095 = vmatprep.mubr.bf16.mxu1 %v1491_v52  ;;  %v1493_v52 = vcombine.high %v65_v46, %v69_v47  ;;  %v1495_v53 = vcombine.high %v66_v48, %v70_v49 }
  0x53   :  { %999 = vmatmul.mubr.bf16.gmra.mrb[24].mxu0 %v1488_v58  ;;  %v1492_v58 = vcombine.low %v65_v46, %v69_v47 }
  0x54   :  { %1096 = vmatmul.mubr.bf16.gmra.mrb[24].mxu1 %v1490_v59  ;;  %1006 = vmatprep.mubr.bf16.mxu0 %v1497_v60  ;;  %v1494_v59 = vcombine.low %v66_v48, %v70_v49  ;;  %v1501_v60 = vcombine.high %v73_v54, %v77_v55 }
  0x55   :  { %1103 = vmatprep.mubr.bf16.mxu1 %v1499_v61  ;;  %v1503_v61 = vcombine.high %v74_v56, %v78_v57 }
  0x5b   :  { %1007 = vmatmul.mubr.bf16.gmra.mrb[28].mxu0 %v1496_v2  ;;  %v2327_v2 = vld [vmem:[%s2459_s2] ss:$0 sm:$0xff] }
  0x5c   :  { %1104 = vmatmul.mubr.bf16.gmra.mrb[28].mxu1 %v1498_v3  ;;  %1144 = vmatprep.mubr.bf16.mxu0 %v1445_v4 }
  0x5d   :  { %1241 = vmatprep.mubr.bf16.mxu1 %v1447_v5 }
  0x63   :  { %1145 = vmatmul.mubr.bf16.vlgmr.msra.gmra.mrb[32].mxu0 %v1444_v10 }
  0x64   :  { %1242 = vmatmul.mubr.bf16.vlgmr.msra.gmra.mrb[32].mxu1 %v1446_v11  ;;  %1152 = vmatprep.mubr.bf16.mxu0 %v1453_v12 }
  0x65   :  { %1249 = vmatprep.mubr.bf16.mxu1 %v1455_v13 }
  0x6b   :  { %1153 = vmatmul.mubr.bf16.gmra.mrb[36].mxu0 %v1452_v18 }
  0x6c   :  { %1250 = vmatmul.mubr.bf16.gmra.mrb[36].mxu1 %v1454_v19  ;;  %1160 = vmatprep.mubr.bf16.mxu0 %v1461_v20 }
  0x6d   :  { %1257 = vmatprep.mubr.bf16.mxu1 %v1463_v21 }
  0x73   :  { %1161 = vmatmul.mubr.bf16.gmra.mrb[40].mxu0 %v1460_v26 }
  0x74   :  { %1258 = vmatmul.mubr.bf16.gmra.mrb[40].mxu1 %v1462_v27  ;;  %1168 = vmatprep.mubr.bf16.mxu0 %v1469_v28 }
  0x75   :  { %1265 = vmatprep.mubr.bf16.mxu1 %v1471_v29 }
  0x7b   :  { %1169 = vmatmul.mubr.bf16.gmra.mrb[44].mxu0 %v1468_v34 }
  0x7c   :  { %1266 = vmatmul.mubr.bf16.gmra.mrb[44].mxu1 %v1470_v35  ;;  %1176 = vmatprep.mubr.bf16.mxu0 %v1477_v36 }
  0x7d   :  { %1273 = vmatprep.mubr.bf16.mxu1 %v1479_v37 }
  0x83   :  { %1177 = vmatmul.mubr.bf16.gmra.mrb[48].mxu0 %v1476_v42 }
  0x84   :  { %1274 = vmatmul.mubr.bf16.gmra.mrb[48].mxu1 %v1478_v43  ;;  %1184 = vmatprep.mubr.bf16.mxu0 %v1485_v44 }
  0x85   :  { %1281 = vmatprep.mubr.bf16.mxu1 %v1487_v45 }
  0x8b   :  { %1185 = vmatmul.mubr.bf16.gmra.mrb[52].mxu0 %v1484_v50 }
  0x8c   :  { %1282 = vmatmul.mubr.bf16.gmra.mrb[52].mxu1 %v1486_v51  ;;  %1192 = vmatprep.mubr.bf16.mxu0 %v1493_v52 }
  0x8d   :  { %1289 = vmatprep.mubr.bf16.mxu1 %v1495_v53 }
  0x93   :  { %1193 = vmatmul.mubr.bf16.gmra.mrb[56].mxu0 %v1492_v58 }
  0x94   :  { %1290 = vmatmul.mubr.bf16.gmra.mrb[56].mxu1 %v1494_v59  ;;  %1200 = vmatprep.mubr.bf16.mxu0 %v1501_v60 }
  0x95   :  { %1297 = vmatprep.mubr.bf16.mxu1 %v1503_v61 }
  0x9b   :  { %1201 = vmatmul.mubr.bf16.gmra.mrb[60].mxu0 %v1500_v62 }
  0x9c   :  { %1298 = vmatmul.mubr.bf16.gmra.mrb[60].mxu1 %v1502_v63 }
  0xf6   :  { %v1616_v0 = vpop.f32.mrb[0].mxu0 }
  0xf7   :  { %v1680_v1 = vpop.f32.mrb[0].mxu1  ;;  %v1617_v3 = vpop.f32.mrb[1].mxu0 }
  0xf8   :  { %v1618_v4 = vadd.f32 %v1617_v3, %v1616_v0  ;;  %v1681_v5 = vpop.f32.mrb[1].mxu1  ;;  %v1619_v6 = vpop.f32.mrb[2].mxu0 }
  0xf9   :  { %v1682_v7 = vadd.f32 %v1681_v5, %v1680_v1  ;;  %v1683_v8 = vpop.f32.mrb[2].mxu1  ;;  %v1620_v9 = vpop.f32.mrb[3].mxu0 }
  0xfa   :  { %v953_v10 = vadd.f32 %v1618_v4, %v2327_v2  ;;  %v1621_v11 = vadd.f32 %v1620_v9, %v1619_v6  ;;  %v1684_v12 = vpop.f32.mrb[3].mxu1 }
  0xfb   :  { %v1685_v13 = vadd.f32 %v1684_v12, %v1683_v8 }
  0xfc   :  { %v2330_v14 = vadd.f32 %v1682_v7, %v953_v10  ;;  %v956_v15 = vadd.f32 %v1621_v11, %v2327_v2 }
  0xfe   :  { %v2333_v16 = vadd.f32 %v1685_v13, %v956_v15  ;;  %v1622_v17 = vpop.f32.mrb[4].mxu0 }
  0xff   :  { %v1686_v18 = vpop.f32.mrb[4].mxu1  ;;  %v1623_v19 = vpop.f32.mrb[5].mxu0 }
 0x100   :  { %v1624_v20 = vadd.f32 %v1623_v19, %v1622_v17  ;;  %v1687_v21 = vpop.f32.mrb[5].mxu1  ;;  %v1625_v22 = vpop.f32.mrb[6].mxu0 }
 0x101   :  { %v1688_v23 = vadd.f32 %v1687_v21, %v1686_v18  ;;  %v1689_v24 = vpop.f32.mrb[6].mxu1  ;;  %v1626_v25 = vpop.f32.mrb[7].mxu0 }
 0x102   :  { %v961_v26 = vadd.f32 %v1624_v20, %v2327_v2  ;;  %v1627_v27 = vadd.f32 %v1626_v25, %v1625_v22  ;;  %v1690_v28 = vpop.f32.mrb[7].mxu1 }
 0x103   :  { %v1691_v29 = vadd.f32 %v1690_v28, %v1689_v24 }
 0x104   :  { %v2336_v30 = vadd.f32 %v1688_v23, %v961_v26  ;;  %v964_v31 = vadd.f32 %v1627_v27, %v2327_v2 }
 0x106   :  { %v2339_v32 = vadd.f32 %v1691_v29, %v964_v31  ;;  %v1628_v33 = vpop.f32.mrb[8].mxu0 }
 0x107   :  { %v1692_v34 = vpop.f32.mrb[8].mxu1  ;;  %v1629_v35 = vpop.f32.mrb[9].mxu0 }
 0x108   :  { %v1630_v36 = vadd.f32 %v1629_v35, %v1628_v33  ;;  %v1693_v37 = vpop.f32.mrb[9].mxu1  ;;  %v1631_v38 = vpop.f32.mrb[10].mxu0 }
 0x109   :  { %v1694_v39 = vadd.f32 %v1693_v37, %v1692_v34  ;;  %v1695_v40 = vpop.f32.mrb[10].mxu1  ;;  %v1632_v41 = vpop.f32.mrb[11].mxu0 }
 0x10a   :  { %v969_v42 = vadd.f32 %v1630_v36, %v2327_v2  ;;  %v1633_v43 = vadd.f32 %v1632_v41, %v1631_v38  ;;  %v1696_v44 = vpop.f32.mrb[11].mxu1 }
 0x10b   :  { %v1697_v45 = vadd.f32 %v1696_v44, %v1695_v40 }
 0x10c   :  { %v2342_v46 = vadd.f32 %v1694_v39, %v969_v42  ;;  %v972_v47 = vadd.f32 %v1633_v43, %v2327_v2 }
 0x10e   :  { %v2345_v48 = vadd.f32 %v1697_v45, %v972_v47  ;;  %v1634_v49 = vpop.f32.mrb[12].mxu0 }
 0x10f   :  { %v1698_v50 = vpop.f32.mrb[12].mxu1  ;;  %v1635_v51 = vpop.f32.mrb[13].mxu0 }
 0x110   :  { %v1636_v52 = vadd.f32 %v1635_v51, %v1634_v49  ;;  %v1699_v53 = vpop.f32.mrb[13].mxu1  ;;  %v1637_v54 = vpop.f32.mrb[14].mxu0 }
 0x111   :  { %v1700_v55 = vadd.f32 %v1699_v53, %v1698_v50  ;;  %v1701_v56 = vpop.f32.mrb[14].mxu1  ;;  %v1638_v57 = vpop.f32.mrb[15].mxu0 }
 0x112   :  { %v977_v58 = vadd.f32 %v1636_v52, %v2327_v2  ;;  %v1639_v59 = vadd.f32 %v1638_v57, %v1637_v54  ;;  %v1702_v60 = vpop.f32.mrb[15].mxu1 }
 0x113   :  { %v1703_v61 = vadd.f32 %v1702_v60, %v1701_v56 }
 0x114   :  { %v2348_v62 = vadd.f32 %v1700_v55, %v977_v58  ;;  %v980_v63 = vadd.f32 %v1639_v59, %v2327_v2 }
 0x116   :  { %v2351_v0 = vadd.f32 %v1703_v61, %v980_v63  ;;  %v1640_v1 = vpop.f32.mrb[16].mxu0 }
 0x117   :  { %v1704_v3 = vpop.f32.mrb[16].mxu1  ;;  %v1641_v4 = vpop.f32.mrb[17].mxu0 }
 0x118   :  { %v1642_v5 = vadd.f32 %v1641_v4, %v1640_v1  ;;  %v1705_v6 = vpop.f32.mrb[17].mxu1  ;;  %v1643_v7 = vpop.f32.mrb[18].mxu0 }
 0x119   :  { %v1706_v8 = vadd.f32 %v1705_v6, %v1704_v3  ;;  %v1707_v9 = vpop.f32.mrb[18].mxu1  ;;  %v1644_v10 = vpop.f32.mrb[19].mxu0 }
 0x11a   :  { %v985_v11 = vadd.f32 %v1642_v5, %v2327_v2  ;;  %v1645_v12 = vadd.f32 %v1644_v10, %v1643_v7  ;;  %v1708_v13 = vpop.f32.mrb[19].mxu1 }
 0x11b   :  { %v1709_v15 = vadd.f32 %v1708_v13, %v1707_v9 }
 0x11c   :  { %v2354_v17 = vadd.f32 %v1706_v8, %v985_v11  ;;  %v988_v18 = vadd.f32 %v1645_v12, %v2327_v2 }
 0x11e   :  { %v2357_v19 = vadd.f32 %v1709_v15, %v988_v18  ;;  %v1646_v20 = vpop.f32.mrb[20].mxu0 }
 0x11f   :  { %v1710_v21 = vpop.f32.mrb[20].mxu1  ;;  %v1647_v22 = vpop.f32.mrb[21].mxu0 }
 0x120   :  { %v1648_v23 = vadd.f32 %v1647_v22, %v1646_v20  ;;  %v1711_v24 = vpop.f32.mrb[21].mxu1  ;;  %v1649_v25 = vpop.f32.mrb[22].mxu0 }
 0x121   :  { %v1712_v26 = vadd.f32 %v1711_v24, %v1710_v21  ;;  %v1713_v27 = vpop.f32.mrb[22].mxu1  ;;  %v1650_v28 = vpop.f32.mrb[23].mxu0 }
 0x122   :  { %v993_v29 = vadd.f32 %v1648_v23, %v2327_v2  ;;  %v1651_v31 = vadd.f32 %v1650_v28, %v1649_v25  ;;  %v1714_v33 = vpop.f32.mrb[23].mxu1 }
 0x123   :  { %v1715_v34 = vadd.f32 %v1714_v33, %v1713_v27 }
 0x124   :  { %v2360_v35 = vadd.f32 %v1712_v26, %v993_v29  ;;  %v996_v36 = vadd.f32 %v1651_v31, %v2327_v2 }
 0x126   :  { %v2363_v37 = vadd.f32 %v1715_v34, %v996_v36  ;;  %v1652_v38 = vpop.f32.mrb[24].mxu0 }
 0x127   :  { %v1716_v39 = vpop.f32.mrb[24].mxu1  ;;  %v1653_v40 = vpop.f32.mrb[25].mxu0 }
 0x128   :  { %v1654_v41 = vadd.f32 %v1653_v40, %v1652_v38  ;;  %v1717_v42 = vpop.f32.mrb[25].mxu1  ;;  %v1655_v43 = vpop.f32.mrb[26].mxu0 }
 0x129   :  { %v1718_v44 = vadd.f32 %v1717_v42, %v1716_v39  ;;  %v1719_v45 = vpop.f32.mrb[26].mxu1  ;;  %v1656_v47 = vpop.f32.mrb[27].mxu0 }
 0x12a   :  { %v1001_v49 = vadd.f32 %v1654_v41, %v2327_v2  ;;  %v1657_v50 = vadd.f32 %v1656_v47, %v1655_v43  ;;  %v1720_v51 = vpop.f32.mrb[27].mxu1 }
 0x12b   :  { %v1721_v52 = vadd.f32 %v1720_v51, %v1719_v45 }
 0x12c   :  { %v2366_v53 = vadd.f32 %v1718_v44, %v1001_v49  ;;  %v1004_v54 = vadd.f32 %v1657_v50, %v2327_v2 }
 0x12e   :  { %v2369_v55 = vadd.f32 %v1721_v52, %v1004_v54  ;;  %v1658_v56 = vpop.f32.mrb[28].mxu0 }
 0x12f   :  { %v1722_v57 = vpop.f32.mrb[28].mxu1  ;;  %v1659_v58 = vpop.f32.mrb[29].mxu0 }
 0x130   :  { %v1660_v59 = vadd.f32 %v1659_v58, %v1658_v56  ;;  %v1723_v60 = vpop.f32.mrb[29].mxu1  ;;  %v1661_v61 = vpop.f32.mrb[30].mxu0 }
 0x131   :  { %v1724_v63 = vadd.f32 %v1723_v60, %v1722_v57  ;;  %v1725_v1 = vpop.f32.mrb[30].mxu1  ;;  %v1662_v3 = vpop.f32.mrb[31].mxu0 }
 0x132   :  { %v1009_v4 = vadd.f32 %v1660_v59, %v2327_v2  ;;  %v1663_v5 = vadd.f32 %v1662_v3, %v1661_v61  ;;  %v1726_v6 = vpop.f32.mrb[31].mxu1 }
 0x133   :  { %v1727_v7 = vadd.f32 %v1726_v6, %v1725_v1 }
 0x134   :  { %v2372_v8 = vadd.f32 %v1724_v63, %v1009_v4  ;;  %v1012_v9 = vadd.f32 %v1663_v5, %v2327_v2 }
 0x136   :  { %v2375_v10 = vadd.f32 %v1727_v7, %v1012_v9  ;;  %v1744_v11 = vpop.f32.mrb[32].mxu0 }
 0x137   :  { %v1808_v12 = vpop.f32.mrb[32].mxu1  ;;  %v1745_v13 = vpop.f32.mrb[33].mxu0 }
 0x138   :  { %v1746_v15 = vadd.f32 %v1745_v13, %v1744_v11  ;;  %v1809_v18 = vpop.f32.mrb[33].mxu1  ;;  %v1747_v20 = vpop.f32.mrb[34].mxu0 }
 0x139   :  { %v1810_v21 = vadd.f32 %v1809_v18, %v1808_v12  ;;  %v1811_v22 = vpop.f32.mrb[34].mxu1  ;;  %v1748_v23 = vpop.f32.mrb[35].mxu0 }
 0x13a   :  { %v1147_v24 = vadd.f32 %v1746_v15, %v2330_v14  ;;  %v1749_v25 = vadd.f32 %v1748_v23, %v1747_v20  ;;  %v1812_v26 = vpop.f32.mrb[35].mxu1 }
 0x13b   :  { %v1813_v27 = vadd.f32 %v1812_v26, %v1811_v22 }
 0x13c   :  { %v1244_v28 = vadd.f32 %v1810_v21, %v1147_v24  ;;  %v1150_v29 = vadd.f32 %v1749_v25, %v2333_v16 }
 0x13e   :  { %vm1306_vm0 = vcmp.gt.f32.partialorder %v1244_v28, 0.0  ;;  %v1322_v2 = vmul.f32 0.2, %v1244_v28  ;;  %v1247_v31 = vadd.f32 %v1813_v27, %v1150_v29  ;;  %v1750_v33 = vpop.f32.mrb[36].mxu0 }
 0x13f   :  { %v1814_v34 = vpop.f32.mrb[36].mxu1  ;;  %v1751_v36 = vpop.f32.mrb[37].mxu0 }
 0x140   :  { %v1338_v38 = vsel %vm1306_vm0, %v1244_v28, %v1322_v2  ;;  %vm1307_vm2 = vcmp.gt.f32.partialorder %v1247_v31, 0.0  ;;  %v1323_v39 = vmul.f32 0.2, %v1247_v31  ;;  %v1752_v40 = vadd.f32 %v1751_v36, %v1750_v33  ;;  %v1815_v41 = vpop.f32.mrb[37].mxu1  ;;  %v1753_v42 = vpop.f32.mrb[38].mxu0 }
 0x141   :  { %v1584_v14 = vpack.c.bf16 %v1338_v38, %v1338_v38  ;;  %v1816_v43 = vadd.f32 %v1815_v41, %v1814_v34  ;;  %v1817_v44 = vpop.f32.mrb[38].mxu1  ;;  %v1754_v45 = vpop.f32.mrb[39].mxu0 }
 0x142   :  { %v1339_v47 = vsel %vm1307_vm2, %v1247_v31, %v1323_v39  ;;  %v1155_v16 = vadd.f32 %v1752_v40, %v2336_v30  ;;  %v1755_v49 = vadd.f32 %v1754_v45, %v1753_v42  ;;  %v1818_v50 = vpop.f32.mrb[39].mxu1 }
 0x143   :  { %1419 = vst.msk [vmem:[%s2460_s3] sm:$0xf] %vm1418_vm1, %v1584_v14  ;;  %v1585_v51 = vpack.c.bf16 %v1339_v47, %v1339_v47  ;;  %v1819_v52 = vadd.f32 %v1818_v50, %v1817_v44 }
 0x144   :  { %v1252_v54 = vadd.f32 %v1816_v43, %v1155_v16  ;;  %v1158_v56 = vadd.f32 %v1755_v49, %v2339_v32 }
 0x145   :  { %1420 = vst.msk [vmem:[%s2460_s3 + $0x4] sm:$0xf] %vm1418_vm1, %v1585_v51 }
 0x146   :  { %vm1308_vm3 = vcmp.gt.f32.partialorder %v1252_v54, 0.0  ;;  %v1324_v57 = vmul.f32 0.2, %v1252_v54  ;;  %v1255_v30 = vadd.f32 %v1819_v52, %v1158_v56  ;;  %v1756_v58 = vpop.f32.mrb[40].mxu0 }
 0x147   :  { %v1820_v59 = vpop.f32.mrb[40].mxu1  ;;  %v1757_v60 = vpop.f32.mrb[41].mxu0 }
 0x148   :  { %v1340_v61 = vsel %vm1308_vm3, %v1252_v54, %v1324_v57  ;;  %vm1309_vm4 = vcmp.gt.f32.partialorder %v1255_v30, 0.0  ;;  %v1325_v63 = vmul.f32 0.2, %v1255_v30  ;;  %v1758_v1 = vadd.f32 %v1757_v60, %v1756_v58  ;;  %v1821_v3 = vpop.f32.mrb[41].mxu1  ;;  %v1759_v4 = vpop.f32.mrb[42].mxu0 }
 0x149   :  { %v1586_v5 = vpack.c.bf16 %v1340_v61, %v1340_v61  ;;  %v1822_v6 = vadd.f32 %v1821_v3, %v1820_v59  ;;  %v1823_v32 = vpop.f32.mrb[42].mxu1  ;;  %v1760_v7 = vpop.f32.mrb[43].mxu0 }
 0x14a   :  { %v1341_v9 = vsel %vm1309_vm4, %v1255_v30, %v1325_v63  ;;  %v1163_v11 = vadd.f32 %v1758_v1, %v2342_v46  ;;  %v1761_v12 = vadd.f32 %v1760_v7, %v1759_v4  ;;  %v1824_v13 = vpop.f32.mrb[43].mxu1 }
 0x14b   :  { %1421 = vst.msk [vmem:[%s2460_s3 + $0x8] sm:$0xf] %vm1418_vm1, %v1586_v5  ;;  %v1587_v15 = vpack.c.bf16 %v1341_v9, %v1341_v9  ;;  %v1825_v18 = vadd.f32 %v1824_v13, %v1823_v32 }
 0x14c   :  { %v1260_v20 = vadd.f32 %v1822_v6, %v1163_v11  ;;  %v1166_v21 = vadd.f32 %v1761_v12, %v2345_v48 }
 0x14d   :  { %1422 = vst.msk [vmem:[%s2460_s3 + $0xc] sm:$0xf] %vm1418_vm1, %v1587_v15 }
 0x14e   :  { %vm1310_vm5 = vcmp.gt.f32.partialorder %v1260_v20, 0.0  ;;  %v1326_v22 = vmul.f32 0.2, %v1260_v20  ;;  %v1263_v46 = vadd.f32 %v1825_v18, %v1166_v21  ;;  %v1762_v23 = vpop.f32.mrb[44].mxu0 }
 0x14f   :  { %v1826_v24 = vpop.f32.mrb[44].mxu1  ;;  %v1763_v25 = vpop.f32.mrb[45].mxu0 }
 0x150   :  { %v1342_v26 = vsel %vm1310_vm5, %v1260_v20, %v1326_v22  ;;  %vm1311_vm6 = vcmp.gt.f32.partialorder %v1263_v46, 0.0  ;;  %v1327_v27 = vmul.f32 0.2, %v1263_v46  ;;  %v1764_v28 = vadd.f32 %v1763_v25, %v1762_v23  ;;  %v1827_v29 = vpop.f32.mrb[45].mxu1  ;;  %v1765_v2 = vpop.f32.mrb[46].mxu0 }
 0x151   :  { %v1588_v31 = vpack.c.bf16 %v1342_v26, %v1342_v26  ;;  %v1828_v33 = vadd.f32 %v1827_v29, %v1826_v24  ;;  %v1829_v48 = vpop.f32.mrb[46].mxu1  ;;  %v1766_v34 = vpop.f32.mrb[47].mxu0 }
 0x152   :  { %v1343_v36 = vsel %vm1311_vm6, %v1263_v46, %v1327_v27  ;;  %v1171_v38 = vadd.f32 %v1764_v28, %v2348_v62  ;;  %v1767_v39 = vadd.f32 %v1766_v34, %v1765_v2  ;;  %v1830_v40 = vpop.f32.mrb[47].mxu1 }
 0x153   :  { %1423 = vst.msk [vmem:[%s2460_s3 + $0x10] sm:$0xf] %vm1418_vm1, %v1588_v31  ;;  %v1589_v41 = vpack.c.bf16 %v1343_v36, %v1343_v36  ;;  %v1831_v42 = vadd.f32 %v1830_v40, %v1829_v48 }
 0x154   :  { %v1268_v14 = vadd.f32 %v1828_v33, %v1171_v38  ;;  %v1174_v43 = vadd.f32 %v1767_v39, %v2351_v0 }
 0x155   :  { %1424 = vst.msk [vmem:[%s2460_s3 + $0x14] sm:$0xf] %vm1418_vm1, %v1589_v41 }
 0x156   :  { %vm1312_vm7 = vcmp.gt.f32.partialorder %v1268_v14, 0.0  ;;  %v1328_v44 = vmul.f32 0.2, %v1268_v14  ;;  %v1271_v62 = vadd.f32 %v1831_v42, %v1174_v43  ;;  %v1768_v45 = vpop.f32.mrb[48].mxu0 }
 0x157   :  { %v1832_v47 = vpop.f32.mrb[48].mxu1  ;;  %v1769_v16 = vpop.f32.mrb[49].mxu0 }
 0x158   :  { %v1344_v49 = vsel %vm1312_vm7, %v1268_v14, %v1328_v44  ;;  %vm1313_vm8 = vcmp.gt.f32.partialorder %v1271_v62, 0.0  ;;  %v1329_v50 = vmul.f32 0.2, %v1271_v62  ;;  %v1770_v51 = vadd.f32 %v1769_v16, %v1768_v45  ;;  %v1833_v52 = vpop.f32.mrb[49].mxu1  ;;  %v1771_v54 = vpop.f32.mrb[50].mxu0 }
 0x159   :  { %v1590_v56 = vpack.c.bf16 %v1344_v49, %v1344_v49  ;;  %v1834_v57 = vadd.f32 %v1833_v52, %v1832_v47  ;;  %v1835_v0 = vpop.f32.mrb[50].mxu1  ;;  %v1772_v30 = vpop.f32.mrb[51].mxu0 }
 0x15a   :  { %v1345_v58 = vsel %vm1313_vm8, %v1271_v62, %v1329_v50  ;;  %v1179_v59 = vadd.f32 %v1770_v51, %v2354_v17  ;;  %v1773_v60 = vadd.f32 %v1772_v30, %v1771_v54  ;;  %v1836_v61 = vpop.f32.mrb[51].mxu1 }
 0x15b   :  { %1425 = vst.msk [vmem:[%s2460_s3 + $0x18] sm:$0xf] %vm1418_vm1, %v1590_v56  ;;  %v1591_v63 = vpack.c.bf16 %v1345_v58, %v1345_v58  ;;  %v1837_v1 = vadd.f32 %v1836_v61, %v1835_v0 }
 0x15c   :  { %v1276_v3 = vadd.f32 %v1834_v57, %v1179_v59  ;;  %v1182_v4 = vadd.f32 %v1773_v60, %v2357_v19 }
 0x15d   :  { %1426 = vst.msk [vmem:[%s2460_s3 + $0x1c] sm:$0xf] %vm1418_vm1, %v1591_v63 }
 0x15e   :  { %vm1314_vm9 = vcmp.gt.f32.partialorder %v1276_v3, 0.0  ;;  %v1330_v5 = vmul.f32 0.2, %v1276_v3  ;;  %v1279_v17 = vadd.f32 %v1837_v1, %v1182_v4  ;;  %v1774_v6 = vpop.f32.mrb[52].mxu0 }
 0x15f   :  { %v1838_v32 = vpop.f32.mrb[52].mxu1  ;;  %v1775_v7 = vpop.f32.mrb[53].mxu0 }
 0x160   :  { %v1346_v9 = vsel %vm1314_vm9, %v1276_v3, %v1330_v5  ;;  %vm1315_vm10 = vcmp.gt.f32.partialorder %v1279_v17, 0.0  ;;  %v1331_v11 = vmul.f32 0.2, %v1279_v17  ;;  %v1776_v12 = vadd.f32 %v1775_v7, %v1774_v6  ;;  %v1839_v13 = vpop.f32.mrb[53].mxu1  ;;  %v1777_v15 = vpop.f32.mrb[54].mxu0 }
 0x161   :  { %v1592_v18 = vpack.c.bf16 %v1346_v9, %v1346_v9  ;;  %v1840_v20 = vadd.f32 %v1839_v13, %v1838_v32  ;;  %v1841_v19 = vpop.f32.mrb[54].mxu1  ;;  %v1778_v21 = vpop.f32.mrb[55].mxu0 }
 0x162   :  { %v1347_v22 = vsel %vm1315_vm10, %v1279_v17, %v1331_v11  ;;  %v1187_v46 = vadd.f32 %v1776_v12, %v2360_v35  ;;  %v1779_v23 = vadd.f32 %v1778_v21, %v1777_v15  ;;  %v1842_v24 = vpop.f32.mrb[55].mxu1 }
 0x163   :  { %1427 = vst.msk [vmem:[%s2460_s3 + $0x20] sm:$0xf] %vm1418_vm1, %v1592_v18  ;;  %v1593_v25 = vpack.c.bf16 %v1347_v22, %v1347_v22  ;;  %v1843_v26 = vadd.f32 %v1842_v24, %v1841_v19 }
 0x164   :  { %v1284_v27 = vadd.f32 %v1840_v20, %v1187_v46  ;;  %v1190_v28 = vadd.f32 %v1779_v23, %v2363_v37 }
 0x165   :  { %1428 = vst.msk [vmem:[%s2460_s3 + $0x24] sm:$0xf] %vm1418_vm1, %v1593_v25 }
 0x166   :  { %vm1316_vm11 = vcmp.gt.f32.partialorder %v1284_v27, 0.0  ;;  %v1332_v29 = vmul.f32 0.2, %v1284_v27  ;;  %v1287_v35 = vadd.f32 %v1843_v26, %v1190_v28  ;;  %v1780_v2 = vpop.f32.mrb[56].mxu0 }
 0x167   :  { %v1844_v31 = vpop.f32.mrb[56].mxu1  ;;  %v1781_v33 = vpop.f32.mrb[57].mxu0 }
 0x168   :  { %v1348_v48 = vsel %vm1316_vm11, %v1284_v27, %v1332_v29  ;;  %vm1317_vm12 = vcmp.gt.f32.partialorder %v1287_v35, 0.0  ;;  %v1333_v34 = vmul.f32 0.2, %v1287_v35  ;;  %v1782_v36 = vadd.f32 %v1781_v33, %v1780_v2  ;;  %v1845_v38 = vpop.f32.mrb[57].mxu1  ;;  %v1783_v39 = vpop.f32.mrb[58].mxu0 }
 0x169   :  { %v1594_v40 = vpack.c.bf16 %v1348_v48, %v1348_v48  ;;  %v1846_v41 = vadd.f32 %v1845_v38, %v1844_v31  ;;  %v1847_v37 = vpop.f32.mrb[58].mxu1  ;;  %v1784_v42 = vpop.f32.mrb[59].mxu0 }
 0x16a   :  { %v1349_v14 = vsel %vm1317_vm12, %v1287_v35, %v1333_v34  ;;  %v1195_v43 = vadd.f32 %v1782_v36, %v2366_v53  ;;  %v1785_v44 = vadd.f32 %v1784_v42, %v1783_v39  ;;  %v1848_v62 = vpop.f32.mrb[59].mxu1 }
 0x16b   :  { %1429 = vst.msk [vmem:[%s2460_s3 + $0x28] sm:$0xf] %vm1418_vm1, %v1594_v40  ;;  %v1595_v45 = vpack.c.bf16 %v1349_v14, %v1349_v14  ;;  %v1849_v47 = vadd.f32 %v1848_v62, %v1847_v37 }
 0x16c   :  { %v1292_v16 = vadd.f32 %v1846_v41, %v1195_v43  ;;  %v1198_v49 = vadd.f32 %v1785_v44, %v2369_v55 }
 0x16d   :  { %1430 = vst.msk [vmem:[%s2460_s3 + $0x2c] sm:$0xf] %vm1418_vm1, %v1595_v45 }
 0x16e   :  { %vm1318_vm13 = vcmp.gt.f32.partialorder %v1292_v16, 0.0  ;;  %v1334_v50 = vmul.f32 0.2, %v1292_v16  ;;  %v1295_v53 = vadd.f32 %v1849_v47, %v1198_v49  ;;  %v1786_v51 = vpop.f32.mrb[60].mxu0 }
 0x16f   :  { %v1850_v52 = vpop.f32.mrb[60].mxu1  ;;  %v1787_v54 = vpop.f32.mrb[61].mxu0 }
 0x170   :  { %v1350_v56 = vsel %vm1318_vm13, %v1292_v16, %v1334_v50  ;;  %vm1319_vm14 = vcmp.gt.f32.partialorder %v1295_v53, 0.0  ;;  %v1335_v57 = vmul.f32 0.2, %v1295_v53  ;;  %v1788_v0 = vadd.f32 %v1787_v54, %v1786_v51  ;;  %v1851_v30 = vpop.f32.mrb[61].mxu1  ;;  %v1789_v58 = vpop.f32.mrb[62].mxu0 }
 0x171   :  { %v1596_v59 = vpack.c.bf16 %v1350_v56, %v1350_v56  ;;  %v1852_v60 = vadd.f32 %v1851_v30, %v1850_v52  ;;  %v1853_v55 = vpop.f32.mrb[62].mxu1  ;;  %v1790_v61 = vpop.f32.mrb[63].mxu0 }
 0x172   :  { %v1351_v63 = vsel %vm1319_vm14, %v1295_v53, %v1335_v57  ;;  %v1203_v1 = vadd.f32 %v1788_v0, %v2372_v8  ;;  %v1791_v3 = vadd.f32 %v1790_v61, %v1789_v58  ;;  %v1854_v4 = vpop.f32.mrb[63].mxu1 }
 0x173   :  { %1431 = vst.msk [vmem:[%s2460_s3 + $0x30] sm:$0xf] %vm1418_vm1, %v1596_v59  ;;  %v1597_v5 = vpack.c.bf16 %v1351_v63, %v1351_v63  ;;  %v1855_v17 = vadd.f32 %v1854_v4, %v1853_v55 }
 0x174   :  { %v1300_v6 = vadd.f32 %v1852_v60, %v1203_v1  ;;  %v1206_v32 = vadd.f32 %v1791_v3, %v2375_v10 }
 0x175   :  { %1432 = vst.msk [vmem:[%s2460_s3 + $0x34] sm:$0xf] %vm1418_vm1, %v1597_v5 }
 0x176   :  { %vm1320_vm15 = vcmp.gt.f32.partialorder %v1300_v6, 0.0  ;;  %v1336_v7 = vmul.f32 0.2, %v1300_v6  ;;  %v1303_v8 = vadd.f32 %v1855_v17, %v1206_v32 }
 0x178   :  { %v1352_v9 = vsel %vm1320_vm15, %v1300_v6, %v1336_v7  ;;  %vm1321_vm0 = vcmp.gt.f32.partialorder %v1303_v8, 0.0  ;;  %v1337_v11 = vmul.f32 0.2, %v1303_v8 }
 0x179   :  { %v1598_v12 = vpack.c.bf16 %v1352_v9, %v1352_v9 }
 0x17a   :  { %v1353_v13 = vsel %vm1321_vm0, %v1303_v8, %v1337_v11 }
 0x17b   :  { %1433 = vst.msk [vmem:[%s2460_s3 + $0x38] sm:$0xf] %vm1418_vm1, %v1598_v12  ;;  %v1599_v15 = vpack.c.bf16 %v1353_v13, %v1353_v13 }
 0x17d   :  { %1434 = vst.msk [vmem:[%s2460_s3 + $0x3c] sm:$0xf] %vm1418_vm1, %v1599_v15 }

// kernel: voxel_processing.20
= control target key start
LH: loop header
LB: loop body
LE: loop exit
PB: predicated region body
PF: predicated region fallthrough
CT: control target
= control target key end

     0   :  { %vm2702_vm1 = vcmask 257024   ;;  %s4669_s1 = inlined_call_operand.vmem [shape: bf16[2048,32], index: 1, kind: input, shape index: {}]   ;;  %s4670_s0 = inlined_call_operand.vmem [shape: bf16[128,2048], index: 0, kind: input, shape index: {}]   ;;  %s4671_s2 = inlined_call_operand.vmem [shape: f32[1,32], index: 2, kind: input, shape index: {}]   ;;  %s4672_s3 = inlined_call_operand.vmem [shape: bf16[128,32], index: 3, kind: output, shape index: {}]  }
   0x1   :  { %v3524_v0 = vld [vmem:[%s4669_s1 + $0x40] sm:$0xff]   ;;  %v3528_v4 = vld [vmem:[%s4669_s1 + $0x48] sm:$0xff]   ;;  %v3532_v8 = vld [vmem:[%s4669_s1 + $0x50] sm:$0xff]  }
   0x2   :  { %v3525_v1 = vld [vmem:[%s4669_s1 + $0xc0] sm:$0xff]   ;;  %3012 = vmatprep.subr.bf16.mxu0 %v3524_v0  ;;  %v3529_v5 = vld [vmem:[%s4669_s1 + $0xc8] sm:$0xff]   ;;  %v3533_v9 = vld [vmem:[%s4669_s1 + $0xd0] sm:$0xff]  }
   0x3   :  { %v3526_v2 = vld [vmem:[%s4669_s1] sm:$0xff]   ;;  %3076 = vmatprep.subr.bf16.mxu1 %v3525_v1  ;;  %v3530_v6 = vld [vmem:[%s4669_s1 + $0x8] sm:$0xff]   ;;  %v3534_v10 = vld [vmem:[%s4669_s1 + $0x10] sm:$0xff]  }
   0x4   :  { %v3527_v3 = vld [vmem:[%s4669_s1 + $0x80] sm:$0xff]   ;;  %3013 = vmatpush3.bf16.msra.mxu0 %v3526_v2  ;;  %v3531_v7 = vld [vmem:[%s4669_s1 + $0x88] sm:$0xff]   ;;  %v3535_v11 = vld [vmem:[%s4669_s1 + $0x90] sm:$0xff]  }
   0x5   :  { %3077 = vmatpush3.bf16.msra.mxu1 %v3527_v3  ;;  %3014 = vmatprep.subr.bf16.mxu0 %v3528_v4  ;;  %v3536_v12 = vld [vmem:[%s4669_s1 + $0x58] sm:$0xff]   ;;  %v3540_v16 = vld [vmem:[%s4669_s1 + $0x60] sm:$0xff]   ;;  %v3544_v20 = vld [vmem:[%s4669_s1 + $0x68] sm:$0xff]  }
   0x6   :  { %3078 = vmatprep.subr.bf16.mxu1 %v3529_v5  ;;  %v3537_v13 = vld [vmem:[%s4669_s1 + $0xd8] sm:$0xff]   ;;  %v3541_v17 = vld [vmem:[%s4669_s1 + $0xe0] sm:$0xff]   ;;  %v3545_v21 = vld [vmem:[%s4669_s1 + $0xe8] sm:$0xff]  }
   0x7   :  { %v3538_v14 = vld [vmem:[%s4669_s1 + $0x18] sm:$0xff]   ;;  %v3542_v18 = vld [vmem:[%s4669_s1 + $0x20] sm:$0xff]   ;;  %v3546_v22 = vld [vmem:[%s4669_s1 + $0x28] sm:$0xff]  }
   0x8   :  { %3015 = vmatpush3.bf16.msra.mxu0 %v3530_v6  ;;  %v3539_v15 = vld [vmem:[%s4669_s1 + $0x98] sm:$0xff]   ;;  %v3543_v19 = vld [vmem:[%s4669_s1 + $0xa0] sm:$0xff]   ;;  %v3547_v23 = vld [vmem:[%s4669_s1 + $0xa8] sm:$0xff]  }
   0x9   :  { %3079 = vmatpush3.bf16.msra.mxu1 %v3531_v7  ;;  %3016 = vmatprep.subr.bf16.mxu0 %v3532_v8  ;;  %v3548_v24 = vld [vmem:[%s4669_s1 + $0x70] sm:$0xff]   ;;  %v3552_v28 = vld [vmem:[%s4669_s1 + $0x78] sm:$0xff]   ;;  %v15_v32 = vld [vmem:[%s4670_s0] sm:$0xff] }
   0xa   :  { %3080 = vmatprep.subr.bf16.mxu1 %v3533_v9  ;;  %v3549_v25 = vld [vmem:[%s4669_s1 + $0xf0] sm:$0xff]   ;;  %v3553_v29 = vld [vmem:[%s4669_s1 + $0xf8] sm:$0xff]   ;;  %v23_v33 = vld [vmem:[%s4670_s0 + $0x40] sm:$0xff] }
   0xb   :  { %v3550_v26 = vld [vmem:[%s4669_s1 + $0x30] sm:$0xff]   ;;  %v3554_v30 = vld [vmem:[%s4669_s1 + $0x38] sm:$0xff]   ;;  %v16_v34 = vld [vmem:[%s4670_s0 + $0x8] sm:$0xff]  ;;  %v2724_v35 = vcombine.low %v15_v32, %v23_v33  ;;  %v2725_v36 = vcombine.high %v15_v32, %v23_v33 }
   0xc   :  { %3017 = vmatpush3.bf16.msra.mxu0 %v3534_v10  ;;  %v3551_v27 = vld [vmem:[%s4669_s1 + $0xb0] sm:$0xff]   ;;  %v3555_v31 = vld [vmem:[%s4669_s1 + $0xb8] sm:$0xff]   ;;  %v24_v37 = vld [vmem:[%s4670_s0 + $0x48] sm:$0xff] }
   0xd   :  { %3081 = vmatpush3.bf16.msra.mxu1 %v3535_v11  ;;  %3018 = vmatprep.subr.bf16.mxu0 %v3536_v12  ;;  %v2726_v38 = vcombine.low %v16_v34, %v24_v37  ;;  %v2727_v39 = vcombine.high %v16_v34, %v24_v37  ;;  %v3556_v40 = vld [vmem:[%s4669_s1 + $0x140] sm:$0xff]   ;;  %v32_v47 = vld [vmem:[%s4670_s0 + $0x88] sm:$0xff]  ;;  %v3564_v62 = vld [vmem:[%s4669_s1 + $0x150] sm:$0xff]  }
   0xe   :  { %3082 = vmatprep.subr.bf16.mxu1 %v3537_v13  ;;  %1846 = vmatprep.mubr.bf16.mxu0 %v2725_v36  ;;  %v3557_v41 = vld [vmem:[%s4669_s1 + $0x100] sm:$0xff]   ;;  %v40_v48 = vld [vmem:[%s4670_s0 + $0xc8] sm:$0xff]  ;;  %v3565_v63 = vld [vmem:[%s4669_s1 + $0x110] sm:$0xff]  }
   0xf   :  { %1943 = vmatprep.mubr.bf16.mxu1 %v2727_v39  ;;  %v3558_v42 = vld [vmem:[%s4669_s1 + $0x1c0] sm:$0xff]   ;;  %v2743_v49 = vcombine.high %v32_v47, %v40_v48  ;;  %v3560_v50 = vld [vmem:[%s4669_s1 + $0x148] sm:$0xff]   ;;  %v2742_v53 = vcombine.low %v32_v47, %v40_v48  ;;  %v3566_v0 = vld [vmem:[%s4669_s1 + $0x1d0] sm:$0xff]  }
  0x10   :  { %3019 = vmatpush3.bf16.msra.mxu0 %v3538_v14  ;;  %v3559_v43 = vld [vmem:[%s4669_s1 + $0x180] sm:$0xff]   ;;  %v3561_v52 = vld [vmem:[%s4669_s1 + $0x108] sm:$0xff]   ;;  %v3567_v1 = vld [vmem:[%s4669_s1 + $0x190] sm:$0xff]  }
  0x11   :  { %3083 = vmatpush3.bf16.msra.mxu1 %v3539_v15  ;;  %3020 = vmatprep.subr.bf16.mxu0 %v3540_v16  ;;  %v31_v44 = vld [vmem:[%s4670_s0 + $0x80] sm:$0xff]  ;;  %v3562_v54 = vld [vmem:[%s4669_s1 + $0x1c8] sm:$0xff]   ;;  %v3568_v10 = vld [vmem:[%s4669_s1 + $0x158] sm:$0xff]  }
  0x12   :  { %3084 = vmatprep.subr.bf16.mxu1 %v3541_v17  ;;  %v39_v45 = vld [vmem:[%s4670_s0 + $0xc0] sm:$0xff]  ;;  %v3563_v55 = vld [vmem:[%s4669_s1 + $0x188] sm:$0xff]   ;;  %v3569_v11 = vld [vmem:[%s4669_s1 + $0x118] sm:$0xff]  }
  0x13   :  { %v2741_v46 = vcombine.high %v31_v44, %v39_v45  ;;  %v2740_v51 = vcombine.low %v31_v44, %v39_v45  ;;  %v47_v56 = vld [vmem:[%s4670_s0 + $0x100] sm:$0xff]  ;;  %v48_v58 = vld [vmem:[%s4670_s0 + $0x108] sm:$0xff]  ;;  %v3570_v12 = vld [vmem:[%s4669_s1 + $0x1d8] sm:$0xff]  }
  0x14   :  { %3021 = vmatpush3.bf16.msra.mxu0 %v3542_v18  ;;  %v55_v57 = vld [vmem:[%s4670_s0 + $0x140] sm:$0xff]  ;;  %v56_v59 = vld [vmem:[%s4670_s0 + $0x148] sm:$0xff]  ;;  %v3571_v13 = vld [vmem:[%s4669_s1 + $0x198] sm:$0xff]  }
  0x15   :  { %3085 = vmatpush3.bf16.msra.mxu1 %v3543_v19  ;;  %3022 = vmatprep.subr.bf16.mxu0 %v3544_v20  ;;  %v2757_v60 = vcombine.high %v47_v56, %v55_v57  ;;  %v2759_v61 = vcombine.high %v48_v58, %v56_v59  ;;  %v2756_v2 = vcombine.low %v47_v56, %v55_v57  ;;  %v63_v3 = vld [vmem:[%s4670_s0 + $0x180] sm:$0xff]  ;;  %v64_v5 = vld [vmem:[%s4670_s0 + $0x188] sm:$0xff]  ;;  %v3581_v39 = vld [vmem:[%s4669_s1 + $0x130] sm:$0xff]  }
  0x16   :  { %3086 = vmatprep.subr.bf16.mxu1 %v3545_v21  ;;  %v71_v4 = vld [vmem:[%s4670_s0 + $0x1c0] sm:$0xff]  ;;  %v2758_v6 = vcombine.low %v48_v58, %v56_v59  ;;  %v72_v8 = vld [vmem:[%s4670_s0 + $0x1c8] sm:$0xff]  ;;  %v3585_v48 = vld [vmem:[%s4669_s1 + $0x138] sm:$0xff]  }
  0x17   :  { %v2773_v7 = vcombine.high %v63_v3, %v71_v4  ;;  %v2775_v9 = vcombine.high %v64_v5, %v72_v8  ;;  %v79_v14 = vld [vmem:[%s4670_s0 + $0x200] sm:$0xff]  ;;  %v80_v16 = vld [vmem:[%s4670_s0 + $0x208] sm:$0xff]  ;;  %v2772_v19 = vcombine.low %v63_v3, %v71_v4  ;;  %v2774_v21 = vcombine.low %v64_v5, %v72_v8  ;;  %v26_v3 = vld [vmem:[%s4670_s0 + $0x58] sm:$0xff] }
  0x18   :  { %3023 = vmatpush3.bf16.msra.mxu0 %v3546_v22  ;;  %v87_v15 = vld [vmem:[%s4670_s0 + $0x240] sm:$0xff]  ;;  %v88_v17 = vld [vmem:[%s4670_s0 + $0x248] sm:$0xff]  ;;  %v33_v8 = vld [vmem:[%s4670_s0 + $0x90] sm:$0xff] }
  0x19   :  { %3087 = vmatpush3.bf16.msra.mxu1 %v3547_v23  ;;  %3024 = vmatprep.subr.bf16.mxu0 %v3548_v24  ;;  %v3572_v18 = vld [vmem:[%s4669_s1 + $0x160] sm:$0xff]   ;;  %v2789_v22 = vcombine.high %v79_v14, %v87_v15  ;;  %v2791_v24 = vcombine.high %v80_v16, %v88_v17  ;;  %v3578_v32 = vld [vmem:[%s4669_s1 + $0x1e8] sm:$0xff]   ;;  %v2788_v34 = vcombine.low %v79_v14, %v87_v15 }
  0x1a   :  { %3088 = vmatprep.subr.bf16.mxu1 %v3549_v25  ;;  %v3573_v20 = vld [vmem:[%s4669_s1 + $0x120] sm:$0xff]   ;;  %v3579_v33 = vld [vmem:[%s4669_s1 + $0x1a8] sm:$0xff]  }
  0x1b   :  { %v3574_v23 = vld [vmem:[%s4669_s1 + $0x1e0] sm:$0xff]   ;;  %v112_v44 = vld [vmem:[%s4670_s0 + $0x308] sm:$0xff] }
  0x1c   :  { %3025 = vmatpush3.bf16.msra.mxu0 %v3550_v26  ;;  %v3575_v25 = vld [vmem:[%s4669_s1 + $0x1a0] sm:$0xff]   ;;  %v120_v45 = vld [vmem:[%s4670_s0 + $0x348] sm:$0xff] }
  0x1d   :  { %3089 = vmatpush3.bf16.msra.mxu1 %v3551_v27  ;;  %3026 = vmatprep.subr.bf16.mxu0 %v3552_v28  ;;  %v95_v26 = vld [vmem:[%s4670_s0 + $0x280] sm:$0xff]  ;;  %v3576_v28 = vld [vmem:[%s4669_s1 + $0x168] sm:$0xff]  }
  0x1e   :  { %3090 = vmatprep.subr.bf16.mxu1 %v3553_v29  ;;  %v103_v27 = vld [vmem:[%s4670_s0 + $0x2c0] sm:$0xff]  ;;  %v96_v29 = vld [vmem:[%s4670_s0 + $0x288] sm:$0xff] }
  0x1f   :  { %v2805_v36 = vcombine.high %v95_v26, %v103_v27  ;;  %v2804_v47 = vcombine.low %v95_v26, %v103_v27  ;;  %v3588_v56 = vld [vmem:[%s4669_s1 + $0x240] sm:$0xff]   ;;  %v128_v57 = vld [vmem:[%s4670_s0 + $0x388] sm:$0xff]  ;;  %v3596_v26 = vld [vmem:[%s4669_s1 + $0x250] sm:$0xff]  }
  0x20   :  { %3027 = vmatpush3.bf16.msra.mxu0 %v3554_v30  ;;  %v104_v30 = vld [vmem:[%s4670_s0 + $0x2c8] sm:$0xff]  ;;  %v3590_v58 = vld [vmem:[%s4669_s1 + $0x2c0] sm:$0xff]   ;;  %v3598_v27 = vld [vmem:[%s4669_s1 + $0x2d0] sm:$0xff]  }
  0x21   :  { %3091 = vmatpush3.bf16.msra.mxu1 %v3555_v31  ;;  %3140 = vmatprep.subr.bf16.mxu0 %v3556_v40  ;;  %v3577_v31 = vld [vmem:[%s4669_s1 + $0x128] sm:$0xff]   ;;  %v2807_v37 = vcombine.high %v96_v29, %v104_v30  ;;  %v3582_v40 = vld [vmem:[%s4669_s1 + $0x1f0] sm:$0xff]   ;;  %v3591_v15 = vld [vmem:[%s4669_s1 + $0x280] sm:$0xff]  }
  0x22   :  { %3204 = vmatprep.subr.bf16.mxu1 %v3558_v42  ;;  %v119_v42 = vld [vmem:[%s4670_s0 + $0x340] sm:$0xff]  ;;  %v136_v59 = vld [vmem:[%s4670_s0 + $0x3c8] sm:$0xff] }
  0x23   :  { %1847 = vmatmul.mubr.bf16.vlgmr.msra.gmra.mrb[0].mxu0 %v2724_v35  ;;  %v2790_v35 = vcombine.low %v80_v16, %v88_v17  ;;  %v2838_v5 = vcombine.low %v128_v57, %v136_v59  ;;  %v3592_v17 = vld [vmem:[%s4669_s1 + $0x248] sm:$0xff]  }
  0x24   :  { %1944 = vmatmul.mubr.bf16.vlgmr.msra.gmra.mrb[0].mxu1 %v2726_v38  ;;  %3141 = vmatpush3.bf16.msra.mxu0 %v3557_v41  ;;  %v3580_v38 = vld [vmem:[%s4669_s1 + $0x170] sm:$0xff]   ;;  %v111_v41 = vld [vmem:[%s4670_s0 + $0x300] sm:$0xff] }
  0x25   :  { %3205 = vmatpush3.bf16.msra.mxu1 %v3559_v43  ;;  %1854 = vmatprep.mubr.bf16.mxu0 %v2741_v46  ;;  %v3583_v43 = vld [vmem:[%s4669_s1 + $0x1b0] sm:$0xff]   ;;  %v3584_v46 = vld [vmem:[%s4669_s1 + $0x178] sm:$0xff]  }
  0x26   :  { %1951 = vmatprep.mubr.bf16.mxu1 %v2743_v49  ;;  %3142 = vmatprep.subr.bf16.mxu0 %v3560_v50  ;;  %v2806_v49 = vcombine.low %v96_v29, %v104_v30  ;;  %v2821_v50 = vcombine.high %v111_v41, %v119_v42 }
  0x27   :  { %3206 = vmatprep.subr.bf16.mxu1 %v3562_v54  ;;  %v127_v54 = vld [vmem:[%s4670_s0 + $0x380] sm:$0xff] }
  0x28   :  { %3143 = vmatpush3.bf16.msra.mxu0 %v3561_v52  ;;  %v2823_v52 = vcombine.high %v112_v44, %v120_v45 }
  0x29   :  { %3207 = vmatpush3.bf16.msra.mxu1 %v3563_v55  ;;  %3144 = vmatprep.subr.bf16.mxu0 %v3564_v62  ;;  %v135_v55 = vld [vmem:[%s4670_s0 + $0x3c0] sm:$0xff] }
  0x2a   :  { %3208 = vmatprep.subr.bf16.mxu1 %v3566_v0  ;;  %v2837_v62 = vcombine.high %v127_v54, %v135_v55  ;;  %v17_v0 = vld [vmem:[%s4670_s0 + $0x10] sm:$0xff]  ;;  %v2836_v4 = vcombine.low %v127_v54, %v135_v55  ;;  %v82_v54 = vld [vmem:[%s4670_s0 + $0x218] sm:$0xff] }
  0x2b   :  { %1855 = vmatmul.mubr.bf16.gmra.mrb[4].mxu0 %v2740_v51  ;;  %v3586_v51 = vld [vmem:[%s4669_s1 + $0x1f8] sm:$0xff]  }
  0x2c   :  { %1952 = vmatmul.mubr.bf16.gmra.mrb[4].mxu1 %v2742_v53  ;;  %1862 = vmatprep.mubr.bf16.mxu0 %v2757_v60  ;;  %v3587_v53 = vld [vmem:[%s4669_s1 + $0x1b8] sm:$0xff]   ;;  %v2820_v60 = vcombine.low %v111_v41, %v119_v42  ;;  %v3604_v42 = vld [vmem:[%s4669_s1 + $0x260] sm:$0xff]  }
  0x2d   :  { %1959 = vmatprep.mubr.bf16.mxu1 %v2759_v61  ;;  %3145 = vmatpush3.bf16.msra.mxu0 %v3565_v63  ;;  %v2822_v61 = vcombine.low %v112_v44, %v120_v45  ;;  %v2839_v63 = vcombine.high %v128_v57, %v136_v59  ;;  %v3603_v41 = vld [vmem:[%s4669_s1 + $0x298] sm:$0xff]   ;;  %v3606_v44 = vld [vmem:[%s4669_s1 + $0x2e0] sm:$0xff]   ;;  %v3611_v57 = vld [vmem:[%s4669_s1 + $0x2a8] sm:$0xff]  }
  0x2e   :  { %3209 = vmatpush3.bf16.msra.mxu1 %v3567_v1  ;;  %3146 = vmatprep.subr.bf16.mxu0 %v3568_v10  ;;  %v25_v1 = vld [vmem:[%s4670_s0 + $0x50] sm:$0xff]  ;;  %v90_v55 = vld [vmem:[%s4670_s0 + $0x258] sm:$0xff] }
  0x2f   :  { %3210 = vmatprep.subr.bf16.mxu1 %v3570_v12  ;;  %v2728_v10 = vcombine.low %v17_v0, %v25_v1  ;;  %v34_v12 = vld [vmem:[%s4670_s0 + $0x98] sm:$0xff] }
  0x31   :  { %3147 = vmatpush3.bf16.msra.mxu0 %v3569_v11  ;;  %v3589_v11 = vld [vmem:[%s4669_s1 + $0x200] sm:$0xff]  }
  0x32   :  { %3211 = vmatpush3.bf16.msra.mxu1 %v3571_v13  ;;  %3148 = vmatprep.subr.bf16.mxu0 %v3572_v18  ;;  %v42_v13 = vld [vmem:[%s4670_s0 + $0xd8] sm:$0xff] }
  0x33   :  { %1863 = vmatmul.mubr.bf16.gmra.mrb[8].mxu0 %v2756_v2  ;;  %3212 = vmatprep.subr.bf16.mxu1 %v3574_v23  ;;  %v18_v2 = vld [vmem:[%s4670_s0 + $0x18] sm:$0xff]  ;;  %v2747_v18 = vcombine.high %v34_v12, %v42_v13  ;;  %v57_v23 = vld [vmem:[%s4670_s0 + $0x150] sm:$0xff]  ;;  %v2746_v29 = vcombine.low %v34_v12, %v42_v13  ;;  %v3622_v12 = vld [vmem:[%s4669_s1 + $0x3c0] sm:$0xff]   ;;  %v2794_v13 = vcombine.low %v82_v54, %v90_v55 }
  0x34   :  { %1960 = vmatmul.mubr.bf16.gmra.mrb[8].mxu1 %v2758_v6  ;;  %1870 = vmatprep.mubr.bf16.mxu0 %v2773_v7  ;;  %v2729_v6 = vcombine.high %v17_v0, %v25_v1  ;;  %v2731_v7 = vcombine.high %v18_v2, %v26_v3  ;;  %v2730_v14 = vcombine.low %v18_v2, %v26_v3  ;;  %v3613_v0 = vld [vmem:[%s4669_s1 + $0x230] sm:$0xff]   ;;  %v3616_v2 = vld [vmem:[%s4669_s1 + $0x278] sm:$0xff]  }
  0x35   :  { %1967 = vmatprep.mubr.bf16.mxu1 %v2775_v9  ;;  %3149 = vmatpush3.bf16.msra.mxu0 %v3573_v20  ;;  %v41_v9 = vld [vmem:[%s4670_s0 + $0xd0] sm:$0xff]  ;;  %v3594_v20 = vld [vmem:[%s4669_s1 + $0x2c8] sm:$0xff]  }
  0x36   :  { %3213 = vmatpush3.bf16.msra.mxu1 %v3575_v25  ;;  %3150 = vmatprep.subr.bf16.mxu0 %v3576_v28  ;;  %v2745_v16 = vcombine.high %v33_v8, %v41_v9  ;;  %v58_v25 = vld [vmem:[%s4670_s0 + $0x158] sm:$0xff]  ;;  %v2744_v28 = vcombine.low %v33_v8, %v41_v9  ;;  %v3615_v1 = vld [vmem:[%s4669_s1 + $0x2b0] sm:$0xff]  }
  0x37   :  { %3214 = vmatprep.subr.bf16.mxu1 %v3578_v32  ;;  %v3597_v32 = vld [vmem:[%s4669_s1 + $0x210] sm:$0xff]   ;;  %v3617_v8 = vld [vmem:[%s4669_s1 + $0x238] sm:$0xff]  }
  0x38   :  { %v97_v3 = vld [vmem:[%s4670_s0 + $0x290] sm:$0xff]  ;;  %v3619_v9 = vld [vmem:[%s4669_s1 + $0x2b8] sm:$0xff]  }
  0x39   :  { %3151 = vmatpush3.bf16.msra.mxu0 %v3577_v31 }
  0x3a   :  { %3215 = vmatpush3.bf16.msra.mxu1 %v3579_v33  ;;  %3152 = vmatprep.subr.bf16.mxu0 %v3580_v38  ;;  %v3599_v33 = vld [vmem:[%s4669_s1 + $0x290] sm:$0xff]   ;;  %v66_v38 = vld [vmem:[%s4670_s0 + $0x198] sm:$0xff] }
  0x3b   :  { %1871 = vmatmul.mubr.bf16.gmra.mrb[12].mxu0 %v2772_v19  ;;  %3216 = vmatprep.subr.bf16.mxu1 %v3582_v40  ;;  %v3593_v19 = vld [vmem:[%s4669_s1 + $0x208] sm:$0xff]   ;;  %v3601_v40 = vld [vmem:[%s4669_s1 + $0x218] sm:$0xff]  }
  0x3c   :  { %1968 = vmatmul.mubr.bf16.gmra.mrb[12].mxu1 %v2774_v21  ;;  %1878 = vmatprep.mubr.bf16.mxu0 %v2789_v22  ;;  %v3595_v21 = vld [vmem:[%s4669_s1 + $0x288] sm:$0xff]   ;;  %v49_v22 = vld [vmem:[%s4670_s0 + $0x110] sm:$0xff] }
  0x3d   :  { %1975 = vmatprep.mubr.bf16.mxu1 %v2791_v24  ;;  %3153 = vmatpush3.bf16.msra.mxu0 %v3581_v39  ;;  %v50_v24 = vld [vmem:[%s4670_s0 + $0x118] sm:$0xff]  ;;  %v2761_v30 = vcombine.high %v49_v22, %v57_v23 }
  0x3e   :  { %3217 = vmatpush3.bf16.msra.mxu1 %v3583_v43  ;;  %3154 = vmatprep.subr.bf16.mxu0 %v3584_v46  ;;  %v2763_v31 = vcombine.high %v50_v24, %v58_v25  ;;  %v74_v39 = vld [vmem:[%s4670_s0 + $0x1d8] sm:$0xff]  ;;  %v2760_v43 = vcombine.low %v49_v22, %v57_v23  ;;  %v2762_v45 = vcombine.low %v50_v24, %v58_v25  ;;  %v129_v24 = vld [vmem:[%s4670_s0 + $0x390] sm:$0xff] }
  0x3f   :  { %3218 = vmatprep.subr.bf16.mxu1 %v3586_v51  ;;  %v81_v51 = vld [vmem:[%s4670_s0 + $0x210] sm:$0xff] }
  0x40   :  { %v137_v25 = vld [vmem:[%s4670_s0 + $0x3d0] sm:$0xff] }
  0x41   :  { %3155 = vmatpush3.bf16.msra.mxu0 %v3585_v48  ;;  %v2779_v48 = vcombine.high %v66_v38, %v74_v39 }
  0x42   :  { %3219 = vmatpush3.bf16.msra.mxu1 %v3587_v53  ;;  %3268 = vmatprep.subr.bf16.mxu0 %v3588_v56  ;;  %v89_v53 = vld [vmem:[%s4670_s0 + $0x250] sm:$0xff]  ;;  %v3609_v56 = vld [vmem:[%s4669_s1 + $0x228] sm:$0xff]  }
  0x43   :  { %1879 = vmatmul.mubr.bf16.gmra.mrb[16].mxu0 %v2788_v34  ;;  %3332 = vmatprep.subr.bf16.mxu1 %v3590_v58  ;;  %v3600_v34 = vld [vmem:[%s4669_s1 + $0x258] sm:$0xff]   ;;  %v3612_v58 = vld [vmem:[%s4669_s1 + $0x270] sm:$0xff]  }
  0x44   :  { %1976 = vmatmul.mubr.bf16.gmra.mrb[16].mxu1 %v2790_v35  ;;  %1886 = vmatprep.mubr.bf16.mxu0 %v2805_v36  ;;  %v65_v35 = vld [vmem:[%s4670_s0 + $0x190] sm:$0xff] }
  0x45   :  { %1983 = vmatprep.mubr.bf16.mxu1 %v2807_v37  ;;  %v73_v36 = vld [vmem:[%s4670_s0 + $0x1d0] sm:$0xff]  ;;  %v3602_v37 = vld [vmem:[%s4669_s1 + $0x2d8] sm:$0xff]  }
  0x46   :  { %v2777_v46 = vcombine.high %v65_v35, %v73_v36  ;;  %v2776_v59 = vcombine.low %v65_v35, %v73_v36  ;;  %v28_v35 = vld [vmem:[%s4670_s0 + $0x68] sm:$0xff]  ;;  %v2840_v36 = vcombine.low %v129_v24, %v137_v25 }
  0x4b   :  { %1887 = vmatmul.mubr.bf16.gmra.mrb[20].mxu0 %v2804_v47  ;;  %v3605_v47 = vld [vmem:[%s4669_s1 + $0x220] sm:$0xff]  }
  0x4c   :  { %1984 = vmatmul.mubr.bf16.gmra.mrb[20].mxu1 %v2806_v49  ;;  %1894 = vmatprep.mubr.bf16.mxu0 %v2821_v50  ;;  %v3607_v49 = vld [vmem:[%s4669_s1 + $0x2a0] sm:$0xff]   ;;  %v3608_v50 = vld [vmem:[%s4669_s1 + $0x268] sm:$0xff]  }
  0x4d   :  { %1991 = vmatprep.mubr.bf16.mxu1 %v2823_v52  ;;  %v3610_v52 = vld [vmem:[%s4669_s1 + $0x2e8] sm:$0xff]  }
  0x53   :  { %1895 = vmatmul.mubr.bf16.gmra.mrb[24].mxu0 %v2820_v60  ;;  %v3614_v60 = vld [vmem:[%s4669_s1 + $0x2f0] sm:$0xff]  }
  0x54   :  { %1992 = vmatmul.mubr.bf16.gmra.mrb[24].mxu1 %v2822_v61  ;;  %1902 = vmatprep.mubr.bf16.mxu0 %v2837_v62  ;;  %v2778_v61 = vcombine.low %v66_v38, %v74_v39  ;;  %v2793_v62 = vcombine.high %v81_v51, %v89_v53 }
  0x55   :  { %1999 = vmatprep.mubr.bf16.mxu1 %v2839_v63  ;;  %v2795_v63 = vcombine.high %v82_v54, %v90_v55  ;;  %v51_v54 = vld [vmem:[%s4670_s0 + $0x120] sm:$0xff] }
  0x56   :  { %v59_v55 = vld [vmem:[%s4670_s0 + $0x160] sm:$0xff] }
  0x5b   :  { %1903 = vmatmul.mubr.bf16.gmra.mrb[28].mxu0 %v2836_v4  ;;  %v105_v4 = vld [vmem:[%s4670_s0 + $0x2d0] sm:$0xff] }
  0x5c   :  { %2000 = vmatmul.mubr.bf16.gmra.mrb[28].mxu1 %v2838_v5  ;;  %2040 = vmatprep.mubr.bf16.mxu0 %v2729_v6  ;;  %v3618_v5 = vld [vmem:[%s4669_s1 + $0x2f8] sm:$0xff]  }
  0x5d   :  { %2137 = vmatprep.mubr.bf16.mxu1 %v2731_v7  ;;  %v98_v6 = vld [vmem:[%s4670_s0 + $0x298] sm:$0xff] }
  0x5e   :  { %v106_v7 = vld [vmem:[%s4670_s0 + $0x2d8] sm:$0xff] }
  0x63   :  { %2041 = vmatmul.mubr.bf16.vlgmr.msra.gmra.mrb[32].mxu0 %v2728_v10  ;;  %v3620_v10 = vld [vmem:[%s4669_s1 + $0x340] sm:$0xff]  }
  0x64   :  { %2138 = vmatmul.mubr.bf16.vlgmr.msra.gmra.mrb[32].mxu1 %v2730_v14  ;;  %3269 = vmatpush3.bf16.msra.mxu0 %v3589_v11  ;;  %v2792_v11 = vcombine.low %v81_v51, %v89_v53  ;;  %v2809_v14 = vcombine.high %v97_v3, %v105_v4  ;;  %v3626_v51 = vld [vmem:[%s4669_s1 + $0x3c8] sm:$0xff]  }
  0x65   :  { %3333 = vmatpush3.bf16.msra.mxu1 %v3591_v15  ;;  %2048 = vmatprep.mubr.bf16.mxu0 %v2745_v16  ;;  %v2811_v15 = vcombine.high %v98_v6, %v106_v7  ;;  %v113_v16 = vld [vmem:[%s4670_s0 + $0x310] sm:$0xff]  ;;  %v3627_v53 = vld [vmem:[%s4669_s1 + $0x388] sm:$0xff]  }
  0x66   :  { %2145 = vmatprep.mubr.bf16.mxu1 %v2747_v18  ;;  %3270 = vmatprep.subr.bf16.mxu0 %v3592_v17  ;;  %v121_v17 = vld [vmem:[%s4670_s0 + $0x350] sm:$0xff]  ;;  %v114_v18 = vld [vmem:[%s4670_s0 + $0x318] sm:$0xff] }
  0x67   :  { %3334 = vmatprep.subr.bf16.mxu1 %v3594_v20  ;;  %v2808_v20 = vcombine.low %v97_v3, %v105_v4  ;;  %v2825_v22 = vcombine.high %v113_v16, %v121_v17  ;;  %v3634_v3 = vld [vmem:[%s4669_s1 + $0x3d8] sm:$0xff]   ;;  %v67_v4 = vld [vmem:[%s4670_s0 + $0x1a0] sm:$0xff] }
  0x68   :  { %3271 = vmatpush3.bf16.msra.mxu0 %v3593_v19  ;;  %v122_v19 = vld [vmem:[%s4670_s0 + $0x358] sm:$0xff] }
  0x69   :  { %3335 = vmatpush3.bf16.msra.mxu1 %v3595_v21  ;;  %3272 = vmatprep.subr.bf16.mxu0 %v3596_v26  ;;  %v2810_v21 = vcombine.low %v98_v6, %v106_v7  ;;  %v2827_v23 = vcombine.high %v114_v18, %v122_v19  ;;  %v130_v26 = vld [vmem:[%s4670_s0 + $0x398] sm:$0xff]  ;;  %v68_v6 = vld [vmem:[%s4670_s0 + $0x1a8] sm:$0xff] }
  0x6a   :  { %3336 = vmatprep.subr.bf16.mxu1 %v3598_v27  ;;  %v138_v27 = vld [vmem:[%s4670_s0 + $0x3d8] sm:$0xff] }
  0x6b   :  { %2049 = vmatmul.mubr.bf16.gmra.mrb[36].mxu0 %v2744_v28  ;;  %v2824_v28 = vcombine.low %v113_v16, %v121_v17  ;;  %v3633_v7 = vld [vmem:[%s4669_s1 + $0x318] sm:$0xff]   ;;  %v3637_v16 = vld [vmem:[%s4669_s1 + $0x320] sm:$0xff]  }
  0x6c   :  { %2146 = vmatmul.mubr.bf16.gmra.mrb[36].mxu1 %v2746_v29  ;;  %2056 = vmatprep.mubr.bf16.mxu0 %v2761_v30  ;;  %v2826_v29 = vcombine.low %v114_v18, %v122_v19  ;;  %v2841_v30 = vcombine.high %v129_v24, %v137_v25  ;;  %v3639_v17 = vld [vmem:[%s4669_s1 + $0x3a0] sm:$0xff]   ;;  %v3640_v18 = vld [vmem:[%s4669_s1 + $0x368] sm:$0xff]  }
  0x6d   :  { %2153 = vmatprep.mubr.bf16.mxu1 %v2763_v31  ;;  %3273 = vmatpush3.bf16.msra.mxu0 %v3597_v32  ;;  %v2843_v31 = vcombine.high %v130_v26, %v138_v27  ;;  %v19_v32 = vld [vmem:[%s4670_s0 + $0x20] sm:$0xff]  ;;  %v3642_v19 = vld [vmem:[%s4669_s1 + $0x3e8] sm:$0xff]  }
  0x6e   :  { %3337 = vmatpush3.bf16.msra.mxu1 %v3599_v33  ;;  %3274 = vmatprep.subr.bf16.mxu0 %v3600_v34  ;;  %v27_v33 = vld [vmem:[%s4670_s0 + $0x60] sm:$0xff]  ;;  %v20_v34 = vld [vmem:[%s4670_s0 + $0x28] sm:$0xff] }
  0x6f   :  { %3338 = vmatprep.subr.bf16.mxu1 %v3602_v37  ;;  %v2842_v37 = vcombine.low %v130_v26, %v138_v27  ;;  %v2733_v38 = vcombine.high %v19_v32, %v27_v33  ;;  %v2735_v39 = vcombine.high %v20_v34, %v28_v35  ;;  %v92_v24 = vld [vmem:[%s4670_s0 + $0x268] sm:$0xff]  ;;  %v3644_v26 = vld [vmem:[%s4669_s1 + $0x370] sm:$0xff]  }
  0x70   :  { %v3643_v25 = vld [vmem:[%s4669_s1 + $0x3a8] sm:$0xff]  }
  0x71   :  { %3275 = vmatpush3.bf16.msra.mxu0 %v3601_v40  ;;  %v35_v40 = vld [vmem:[%s4670_s0 + $0xa0] sm:$0xff] }
  0x72   :  { %3339 = vmatpush3.bf16.msra.mxu1 %v3603_v41  ;;  %3276 = vmatprep.subr.bf16.mxu0 %v3604_v42  ;;  %v43_v41 = vld [vmem:[%s4670_s0 + $0xe0] sm:$0xff]  ;;  %v2732_v42 = vcombine.low %v19_v32, %v27_v33  ;;  %v3645_v32 = vld [vmem:[%s4669_s1 + $0x330] sm:$0xff]  }
  0x73   :  { %2057 = vmatmul.mubr.bf16.gmra.mrb[40].mxu0 %v2760_v43  ;;  %3340 = vmatprep.subr.bf16.mxu1 %v3606_v44  ;;  %v36_v43 = vld [vmem:[%s4670_s0 + $0xa8] sm:$0xff]  ;;  %v3647_v33 = vld [vmem:[%s4669_s1 + $0x3b0] sm:$0xff]  }
  0x74   :  { %2154 = vmatmul.mubr.bf16.gmra.mrb[40].mxu1 %v2762_v45  ;;  %2064 = vmatprep.mubr.bf16.mxu0 %v2777_v46  ;;  %v44_v44 = vld [vmem:[%s4670_s0 + $0xe8] sm:$0xff]  ;;  %v2734_v45 = vcombine.low %v20_v34, %v28_v35  ;;  %v3621_v46 = vld [vmem:[%s4669_s1 + $0x300] sm:$0xff]   ;;  %v3648_v34 = vld [vmem:[%s4669_s1 + $0x378] sm:$0xff]  }
  0x75   :  { %2161 = vmatprep.mubr.bf16.mxu1 %v2779_v48  ;;  %3277 = vmatpush3.bf16.msra.mxu0 %v3605_v47  ;;  %v3623_v47 = vld [vmem:[%s4669_s1 + $0x380] sm:$0xff]   ;;  %v2749_v48 = vcombine.high %v35_v40, %v43_v41  ;;  %v3650_v35 = vld [vmem:[%s4669_s1 + $0x3f8] sm:$0xff]  }
  0x76   :  { %3341 = vmatpush3.bf16.msra.mxu1 %v3607_v49  ;;  %3278 = vmatprep.subr.bf16.mxu0 %v3608_v50  ;;  %v2751_v49 = vcombine.high %v36_v43, %v44_v44  ;;  %v3624_v50 = vld [vmem:[%s4669_s1 + $0x348] sm:$0xff]  }
  0x77   :  { %3342 = vmatprep.subr.bf16.mxu1 %v3610_v52  ;;  %v3625_v52 = vld [vmem:[%s4669_s1 + $0x308] sm:$0xff]  }
  0x79   :  { %3279 = vmatpush3.bf16.msra.mxu0 %v3609_v56  ;;  %v3628_v56 = vld [vmem:[%s4669_s1 + $0x350] sm:$0xff]  }
  0x7a   :  { %3343 = vmatpush3.bf16.msra.mxu1 %v3611_v57  ;;  %3280 = vmatprep.subr.bf16.mxu0 %v3612_v58  ;;  %v52_v57 = vld [vmem:[%s4670_s0 + $0x128] sm:$0xff] }
  0x7b   :  { %2065 = vmatmul.mubr.bf16.gmra.mrb[44].mxu0 %v2776_v59  ;;  %3344 = vmatprep.subr.bf16.mxu1 %v3614_v60  ;;  %v60_v58 = vld [vmem:[%s4670_s0 + $0x168] sm:$0xff]  ;;  %v3630_v59 = vld [vmem:[%s4669_s1 + $0x3d0] sm:$0xff]   ;;  %v2748_v60 = vcombine.low %v35_v40, %v43_v41  ;;  %v3651_v41 = vld [vmem:[%s4669_s1 + $0x3b8] sm:$0xff]  }
  0x7c   :  { %2162 = vmatmul.mubr.bf16.gmra.mrb[44].mxu1 %v2778_v61  ;;  %2072 = vmatprep.mubr.bf16.mxu0 %v2793_v62  ;;  %v2750_v61 = vcombine.low %v36_v43, %v44_v44  ;;  %v2765_v62 = vcombine.high %v51_v54, %v59_v55  ;;  %v108_v40 = vld [vmem:[%s4670_s0 + $0x2e8] sm:$0xff] }
  0x7d   :  { %2169 = vmatprep.mubr.bf16.mxu1 %v2795_v63  ;;  %3281 = vmatpush3.bf16.msra.mxu0 %v3613_v0  ;;  %v2767_v63 = vcombine.high %v52_v57, %v60_v58  ;;  %v3629_v0 = vld [vmem:[%s4669_s1 + $0x310] sm:$0xff]  }
  0x7e   :  { %3345 = vmatpush3.bf16.msra.mxu1 %v3615_v1  ;;  %3282 = vmatprep.subr.bf16.mxu0 %v3616_v2  ;;  %v3631_v1 = vld [vmem:[%s4669_s1 + $0x390] sm:$0xff]   ;;  %v3632_v2 = vld [vmem:[%s4669_s1 + $0x358] sm:$0xff]  }
  0x7f   :  { %3346 = vmatprep.subr.bf16.mxu1 %v3618_v5  ;;  %v75_v5 = vld [vmem:[%s4670_s0 + $0x1e0] sm:$0xff] }
  0x80   :  { %v2780_v27 = vcombine.low %v67_v4, %v75_v5 }
  0x81   :  { %3283 = vmatpush3.bf16.msra.mxu0 %v3617_v8  ;;  %v76_v8 = vld [vmem:[%s4670_s0 + $0x1e8] sm:$0xff] }
  0x82   :  { %3347 = vmatpush3.bf16.msra.mxu1 %v3619_v9  ;;  %3396 = vmatprep.subr.bf16.mxu0 %v3620_v10  ;;  %v3635_v9 = vld [vmem:[%s4669_s1 + $0x398] sm:$0xff]   ;;  %v3636_v10 = vld [vmem:[%s4669_s1 + $0x360] sm:$0xff]  }
  0x83   :  { %2073 = vmatmul.mubr.bf16.gmra.mrb[48].mxu0 %v2792_v11  ;;  %3460 = vmatprep.subr.bf16.mxu1 %v3622_v12  ;;  %v2764_v11 = vcombine.low %v51_v54, %v59_v55  ;;  %v3638_v12 = vld [vmem:[%s4669_s1 + $0x3e0] sm:$0xff]  }
  0x84   :  { %2170 = vmatmul.mubr.bf16.gmra.mrb[48].mxu1 %v2794_v13  ;;  %2080 = vmatprep.mubr.bf16.mxu0 %v2809_v14  ;;  %v2766_v13 = vcombine.low %v52_v57, %v60_v58  ;;  %v2781_v14 = vcombine.high %v67_v4, %v75_v5  ;;  %v131_v54 = vld [vmem:[%s4670_s0 + $0x3a0] sm:$0xff]  ;;  %v140_v57 = vld [vmem:[%s4670_s0 + $0x3e8] sm:$0xff] }
  0x85   :  { %2177 = vmatprep.mubr.bf16.mxu1 %v2811_v15  ;;  %v2783_v15 = vcombine.high %v68_v6, %v76_v8  ;;  %v139_v55 = vld [vmem:[%s4670_s0 + $0x3e0] sm:$0xff] }
  0x8b   :  { %2081 = vmatmul.mubr.bf16.gmra.mrb[52].mxu0 %v2808_v20  ;;  %v83_v20 = vld [vmem:[%s4670_s0 + $0x220] sm:$0xff] }
  0x8c   :  { %2178 = vmatmul.mubr.bf16.gmra.mrb[52].mxu1 %v2810_v21  ;;  %2088 = vmatprep.mubr.bf16.mxu0 %v2825_v22  ;;  %v91_v21 = vld [vmem:[%s4670_s0 + $0x260] sm:$0xff]  ;;  %v84_v22 = vld [vmem:[%s4670_s0 + $0x228] sm:$0xff] }
  0x8d   :  { %2185 = vmatprep.mubr.bf16.mxu1 %v2827_v23  ;;  %v3641_v23 = vld [vmem:[%s4669_s1 + $0x328] sm:$0xff]   ;;  %v2798_v43 = vcombine.low %v84_v22, %v92_v24 }
  0x93   :  { %2089 = vmatmul.mubr.bf16.gmra.mrb[56].mxu0 %v2824_v28  ;;  %v3646_v28 = vld [vmem:[%s4669_s1 + $0x3f0] sm:$0xff]  }
  0x94   :  { %2186 = vmatmul.mubr.bf16.gmra.mrb[56].mxu1 %v2826_v29  ;;  %2096 = vmatprep.mubr.bf16.mxu0 %v2841_v30  ;;  %v2782_v29 = vcombine.low %v68_v6, %v76_v8  ;;  %v2797_v30 = vcombine.high %v83_v20, %v91_v21  ;;  %v37_v6 = vld [vmem:[%s4670_s0 + $0xb0] sm:$0xff]  ;;  %v38_v8 = vld [vmem:[%s4670_s0 + $0xb8] sm:$0xff] }
  0x95   :  { %2193 = vmatprep.mubr.bf16.mxu1 %v2843_v31  ;;  %v2799_v31 = vcombine.high %v84_v22, %v92_v24  ;;  %v69_v22 = vld [vmem:[%s4670_s0 + $0x1b0] sm:$0xff]  ;;  %v70_v24 = vld [vmem:[%s4670_s0 + $0x1b8] sm:$0xff] }
  0x9b   :  { %2097 = vmatmul.mubr.bf16.gmra.mrb[60].mxu0 %v2840_v36  ;;  %v99_v36 = vld [vmem:[%s4670_s0 + $0x2a0] sm:$0xff] }
  0x9c   :  { %2194 = vmatmul.mubr.bf16.gmra.mrb[60].mxu1 %v2842_v37  ;;  %2234 = vmatprep.mubr.bf16.mxu0 %v2733_v38  ;;  %v107_v37 = vld [vmem:[%s4670_s0 + $0x2e0] sm:$0xff]  ;;  %v3649_v38 = vld [vmem:[%s4669_s1 + $0x338] sm:$0xff]  }
  0x9d   :  { %2331 = vmatprep.mubr.bf16.mxu1 %v2735_v39  ;;  %v100_v39 = vld [vmem:[%s4670_s0 + $0x2a8] sm:$0xff]  ;;  %v2813_v44 = vcombine.high %v99_v36, %v107_v37 }
  0xa3   :  { %2235 = vmatmul.mubr.bf16.vlgmr.msra.gmra.mrb[64].mxu0 %v2732_v42  ;;  %v2796_v42 = vcombine.low %v83_v20, %v91_v21 }
  0xa4   :  { %2332 = vmatmul.mubr.bf16.vlgmr.msra.gmra.mrb[64].mxu1 %v2734_v45  ;;  %3397 = vmatpush3.bf16.msra.mxu0 %v3621_v46  ;;  %v2815_v45 = vcombine.high %v100_v39, %v108_v40  ;;  %v115_v46 = vld [vmem:[%s4670_s0 + $0x320] sm:$0xff] }
  0xa5   :  { %3461 = vmatpush3.bf16.msra.mxu1 %v3623_v47  ;;  %2242 = vmatprep.mubr.bf16.mxu0 %v2749_v48  ;;  %v123_v47 = vld [vmem:[%s4670_s0 + $0x360] sm:$0xff]  ;;  %v116_v48 = vld [vmem:[%s4670_s0 + $0x328] sm:$0xff] }
  0xa6   :  { %2339 = vmatprep.mubr.bf16.mxu1 %v2751_v49  ;;  %3398 = vmatprep.subr.bf16.mxu0 %v3624_v50  ;;  %v124_v49 = vld [vmem:[%s4670_s0 + $0x368] sm:$0xff]  ;;  %v2812_v50 = vcombine.low %v99_v36, %v107_v37  ;;  %v2828_v58 = vcombine.low %v115_v46, %v123_v47  ;;  %v4407_v36 = vld [vmem:[%s4671_s2] ss:$0 sm:$0xff] }
  0xa7   :  { %3462 = vmatprep.subr.bf16.mxu1 %v3626_v51  ;;  %v2814_v51 = vcombine.low %v100_v39, %v108_v40 }
  0xa8   :  { %3399 = vmatpush3.bf16.msra.mxu0 %v3625_v52  ;;  %v2829_v52 = vcombine.high %v115_v46, %v123_v47 }
  0xa9   :  { %3463 = vmatpush3.bf16.msra.mxu1 %v3627_v53  ;;  %3400 = vmatprep.subr.bf16.mxu0 %v3628_v56  ;;  %v2831_v53 = vcombine.high %v116_v48, %v124_v49  ;;  %v132_v56 = vld [vmem:[%s4670_s0 + $0x3a8] sm:$0xff] }
  0xaa   :  { %3464 = vmatprep.subr.bf16.mxu1 %v3630_v59  ;;  %v2830_v59 = vcombine.low %v116_v48, %v124_v49 }
  0xab   :  { %2243 = vmatmul.mubr.bf16.gmra.mrb[68].mxu0 %v2748_v60  ;;  %v2845_v60 = vcombine.high %v131_v54, %v139_v55 }
  0xac   :  { %2340 = vmatmul.mubr.bf16.gmra.mrb[68].mxu1 %v2750_v61  ;;  %2250 = vmatprep.mubr.bf16.mxu0 %v2765_v62  ;;  %v2847_v61 = vcombine.high %v132_v56, %v140_v57  ;;  %v21_v62 = vld [vmem:[%s4670_s0 + $0x30] sm:$0xff] }
  0xad   :  { %2347 = vmatprep.mubr.bf16.mxu1 %v2767_v63  ;;  %3401 = vmatpush3.bf16.msra.mxu0 %v3629_v0  ;;  %v29_v63 = vld [vmem:[%s4670_s0 + $0x70] sm:$0xff]  ;;  %v22_v0 = vld [vmem:[%s4670_s0 + $0x38] sm:$0xff] }
  0xae   :  { %3465 = vmatpush3.bf16.msra.mxu1 %v3631_v1  ;;  %3402 = vmatprep.subr.bf16.mxu0 %v3632_v2  ;;  %v30_v1 = vld [vmem:[%s4670_s0 + $0x78] sm:$0xff]  ;;  %v2844_v2 = vcombine.low %v131_v54, %v139_v55  ;;  %v2737_v4 = vcombine.high %v21_v62, %v29_v63  ;;  %v101_v54 = vld [vmem:[%s4670_s0 + $0x2b0] sm:$0xff] }
  0xaf   :  { %3466 = vmatprep.subr.bf16.mxu1 %v3634_v3  ;;  %v2846_v3 = vcombine.low %v132_v56, %v140_v57  ;;  %v2739_v5 = vcombine.high %v22_v0, %v30_v1  ;;  %v109_v55 = vld [vmem:[%s4670_s0 + $0x2f0] sm:$0xff] }
  0xb1   :  { %3403 = vmatpush3.bf16.msra.mxu0 %v3633_v7  ;;  %v45_v7 = vld [vmem:[%s4670_s0 + $0xf0] sm:$0xff] }
  0xb2   :  { %3467 = vmatpush3.bf16.msra.mxu1 %v3635_v9  ;;  %3404 = vmatprep.subr.bf16.mxu0 %v3636_v10  ;;  %v46_v9 = vld [vmem:[%s4670_s0 + $0xf8] sm:$0xff]  ;;  %v2736_v10 = vcombine.low %v21_v62, %v29_v63 }
  0xb3   :  { %2251 = vmatmul.mubr.bf16.gmra.mrb[72].mxu0 %v2764_v11  ;;  %3468 = vmatprep.subr.bf16.mxu1 %v3638_v12  ;;  %v2738_v11 = vcombine.low %v22_v0, %v30_v1  ;;  %v2753_v12 = vcombine.high %v37_v6, %v45_v7 }
  0xb4   :  { %2348 = vmatmul.mubr.bf16.gmra.mrb[72].mxu1 %v2766_v13  ;;  %2258 = vmatprep.mubr.bf16.mxu0 %v2781_v14  ;;  %v2755_v13 = vcombine.high %v38_v8, %v46_v9  ;;  %v53_v14 = vld [vmem:[%s4670_s0 + $0x130] sm:$0xff] }
  0xb5   :  { %2355 = vmatprep.mubr.bf16.mxu1 %v2783_v15  ;;  %3405 = vmatpush3.bf16.msra.mxu0 %v3637_v16  ;;  %v61_v15 = vld [vmem:[%s4670_s0 + $0x170] sm:$0xff]  ;;  %v54_v16 = vld [vmem:[%s4670_s0 + $0x138] sm:$0xff] }
  0xb6   :  { %3469 = vmatpush3.bf16.msra.mxu1 %v3639_v17  ;;  %3406 = vmatprep.subr.bf16.mxu0 %v3640_v18  ;;  %v62_v17 = vld [vmem:[%s4670_s0 + $0x178] sm:$0xff]  ;;  %v2752_v18 = vcombine.low %v37_v6, %v45_v7  ;;  %v2769_v20 = vcombine.high %v53_v14, %v61_v15 }
  0xb7   :  { %3470 = vmatprep.subr.bf16.mxu1 %v3642_v19  ;;  %v2754_v19 = vcombine.low %v38_v8, %v46_v9  ;;  %v2771_v21 = vcombine.high %v54_v16, %v62_v17 }
  0xb9   :  { %3407 = vmatpush3.bf16.msra.mxu0 %v3641_v23  ;;  %v77_v23 = vld [vmem:[%s4670_s0 + $0x1f0] sm:$0xff] }
  0xba   :  { %3471 = vmatpush3.bf16.msra.mxu1 %v3643_v25  ;;  %3408 = vmatprep.subr.bf16.mxu0 %v3644_v26  ;;  %v78_v25 = vld [vmem:[%s4670_s0 + $0x1f8] sm:$0xff]  ;;  %v2768_v26 = vcombine.low %v53_v14, %v61_v15  ;;  %v117_v14 = vld [vmem:[%s4670_s0 + $0x330] sm:$0xff] }
  0xbb   :  { %2259 = vmatmul.mubr.bf16.gmra.mrb[76].mxu0 %v2780_v27  ;;  %3472 = vmatprep.subr.bf16.mxu1 %v3646_v28  ;;  %v2770_v27 = vcombine.low %v54_v16, %v62_v17  ;;  %v2785_v28 = vcombine.high %v69_v22, %v77_v23  ;;  %v125_v15 = vld [vmem:[%s4670_s0 + $0x370] sm:$0xff] }
  0xbc   :  { %2356 = vmatmul.mubr.bf16.gmra.mrb[76].mxu1 %v2782_v29  ;;  %2266 = vmatprep.mubr.bf16.mxu0 %v2797_v30  ;;  %v2787_v29 = vcombine.high %v70_v24, %v78_v25  ;;  %v85_v30 = vld [vmem:[%s4670_s0 + $0x230] sm:$0xff] }
  0xbd   :  { %2363 = vmatprep.mubr.bf16.mxu1 %v2799_v31  ;;  %3409 = vmatpush3.bf16.msra.mxu0 %v3645_v32  ;;  %v93_v31 = vld [vmem:[%s4670_s0 + $0x270] sm:$0xff] }
  0xbe   :  { %3473 = vmatpush3.bf16.msra.mxu1 %v3647_v33  ;;  %3410 = vmatprep.subr.bf16.mxu0 %v3648_v34  ;;  %v86_v33 = vld [vmem:[%s4670_s0 + $0x238] sm:$0xff]  ;;  %v2800_v62 = vcombine.low %v85_v30, %v93_v31 }
  0xbf   :  { %3474 = vmatprep.subr.bf16.mxu1 %v3650_v35  ;;  %v94_v34 = vld [vmem:[%s4670_s0 + $0x278] sm:$0xff] }
  0xc0   :  { %v2803_v47 = vcombine.high %v86_v33, %v94_v34 }
  0xc1   :  { %3411 = vmatpush3.bf16.msra.mxu0 %v3649_v38  ;;  %v2784_v38 = vcombine.low %v69_v22, %v77_v23  ;;  %v2816_v22 = vcombine.low %v101_v54, %v109_v55 }
  0xc2   :  { %3475 = vmatpush3.bf16.msra.mxu1 %v3651_v41 }
  0xc3   :  { %2267 = vmatmul.mubr.bf16.gmra.mrb[80].mxu0 %v2796_v42  ;;  %v2786_v42 = vcombine.low %v70_v24, %v78_v25 }
  0xc4   :  { %2364 = vmatmul.mubr.bf16.gmra.mrb[80].mxu1 %v2798_v43  ;;  %2274 = vmatprep.mubr.bf16.mxu0 %v2813_v44  ;;  %v2801_v43 = vcombine.high %v85_v30, %v93_v31 }
  0xc5   :  { %2371 = vmatprep.mubr.bf16.mxu1 %v2815_v45 }
  0xcb   :  { %2275 = vmatmul.mubr.bf16.gmra.mrb[84].mxu0 %v2812_v50 }
  0xcc   :  { %2372 = vmatmul.mubr.bf16.gmra.mrb[84].mxu1 %v2814_v51  ;;  %2282 = vmatprep.mubr.bf16.mxu0 %v2829_v52 }
  0xcd   :  { %2379 = vmatprep.mubr.bf16.mxu1 %v2831_v53 }
  0xd3   :  { %2283 = vmatmul.mubr.bf16.gmra.mrb[88].mxu0 %v2828_v58  ;;  %v102_v58 = vld [vmem:[%s4670_s0 + $0x2b8] sm:$0xff] }
  0xd4   :  { %2380 = vmatmul.mubr.bf16.gmra.mrb[88].mxu1 %v2830_v59  ;;  %2290 = vmatprep.mubr.bf16.mxu0 %v2845_v60  ;;  %v110_v59 = vld [vmem:[%s4670_s0 + $0x2f8] sm:$0xff] }
  0xd5   :  { %2387 = vmatprep.mubr.bf16.mxu1 %v2847_v61  ;;  %v2819_v7 = vcombine.high %v102_v58, %v110_v59 }
  0xdb   :  { %2291 = vmatmul.mubr.bf16.gmra.mrb[92].mxu0 %v2844_v2  ;;  %v2802_v2 = vcombine.low %v86_v33, %v94_v34 }
  0xdc   :  { %2388 = vmatmul.mubr.bf16.gmra.mrb[92].mxu1 %v2846_v3  ;;  %2428 = vmatprep.mubr.bf16.mxu0 %v2737_v4  ;;  %v2817_v3 = vcombine.high %v101_v54, %v109_v55 }
  0xdd   :  { %2525 = vmatprep.mubr.bf16.mxu1 %v2739_v5 }
  0xe3   :  { %2429 = vmatmul.mubr.bf16.vlgmr.msra.gmra.mrb[96].mxu0 %v2736_v10 }
  0xe4   :  { %2526 = vmatmul.mubr.bf16.vlgmr.msra.gmra.mrb[96].mxu1 %v2738_v11  ;;  %2436 = vmatprep.mubr.bf16.mxu0 %v2753_v12 }
  0xe5   :  { %2533 = vmatprep.mubr.bf16.mxu1 %v2755_v13 }
  0xeb   :  { %2437 = vmatmul.mubr.bf16.gmra.mrb[100].mxu0 %v2752_v18  ;;  %v118_v18 = vld [vmem:[%s4670_s0 + $0x338] sm:$0xff] }
  0xec   :  { %2534 = vmatmul.mubr.bf16.gmra.mrb[100].mxu1 %v2754_v19  ;;  %2444 = vmatprep.mubr.bf16.mxu0 %v2769_v20  ;;  %v126_v19 = vld [vmem:[%s4670_s0 + $0x378] sm:$0xff] }
  0xed   :  { %2541 = vmatprep.mubr.bf16.mxu1 %v2771_v21  ;;  %v2835_v31 = vcombine.high %v118_v18, %v126_v19 }
  0xf3   :  { %2445 = vmatmul.mubr.bf16.gmra.mrb[104].mxu0 %v2768_v26  ;;  %v2818_v26 = vcombine.low %v102_v58, %v110_v59 }
  0xf4   :  { %2542 = vmatmul.mubr.bf16.gmra.mrb[104].mxu1 %v2770_v27  ;;  %2452 = vmatprep.mubr.bf16.mxu0 %v2785_v28  ;;  %v2833_v27 = vcombine.high %v117_v14, %v125_v15 }
  0xf5   :  { %2549 = vmatprep.mubr.bf16.mxu1 %v2787_v29 }
  0xf6   :  { %v3028_v32 = vpop.f32.mrb[0].mxu0 }
  0xf7   :  { %v3092_v35 = vpop.f32.mrb[0].mxu1  ;;  %v3029_v37 = vpop.f32.mrb[1].mxu0 }
  0xf8   :  { %v3030_v39 = vadd.f32 %v3029_v37, %v3028_v32  ;;  %v3093_v40 = vpop.f32.mrb[1].mxu1  ;;  %v3031_v41 = vpop.f32.mrb[2].mxu0 }
  0xf9   :  { %v3094_v44 = vadd.f32 %v3093_v40, %v3092_v35  ;;  %v3095_v45 = vpop.f32.mrb[2].mxu1  ;;  %v3032_v46 = vpop.f32.mrb[3].mxu0  ;;  %v141_v40 = vld [vmem:[%s4670_s0 + $0x3f0] sm:$0xff] }
  0xfa   :  { %v1849_v48 = vadd.f32 %v3030_v39, %v4407_v36  ;;  %v3033_v49 = vadd.f32 %v3032_v46, %v3031_v41  ;;  %v3096_v50 = vpop.f32.mrb[3].mxu1  ;;  %v133_v39 = vld [vmem:[%s4670_s0 + $0x3b0] sm:$0xff] }
  0xfb   :  { %v3097_v51 = vadd.f32 %v3096_v50, %v3095_v45  ;;  %2453 = vmatmul.mubr.bf16.gmra.mrb[108].mxu0 %v2784_v38 }
  0xfc   :  { %v4410_v52 = vadd.f32 %v3094_v44, %v1849_v48  ;;  %v1852_v53 = vadd.f32 %v3033_v49, %v4407_v36  ;;  %2550 = vmatmul.mubr.bf16.gmra.mrb[108].mxu1 %v2786_v42  ;;  %2460 = vmatprep.mubr.bf16.mxu0 %v2801_v43  ;;  %v134_v43 = vld [vmem:[%s4670_s0 + $0x3b8] sm:$0xff] }
  0xfd   :  { %2557 = vmatprep.mubr.bf16.mxu1 %v2803_v47  ;;  %v142_v44 = vld [vmem:[%s4670_s0 + $0x3f8] sm:$0xff]  ;;  %v2832_v47 = vcombine.low %v117_v14, %v125_v15 }
  0xfe   :  { %v4419_v56 = vadd.f32 %v3097_v51, %v1852_v53  ;;  %v3034_v57 = vpop.f32.mrb[4].mxu0  ;;  %v2834_v51 = vcombine.low %v118_v18, %v126_v19  ;;  %v2849_v53 = vcombine.high %v133_v39, %v141_v40  ;;  %v2851_v58 = vcombine.high %v134_v43, %v142_v44 }
  0xff   :  { %v3098_v60 = vpop.f32.mrb[4].mxu1  ;;  %v3035_v61 = vpop.f32.mrb[5].mxu0 }
 0x100   :  { %v3036_v63 = vadd.f32 %v3035_v61, %v3034_v57  ;;  %v3099_v0 = vpop.f32.mrb[5].mxu1  ;;  %v3037_v1 = vpop.f32.mrb[6].mxu0 }
 0x101   :  { %v3100_v4 = vadd.f32 %v3099_v0, %v3098_v60  ;;  %v3101_v5 = vpop.f32.mrb[6].mxu1  ;;  %v3038_v6 = vpop.f32.mrb[7].mxu0 }
 0x102   :  { %v1857_v8 = vadd.f32 %v3036_v63, %v4407_v36  ;;  %v3039_v9 = vadd.f32 %v3038_v6, %v3037_v1  ;;  %v3102_v10 = vpop.f32.mrb[7].mxu1 }
 0x103   :  { %v3103_v11 = vadd.f32 %v3102_v10, %v3101_v5  ;;  %2461 = vmatmul.mubr.bf16.gmra.mrb[112].mxu0 %v2800_v62  ;;  %v2848_v5 = vcombine.low %v133_v39, %v141_v40 }
 0x104   :  { %v4428_v12 = vadd.f32 %v3100_v4, %v1857_v8  ;;  %v1860_v13 = vadd.f32 %v3039_v9, %v4407_v36  ;;  %2558 = vmatmul.mubr.bf16.gmra.mrb[112].mxu1 %v2802_v2  ;;  %2468 = vmatprep.mubr.bf16.mxu0 %v2817_v3  ;;  %v2850_v9 = vcombine.low %v134_v43, %v142_v44 }
 0x105   :  { %2565 = vmatprep.mubr.bf16.mxu1 %v2819_v7 }
 0x106   :  { %v4437_v16 = vadd.f32 %v3103_v11, %v1860_v13  ;;  %v3040_v17 = vpop.f32.mrb[8].mxu0 }
 0x107   :  { %v3104_v20 = vpop.f32.mrb[8].mxu1  ;;  %v3041_v21 = vpop.f32.mrb[9].mxu0 }
 0x108   :  { %v3042_v23 = vadd.f32 %v3041_v21, %v3040_v17  ;;  %v3105_v24 = vpop.f32.mrb[9].mxu1  ;;  %v3043_v25 = vpop.f32.mrb[10].mxu0 }
 0x109   :  { %v3106_v28 = vadd.f32 %v3105_v24, %v3104_v20  ;;  %v3107_v29 = vpop.f32.mrb[10].mxu1  ;;  %v3044_v30 = vpop.f32.mrb[11].mxu0 }
 0x10a   :  { %v1865_v32 = vadd.f32 %v3042_v23, %v4407_v36  ;;  %v3045_v33 = vadd.f32 %v3044_v30, %v3043_v25  ;;  %v3108_v34 = vpop.f32.mrb[11].mxu1 }
 0x10b   :  { %v3109_v35 = vadd.f32 %v3108_v34, %v3107_v29  ;;  %2469 = vmatmul.mubr.bf16.gmra.mrb[116].mxu0 %v2816_v22 }
 0x10c   :  { %v4446_v37 = vadd.f32 %v3106_v28, %v1865_v32  ;;  %v1868_v38 = vadd.f32 %v3045_v33, %v4407_v36  ;;  %2566 = vmatmul.mubr.bf16.gmra.mrb[116].mxu1 %v2818_v26  ;;  %2476 = vmatprep.mubr.bf16.mxu0 %v2833_v27 }
 0x10d   :  { %2573 = vmatprep.mubr.bf16.mxu1 %v2835_v31 }
 0x10e   :  { %v4455_v41 = vadd.f32 %v3109_v35, %v1868_v38  ;;  %v3046_v42 = vpop.f32.mrb[12].mxu0 }
 0x10f   :  { %v3110_v45 = vpop.f32.mrb[12].mxu1  ;;  %v3047_v46 = vpop.f32.mrb[13].mxu0 }
 0x110   :  { %v3048_v48 = vadd.f32 %v3047_v46, %v3046_v42  ;;  %v3111_v49 = vpop.f32.mrb[13].mxu1  ;;  %v3049_v50 = vpop.f32.mrb[14].mxu0 }
 0x111   :  { %v3112_v54 = vadd.f32 %v3111_v49, %v3110_v45  ;;  %v3113_v55 = vpop.f32.mrb[14].mxu1  ;;  %v3050_v57 = vpop.f32.mrb[15].mxu0 }
 0x112   :  { %v1873_v59 = vadd.f32 %v3048_v48, %v4407_v36  ;;  %v3051_v60 = vadd.f32 %v3050_v57, %v3049_v50  ;;  %v3114_v61 = vpop.f32.mrb[15].mxu1 }
 0x113   :  { %v3115_v62 = vadd.f32 %v3114_v61, %v3113_v55  ;;  %2477 = vmatmul.mubr.bf16.gmra.mrb[120].mxu0 %v2832_v47 }
 0x114   :  { %v4464_v63 = vadd.f32 %v3112_v54, %v1873_v59  ;;  %v1876_v0 = vadd.f32 %v3051_v60, %v4407_v36  ;;  %2574 = vmatmul.mubr.bf16.gmra.mrb[120].mxu1 %v2834_v51  ;;  %2484 = vmatprep.mubr.bf16.mxu0 %v2849_v53 }
 0x115   :  { %2581 = vmatprep.mubr.bf16.mxu1 %v2851_v58 }
 0x116   :  { %v4467_v1 = vadd.f32 %v3115_v62, %v1876_v0  ;;  %v3052_v2 = vpop.f32.mrb[16].mxu0 }
 0x117   :  { %v3116_v3 = vpop.f32.mrb[16].mxu1  ;;  %v3053_v4 = vpop.f32.mrb[17].mxu0 }
 0x118   :  { %v3054_v6 = vadd.f32 %v3053_v4, %v3052_v2  ;;  %v3117_v7 = vpop.f32.mrb[17].mxu1  ;;  %v3055_v8 = vpop.f32.mrb[18].mxu0 }
 0x119   :  { %v3118_v10 = vadd.f32 %v3117_v7, %v3116_v3  ;;  %v3119_v11 = vpop.f32.mrb[18].mxu1  ;;  %v3056_v13 = vpop.f32.mrb[19].mxu0 }
 0x11a   :  { %v1881_v14 = vadd.f32 %v3054_v6, %v4407_v36  ;;  %v3057_v15 = vadd.f32 %v3056_v13, %v3055_v8  ;;  %v3120_v17 = vpop.f32.mrb[19].mxu1 }
 0x11b   :  { %v3121_v18 = vadd.f32 %v3120_v17, %v3119_v11  ;;  %2485 = vmatmul.mubr.bf16.gmra.mrb[124].mxu0 %v2848_v5 }
 0x11c   :  { %v4470_v19 = vadd.f32 %v3118_v10, %v1881_v14  ;;  %v1884_v20 = vadd.f32 %v3057_v15, %v4407_v36  ;;  %2582 = vmatmul.mubr.bf16.gmra.mrb[124].mxu1 %v2850_v9 }
 0x11e   :  { %v4473_v21 = vadd.f32 %v3121_v18, %v1884_v20  ;;  %v3058_v22 = vpop.f32.mrb[20].mxu0 }
 0x11f   :  { %v3122_v23 = vpop.f32.mrb[20].mxu1  ;;  %v3059_v24 = vpop.f32.mrb[21].mxu0 }
 0x120   :  { %v3060_v25 = vadd.f32 %v3059_v24, %v3058_v22  ;;  %v3123_v26 = vpop.f32.mrb[21].mxu1  ;;  %v3061_v27 = vpop.f32.mrb[22].mxu0 }
 0x121   :  { %v3124_v28 = vadd.f32 %v3123_v26, %v3122_v23  ;;  %v3125_v29 = vpop.f32.mrb[22].mxu1  ;;  %v3062_v30 = vpop.f32.mrb[23].mxu0 }
 0x122   :  { %v1889_v31 = vadd.f32 %v3060_v25, %v4407_v36  ;;  %v3063_v32 = vadd.f32 %v3062_v30, %v3061_v27  ;;  %v3126_v33 = vpop.f32.mrb[23].mxu1 }
 0x123   :  { %v3127_v34 = vadd.f32 %v3126_v33, %v3125_v29 }
 0x124   :  { %v4476_v35 = vadd.f32 %v3124_v28, %v1889_v31  ;;  %v1892_v38 = vadd.f32 %v3063_v32, %v4407_v36 }
 0x126   :  { %v4479_v39 = vadd.f32 %v3127_v34, %v1892_v38  ;;  %v3064_v40 = vpop.f32.mrb[24].mxu0 }
 0x127   :  { %v3128_v42 = vpop.f32.mrb[24].mxu1  ;;  %v3065_v43 = vpop.f32.mrb[25].mxu0 }
 0x128   :  { %v3066_v44 = vadd.f32 %v3065_v43, %v3064_v40  ;;  %v3129_v45 = vpop.f32.mrb[25].mxu1  ;;  %v3067_v46 = vpop.f32.mrb[26].mxu0 }
 0x129   :  { %v3130_v47 = vadd.f32 %v3129_v45, %v3128_v42  ;;  %v3131_v48 = vpop.f32.mrb[26].mxu1  ;;  %v3068_v49 = vpop.f32.mrb[27].mxu0 }
 0x12a   :  { %v1897_v50 = vadd.f32 %v3066_v44, %v4407_v36  ;;  %v3069_v51 = vadd.f32 %v3068_v49, %v3067_v46  ;;  %v3132_v53 = vpop.f32.mrb[27].mxu1 }
 0x12b   :  { %v3133_v54 = vadd.f32 %v3132_v53, %v3131_v48 }
 0x12c   :  { %v4482_v55 = vadd.f32 %v3130_v47, %v1897_v50  ;;  %v1900_v57 = vadd.f32 %v3069_v51, %v4407_v36 }
 0x12e   :  { %v4485_v58 = vadd.f32 %v3133_v54, %v1900_v57  ;;  %v3070_v59 = vpop.f32.mrb[28].mxu0 }
 0x12f   :  { %v3134_v60 = vpop.f32.mrb[28].mxu1  ;;  %v3071_v61 = vpop.f32.mrb[29].mxu0 }
 0x130   :  { %v3072_v62 = vadd.f32 %v3071_v61, %v3070_v59  ;;  %v3135_v0 = vpop.f32.mrb[29].mxu1  ;;  %v3073_v2 = vpop.f32.mrb[30].mxu0 }
 0x131   :  { %v3136_v3 = vadd.f32 %v3135_v0, %v3134_v60  ;;  %v3137_v4 = vpop.f32.mrb[30].mxu1  ;;  %v3074_v5 = vpop.f32.mrb[31].mxu0 }
 0x132   :  { %v1905_v6 = vadd.f32 %v3072_v62, %v4407_v36  ;;  %v3075_v7 = vadd.f32 %v3074_v5, %v3073_v2  ;;  %v3138_v8 = vpop.f32.mrb[31].mxu1 }
 0x133   :  { %v3139_v9 = vadd.f32 %v3138_v8, %v3137_v4 }
 0x134   :  { %v4488_v10 = vadd.f32 %v3136_v3, %v1905_v6  ;;  %v1908_v11 = vadd.f32 %v3075_v7, %v4407_v36 }
 0x136   :  { %v4491_v13 = vadd.f32 %v3139_v9, %v1908_v11  ;;  %v3156_v14 = vpop.f32.mrb[32].mxu0 }
 0x137   :  { %v3220_v15 = vpop.f32.mrb[32].mxu1  ;;  %v3157_v17 = vpop.f32.mrb[33].mxu0 }
 0x138   :  { %v3158_v18 = vadd.f32 %v3157_v17, %v3156_v14  ;;  %v3221_v20 = vpop.f32.mrb[33].mxu1  ;;  %v3159_v22 = vpop.f32.mrb[34].mxu0 }
 0x139   :  { %v3222_v23 = vadd.f32 %v3221_v20, %v3220_v15  ;;  %v3223_v24 = vpop.f32.mrb[34].mxu1  ;;  %v3160_v25 = vpop.f32.mrb[35].mxu0 }
 0x13a   :  { %v2043_v26 = vadd.f32 %v3158_v18, %v4410_v52  ;;  %v3161_v27 = vadd.f32 %v3160_v25, %v3159_v22  ;;  %v3224_v28 = vpop.f32.mrb[35].mxu1 }
 0x13b   :  { %v3225_v29 = vadd.f32 %v3224_v28, %v3223_v24 }
 0x13c   :  { %v4494_v30 = vadd.f32 %v3222_v23, %v2043_v26  ;;  %v2046_v36 = vadd.f32 %v3161_v27, %v4419_v56 }
 0x13e   :  { %v4497_v31 = vadd.f32 %v3225_v29, %v2046_v36  ;;  %v3162_v32 = vpop.f32.mrb[36].mxu0 }
 0x13f   :  { %v3226_v33 = vpop.f32.mrb[36].mxu1  ;;  %v3163_v34 = vpop.f32.mrb[37].mxu0 }
 0x140   :  { %v3164_v38 = vadd.f32 %v3163_v34, %v3162_v32  ;;  %v3227_v40 = vpop.f32.mrb[37].mxu1  ;;  %v3165_v42 = vpop.f32.mrb[38].mxu0 }
 0x141   :  { %v3228_v43 = vadd.f32 %v3227_v40, %v3226_v33  ;;  %v3229_v44 = vpop.f32.mrb[38].mxu1  ;;  %v3166_v45 = vpop.f32.mrb[39].mxu0 }
 0x142   :  { %v2051_v52 = vadd.f32 %v3164_v38, %v4428_v12  ;;  %v3167_v46 = vadd.f32 %v3166_v45, %v3165_v42  ;;  %v3230_v47 = vpop.f32.mrb[39].mxu1 }
 0x143   :  { %v3231_v48 = vadd.f32 %v3230_v47, %v3229_v44 }
 0x144   :  { %v4500_v49 = vadd.f32 %v3228_v43, %v2051_v52  ;;  %v2054_v56 = vadd.f32 %v3167_v46, %v4437_v16 }
 0x146   :  { %v4503_v50 = vadd.f32 %v3231_v48, %v2054_v56  ;;  %v3168_v51 = vpop.f32.mrb[40].mxu0 }
 0x147   :  { %v3232_v53 = vpop.f32.mrb[40].mxu1  ;;  %v3169_v54 = vpop.f32.mrb[41].mxu0 }
 0x148   :  { %v3170_v57 = vadd.f32 %v3169_v54, %v3168_v51  ;;  %v3233_v59 = vpop.f32.mrb[41].mxu1  ;;  %v3171_v60 = vpop.f32.mrb[42].mxu0 }
 0x149   :  { %v3234_v61 = vadd.f32 %v3233_v59, %v3232_v53  ;;  %v3235_v62 = vpop.f32.mrb[42].mxu1  ;;  %v3172_v0 = vpop.f32.mrb[43].mxu0 }
 0x14a   :  { %v2059_v12 = vadd.f32 %v3170_v57, %v4446_v37  ;;  %v3173_v2 = vadd.f32 %v3172_v0, %v3171_v60  ;;  %v3236_v3 = vpop.f32.mrb[43].mxu1 }
 0x14b   :  { %v3237_v4 = vadd.f32 %v3236_v3, %v3235_v62 }
 0x14c   :  { %v4506_v5 = vadd.f32 %v3234_v61, %v2059_v12  ;;  %v2062_v16 = vadd.f32 %v3173_v2, %v4455_v41 }
 0x14e   :  { %v4509_v6 = vadd.f32 %v3237_v4, %v2062_v16  ;;  %v3174_v7 = vpop.f32.mrb[44].mxu0 }
 0x14f   :  { %v3238_v8 = vpop.f32.mrb[44].mxu1  ;;  %v3175_v9 = vpop.f32.mrb[45].mxu0 }
 0x150   :  { %v3176_v11 = vadd.f32 %v3175_v9, %v3174_v7  ;;  %v3239_v14 = vpop.f32.mrb[45].mxu1  ;;  %v3177_v15 = vpop.f32.mrb[46].mxu0 }
 0x151   :  { %v3240_v17 = vadd.f32 %v3239_v14, %v3238_v8  ;;  %v3241_v18 = vpop.f32.mrb[46].mxu1  ;;  %v3178_v20 = vpop.f32.mrb[47].mxu0 }
 0x152   :  { %v2067_v37 = vadd.f32 %v3176_v11, %v4464_v63  ;;  %v3179_v22 = vadd.f32 %v3178_v20, %v3177_v15  ;;  %v3242_v23 = vpop.f32.mrb[47].mxu1 }
 0x153   :  { %v3243_v24 = vadd.f32 %v3242_v23, %v3241_v18 }
 0x154   :  { %v4512_v25 = vadd.f32 %v3240_v17, %v2067_v37  ;;  %v2070_v41 = vadd.f32 %v3179_v22, %v4467_v1 }
 0x156   :  { %v4515_v26 = vadd.f32 %v3243_v24, %v2070_v41  ;;  %v3180_v27 = vpop.f32.mrb[48].mxu0 }
 0x157   :  { %v3244_v28 = vpop.f32.mrb[48].mxu1  ;;  %v3181_v29 = vpop.f32.mrb[49].mxu0 }
 0x158   :  { %v3182_v36 = vadd.f32 %v3181_v29, %v3180_v27  ;;  %v3245_v32 = vpop.f32.mrb[49].mxu1  ;;  %v3183_v33 = vpop.f32.mrb[50].mxu0 }
 0x159   :  { %v3246_v34 = vadd.f32 %v3245_v32, %v3244_v28  ;;  %v3247_v38 = vpop.f32.mrb[50].mxu1  ;;  %v3184_v40 = vpop.f32.mrb[51].mxu0 }
 0x15a   :  { %v2075_v63 = vadd.f32 %v3182_v36, %v4470_v19  ;;  %v3185_v42 = vadd.f32 %v3184_v40, %v3183_v33  ;;  %v3248_v43 = vpop.f32.mrb[51].mxu1 }
 0x15b   :  { %v3249_v44 = vadd.f32 %v3248_v43, %v3247_v38 }
 0x15c   :  { %v4518_v45 = vadd.f32 %v3246_v34, %v2075_v63  ;;  %v2078_v1 = vadd.f32 %v3185_v42, %v4473_v21 }
 0x15e   :  { %v4521_v52 = vadd.f32 %v3249_v44, %v2078_v1  ;;  %v3186_v46 = vpop.f32.mrb[52].mxu0 }
 0x15f   :  { %v3250_v47 = vpop.f32.mrb[52].mxu1  ;;  %v3187_v48 = vpop.f32.mrb[53].mxu0 }
 0x160   :  { %v3188_v56 = vadd.f32 %v3187_v48, %v3186_v46  ;;  %v3251_v51 = vpop.f32.mrb[53].mxu1  ;;  %v3189_v53 = vpop.f32.mrb[54].mxu0 }
 0x161   :  { %v3252_v54 = vadd.f32 %v3251_v51, %v3250_v47  ;;  %v3253_v57 = vpop.f32.mrb[54].mxu1  ;;  %v3190_v59 = vpop.f32.mrb[55].mxu0 }
 0x162   :  { %v2083_v19 = vadd.f32 %v3188_v56, %v4476_v35  ;;  %v3191_v60 = vadd.f32 %v3190_v59, %v3189_v53  ;;  %v3254_v61 = vpop.f32.mrb[55].mxu1 }
 0x163   :  { %v3255_v62 = vadd.f32 %v3254_v61, %v3253_v57 }
 0x164   :  { %v4524_v0 = vadd.f32 %v3252_v54, %v2083_v19  ;;  %v2086_v21 = vadd.f32 %v3191_v60, %v4479_v39 }
 0x166   :  { %v4527_v12 = vadd.f32 %v3255_v62, %v2086_v21  ;;  %v3192_v2 = vpop.f32.mrb[56].mxu0 }
 0x167   :  { %v3256_v3 = vpop.f32.mrb[56].mxu1  ;;  %v3193_v4 = vpop.f32.mrb[57].mxu0 }
 0x168   :  { %v3194_v16 = vadd.f32 %v3193_v4, %v3192_v2  ;;  %v3257_v7 = vpop.f32.mrb[57].mxu1  ;;  %v3195_v8 = vpop.f32.mrb[58].mxu0 }
 0x169   :  { %v3258_v9 = vadd.f32 %v3257_v7, %v3256_v3  ;;  %v3259_v11 = vpop.f32.mrb[58].mxu1  ;;  %v3196_v14 = vpop.f32.mrb[59].mxu0 }
 0x16a   :  { %v2091_v35 = vadd.f32 %v3194_v16, %v4482_v55  ;;  %v3197_v15 = vadd.f32 %v3196_v14, %v3195_v8  ;;  %v3260_v17 = vpop.f32.mrb[59].mxu1 }
 0x16b   :  { %v3261_v18 = vadd.f32 %v3260_v17, %v3259_v11 }
 0x16c   :  { %v4530_v20 = vadd.f32 %v3258_v9, %v2091_v35  ;;  %v2094_v39 = vadd.f32 %v3197_v15, %v4485_v58 }
 0x16e   :  { %v4533_v37 = vadd.f32 %v3261_v18, %v2094_v39  ;;  %v3198_v22 = vpop.f32.mrb[60].mxu0 }
 0x16f   :  { %v3262_v23 = vpop.f32.mrb[60].mxu1  ;;  %v3199_v24 = vpop.f32.mrb[61].mxu0 }
 0x170   :  { %v3200_v41 = vadd.f32 %v3199_v24, %v3198_v22  ;;  %v3263_v27 = vpop.f32.mrb[61].mxu1  ;;  %v3201_v28 = vpop.f32.mrb[62].mxu0 }
 0x171   :  { %v3264_v29 = vadd.f32 %v3263_v27, %v3262_v23  ;;  %v3265_v36 = vpop.f32.mrb[62].mxu1  ;;  %v3202_v32 = vpop.f32.mrb[63].mxu0 }
 0x172   :  { %v2099_v55 = vadd.f32 %v3200_v41, %v4488_v10  ;;  %v3203_v33 = vadd.f32 %v3202_v32, %v3201_v28  ;;  %v3266_v34 = vpop.f32.mrb[63].mxu1 }
 0x173   :  { %v3267_v38 = vadd.f32 %v3266_v34, %v3265_v36 }
 0x174   :  { %v4536_v40 = vadd.f32 %v3264_v29, %v2099_v55  ;;  %v2102_v58 = vadd.f32 %v3203_v33, %v4491_v13 }
 0x176   :  { %v4539_v63 = vadd.f32 %v3267_v38, %v2102_v58  ;;  %v3284_v42 = vpop.f32.mrb[64].mxu0 }
 0x177   :  { %v3348_v43 = vpop.f32.mrb[64].mxu1  ;;  %v3285_v44 = vpop.f32.mrb[65].mxu0 }
 0x178   :  { %v3286_v1 = vadd.f32 %v3285_v44, %v3284_v42  ;;  %v3349_v46 = vpop.f32.mrb[65].mxu1  ;;  %v3287_v47 = vpop.f32.mrb[66].mxu0 }
 0x179   :  { %v3350_v48 = vadd.f32 %v3349_v46, %v3348_v43  ;;  %v3351_v56 = vpop.f32.mrb[66].mxu1  ;;  %v3288_v51 = vpop.f32.mrb[67].mxu0 }
 0x17a   :  { %v2237_v10 = vadd.f32 %v3286_v1, %v4494_v30  ;;  %v3289_v53 = vadd.f32 %v3288_v51, %v3287_v47  ;;  %v3352_v54 = vpop.f32.mrb[67].mxu1 }
 0x17b   :  { %v3353_v57 = vadd.f32 %v3352_v54, %v3351_v56 }
 0x17c   :  { %v4542_v59 = vadd.f32 %v3350_v48, %v2237_v10  ;;  %v2240_v13 = vadd.f32 %v3289_v53, %v4497_v31 }
 0x17e   :  { %v4545_v19 = vadd.f32 %v3353_v57, %v2240_v13  ;;  %v3290_v60 = vpop.f32.mrb[68].mxu0 }
 0x17f   :  { %v3354_v61 = vpop.f32.mrb[68].mxu1  ;;  %v3291_v62 = vpop.f32.mrb[69].mxu0 }
 0x180   :  { %v3292_v21 = vadd.f32 %v3291_v62, %v3290_v60  ;;  %v3355_v2 = vpop.f32.mrb[69].mxu1  ;;  %v3293_v3 = vpop.f32.mrb[70].mxu0 }
 0x181   :  { %v3356_v4 = vadd.f32 %v3355_v2, %v3354_v61  ;;  %v3357_v16 = vpop.f32.mrb[70].mxu1  ;;  %v3294_v7 = vpop.f32.mrb[71].mxu0 }
 0x182   :  { %v2245_v30 = vadd.f32 %v3292_v21, %v4500_v49  ;;  %v3295_v8 = vadd.f32 %v3294_v7, %v3293_v3  ;;  %v3358_v9 = vpop.f32.mrb[71].mxu1 }
 0x183   :  { %v3359_v11 = vadd.f32 %v3358_v9, %v3357_v16 }
 0x184   :  { %v4548_v14 = vadd.f32 %v3356_v4, %v2245_v30  ;;  %v2248_v31 = vadd.f32 %v3295_v8, %v4503_v50 }
 0x186   :  { %v4551_v35 = vadd.f32 %v3359_v11, %v2248_v31  ;;  %v3296_v15 = vpop.f32.mrb[72].mxu0 }
 0x187   :  { %v3360_v17 = vpop.f32.mrb[72].mxu1  ;;  %v3297_v18 = vpop.f32.mrb[73].mxu0 }
 0x188   :  { %v3298_v39 = vadd.f32 %v3297_v18, %v3296_v15  ;;  %v3361_v22 = vpop.f32.mrb[73].mxu1  ;;  %v3299_v23 = vpop.f32.mrb[74].mxu0 }
 0x189   :  { %v3362_v24 = vadd.f32 %v3361_v22, %v3360_v17  ;;  %v3363_v41 = vpop.f32.mrb[74].mxu1  ;;  %v3300_v27 = vpop.f32.mrb[75].mxu0 }
 0x18a   :  { %v2253_v49 = vadd.f32 %v3298_v39, %v4506_v5  ;;  %v3301_v28 = vadd.f32 %v3300_v27, %v3299_v23  ;;  %v3364_v29 = vpop.f32.mrb[75].mxu1 }
 0x18b   :  { %v3365_v36 = vadd.f32 %v3364_v29, %v3363_v41 }
 0x18c   :  { %v4554_v32 = vadd.f32 %v3362_v24, %v2253_v49  ;;  %v2256_v50 = vadd.f32 %v3301_v28, %v4509_v6 }
 0x18e   :  { %v4557_v55 = vadd.f32 %v3365_v36, %v2256_v50  ;;  %v3302_v33 = vpop.f32.mrb[76].mxu0 }
 0x18f   :  { %v3366_v34 = vpop.f32.mrb[76].mxu1  ;;  %v3303_v38 = vpop.f32.mrb[77].mxu0 }
 0x190   :  { %v3304_v58 = vadd.f32 %v3303_v38, %v3302_v33  ;;  %v3367_v42 = vpop.f32.mrb[77].mxu1  ;;  %v3305_v43 = vpop.f32.mrb[78].mxu0 }
 0x191   :  { %v3368_v44 = vadd.f32 %v3367_v42, %v3366_v34  ;;  %v3369_v1 = vpop.f32.mrb[78].mxu1  ;;  %v3306_v46 = vpop.f32.mrb[79].mxu0 }
 0x192   :  { %v2261_v5 = vadd.f32 %v3304_v58, %v4512_v25  ;;  %v3307_v47 = vadd.f32 %v3306_v46, %v3305_v43  ;;  %v3370_v48 = vpop.f32.mrb[79].mxu1 }
 0x193   :  { %v3371_v56 = vadd.f32 %v3370_v48, %v3369_v1 }
 0x194   :  { %v4560_v51 = vadd.f32 %v3368_v44, %v2261_v5  ;;  %v2264_v6 = vadd.f32 %v3307_v47, %v4515_v26 }
 0x196   :  { %v4563_v10 = vadd.f32 %v3371_v56, %v2264_v6  ;;  %v3308_v53 = vpop.f32.mrb[80].mxu0 }
 0x197   :  { %v3372_v54 = vpop.f32.mrb[80].mxu1  ;;  %v3309_v57 = vpop.f32.mrb[81].mxu0 }
 0x198   :  { %v3310_v13 = vadd.f32 %v3309_v57, %v3308_v53  ;;  %v3373_v60 = vpop.f32.mrb[81].mxu1  ;;  %v3311_v61 = vpop.f32.mrb[82].mxu0 }
 0x199   :  { %v3374_v62 = vadd.f32 %v3373_v60, %v3372_v54  ;;  %v3375_v21 = vpop.f32.mrb[82].mxu1  ;;  %v3312_v2 = vpop.f32.mrb[83].mxu0 }
 0x19a   :  { %v2269_v25 = vadd.f32 %v3310_v13, %v4518_v45  ;;  %v3313_v3 = vadd.f32 %v3312_v2, %v3311_v61  ;;  %v3376_v4 = vpop.f32.mrb[83].mxu1 }
 0x19b   :  { %v3377_v16 = vadd.f32 %v3376_v4, %v3375_v21 }
 0x19c   :  { %v4566_v7 = vadd.f32 %v3374_v62, %v2269_v25  ;;  %v2272_v26 = vadd.f32 %v3313_v3, %v4521_v52 }
 0x19e   :  { %v4569_v30 = vadd.f32 %v3377_v16, %v2272_v26  ;;  %v3314_v8 = vpop.f32.mrb[84].mxu0 }
 0x19f   :  { %v3378_v9 = vpop.f32.mrb[84].mxu1  ;;  %v3315_v11 = vpop.f32.mrb[85].mxu0 }
 0x1a0   :  { %v3316_v31 = vadd.f32 %v3315_v11, %v3314_v8  ;;  %v3379_v15 = vpop.f32.mrb[85].mxu1  ;;  %v3317_v17 = vpop.f32.mrb[86].mxu0 }
 0x1a1   :  { %v3380_v18 = vadd.f32 %v3379_v15, %v3378_v9  ;;  %v3381_v39 = vpop.f32.mrb[86].mxu1  ;;  %v3318_v22 = vpop.f32.mrb[87].mxu0 }
 0x1a2   :  { %v2277_v45 = vadd.f32 %v3316_v31, %v4524_v0  ;;  %v3319_v23 = vadd.f32 %v3318_v22, %v3317_v17  ;;  %v3382_v24 = vpop.f32.mrb[87].mxu1 }
 0x1a3   :  { %v3383_v41 = vadd.f32 %v3382_v24, %v3381_v39 }
 0x1a4   :  { %v4572_v27 = vadd.f32 %v3380_v18, %v2277_v45  ;;  %v2280_v52 = vadd.f32 %v3319_v23, %v4527_v12 }
 0x1a6   :  { %v4575_v49 = vadd.f32 %v3383_v41, %v2280_v52  ;;  %v3320_v28 = vpop.f32.mrb[88].mxu0 }
 0x1a7   :  { %v3384_v29 = vpop.f32.mrb[88].mxu1  ;;  %v3321_v36 = vpop.f32.mrb[89].mxu0 }
 0x1a8   :  { %v3322_v50 = vadd.f32 %v3321_v36, %v3320_v28  ;;  %v3385_v33 = vpop.f32.mrb[89].mxu1  ;;  %v3323_v34 = vpop.f32.mrb[90].mxu0 }
 0x1a9   :  { %v3386_v38 = vadd.f32 %v3385_v33, %v3384_v29  ;;  %v3387_v58 = vpop.f32.mrb[90].mxu1  ;;  %v3324_v42 = vpop.f32.mrb[91].mxu0 }
 0x1aa   :  { %v2285_v0 = vadd.f32 %v3322_v50, %v4530_v20  ;;  %v3325_v43 = vadd.f32 %v3324_v42, %v3323_v34  ;;  %v3388_v44 = vpop.f32.mrb[91].mxu1 }
 0x1ab   :  { %v3389_v1 = vadd.f32 %v3388_v44, %v3387_v58 }
 0x1ac   :  { %v4578_v46 = vadd.f32 %v3386_v38, %v2285_v0  ;;  %v2288_v12 = vadd.f32 %v3325_v43, %v4533_v37 }
 0x1ae   :  { %v4581_v5 = vadd.f32 %v3389_v1, %v2288_v12  ;;  %v3326_v47 = vpop.f32.mrb[92].mxu0 }
 0x1af   :  { %v3390_v48 = vpop.f32.mrb[92].mxu1  ;;  %v3327_v56 = vpop.f32.mrb[93].mxu0 }
 0x1b0   :  { %v3328_v6 = vadd.f32 %v3327_v56, %v3326_v47  ;;  %v3391_v53 = vpop.f32.mrb[93].mxu1  ;;  %v3329_v54 = vpop.f32.mrb[94].mxu0 }
 0x1b1   :  { %v3392_v57 = vadd.f32 %v3391_v53, %v3390_v48  ;;  %v3393_v13 = vpop.f32.mrb[94].mxu1  ;;  %v3330_v60 = vpop.f32.mrb[95].mxu0 }
 0x1b2   :  { %v2293_v20 = vadd.f32 %v3328_v6, %v4536_v40  ;;  %v3331_v61 = vadd.f32 %v3330_v60, %v3329_v54  ;;  %v3394_v62 = vpop.f32.mrb[95].mxu1 }
 0x1b3   :  { %v3395_v21 = vadd.f32 %v3394_v62, %v3393_v13 }
 0x1b4   :  { %v4584_v2 = vadd.f32 %v3392_v57, %v2293_v20  ;;  %v2296_v37 = vadd.f32 %v3331_v61, %v4539_v63 }
 0x1b6   :  { %v4587_v25 = vadd.f32 %v3395_v21, %v2296_v37  ;;  %v3412_v3 = vpop.f32.mrb[96].mxu0 }
 0x1b7   :  { %v3476_v4 = vpop.f32.mrb[96].mxu1  ;;  %v3413_v16 = vpop.f32.mrb[97].mxu0 }
 0x1b8   :  { %v3414_v26 = vadd.f32 %v3413_v16, %v3412_v3  ;;  %v3477_v8 = vpop.f32.mrb[97].mxu1  ;;  %v3415_v9 = vpop.f32.mrb[98].mxu0 }
 0x1b9   :  { %v3478_v11 = vadd.f32 %v3477_v8, %v3476_v4  ;;  %v3479_v31 = vpop.f32.mrb[98].mxu1  ;;  %v3416_v15 = vpop.f32.mrb[99].mxu0 }
 0x1ba   :  { %v2431_v40 = vadd.f32 %v3414_v26, %v4542_v59  ;;  %v3417_v17 = vadd.f32 %v3416_v15, %v3415_v9  ;;  %v3480_v18 = vpop.f32.mrb[99].mxu1 }
 0x1bb   :  { %v3481_v39 = vadd.f32 %v3480_v18, %v3479_v31 }
 0x1bc   :  { %v2528_v22 = vadd.f32 %v3478_v11, %v2431_v40  ;;  %v2434_v45 = vadd.f32 %v3417_v17, %v4545_v19 }
 0x1be   :  { %vm2590_vm0 = vcmp.gt.f32.partialorder %v2528_v22, 0.0  ;;  %v2606_v63 = vmul.f32 0.2, %v2528_v22  ;;  %v2531_v23 = vadd.f32 %v3481_v39, %v2434_v45  ;;  %v3418_v24 = vpop.f32.mrb[100].mxu0 }
 0x1bf   :  { %v3482_v41 = vpop.f32.mrb[100].mxu1  ;;  %v3419_v52 = vpop.f32.mrb[101].mxu0 }
 0x1c0   :  { %v2622_v28 = vsel %vm2590_vm0, %v2528_v22, %v2606_v63  ;;  %vm2591_vm2 = vcmp.gt.f32.partialorder %v2531_v23, 0.0  ;;  %v2607_v29 = vmul.f32 0.2, %v2531_v23  ;;  %v3420_v36 = vadd.f32 %v3419_v52, %v3418_v24  ;;  %v3483_v50 = vpop.f32.mrb[101].mxu1  ;;  %v3421_v33 = vpop.f32.mrb[102].mxu0 }
 0x1c1   :  { %v2996_v59 = vpack.c.bf16 %v2622_v28, %v2622_v28  ;;  %v3484_v34 = vadd.f32 %v3483_v50, %v3482_v41  ;;  %v3485_v38 = vpop.f32.mrb[102].mxu1  ;;  %v3422_v58 = vpop.f32.mrb[103].mxu0 }
 0x1c2   :  { %v2623_v42 = vsel %vm2591_vm2, %v2531_v23, %v2607_v29  ;;  %v2439_v19 = vadd.f32 %v3420_v36, %v4548_v14  ;;  %v3423_v0 = vadd.f32 %v3422_v58, %v3421_v33  ;;  %v3486_v43 = vpop.f32.mrb[103].mxu1 }
 0x1c3   :  { %2703 = vst.msk [vmem:[%s4672_s3] sm:$0xf] %vm2702_vm1, %v2996_v59  ;;  %v2997_v44 = vpack.c.bf16 %v2623_v42, %v2623_v42  ;;  %v3487_v1 = vadd.f32 %v3486_v43, %v3485_v38 }
 0x1c4   :  { %v2536_v12 = vadd.f32 %v3484_v34, %v2439_v19  ;;  %v2442_v47 = vadd.f32 %v3423_v0, %v4551_v35 }
 0x1c5   :  { %2704 = vst.msk [vmem:[%s4672_s3 + $0x4] sm:$0xf] %vm2702_vm1, %v2997_v44 }
 0x1c6   :  { %vm2592_vm3 = vcmp.gt.f32.partialorder %v2536_v12, 0.0  ;;  %v2608_v48 = vmul.f32 0.2, %v2536_v12  ;;  %v2539_v14 = vadd.f32 %v3487_v1, %v2442_v47  ;;  %v3424_v56 = vpop.f32.mrb[104].mxu0 }
 0x1c7   :  { %v3488_v6 = vpop.f32.mrb[104].mxu1  ;;  %v3425_v53 = vpop.f32.mrb[105].mxu0 }
 0x1c8   :  { %v2624_v54 = vsel %vm2592_vm3, %v2536_v12, %v2608_v48  ;;  %vm2593_vm4 = vcmp.gt.f32.partialorder %v2539_v14, 0.0  ;;  %v2609_v57 = vmul.f32 0.2, %v2539_v14  ;;  %v3426_v13 = vadd.f32 %v3425_v53, %v3424_v56  ;;  %v3489_v60 = vpop.f32.mrb[105].mxu1  ;;  %v3427_v20 = vpop.f32.mrb[106].mxu0 }
 0x1c9   :  { %v2998_v61 = vpack.c.bf16 %v2624_v54, %v2624_v54  ;;  %v3490_v62 = vadd.f32 %v3489_v60, %v3488_v6  ;;  %v3491_v35 = vpop.f32.mrb[106].mxu1  ;;  %v3428_v21 = vpop.f32.mrb[107].mxu0 }
 0x1ca   :  { %v2625_v37 = vsel %vm2593_vm4, %v2539_v14, %v2609_v57  ;;  %v2447_v3 = vadd.f32 %v3426_v13, %v4554_v32  ;;  %v3429_v4 = vadd.f32 %v3428_v21, %v3427_v20  ;;  %v3492_v16 = vpop.f32.mrb[107].mxu1 }
 0x1cb   :  { %2705 = vst.msk [vmem:[%s4672_s3 + $0x8] sm:$0xf] %vm2702_vm1, %v2998_v61  ;;  %v2999_v26 = vpack.c.bf16 %v2625_v37, %v2625_v37  ;;  %v3493_v8 = vadd.f32 %v3492_v16, %v3491_v35 }
 0x1cc   :  { %v2544_v9 = vadd.f32 %v3490_v62, %v2447_v3  ;;  %v2450_v11 = vadd.f32 %v3429_v4, %v4557_v55 }
 0x1cd   :  { %2706 = vst.msk [vmem:[%s4672_s3 + $0xc] sm:$0xf] %vm2702_vm1, %v2999_v26 }
 0x1ce   :  { %vm2594_vm5 = vcmp.gt.f32.partialorder %v2544_v9, 0.0  ;;  %v2610_v31 = vmul.f32 0.2, %v2544_v9  ;;  %v2547_v32 = vadd.f32 %v3493_v8, %v2450_v11  ;;  %v3430_v15 = vpop.f32.mrb[108].mxu0 }
 0x1cf   :  { %v3494_v40 = vpop.f32.mrb[108].mxu1  ;;  %v3431_v17 = vpop.f32.mrb[109].mxu0 }
 0x1d0   :  { %v2626_v18 = vsel %vm2594_vm5, %v2544_v9, %v2610_v31  ;;  %vm2595_vm6 = vcmp.gt.f32.partialorder %v2547_v32, 0.0  ;;  %v2611_v39 = vmul.f32 0.2, %v2547_v32  ;;  %v3432_v22 = vadd.f32 %v3431_v17, %v3430_v15  ;;  %v3495_v45 = vpop.f32.mrb[109].mxu1  ;;  %v3433_v63 = vpop.f32.mrb[110].mxu0 }
 0x1d1   :  { %v3000_v23 = vpack.c.bf16 %v2626_v18, %v2626_v18  ;;  %v3496_v24 = vadd.f32 %v3495_v45, %v3494_v40  ;;  %v3497_v55 = vpop.f32.mrb[110].mxu1  ;;  %v3434_v41 = vpop.f32.mrb[111].mxu0 }
 0x1d2   :  { %v2627_v52 = vsel %vm2595_vm6, %v2547_v32, %v2611_v39  ;;  %v2455_v28 = vadd.f32 %v3432_v22, %v4560_v51  ;;  %v3435_v29 = vadd.f32 %v3434_v41, %v3433_v63  ;;  %v3498_v36 = vpop.f32.mrb[111].mxu1 }
 0x1d3   :  { %2707 = vst.msk [vmem:[%s4672_s3 + $0x10] sm:$0xf] %vm2702_vm1, %v3000_v23  ;;  %v3001_v50 = vpack.c.bf16 %v2627_v52, %v2627_v52  ;;  %v3499_v33 = vadd.f32 %v3498_v36, %v3497_v55 }
 0x1d4   :  { %v2552_v59 = vadd.f32 %v3496_v24, %v2455_v28  ;;  %v2458_v34 = vadd.f32 %v3435_v29, %v4563_v10 }
 0x1d5   :  { %2708 = vst.msk [vmem:[%s4672_s3 + $0x14] sm:$0xf] %vm2702_vm1, %v3001_v50 }
 0x1d6   :  { %vm2596_vm7 = vcmp.gt.f32.partialorder %v2552_v59, 0.0  ;;  %v2612_v38 = vmul.f32 0.2, %v2552_v59  ;;  %v2555_v51 = vadd.f32 %v3499_v33, %v2458_v34  ;;  %v3436_v58 = vpop.f32.mrb[112].mxu0 }
 0x1d7   :  { %v3500_v42 = vpop.f32.mrb[112].mxu1  ;;  %v3437_v19 = vpop.f32.mrb[113].mxu0 }
 0x1d8   :  { %v2628_v0 = vsel %vm2596_vm7, %v2552_v59, %v2612_v38  ;;  %vm2597_vm8 = vcmp.gt.f32.partialorder %v2555_v51, 0.0  ;;  %v2613_v43 = vmul.f32 0.2, %v2555_v51  ;;  %v3438_v44 = vadd.f32 %v3437_v19, %v3436_v58  ;;  %v3501_v1 = vpop.f32.mrb[113].mxu1  ;;  %v3439_v12 = vpop.f32.mrb[114].mxu0 }
 0x1d9   :  { %v3002_v47 = vpack.c.bf16 %v2628_v0, %v2628_v0  ;;  %v3502_v48 = vadd.f32 %v3501_v1, %v3500_v42  ;;  %v3503_v10 = vpop.f32.mrb[114].mxu1  ;;  %v3440_v14 = vpop.f32.mrb[115].mxu0 }
 0x1da   :  { %v2629_v56 = vsel %vm2597_vm8, %v2555_v51, %v2613_v43  ;;  %v2463_v6 = vadd.f32 %v3438_v44, %v4566_v7  ;;  %v3441_v53 = vadd.f32 %v3440_v14, %v3439_v12  ;;  %v3504_v54 = vpop.f32.mrb[115].mxu1 }
 0x1db   :  { %2709 = vst.msk [vmem:[%s4672_s3 + $0x18] sm:$0xf] %vm2702_vm1, %v3002_v47  ;;  %v3003_v57 = vpack.c.bf16 %v2629_v56, %v2629_v56  ;;  %v3505_v13 = vadd.f32 %v3504_v54, %v3503_v10 }
 0x1dc   :  { %v2560_v60 = vadd.f32 %v3502_v48, %v2463_v6  ;;  %v2466_v20 = vadd.f32 %v3441_v53, %v4569_v30 }
 0x1dd   :  { %2710 = vst.msk [vmem:[%s4672_s3 + $0x1c] sm:$0xf] %vm2702_vm1, %v3003_v57 }
 0x1de   :  { %vm2598_vm9 = vcmp.gt.f32.partialorder %v2560_v60, 0.0  ;;  %v2614_v61 = vmul.f32 0.2, %v2560_v60  ;;  %v2563_v7 = vadd.f32 %v3505_v13, %v2466_v20  ;;  %v3442_v62 = vpop.f32.mrb[116].mxu0 }
 0x1df   :  { %v3506_v35 = vpop.f32.mrb[116].mxu1  ;;  %v3443_v21 = vpop.f32.mrb[117].mxu0 }
 0x1e0   :  { %v2630_v37 = vsel %vm2598_vm9, %v2560_v60, %v2614_v61  ;;  %vm2599_vm10 = vcmp.gt.f32.partialorder %v2563_v7, 0.0  ;;  %v2615_v3 = vmul.f32 0.2, %v2563_v7  ;;  %v3444_v4 = vadd.f32 %v3443_v21, %v3442_v62  ;;  %v3507_v16 = vpop.f32.mrb[117].mxu1  ;;  %v3445_v26 = vpop.f32.mrb[118].mxu0 }
 0x1e1   :  { %v3004_v8 = vpack.c.bf16 %v2630_v37, %v2630_v37  ;;  %v3508_v9 = vadd.f32 %v3507_v16, %v3506_v35  ;;  %v3509_v30 = vpop.f32.mrb[118].mxu1  ;;  %v3446_v11 = vpop.f32.mrb[119].mxu0 }
 0x1e2   :  { %v2631_v31 = vsel %vm2599_vm10, %v2563_v7, %v2615_v3  ;;  %v2471_v32 = vadd.f32 %v3444_v4, %v4572_v27  ;;  %v3447_v15 = vadd.f32 %v3446_v11, %v3445_v26  ;;  %v3510_v40 = vpop.f32.mrb[119].mxu1 }
 0x1e3   :  { %2711 = vst.msk [vmem:[%s4672_s3 + $0x20] sm:$0xf] %vm2702_vm1, %v3004_v8  ;;  %v3005_v17 = vpack.c.bf16 %v2631_v31, %v2631_v31  ;;  %v3511_v18 = vadd.f32 %v3510_v40, %v3509_v30 }
 0x1e4   :  { %v2568_v39 = vadd.f32 %v3508_v9, %v2471_v32  ;;  %v2474_v22 = vadd.f32 %v3447_v15, %v4575_v49 }
 0x1e5   :  { %2712 = vst.msk [vmem:[%s4672_s3 + $0x24] sm:$0xf] %vm2702_vm1, %v3005_v17 }
 0x1e6   :  { %vm2600_vm11 = vcmp.gt.f32.partialorder %v2568_v39, 0.0  ;;  %v2616_v45 = vmul.f32 0.2, %v2568_v39  ;;  %v2571_v27 = vadd.f32 %v3511_v18, %v2474_v22  ;;  %v3448_v63 = vpop.f32.mrb[120].mxu0 }
 0x1e7   :  { %v3512_v23 = vpop.f32.mrb[120].mxu1  ;;  %v3449_v24 = vpop.f32.mrb[121].mxu0 }
 0x1e8   :  { %v2632_v55 = vsel %vm2600_vm11, %v2568_v39, %v2616_v45  ;;  %vm2601_vm12 = vcmp.gt.f32.partialorder %v2571_v27, 0.0  ;;  %v2617_v41 = vmul.f32 0.2, %v2571_v27  ;;  %v3450_v52 = vadd.f32 %v3449_v24, %v3448_v63  ;;  %v3513_v28 = vpop.f32.mrb[121].mxu1  ;;  %v3451_v29 = vpop.f32.mrb[122].mxu0 }
 0x1e9   :  { %v3006_v36 = vpack.c.bf16 %v2632_v55, %v2632_v55  ;;  %v3514_v50 = vadd.f32 %v3513_v28, %v3512_v23  ;;  %v3515_v49 = vpop.f32.mrb[122].mxu1  ;;  %v3452_v33 = vpop.f32.mrb[123].mxu0 }
 0x1ea   :  { %v2633_v59 = vsel %vm2601_vm12, %v2571_v27, %v2617_v41  ;;  %v2479_v34 = vadd.f32 %v3450_v52, %v4578_v46  ;;  %v3453_v38 = vadd.f32 %v3452_v33, %v3451_v29  ;;  %v3516_v51 = vpop.f32.mrb[123].mxu1 }
 0x1eb   :  { %2713 = vst.msk [vmem:[%s4672_s3 + $0x28] sm:$0xf] %vm2702_vm1, %v3006_v36  ;;  %v3007_v58 = vpack.c.bf16 %v2633_v59, %v2633_v59  ;;  %v3517_v42 = vadd.f32 %v3516_v51, %v3515_v49 }
 0x1ec   :  { %v2576_v19 = vadd.f32 %v3514_v50, %v2479_v34  ;;  %v2482_v0 = vadd.f32 %v3453_v38, %v4581_v5 }
 0x1ed   :  { %2714 = vst.msk [vmem:[%s4672_s3 + $0x2c] sm:$0xf] %vm2702_vm1, %v3007_v58 }
 0x1ee   :  { %vm2602_vm13 = vcmp.gt.f32.partialorder %v2576_v19, 0.0  ;;  %v2618_v43 = vmul.f32 0.2, %v2576_v19  ;;  %v2579_v46 = vadd.f32 %v3517_v42, %v2482_v0  ;;  %v3454_v44 = vpop.f32.mrb[124].mxu0 }
 0x1ef   :  { %v3518_v1 = vpop.f32.mrb[124].mxu1  ;;  %v3455_v12 = vpop.f32.mrb[125].mxu0 }
 0x1f0   :  { %v2634_v47 = vsel %vm2602_vm13, %v2576_v19, %v2618_v43  ;;  %vm2603_vm14 = vcmp.gt.f32.partialorder %v2579_v46, 0.0  ;;  %v2619_v48 = vmul.f32 0.2, %v2579_v46  ;;  %v3456_v10 = vadd.f32 %v3455_v12, %v3454_v44  ;;  %v3519_v14 = vpop.f32.mrb[125].mxu1  ;;  %v3457_v56 = vpop.f32.mrb[126].mxu0 }
 0x1f1   :  { %v3008_v6 = vpack.c.bf16 %v2634_v47, %v2634_v47  ;;  %v3520_v53 = vadd.f32 %v3519_v14, %v3518_v1  ;;  %v3521_v5 = vpop.f32.mrb[126].mxu1  ;;  %v3458_v54 = vpop.f32.mrb[127].mxu0 }
 0x1f2   :  { %v2635_v57 = vsel %vm2603_vm14, %v2579_v46, %v2619_v48  ;;  %v2487_v13 = vadd.f32 %v3456_v10, %v4584_v2  ;;  %v3459_v60 = vadd.f32 %v3458_v54, %v3457_v56  ;;  %v3522_v20 = vpop.f32.mrb[127].mxu1 }
 0x1f3   :  { %2715 = vst.msk [vmem:[%s4672_s3 + $0x30] sm:$0xf] %vm2702_vm1, %v3008_v6  ;;  %v3009_v61 = vpack.c.bf16 %v2635_v57, %v2635_v57  ;;  %v3523_v7 = vadd.f32 %v3522_v20, %v3521_v5 }
 0x1f4   :  { %v2584_v62 = vadd.f32 %v3520_v53, %v2487_v13  ;;  %v2490_v35 = vadd.f32 %v3459_v60, %v4587_v25 }
 0x1f5   :  { %2716 = vst.msk [vmem:[%s4672_s3 + $0x34] sm:$0xf] %vm2702_vm1, %v3009_v61 }
 0x1f6   :  { %vm2604_vm15 = vcmp.gt.f32.partialorder %v2584_v62, 0.0  ;;  %v2620_v21 = vmul.f32 0.2, %v2584_v62  ;;  %v2587_v2 = vadd.f32 %v3523_v7, %v2490_v35 }
 0x1f8   :  { %v2636_v37 = vsel %vm2604_vm15, %v2584_v62, %v2620_v21  ;;  %vm2605_vm0 = vcmp.gt.f32.partialorder %v2587_v2, 0.0  ;;  %v2621_v3 = vmul.f32 0.2, %v2587_v2 }
 0x1f9   :  { %v3010_v4 = vpack.c.bf16 %v2636_v37, %v2636_v37 }
 0x1fa   :  { %v2637_v16 = vsel %vm2605_vm0, %v2587_v2, %v2621_v3 }
 0x1fb   :  { %2717 = vst.msk [vmem:[%s4672_s3 + $0x38] sm:$0xf] %vm2702_vm1, %v3010_v4  ;;  %v3011_v26 = vpack.c.bf16 %v2637_v16, %v2637_v16 }
 0x1fd   :  { %2718 = vst.msk [vmem:[%s4672_s3 + $0x3c] sm:$0xf] %vm2702_vm1, %v3011_v26 }

// kernel: voxel_processing.21
= control target key start
LH: loop header
LB: loop body
LE: loop exit
PB: predicated region body
PF: predicated region fallthrough
CT: control target
= control target key end

     0   :  { %vm798_vm0 = vcmask 785408   ;;  %vm1323_vm2 = vcmask 257024   ;;  %s2372_s1 = inlined_call_operand.vmem [shape: bf16[864,32], index: 1, kind: input, shape index: {}]   ;;  %s2373_s0 = inlined_call_operand.vmem [shape: bf16[128,864], index: 0, kind: input, shape index: {}]   ;;  %s2374_s2 = inlined_call_operand.vmem [shape: f32[1,32], index: 2, kind: input, shape index: {}]   ;;  %s2375_s3 = inlined_call_operand.vmem [shape: bf16[128,32], index: 3, kind: output, shape index: {}]  }
   0x1   :  { %v1729_v0 = vld [vmem:[%s2372_s1 + $0x40] sm:$0xff]   ;;  %v1733_v4 = vld [vmem:[%s2372_s1 + $0x48] sm:$0xff]   ;;  %v1737_v8 = vld [vmem:[%s2372_s1 + $0x50] sm:$0xff]  }
   0x2   :  { %v1730_v1 = vld [vmem:[%s2372_s1] sm:$0xff]   ;;  %1495 = vmatprep.subr.bf16.mxu0 %v1729_v0  ;;  %v1734_v5 = vld [vmem:[%s2372_s1 + $0x8] sm:$0xff]   ;;  %v1738_v9 = vld [vmem:[%s2372_s1 + $0x10] sm:$0xff]  }
   0x3   :  { %v1731_v2 = vld [vmem:[%s2372_s1 + $0xc0] sm:$0xff]   ;;  %1496 = vmatpush3.bf16.msra.mxu0 %v1730_v1  ;;  %v1735_v6 = vld [vmem:[%s2372_s1 + $0xc8] sm:$0xff]   ;;  %v1739_v10 = vld [vmem:[%s2372_s1 + $0xd0] sm:$0xff]  }
   0x4   :  { %v1732_v3 = vld [vmem:[%s2372_s1 + $0x80] sm:$0xff]   ;;  %1559 = vmatprep.subr.bf16.mxu1 %v1731_v2  ;;  %1497 = vmatprep.subr.bf16.mxu0 %v1733_v4  ;;  %v1736_v7 = vld [vmem:[%s2372_s1 + $0x88] sm:$0xff]   ;;  %v1740_v11 = vld [vmem:[%s2372_s1 + $0x90] sm:$0xff]  }
   0x5   :  { %1560 = vmatpush3.bf16.msra.mxu1 %v1732_v3  ;;  %v1741_v12 = vld [vmem:[%s2372_s1 + $0x58] sm:$0xff]   ;;  %v1745_v16 = vld [vmem:[%s2372_s1 + $0x60] sm:$0xff]   ;;  %v1749_v20 = vld [vmem:[%s2372_s1 + $0x68] sm:$0xff]  }
   0x6   :  { %1561 = vmatprep.subr.bf16.mxu1 %v1735_v6  ;;  %v1742_v13 = vld [vmem:[%s2372_s1 + $0x18] sm:$0xff]   ;;  %v1746_v17 = vld [vmem:[%s2372_s1 + $0x20] sm:$0xff]   ;;  %v1750_v21 = vld [vmem:[%s2372_s1 + $0x28] sm:$0xff]  }
   0x7   :  { %1498 = vmatpush3.bf16.msra.mxu0 %v1734_v5  ;;  %v1743_v14 = vld [vmem:[%s2372_s1 + $0xd8] sm:$0xff]   ;;  %v1747_v18 = vld [vmem:[%s2372_s1 + $0xe0] sm:$0xff]   ;;  %v1751_v22 = vld [vmem:[%s2372_s1 + $0xe8] sm:$0xff]  }
   0x8   :  { %1499 = vmatprep.subr.bf16.mxu0 %v1737_v8  ;;  %v1744_v15 = vld [vmem:[%s2372_s1 + $0x98] sm:$0xff]   ;;  %v1748_v19 = vld [vmem:[%s2372_s1 + $0xa0] sm:$0xff]   ;;  %v1752_v23 = vld [vmem:[%s2372_s1 + $0xa8] sm:$0xff]  }
   0x9   :  { %1562 = vmatpush3.bf16.msra.mxu1 %v1736_v7  ;;  %v1753_v24 = vld [vmem:[%s2372_s1 + $0x70] sm:$0xff]   ;;  %v1757_v28 = vld [vmem:[%s2372_s1 + $0x78] sm:$0xff]   ;;  %v1762_v32 = vld [vmem:[%s2373_s0 + $0x4] ss:$28 sps:$4 sm:$0xff]  }
   0xa   :  { %1563 = vmatprep.subr.bf16.mxu1 %v1739_v10  ;;  %v1754_v25 = vld [vmem:[%s2372_s1 + $0x30] sm:$0xff]   ;;  %v1758_v29 = vld [vmem:[%s2372_s1 + $0x38] sm:$0xff]   ;;  %855 = vmatprep.mubr.bf16.mxu0 %v1762_v32  ;;  %v1764_v34 = vld [vmem:[%s2372_s1 + $0x140] sm:$0xff]  }
   0xb   :  { %1500 = vmatpush3.bf16.msra.mxu0 %v1738_v9  ;;  %v1755_v26 = vld [vmem:[%s2372_s1 + $0xf0] sm:$0xff]   ;;  %v1759_v30 = vld [vmem:[%s2372_s1 + $0xf8] sm:$0xff]   ;;  %v1765_v35 = vld [vmem:[%s2373_s0 + $0x8] ss:$28 sps:$4 sm:$0xff]  }
   0xc   :  { %1501 = vmatprep.subr.bf16.mxu0 %v1741_v12  ;;  %v1756_v27 = vld [vmem:[%s2372_s1 + $0xb0] sm:$0xff]   ;;  %v1760_v31 = vld [vmem:[%s2373_s0] ss:$28 sps:$4 sm:$0xff]   ;;  %v1767_v36 = vld [vmem:[%s2373_s0 + $0xc] ss:$28 sps:$4 sm:$0xff]  }
   0xd   :  { %1564 = vmatpush3.bf16.msra.mxu1 %v1740_v11  ;;  %v1763_v33 = vld [vmem:[%s2372_s1 + $0xb8] sm:$0xff]   ;;  %v1768_v37 = vld [vmem:[%s2372_s1 + $0x100] sm:$0xff]   ;;  %952 = vmatprep.mubr.bf16.mxu1 %v1767_v36  ;;  %v1772_v40 = vld [vmem:[%s2372_s1 + $0x148] sm:$0xff]  }
   0xe   :  { %1565 = vmatprep.subr.bf16.mxu1 %v1743_v14  ;;  %v1769_v38 = vld [vmem:[%s2373_s0 + $0x3c] ss:$28 sps:$4 sm:$0xff]   ;;  %v1773_v41 = vld [vmem:[%s2373_s0 + $0x44] ss:$28 sps:$4 sm:$0xff]   ;;  %v1775_v42 = vld [vmem:[%s2372_s1 + $0x108] sm:$0xff]  }
   0xf   :  { %1502 = vmatpush3.bf16.msra.mxu0 %v1742_v13  ;;  %v1771_v39 = vld [vmem:[%s2373_s0 + $0x38] ss:$28 sps:$4 sm:$0xff]   ;;  %v1776_v43 = vld [vmem:[%s2373_s0 + $0x40] ss:$28 sps:$4 sm:$0xff]   ;;  %v1779_v48 = vld [vmem:[%s2373_s0 + $0x70] ss:$28 sps:$4 sm:$0xff]  }
  0x10   :  { %1503 = vmatprep.subr.bf16.mxu0 %v1745_v16  ;;  %v1777_v44 = vld [vmem:[%s2373_s0 + $0x74] ss:$28 sps:$4 sm:$0xff]   ;;  %v1781_v46 = vld [vmem:[%s2373_s0 + $0x7c] ss:$28 sps:$4 sm:$0xff]   ;;  %v1785_v49 = vld [vmem:[%s2373_s0 + $0xac] ss:$28 sps:$4 sm:$0xff]  }
  0x11   :  { %1566 = vmatpush3.bf16.msra.mxu1 %v1744_v15  ;;  %v1780_v45 = vld [vmem:[%s2372_s1 + $0x150] sm:$0xff]   ;;  %v1788_v50 = vld [vmem:[%s2372_s1 + $0x158] sm:$0xff]   ;;  %v1796_v54 = vld [vmem:[%s2372_s1 + $0x160] sm:$0xff]  }
  0x12   :  { %1567 = vmatprep.subr.bf16.mxu1 %v1747_v18  ;;  %v1783_v47 = vld [vmem:[%s2372_s1 + $0x110] sm:$0xff]   ;;  %v1791_v52 = vld [vmem:[%s2372_s1 + $0x118] sm:$0xff]   ;;  %v1787_v55 = vld [vmem:[%s2373_s0 + $0xa8] ss:$28 sps:$4 sm:$0xff]  }
  0x13   :  { %1504 = vmatpush3.bf16.msra.mxu0 %v1746_v17  ;;  %v1784_v51 = vld [vmem:[%s2373_s0 + $0x78] ss:$28 sps:$4 sm:$0xff]   ;;  %v1799_v56 = vld [vmem:[%s2372_s1 + $0x120] sm:$0xff]   ;;  %v1792_v59 = vld [vmem:[%s2373_s0 + $0xb0] ss:$28 sps:$4 sm:$0xff]  }
  0x14   :  { %1505 = vmatprep.subr.bf16.mxu0 %v1749_v20  ;;  %v1789_v53 = vld [vmem:[%s2373_s0 + $0xb4] ss:$28 sps:$4 sm:$0xff]   ;;  %v1793_v57 = vld [vmem:[%s2373_s0 + $0xe4] ss:$28 sps:$4 sm:$0xff]   ;;  %v1805_v60 = vld [vmem:[%s2372_s1 + $0x168] sm:$0xff]  }
  0x15   :  { %1568 = vmatpush3.bf16.msra.mxu1 %v1748_v19  ;;  %v1801_v58 = vld [vmem:[%s2372_s1 + $0x180] sm:$0xff]   ;;  %v1797_v61 = vld [vmem:[%s2373_s0 + $0xec] ss:$28 sps:$4 sm:$0xff]   ;;  %v1802_v1 = vld [vmem:[%s2373_s0 + $0x11c] ss:$28 sps:$4 sm:$0xff]  }
  0x16   :  { %1569 = vmatprep.subr.bf16.mxu1 %v1751_v22  ;;  %v1808_v62 = vld [vmem:[%s2372_s1 + $0x128] sm:$0xff]   ;;  %v1795_v63 = vld [vmem:[%s2373_s0 + $0xe0] ss:$28 sps:$4 sm:$0xff]   ;;  %v1814_v2 = vld [vmem:[%s2372_s1 + $0x170] sm:$0xff]  }
  0x17   :  { %1506 = vmatpush3.bf16.msra.mxu0 %v1750_v21  ;;  %v1812_v0 = vld [vmem:[%s2372_s1 + $0x188] sm:$0xff]   ;;  %v1806_v4 = vld [vmem:[%s2373_s0 + $0x124] ss:$28 sps:$4 sm:$0xff]   ;;  %v1817_v5 = vld [vmem:[%s2372_s1 + $0x130] sm:$0xff]  }
  0x18   :  { %1507 = vmatprep.subr.bf16.mxu0 %v1753_v24  ;;  %v1800_v3 = vld [vmem:[%s2373_s0 + $0xe8] ss:$28 sps:$4 sm:$0xff]   ;;  %v1819_v6 = vld [vmem:[%s2372_s1 + $0x190] sm:$0xff]   ;;  %v1823_v8 = vld [vmem:[%s2372_s1 + $0x178] sm:$0xff]  }
  0x19   :  { %1570 = vmatpush3.bf16.msra.mxu1 %v1752_v23  ;;  %v1804_v7 = vld [vmem:[%s2373_s0 + $0x118] ss:$28 sps:$4 sm:$0xff]   ;;  %v1809_v12 = vld [vmem:[%s2373_s0 + $0x120] ss:$28 sps:$4 sm:$0xff]   ;;  %v1833_v15 = vld [vmem:[%s2372_s1 + $0x1a8] sm:$0xff]  }
  0x1a   :  { %1571 = vmatprep.subr.bf16.mxu1 %v1755_v26  ;;  %v1824_v9 = vld [vmem:[%s2372_s1 + $0x198] sm:$0xff]   ;;  %v1810_v10 = vld [vmem:[%s2373_s0 + $0x154] ss:$28 sps:$4 sm:$0xff]   ;;  %v1829_v13 = vld [vmem:[%s2372_s1 + $0x1a0] sm:$0xff]  }
  0x1b   :  { %1508 = vmatpush3.bf16.msra.mxu0 %v1754_v25  ;;  %v1827_v11 = vld [vmem:[%s2372_s1 + $0x138] sm:$0xff]   ;;  %v1813_v16 = vld [vmem:[%s2373_s0 + $0x150] ss:$28 sps:$4 sm:$0xff]   ;;  %v1822_v20 = vld [vmem:[%s2373_s0 + $0x188] ss:$28 sps:$4 sm:$0xff]  }
  0x1c   :  { %1509 = vmatprep.subr.bf16.mxu0 %v1757_v28  ;;  %v1815_v14 = vld [vmem:[%s2373_s0 + $0x15c] ss:$28 sps:$4 sm:$0xff]   ;;  %v1820_v17 = vld [vmem:[%s2373_s0 + $0x18c] ss:$28 sps:$4 sm:$0xff]   ;;  %v1825_v19 = vld [vmem:[%s2373_s0 + $0x194] ss:$28 sps:$4 sm:$0xff]  }
  0x1d   :  { %1572 = vmatpush3.bf16.msra.mxu1 %v1756_v27  ;;  %v1818_v18 = vld [vmem:[%s2373_s0 + $0x158] ss:$28 sps:$4 sm:$0xff]   ;;  %v1828_v22 = vld [vmem:[%s2373_s0 + $0x190] ss:$28 sps:$4 sm:$0xff]   ;;  %v1842_v27 = vld [vmem:[%s2373_s0 + $0x88] ss:$28 sps:$4 sm:$0xff]  }
  0x1e   :  { %1573 = vmatprep.subr.bf16.mxu1 %v1759_v30  ;;  %v1832_v21 = vld [vmem:[%s2373_s0 + $0x14] ss:$28 sps:$4 sm:$0xff]   ;;  %v1836_v25 = vld [vmem:[%s2373_s0 + $0x4c] ss:$28 sps:$4 sm:$0xff]   ;;  %v1843_v30 = vld [vmem:[%s2373_s0 + $0xc0] ss:$28 sps:$4 sm:$0xff]  }
  0x1f   :  { %1510 = vmatpush3.bf16.msra.mxu0 %v1758_v29  ;;  %v1834_v23 = vld [vmem:[%s2373_s0 + $0x18] ss:$28 sps:$4 sm:$0xff]   ;;  %v1830_v24 = vld [vmem:[%s2373_s0 + $0x10] ss:$28 sps:$4 sm:$0xff]   ;;  %v1838_v28 = vld [vmem:[%s2373_s0 + $0x48] ss:$28 sps:$4 sm:$0xff]  }
  0x20   :  { %1623 = vmatprep.subr.bf16.mxu0 %v1764_v34  ;;  %v1835_v26 = vld [vmem:[%s2373_s0 + $0x50] ss:$28 sps:$4 sm:$0xff]   ;;  %v1839_v29 = vld [vmem:[%s2373_s0 + $0x84] ss:$28 sps:$4 sm:$0xff]   ;;  %v1846_v36 = vld [vmem:[%s2373_s0 + $0xb8] ss:$28 sps:$4 sm:$0xff]  }
  0x21   :  { %1574 = vmatpush3.bf16.msra.mxu1 %v1763_v33  ;;  %v1841_v32 = vld [vmem:[%s2373_s0 + $0x80] ss:$28 sps:$4 sm:$0xff]   ;;  %v1851_v34 = vld [vmem:[%s2373_s0 + $0x130] ss:$28 sps:$4 sm:$0xff]  }
  0x22   :  { %856 = vmatmul.mubr.bf16.vlgmr.msra.gmra.mrb[0].mxu0 %v1760_v31  ;;  %1701 = vmatprep.subr.bf16.mxu1 %v1801_v58  ;;  %v1850_v31 = vld [vmem:[%s2373_s0 + $0xf8] ss:$28 sps:$4 sm:$0xff]  }
  0x23   :  { %1624 = vmatpush3.bf16.msra.mxu0 %v1768_v37  ;;  %863 = vmatprep.mubr.bf16.mxu0 %v1769_v38  ;;  %v1844_v33 = vld [vmem:[%s2373_s0 + $0xbc] ss:$28 sps:$4 sm:$0xff]   ;;  %v1847_v37 = vld [vmem:[%s2373_s0 + $0xf4] ss:$28 sps:$4 sm:$0xff]  }
  0x24   :  { %953 = vmatmul.mubr.bf16.vlgmr.msra.gmra.mrb[0].mxu1 %v1765_v35  ;;  %1625 = vmatprep.subr.bf16.mxu0 %v1772_v40  ;;  %v1858_v35 = vld [vmem:[%s2373_s0 + $0x168] ss:$28 sps:$4 sm:$0xff]   ;;  %v1859_v38 = vld [vmem:[%s2373_s0 + $0x1a0] ss:$28 sps:$4 sm:$0xff]  }
  0x25   :  { %960 = vmatprep.mubr.bf16.mxu1 %v1773_v41  ;;  %1702 = vmatpush3.bf16.msra.mxu1 %v1801_v58  ;;  %v1852_v40 = vld [vmem:[%s2373_s0 + $0x12c] ss:$28 sps:$4 sm:$0xff]  }
  0x26   :  { %1703 = vmatprep.subr.bf16.mxu1 %v1812_v0  ;;  %v1854_v41 = vld [vmem:[%s2373_s0 + $0x128] ss:$28 sps:$4 sm:$0xff]  }
  0x27   :  { %1626 = vmatpush3.bf16.msra.mxu0 %v1775_v42  ;;  %v1855_v42 = vld [vmem:[%s2373_s0 + $0x164] ss:$28 sps:$4 sm:$0xff]  }
  0x28   :  { %1627 = vmatprep.subr.bf16.mxu0 %v1780_v45  ;;  %v1862_v45 = vld [vmem:[%s2373_s0 + $0x198] ss:$28 sps:$4 sm:$0xff]  }
  0x29   :  { %1704 = vmatpush3.bf16.msra.mxu1 %v1812_v0 }
  0x2a   :  { %864 = vmatmul.mubr.bf16.gmra.mrb[4].mxu0 %v1771_v39  ;;  %1705 = vmatprep.subr.bf16.mxu1 %v1819_v6  ;;  %v1849_v39 = vld [vmem:[%s2373_s0 + $0xf0] ss:$28 sps:$4 sm:$0xff]  }
  0x2b   :  { %871 = vmatprep.mubr.bf16.mxu0 %v1777_v44  ;;  %1628 = vmatpush3.bf16.msra.mxu0 %v1783_v47  ;;  %v1860_v44 = vld [vmem:[%s2373_s0 + $0x19c] ss:$28 sps:$4 sm:$0xff]   ;;  %v2224_v47 = vld [vmem:[%s2374_s2] ss:$0 sm:$0xff] }
  0x2c   :  { %961 = vmatmul.mubr.bf16.gmra.mrb[4].mxu1 %v1776_v43  ;;  %1629 = vmatprep.subr.bf16.mxu0 %v1788_v50  ;;  %v1857_v43 = vld [vmem:[%s2373_s0 + $0x160] ss:$28 sps:$4 sm:$0xff]  }
  0x2d   :  { %968 = vmatprep.mubr.bf16.mxu1 %v1781_v46  ;;  %1706 = vmatpush3.bf16.msra.mxu1 %v1819_v6 }
  0x2e   :  { %1707 = vmatprep.subr.bf16.mxu1 %v1824_v9 }
  0x2f   :  { %1630 = vmatpush3.bf16.msra.mxu0 %v1791_v52 }
  0x30   :  { %1631 = vmatprep.subr.bf16.mxu0 %v1796_v54 }
  0x31   :  { %1708 = vmatpush3.bf16.msra.mxu1 %v1824_v9 }
  0x32   :  { %872 = vmatmul.mubr.bf16.gmra.mrb[8].mxu0 %v1779_v48  ;;  %1709 = vmatprep.subr.bf16.mxu1 %v1829_v13 }
  0x33   :  { %879 = vmatprep.mubr.bf16.mxu0 %v1785_v49  ;;  %1632 = vmatpush3.bf16.msra.mxu0 %v1799_v56 }
  0x34   :  { %969 = vmatmul.mubr.bf16.gmra.mrb[8].mxu1 %v1784_v51  ;;  %1633 = vmatprep.subr.bf16.mxu0 %v1805_v60 }
  0x35   :  { %976 = vmatprep.mubr.bf16.mxu1 %v1789_v53  ;;  %1710 = vmatpush3.bf16.msra.mxu1 %v1829_v13 }
  0x36   :  { %1711 = vmatprep.subr.bf16.mxu1 %v1833_v15 }
  0x37   :  { %1634 = vmatpush3.bf16.msra.mxu0 %v1808_v62 }
  0x38   :  { %1635 = vmatprep.subr.bf16.mxu0 %v1814_v2 }
  0x39   :  { %1712 = vmatpush3.bf16.msra.mxu1 %v1833_v15 }
  0x3a   :  { %880 = vmatmul.mubr.bf16.gmra.mrb[12].mxu0 %v1787_v55 }
  0x3b   :  { %887 = vmatprep.mubr.bf16.mxu0 %v1793_v57  ;;  %1636 = vmatpush3.bf16.msra.mxu0 %v1817_v5 }
  0x3c   :  { %977 = vmatmul.mubr.bf16.gmra.mrb[12].mxu1 %v1792_v59  ;;  %1637 = vmatprep.subr.bf16.mxu0 %v1823_v8 }
  0x3d   :  { %984 = vmatprep.mubr.bf16.mxu1 %v1797_v61 }
  0x3f   :  { %1638 = vmatpush3.bf16.msra.mxu0 %v1827_v11 }
  0x42   :  { %888 = vmatmul.mubr.bf16.gmra.mrb[16].mxu0 %v1795_v63 }
  0x43   :  { %895 = vmatprep.mubr.bf16.mxu0 %v1802_v1 }
  0x44   :  { %985 = vmatmul.mubr.bf16.gmra.mrb[16].mxu1 %v1800_v3 }
  0x45   :  { %992 = vmatprep.mubr.bf16.mxu1 %v1806_v4 }
  0x4a   :  { %896 = vmatmul.mubr.bf16.gmra.mrb[20].mxu0 %v1804_v7 }
  0x4b   :  { %903 = vmatprep.mubr.bf16.mxu0 %v1810_v10 }
  0x4c   :  { %993 = vmatmul.mubr.bf16.gmra.mrb[20].mxu1 %v1809_v12 }
  0x4d   :  { %1000 = vmatprep.mubr.bf16.mxu1 %v1815_v14 }
  0x52   :  { %904 = vmatmul.mubr.bf16.gmra.mrb[24].mxu0 %v1813_v16 }
  0x53   :  { %911 = vmatprep.mubr.bf16.mxu0 %v1820_v17 }
  0x54   :  { %1001 = vmatmul.mubr.bf16.gmra.mrb[24].mxu1 %v1818_v18 }
  0x55   :  { %1008 = vmatprep.mubr.bf16.mxu1 %v1825_v19 }
  0x5a   :  { %912 = vmatmul.mubr.bf16.gmra.mrb[28].mxu0 %v1822_v20 }
  0x5b   :  { %1049 = vmatprep.mubr.bf16.mxu0 %v1832_v21 }
  0x5c   :  { %1009 = vmatmul.mubr.bf16.gmra.mrb[28].mxu1 %v1828_v22 }
  0x5d   :  { %1713 = vmatprep.mubr.msk.bf16.mxu1 %vm798_vm0, %v1834_v23 }
  0x62   :  { %1050 = vmatmul.mubr.bf16.vlgmr.msra.gmra.mrb[32].mxu0 %v1830_v24 }
  0x63   :  { %1057 = vmatprep.mubr.bf16.mxu0 %v1836_v25 }
  0x64   :  { %1714 = vmatmul.mubr.msk.bf16.vlgmr.msra.gmra.mrb[32].mxu1 %vm798_vm0, %v1835_v26 }
  0x65   :  { %1717 = vmatprep.mubr.msk.bf16.mxu1 %vm798_vm0, %v1842_v27 }
  0x6a   :  { %1058 = vmatmul.mubr.bf16.gmra.mrb[36].mxu0 %v1838_v28 }
  0x6b   :  { %1065 = vmatprep.mubr.bf16.mxu0 %v1839_v29 }
  0x6c   :  { %1718 = vmatmul.mubr.msk.bf16.gmra.mrb[36].mxu1 %vm798_vm0, %v1843_v30 }
  0x6d   :  { %1721 = vmatprep.mubr.msk.bf16.mxu1 %vm798_vm0, %v1850_v31 }
  0x72   :  { %1066 = vmatmul.mubr.bf16.gmra.mrb[40].mxu0 %v1841_v32 }
  0x73   :  { %1073 = vmatprep.mubr.bf16.mxu0 %v1844_v33 }
  0x74   :  { %1722 = vmatmul.mubr.msk.bf16.gmra.mrb[40].mxu1 %vm798_vm0, %v1851_v34 }
  0x75   :  { %1725 = vmatprep.mubr.msk.bf16.mxu1 %vm798_vm0, %v1858_v35 }
  0x7a   :  { %1074 = vmatmul.mubr.bf16.gmra.mrb[44].mxu0 %v1846_v36 }
  0x7b   :  { %1081 = vmatprep.mubr.bf16.mxu0 %v1847_v37 }
  0x7c   :  { %1726 = vmatmul.mubr.msk.bf16.gmra.mrb[44].mxu1 %vm798_vm0, %v1859_v38 }
  0x82   :  { %1082 = vmatmul.mubr.bf16.gmra.mrb[48].mxu0 %v1849_v39 }
  0x83   :  { %1089 = vmatprep.mubr.bf16.mxu0 %v1852_v40 }
  0x8a   :  { %1090 = vmatmul.mubr.bf16.gmra.mrb[52].mxu0 %v1854_v41 }
  0x8b   :  { %1097 = vmatprep.mubr.bf16.mxu0 %v1855_v42 }
  0x92   :  { %1098 = vmatmul.mubr.bf16.gmra.mrb[56].mxu0 %v1857_v43 }
  0x93   :  { %1105 = vmatprep.mubr.bf16.mxu0 %v1860_v44 }
  0x9a   :  { %1106 = vmatmul.mubr.bf16.gmra.mrb[60].mxu0 %v1862_v45 }
  0xf5   :  { %v1511_v46 = vpop.f32.mrb[0].mxu0 }
  0xf6   :  { %v1512_v48 = vpop.f32.mrb[1].mxu0 }
  0xf7   :  { %v1513_v49 = vadd.f32 %v1512_v48, %v1511_v46  ;;  %v1514_v50 = vpop.f32.mrb[2].mxu0  ;;  %v1575_v51 = vpop.f32.mrb[0].mxu1 }
  0xf8   :  { %v1515_v52 = vpop.f32.mrb[3].mxu0  ;;  %v1576_v55 = vpop.f32.mrb[1].mxu1 }
  0xf9   :  { %v858_v53 = vadd.f32 %v1513_v49, %v2224_v47  ;;  %v1516_v54 = vadd.f32 %v1515_v52, %v1514_v50  ;;  %v1577_v56 = vadd.f32 %v1576_v55, %v1575_v51  ;;  %v1578_v57 = vpop.f32.mrb[2].mxu1 }
  0xfa   :  { %v1579_v59 = vpop.f32.mrb[3].mxu1 }
  0xfb   :  { %v861_v58 = vadd.f32 %v1516_v54, %v2224_v47  ;;  %v2228_v60 = vadd.f32 %v1577_v56, %v858_v53  ;;  %v1580_v61 = vadd.f32 %v1579_v59, %v1578_v57 }
  0xfd   :  { %v1517_v62 = vpop.f32.mrb[4].mxu0  ;;  %v2230_v63 = vadd.f32 %v1580_v61, %v861_v58 }
  0xfe   :  { %v1518_v0 = vpop.f32.mrb[5].mxu0 }
  0xff   :  { %v1519_v1 = vadd.f32 %v1518_v0, %v1517_v62  ;;  %v1520_v2 = vpop.f32.mrb[6].mxu0  ;;  %v1581_v3 = vpop.f32.mrb[4].mxu1 }
 0x100   :  { %v1521_v4 = vpop.f32.mrb[7].mxu0  ;;  %v1582_v7 = vpop.f32.mrb[5].mxu1 }
 0x101   :  { %v866_v5 = vadd.f32 %v1519_v1, %v2224_v47  ;;  %v1522_v6 = vadd.f32 %v1521_v4, %v1520_v2  ;;  %v1583_v8 = vadd.f32 %v1582_v7, %v1581_v3  ;;  %v1584_v9 = vpop.f32.mrb[6].mxu1 }
 0x102   :  { %v1585_v11 = vpop.f32.mrb[7].mxu1 }
 0x103   :  { %v869_v10 = vadd.f32 %v1522_v6, %v2224_v47  ;;  %v2234_v12 = vadd.f32 %v1583_v8, %v866_v5  ;;  %v1586_v13 = vadd.f32 %v1585_v11, %v1584_v9 }
 0x105   :  { %v1523_v14 = vpop.f32.mrb[8].mxu0  ;;  %v2236_v15 = vadd.f32 %v1586_v13, %v869_v10 }
 0x106   :  { %v1524_v16 = vpop.f32.mrb[9].mxu0 }
 0x107   :  { %v1525_v17 = vadd.f32 %v1524_v16, %v1523_v14  ;;  %v1526_v18 = vpop.f32.mrb[10].mxu0  ;;  %v1587_v19 = vpop.f32.mrb[8].mxu1 }
 0x108   :  { %v1527_v20 = vpop.f32.mrb[11].mxu0  ;;  %v1588_v23 = vpop.f32.mrb[9].mxu1 }
 0x109   :  { %v874_v21 = vadd.f32 %v1525_v17, %v2224_v47  ;;  %v1528_v22 = vadd.f32 %v1527_v20, %v1526_v18  ;;  %v1589_v24 = vadd.f32 %v1588_v23, %v1587_v19  ;;  %v1590_v25 = vpop.f32.mrb[10].mxu1 }
 0x10a   :  { %v1591_v27 = vpop.f32.mrb[11].mxu1 }
 0x10b   :  { %v877_v26 = vadd.f32 %v1528_v22, %v2224_v47  ;;  %v2240_v28 = vadd.f32 %v1589_v24, %v874_v21  ;;  %v1592_v29 = vadd.f32 %v1591_v27, %v1590_v25 }
 0x10d   :  { %v1529_v30 = vpop.f32.mrb[12].mxu0  ;;  %v2242_v31 = vadd.f32 %v1592_v29, %v877_v26 }
 0x10e   :  { %v1530_v32 = vpop.f32.mrb[13].mxu0 }
 0x10f   :  { %v1531_v33 = vadd.f32 %v1530_v32, %v1529_v30  ;;  %v1532_v34 = vpop.f32.mrb[14].mxu0  ;;  %v1593_v35 = vpop.f32.mrb[12].mxu1 }
 0x110   :  { %v1533_v36 = vpop.f32.mrb[15].mxu0  ;;  %v1594_v39 = vpop.f32.mrb[13].mxu1 }
 0x111   :  { %v882_v37 = vadd.f32 %v1531_v33, %v2224_v47  ;;  %v1534_v38 = vadd.f32 %v1533_v36, %v1532_v34  ;;  %v1595_v40 = vadd.f32 %v1594_v39, %v1593_v35  ;;  %v1596_v41 = vpop.f32.mrb[14].mxu1 }
 0x112   :  { %v1597_v43 = vpop.f32.mrb[15].mxu1 }
 0x113   :  { %v885_v42 = vadd.f32 %v1534_v38, %v2224_v47  ;;  %v2246_v44 = vadd.f32 %v1595_v40, %v882_v37  ;;  %v1598_v45 = vadd.f32 %v1597_v43, %v1596_v41 }
 0x115   :  { %v1535_v46 = vpop.f32.mrb[16].mxu0  ;;  %v2248_v48 = vadd.f32 %v1598_v45, %v885_v42 }
 0x116   :  { %v1536_v49 = vpop.f32.mrb[17].mxu0 }
 0x117   :  { %v1537_v50 = vadd.f32 %v1536_v49, %v1535_v46  ;;  %v1538_v51 = vpop.f32.mrb[18].mxu0  ;;  %v1599_v52 = vpop.f32.mrb[16].mxu1 }
 0x118   :  { %v1539_v53 = vpop.f32.mrb[19].mxu0  ;;  %v1600_v56 = vpop.f32.mrb[17].mxu1 }
 0x119   :  { %v890_v54 = vadd.f32 %v1537_v50, %v2224_v47  ;;  %v1540_v55 = vadd.f32 %v1539_v53, %v1538_v51  ;;  %v1601_v57 = vadd.f32 %v1600_v56, %v1599_v52  ;;  %v1602_v58 = vpop.f32.mrb[18].mxu1 }
 0x11a   :  { %v1603_v61 = vpop.f32.mrb[19].mxu1 }
 0x11b   :  { %v893_v59 = vadd.f32 %v1540_v55, %v2224_v47  ;;  %v2252_v62 = vadd.f32 %v1601_v57, %v890_v54  ;;  %v1604_v0 = vadd.f32 %v1603_v61, %v1602_v58 }
 0x11d   :  { %v1541_v1 = vpop.f32.mrb[20].mxu0  ;;  %v2254_v2 = vadd.f32 %v1604_v0, %v893_v59 }
 0x11e   :  { %v1542_v3 = vpop.f32.mrb[21].mxu0 }
 0x11f   :  { %v1543_v4 = vadd.f32 %v1542_v3, %v1541_v1  ;;  %v1544_v5 = vpop.f32.mrb[22].mxu0  ;;  %v1605_v6 = vpop.f32.mrb[20].mxu1 }
 0x120   :  { %v1545_v7 = vpop.f32.mrb[23].mxu0  ;;  %v1606_v10 = vpop.f32.mrb[21].mxu1 }
 0x121   :  { %v898_v8 = vadd.f32 %v1543_v4, %v2224_v47  ;;  %v1546_v9 = vadd.f32 %v1545_v7, %v1544_v5  ;;  %v1607_v11 = vadd.f32 %v1606_v10, %v1605_v6  ;;  %v1608_v13 = vpop.f32.mrb[22].mxu1 }
 0x122   :  { %v1609_v16 = vpop.f32.mrb[23].mxu1 }
 0x123   :  { %v901_v14 = vadd.f32 %v1546_v9, %v2224_v47  ;;  %v2258_v17 = vadd.f32 %v1607_v11, %v898_v8  ;;  %v1610_v18 = vadd.f32 %v1609_v16, %v1608_v13 }
 0x125   :  { %v1547_v19 = vpop.f32.mrb[24].mxu0  ;;  %v2260_v20 = vadd.f32 %v1610_v18, %v901_v14 }
 0x126   :  { %v1548_v21 = vpop.f32.mrb[25].mxu0 }
 0x127   :  { %v1549_v22 = vadd.f32 %v1548_v21, %v1547_v19  ;;  %v1550_v23 = vpop.f32.mrb[26].mxu0  ;;  %v1611_v24 = vpop.f32.mrb[24].mxu1 }
 0x128   :  { %v1551_v25 = vpop.f32.mrb[27].mxu0  ;;  %v1612_v29 = vpop.f32.mrb[25].mxu1 }
 0x129   :  { %v906_v26 = vadd.f32 %v1549_v22, %v2224_v47  ;;  %v1552_v27 = vadd.f32 %v1551_v25, %v1550_v23  ;;  %v1613_v30 = vadd.f32 %v1612_v29, %v1611_v24  ;;  %v1614_v32 = vpop.f32.mrb[26].mxu1 }
 0x12a   :  { %v1615_v34 = vpop.f32.mrb[27].mxu1 }
 0x12b   :  { %v909_v33 = vadd.f32 %v1552_v27, %v2224_v47  ;;  %v2264_v35 = vadd.f32 %v1613_v30, %v906_v26  ;;  %v1616_v36 = vadd.f32 %v1615_v34, %v1614_v32 }
 0x12d   :  { %v1553_v37 = vpop.f32.mrb[28].mxu0  ;;  %v2266_v38 = vadd.f32 %v1616_v36, %v909_v33 }
 0x12e   :  { %v1554_v39 = vpop.f32.mrb[29].mxu0 }
 0x12f   :  { %v1555_v40 = vadd.f32 %v1554_v39, %v1553_v37  ;;  %v1556_v41 = vpop.f32.mrb[30].mxu0  ;;  %v1617_v42 = vpop.f32.mrb[28].mxu1 }
 0x130   :  { %v1557_v43 = vpop.f32.mrb[31].mxu0  ;;  %v1618_v49 = vpop.f32.mrb[29].mxu1 }
 0x131   :  { %v914_v45 = vadd.f32 %v1555_v40, %v2224_v47  ;;  %v1558_v46 = vadd.f32 %v1557_v43, %v1556_v41  ;;  %v1619_v50 = vadd.f32 %v1618_v49, %v1617_v42  ;;  %v1620_v51 = vpop.f32.mrb[30].mxu1 }
 0x132   :  { %v1621_v53 = vpop.f32.mrb[31].mxu1 }
 0x133   :  { %v917_v52 = vadd.f32 %v1558_v46, %v2224_v47  ;;  %v2270_v54 = vadd.f32 %v1619_v50, %v914_v45  ;;  %v1622_v55 = vadd.f32 %v1621_v53, %v1620_v51 }
 0x135   :  { %v1639_v56 = vpop.f32.mrb[32].mxu0  ;;  %v2272_v57 = vadd.f32 %v1622_v55, %v917_v52 }
 0x136   :  { %v1640_v58 = vpop.f32.mrb[33].mxu0 }
 0x137   :  { %v1641_v59 = vadd.f32 %v1640_v58, %v1639_v56  ;;  %v1642_v61 = vpop.f32.mrb[34].mxu0  ;;  %v1715_v1 = vpop.f32.mrb[32].mxu1 }
 0x138   :  { %v1643_v0 = vpop.f32.mrb[35].mxu0  ;;  %v1148_v5 = vpop.f32.mrb[33].mxu1 }
 0x139   :  { %v1644_v3 = vadd.f32 %v1643_v0, %v1642_v61  ;;  %v1052_v4 = vadd.f32 %v1641_v59, %v2228_v60  ;;  %v1716_v6 = vpop.f32.mrb[34].mxu1 }
 0x13a   :  { %v1151_v8 = vpop.f32.mrb[35].mxu1 }
 0x13b   :  { %v1149_v7 = vadd.f32 %v1148_v5, %v1052_v4  ;;  %v1055_v47 = vadd.f32 %v1644_v3, %v2230_v63 }
 0x13d   :  { %vm1211_vm1 = vcmp.gt.f32.partialorder %v1149_v7, 0.0  ;;  %v1227_v9 = vmul.f32 0.2, %v1149_v7  ;;  %v1152_v10 = vadd.f32 %v1151_v8, %v1055_v47  ;;  %v1645_v11 = vpop.f32.mrb[36].mxu0 }
 0x13e   :  { %v1646_v13 = vpop.f32.mrb[37].mxu0 }
 0x13f   :  { %v1243_v14 = vsel %vm1211_vm1, %v1149_v7, %v1227_v9  ;;  %vm1212_vm3 = vcmp.gt.f32.partialorder %v1152_v10, 0.0  ;;  %v1228_v16 = vmul.f32 0.2, %v1152_v10  ;;  %v1647_v18 = vadd.f32 %v1646_v13, %v1645_v11  ;;  %v1648_v19 = vpop.f32.mrb[38].mxu0  ;;  %v1719_v60 = vpop.f32.mrb[36].mxu1 }
 0x140   :  { %v1479_v21 = vpack.c.bf16 %v1243_v14, %v1243_v14  ;;  %v1649_v22 = vpop.f32.mrb[39].mxu0  ;;  %v1164_v63 = vpop.f32.mrb[37].mxu1 }
 0x141   :  { %v1244_v23 = vsel %vm1212_vm3, %v1152_v10, %v1228_v16  ;;  %v1060_v24 = vadd.f32 %v1647_v18, %v2234_v12  ;;  %v1650_v25 = vadd.f32 %v1649_v22, %v1648_v19  ;;  %v1720_v27 = vpop.f32.mrb[38].mxu1 }
 0x142   :  { %1324 = vst.msk [vmem:[%s2375_s3] sm:$0xf] %vm1323_vm2, %v1479_v21  ;;  %v1480_v26 = vpack.c.bf16 %v1244_v23, %v1244_v23  ;;  %v1167_v32 = vpop.f32.mrb[39].mxu1 }
 0x143   :  { %v1157_v29 = vadd.f32 %v1715_v1, %v1060_v24  ;;  %v1063_v30 = vadd.f32 %v1650_v25, %v2236_v15 }
 0x144   :  { %1325 = vst.msk [vmem:[%s2375_s3 + $0x4] sm:$0xf] %vm1323_vm2, %v1480_v26 }
 0x145   :  { %vm1213_vm4 = vcmp.gt.f32.partialorder %v1157_v29, 0.0  ;;  %v1229_v12 = vmul.f32 0.2, %v1157_v29  ;;  %v1160_v33 = vadd.f32 %v1716_v6, %v1063_v30  ;;  %v1651_v34 = vpop.f32.mrb[40].mxu0 }
 0x146   :  { %v1652_v36 = vpop.f32.mrb[41].mxu0 }
 0x147   :  { %v1245_v37 = vsel %vm1213_vm4, %v1157_v29, %v1229_v12  ;;  %vm1214_vm5 = vcmp.gt.f32.partialorder %v1160_v33, 0.0  ;;  %v1230_v39 = vmul.f32 0.2, %v1160_v33  ;;  %v1653_v40 = vadd.f32 %v1652_v36, %v1651_v34  ;;  %v1654_v41 = vpop.f32.mrb[42].mxu0  ;;  %v2286_v45 = vpop.f32.mrb[40].mxu1 }
 0x148   :  { %v1481_v42 = vpack.c.bf16 %v1245_v37, %v1245_v37  ;;  %v1655_v43 = vpop.f32.mrb[43].mxu0  ;;  %v1180_v50 = vpop.f32.mrb[41].mxu1 }
 0x149   :  { %v1246_v15 = vsel %vm1214_vm5, %v1160_v33, %v1230_v39  ;;  %v1656_v46 = vadd.f32 %v1655_v43, %v1654_v41  ;;  %v1068_v49 = vadd.f32 %v1653_v40, %v2240_v28  ;;  %v2293_v52 = vpop.f32.mrb[42].mxu1 }
 0x14a   :  { %1326 = vst.msk [vmem:[%s2375_s3 + $0x8] sm:$0xf] %vm1323_vm2, %v1481_v42  ;;  %v1482_v51 = vpack.c.bf16 %v1246_v15, %v1246_v15  ;;  %v1183_v56 = vpop.f32.mrb[43].mxu1 }
 0x14b   :  { %v1165_v53 = vadd.f32 %v1164_v63, %v1068_v49  ;;  %v1071_v55 = vadd.f32 %v1656_v46, %v2242_v31 }
 0x14c   :  { %1327 = vst.msk [vmem:[%s2375_s3 + $0xc] sm:$0xf] %vm1323_vm2, %v1482_v51 }
 0x14d   :  { %vm1215_vm6 = vcmp.gt.f32.partialorder %v1165_v53, 0.0  ;;  %v1231_v28 = vmul.f32 0.2, %v1165_v53  ;;  %v1168_v58 = vadd.f32 %v1167_v32, %v1071_v55  ;;  %v1657_v59 = vpop.f32.mrb[44].mxu0 }
 0x14e   :  { %v1658_v61 = vpop.f32.mrb[45].mxu0 }
 0x14f   :  { %v1247_v0 = vsel %vm1215_vm6, %v1165_v53, %v1231_v28  ;;  %vm1216_vm7 = vcmp.gt.f32.partialorder %v1168_v58, 0.0  ;;  %v1232_v1 = vmul.f32 0.2, %v1168_v58  ;;  %v1659_v3 = vadd.f32 %v1658_v61, %v1657_v59  ;;  %v1660_v4 = vpop.f32.mrb[46].mxu0  ;;  %v2300_v7 = vpop.f32.mrb[44].mxu1 }
 0x150   :  { %v1483_v5 = vpack.c.bf16 %v1247_v0, %v1247_v0  ;;  %v1661_v6 = vpop.f32.mrb[47].mxu0  ;;  %v2303_v9 = vpop.f32.mrb[45].mxu1 }
 0x151   :  { %v1248_v31 = vsel %vm1216_vm7, %v1168_v58, %v1232_v1  ;;  %v1076_v47 = vadd.f32 %v1659_v3, %v2246_v44  ;;  %v1662_v8 = vadd.f32 %v1661_v6, %v1660_v4  ;;  %v2309_v11 = vpop.f32.mrb[46].mxu1 }
 0x152   :  { %1328 = vst.msk [vmem:[%s2375_s3 + $0x10] sm:$0xf] %vm1323_vm2, %v1483_v5  ;;  %v1484_v10 = vpack.c.bf16 %v1248_v31, %v1248_v31  ;;  %v2312_v16 = vpop.f32.mrb[47].mxu1 }
 0x153   :  { %v1173_v13 = vadd.f32 %v1719_v60, %v1076_v47  ;;  %v1079_v14 = vadd.f32 %v1662_v8, %v2248_v48 }
 0x154   :  { %1329 = vst.msk [vmem:[%s2375_s3 + $0x14] sm:$0xf] %vm1323_vm2, %v1484_v10 }
 0x155   :  { %vm1217_vm8 = vcmp.gt.f32.partialorder %v1173_v13, 0.0  ;;  %v1233_v44 = vmul.f32 0.2, %v1173_v13  ;;  %v1176_v18 = vadd.f32 %v1720_v27, %v1079_v14  ;;  %v1663_v19 = vpop.f32.mrb[48].mxu0 }
 0x156   :  { %v1664_v21 = vpop.f32.mrb[49].mxu0 }
 0x157   :  { %v1249_v22 = vsel %vm1217_vm8, %v1173_v13, %v1233_v44  ;;  %vm1218_vm9 = vcmp.gt.f32.partialorder %v1176_v18, 0.0  ;;  %v1234_v23 = vmul.f32 0.2, %v1176_v18  ;;  %v1665_v24 = vadd.f32 %v1664_v21, %v1663_v19  ;;  %v1666_v25 = vpop.f32.mrb[50].mxu0 }
 0x158   :  { %v1485_v60 = vpack.c.bf16 %v1249_v22, %v1249_v22  ;;  %v1667_v63 = vpop.f32.mrb[51].mxu0 }
 0x159   :  { %v1250_v48 = vsel %vm1218_vm9, %v1176_v18, %v1234_v23  ;;  %v1668_v26 = vadd.f32 %v1667_v63, %v1666_v25  ;;  %v1084_v29 = vadd.f32 %v1665_v24, %v2252_v62 }
 0x15a   :  { %1330 = vst.msk [vmem:[%s2375_s3 + $0x18] sm:$0xf] %vm1323_vm2, %v1485_v60  ;;  %v1486_v30 = vpack.c.bf16 %v1250_v48, %v1250_v48 }
 0x15b   :  { %v1181_v27 = vadd.f32 %v1180_v50, %v1084_v29  ;;  %v1087_v32 = vadd.f32 %v1668_v26, %v2254_v2 }
 0x15c   :  { %1331 = vst.msk [vmem:[%s2375_s3 + $0x1c] sm:$0xf] %vm1323_vm2, %v1486_v30 }
 0x15d   :  { %vm1219_vm10 = vcmp.gt.f32.partialorder %v1181_v27, 0.0  ;;  %v1235_v12 = vmul.f32 0.2, %v1181_v27  ;;  %v1184_v33 = vadd.f32 %v1183_v56, %v1087_v32  ;;  %v1669_v34 = vpop.f32.mrb[52].mxu0 }
 0x15e   :  { %v1670_v36 = vpop.f32.mrb[53].mxu0 }
 0x15f   :  { %v1251_v62 = vsel %vm1219_vm10, %v1181_v27, %v1235_v12  ;;  %vm1220_vm11 = vcmp.gt.f32.partialorder %v1184_v33, 0.0  ;;  %v1236_v37 = vmul.f32 0.2, %v1184_v33  ;;  %v1671_v39 = vadd.f32 %v1670_v36, %v1669_v34  ;;  %v1672_v40 = vpop.f32.mrb[54].mxu0 }
 0x160   :  { %v1487_v41 = vpack.c.bf16 %v1251_v62, %v1251_v62  ;;  %v1673_v42 = vpop.f32.mrb[55].mxu0 }
 0x161   :  { %v1252_v43 = vsel %vm1220_vm11, %v1184_v33, %v1236_v37  ;;  %v1092_v2 = vadd.f32 %v1671_v39, %v2258_v17  ;;  %v1674_v15 = vadd.f32 %v1673_v42, %v1672_v40 }
 0x162   :  { %1332 = vst.msk [vmem:[%s2375_s3 + $0x20] sm:$0xf] %vm1323_vm2, %v1487_v41  ;;  %v1488_v46 = vpack.c.bf16 %v1252_v43, %v1252_v43 }
 0x163   :  { %v1189_v49 = vadd.f32 %v2286_v45, %v1092_v2  ;;  %v1095_v50 = vadd.f32 %v1674_v15, %v2260_v20 }
 0x164   :  { %1333 = vst.msk [vmem:[%s2375_s3 + $0x24] sm:$0xf] %vm1323_vm2, %v1488_v46 }
 0x165   :  { %vm1221_vm12 = vcmp.gt.f32.partialorder %v1189_v49, 0.0  ;;  %v1237_v51 = vmul.f32 0.2, %v1189_v49  ;;  %v1192_v17 = vadd.f32 %v2293_v52, %v1095_v50  ;;  %v1675_v53 = vpop.f32.mrb[56].mxu0 }
 0x166   :  { %v1676_v55 = vpop.f32.mrb[57].mxu0 }
 0x167   :  { %v1253_v56 = vsel %vm1221_vm12, %v1189_v49, %v1237_v51  ;;  %vm1222_vm13 = vcmp.gt.f32.partialorder %v1192_v17, 0.0  ;;  %v1238_v28 = vmul.f32 0.2, %v1192_v17  ;;  %v1677_v58 = vadd.f32 %v1676_v55, %v1675_v53  ;;  %v1678_v59 = vpop.f32.mrb[58].mxu0 }
 0x168   :  { %v1489_v61 = vpack.c.bf16 %v1253_v56, %v1253_v56  ;;  %v1679_v45 = vpop.f32.mrb[59].mxu0 }
 0x169   :  { %v1254_v0 = vsel %vm1222_vm13, %v1192_v17, %v1238_v28  ;;  %v1680_v20 = vadd.f32 %v1679_v45, %v1678_v59  ;;  %v1100_v1 = vadd.f32 %v1677_v58, %v2264_v35 }
 0x16a   :  { %1334 = vst.msk [vmem:[%s2375_s3 + $0x28] sm:$0xf] %vm1323_vm2, %v1489_v61  ;;  %v1490_v3 = vpack.c.bf16 %v1254_v0, %v1254_v0 }
 0x16b   :  { %v1197_v52 = vadd.f32 %v2303_v9, %v1100_v1  ;;  %v1103_v4 = vadd.f32 %v1680_v20, %v2266_v38 }
 0x16c   :  { %1335 = vst.msk [vmem:[%s2375_s3 + $0x2c] sm:$0xf] %vm1323_vm2, %v1490_v3 }
 0x16d   :  { %vm1223_vm14 = vcmp.gt.f32.partialorder %v1197_v52, 0.0  ;;  %v1239_v5 = vmul.f32 0.2, %v1197_v52  ;;  %v1200_v6 = vadd.f32 %v2312_v16, %v1103_v4  ;;  %v1681_v35 = vpop.f32.mrb[60].mxu0 }
 0x16e   :  { %v1682_v31 = vpop.f32.mrb[61].mxu0 }
 0x16f   :  { %v1255_v47 = vsel %vm1223_vm14, %v1197_v52, %v1239_v5  ;;  %vm1224_vm15 = vcmp.gt.f32.partialorder %v1200_v6, 0.0  ;;  %v1240_v8 = vmul.f32 0.2, %v1200_v6  ;;  %v1683_v10 = vadd.f32 %v1682_v31, %v1681_v35  ;;  %v1684_v13 = vpop.f32.mrb[62].mxu0 }
 0x170   :  { %v1491_v14 = vpack.c.bf16 %v1255_v47, %v1255_v47  ;;  %v1685_v9 = vpop.f32.mrb[63].mxu0 }
 0x171   :  { %v1256_v44 = vsel %vm1224_vm15, %v1200_v6, %v1240_v8  ;;  %v1108_v38 = vadd.f32 %v1683_v10, %v2270_v54  ;;  %v1686_v18 = vadd.f32 %v1685_v9, %v1684_v13 }
 0x172   :  { %1336 = vst.msk [vmem:[%s2375_s3 + $0x30] sm:$0xf] %vm1323_vm2, %v1491_v14  ;;  %v1492_v19 = vpack.c.bf16 %v1256_v44, %v1256_v44 }
 0x173   :  { %v1205_v16 = vadd.f32 %v2300_v7, %v1108_v38  ;;  %v1111_v21 = vadd.f32 %v1686_v18, %v2272_v57 }
 0x174   :  { %1337 = vst.msk [vmem:[%s2375_s3 + $0x34] sm:$0xf] %vm1323_vm2, %v1492_v19 }
 0x175   :  { %vm1225_vm0 = vcmp.gt.f32.partialorder %v1205_v16, 0.0  ;;  %v1241_v22 = vmul.f32 0.2, %v1205_v16  ;;  %v1208_v54 = vadd.f32 %v2309_v11, %v1111_v21 }
 0x177   :  { %v1257_v23 = vsel %vm1225_vm0, %v1205_v16, %v1241_v22  ;;  %vm1226_vm1 = vcmp.gt.f32.partialorder %v1208_v54, 0.0  ;;  %v1242_v24 = vmul.f32 0.2, %v1208_v54 }
 0x178   :  { %v1493_v25 = vpack.c.bf16 %v1257_v23, %v1257_v23 }
 0x179   :  { %v1258_v60 = vsel %vm1226_vm1, %v1208_v54, %v1242_v24 }
 0x17a   :  { %1338 = vst.msk [vmem:[%s2375_s3 + $0x38] sm:$0xf] %vm1323_vm2, %v1493_v25  ;;  %v1494_v57 = vpack.c.bf16 %v1258_v60, %v1258_v60 }
 0x17c   :  { %1339 = vst.msk [vmem:[%s2375_s3 + $0x3c] sm:$0xf] %vm1323_vm2, %v1494_v57 }

// kernel: voxel_processing.22
= control target key start
LH: loop header
LB: loop body
LE: loop exit
PB: predicated region body
PF: predicated region fallthrough
CT: control target
= control target key end

     0   :  { %vm801_vm0 = vcmask 785408   ;;  %vm1374_vm2 = vcmask 257024   ;;  %s2497_s1 = inlined_call_operand.vmem [shape: bf16[864,32], index: 1, kind: input, shape index: {}]   ;;  %s2498_s0 = inlined_call_operand.vmem [shape: bf16[128,864], index: 0, kind: input, shape index: {}]   ;;  %s2499_s2 = inlined_call_operand.vmem [shape: f32[1,32], index: 2, kind: input, shape index: {}]   ;;  %s2500_s3 = inlined_call_operand.vmem [shape: bf16[128,32], index: 3, kind: input, shape index: {}]   ;;  %s2501_s4 = inlined_call_operand.vmem [shape: bf16[128,32], index: 4, kind: output, shape index: {}]  }
   0x1   :  { %v1819_v0 = vld [vmem:[%s2497_s1 + $0x40] sm:$0xff]   ;;  %v1823_v4 = vld [vmem:[%s2497_s1 + $0x48] sm:$0xff]   ;;  %v1827_v8 = vld [vmem:[%s2497_s1 + $0x50] sm:$0xff]  }
   0x2   :  { %v1820_v1 = vld [vmem:[%s2497_s1] sm:$0xff]   ;;  %1585 = vmatprep.subr.bf16.mxu0 %v1819_v0  ;;  %v1824_v5 = vld [vmem:[%s2497_s1 + $0x8] sm:$0xff]   ;;  %v1828_v9 = vld [vmem:[%s2497_s1 + $0x10] sm:$0xff]  }
   0x3   :  { %v1821_v2 = vld [vmem:[%s2497_s1 + $0xc0] sm:$0xff]   ;;  %1586 = vmatpush3.bf16.msra.mxu0 %v1820_v1  ;;  %v1825_v6 = vld [vmem:[%s2497_s1 + $0xc8] sm:$0xff]   ;;  %v1829_v10 = vld [vmem:[%s2497_s1 + $0xd0] sm:$0xff]  }
   0x4   :  { %v1822_v3 = vld [vmem:[%s2497_s1 + $0x80] sm:$0xff]   ;;  %1649 = vmatprep.subr.bf16.mxu1 %v1821_v2  ;;  %1587 = vmatprep.subr.bf16.mxu0 %v1823_v4  ;;  %v1826_v7 = vld [vmem:[%s2497_s1 + $0x88] sm:$0xff]   ;;  %v1830_v11 = vld [vmem:[%s2497_s1 + $0x90] sm:$0xff]  }
   0x5   :  { %1650 = vmatpush3.bf16.msra.mxu1 %v1822_v3  ;;  %v1831_v12 = vld [vmem:[%s2497_s1 + $0x58] sm:$0xff]   ;;  %v1835_v16 = vld [vmem:[%s2497_s1 + $0x60] sm:$0xff]   ;;  %v1839_v20 = vld [vmem:[%s2497_s1 + $0x68] sm:$0xff]  }
   0x6   :  { %1651 = vmatprep.subr.bf16.mxu1 %v1825_v6  ;;  %v1832_v13 = vld [vmem:[%s2497_s1 + $0x18] sm:$0xff]   ;;  %v1836_v17 = vld [vmem:[%s2497_s1 + $0x20] sm:$0xff]   ;;  %v1840_v21 = vld [vmem:[%s2497_s1 + $0x28] sm:$0xff]  }
   0x7   :  { %1588 = vmatpush3.bf16.msra.mxu0 %v1824_v5  ;;  %v1833_v14 = vld [vmem:[%s2497_s1 + $0xd8] sm:$0xff]   ;;  %v1837_v18 = vld [vmem:[%s2497_s1 + $0xe0] sm:$0xff]   ;;  %v1841_v22 = vld [vmem:[%s2497_s1 + $0xe8] sm:$0xff]  }
   0x8   :  { %1589 = vmatprep.subr.bf16.mxu0 %v1827_v8  ;;  %v1834_v15 = vld [vmem:[%s2497_s1 + $0x98] sm:$0xff]   ;;  %v1838_v19 = vld [vmem:[%s2497_s1 + $0xa0] sm:$0xff]   ;;  %v1842_v23 = vld [vmem:[%s2497_s1 + $0xa8] sm:$0xff]  }
   0x9   :  { %1652 = vmatpush3.bf16.msra.mxu1 %v1826_v7  ;;  %v1843_v24 = vld [vmem:[%s2497_s1 + $0x70] sm:$0xff]   ;;  %v1847_v28 = vld [vmem:[%s2497_s1 + $0x78] sm:$0xff]   ;;  %v1852_v32 = vld [vmem:[%s2498_s0 + $0x4] ss:$28 sps:$4 sm:$0xff]  }
   0xa   :  { %1653 = vmatprep.subr.bf16.mxu1 %v1829_v10  ;;  %v1844_v25 = vld [vmem:[%s2497_s1 + $0x30] sm:$0xff]   ;;  %v1848_v29 = vld [vmem:[%s2497_s1 + $0x38] sm:$0xff]   ;;  %858 = vmatprep.mubr.bf16.mxu0 %v1852_v32  ;;  %v1854_v34 = vld [vmem:[%s2497_s1 + $0x140] sm:$0xff]  }
   0xb   :  { %1590 = vmatpush3.bf16.msra.mxu0 %v1828_v9  ;;  %v1845_v26 = vld [vmem:[%s2497_s1 + $0xf0] sm:$0xff]   ;;  %v1849_v30 = vld [vmem:[%s2497_s1 + $0xf8] sm:$0xff]   ;;  %v1855_v35 = vld [vmem:[%s2498_s0 + $0x8] ss:$28 sps:$4 sm:$0xff]  }
   0xc   :  { %1591 = vmatprep.subr.bf16.mxu0 %v1831_v12  ;;  %v1846_v27 = vld [vmem:[%s2497_s1 + $0xb0] sm:$0xff]   ;;  %v1850_v31 = vld [vmem:[%s2498_s0] ss:$28 sps:$4 sm:$0xff]   ;;  %v1857_v36 = vld [vmem:[%s2498_s0 + $0xc] ss:$28 sps:$4 sm:$0xff]  }
   0xd   :  { %1654 = vmatpush3.bf16.msra.mxu1 %v1830_v11  ;;  %v1853_v33 = vld [vmem:[%s2497_s1 + $0xb8] sm:$0xff]   ;;  %v1858_v37 = vld [vmem:[%s2497_s1 + $0x100] sm:$0xff]   ;;  %955 = vmatprep.mubr.bf16.mxu1 %v1857_v36  ;;  %v1862_v40 = vld [vmem:[%s2497_s1 + $0x148] sm:$0xff]  }
   0xe   :  { %1655 = vmatprep.subr.bf16.mxu1 %v1833_v14  ;;  %v1859_v38 = vld [vmem:[%s2498_s0 + $0x3c] ss:$28 sps:$4 sm:$0xff]   ;;  %v1863_v41 = vld [vmem:[%s2498_s0 + $0x44] ss:$28 sps:$4 sm:$0xff]   ;;  %v1865_v42 = vld [vmem:[%s2497_s1 + $0x108] sm:$0xff]  }
   0xf   :  { %1592 = vmatpush3.bf16.msra.mxu0 %v1832_v13  ;;  %v1861_v39 = vld [vmem:[%s2498_s0 + $0x38] ss:$28 sps:$4 sm:$0xff]   ;;  %v1866_v43 = vld [vmem:[%s2498_s0 + $0x40] ss:$28 sps:$4 sm:$0xff]   ;;  %v1869_v48 = vld [vmem:[%s2498_s0 + $0x70] ss:$28 sps:$4 sm:$0xff]  }
  0x10   :  { %1593 = vmatprep.subr.bf16.mxu0 %v1835_v16  ;;  %v1867_v44 = vld [vmem:[%s2498_s0 + $0x74] ss:$28 sps:$4 sm:$0xff]   ;;  %v1871_v46 = vld [vmem:[%s2498_s0 + $0x7c] ss:$28 sps:$4 sm:$0xff]   ;;  %v1875_v49 = vld [vmem:[%s2498_s0 + $0xac] ss:$28 sps:$4 sm:$0xff]  }
  0x11   :  { %1656 = vmatpush3.bf16.msra.mxu1 %v1834_v15  ;;  %v1870_v45 = vld [vmem:[%s2497_s1 + $0x150] sm:$0xff]   ;;  %v1878_v50 = vld [vmem:[%s2497_s1 + $0x158] sm:$0xff]   ;;  %v1886_v54 = vld [vmem:[%s2497_s1 + $0x160] sm:$0xff]  }
  0x12   :  { %1657 = vmatprep.subr.bf16.mxu1 %v1837_v18  ;;  %v1873_v47 = vld [vmem:[%s2497_s1 + $0x110] sm:$0xff]   ;;  %v1881_v52 = vld [vmem:[%s2497_s1 + $0x118] sm:$0xff]   ;;  %v1877_v55 = vld [vmem:[%s2498_s0 + $0xa8] ss:$28 sps:$4 sm:$0xff]  }
  0x13   :  { %1594 = vmatpush3.bf16.msra.mxu0 %v1836_v17  ;;  %v1874_v51 = vld [vmem:[%s2498_s0 + $0x78] ss:$28 sps:$4 sm:$0xff]   ;;  %v1889_v56 = vld [vmem:[%s2497_s1 + $0x120] sm:$0xff]   ;;  %v1882_v59 = vld [vmem:[%s2498_s0 + $0xb0] ss:$28 sps:$4 sm:$0xff]  }
  0x14   :  { %1595 = vmatprep.subr.bf16.mxu0 %v1839_v20  ;;  %v1879_v53 = vld [vmem:[%s2498_s0 + $0xb4] ss:$28 sps:$4 sm:$0xff]   ;;  %v1883_v57 = vld [vmem:[%s2498_s0 + $0xe4] ss:$28 sps:$4 sm:$0xff]   ;;  %v1895_v60 = vld [vmem:[%s2497_s1 + $0x168] sm:$0xff]  }
  0x15   :  { %1658 = vmatpush3.bf16.msra.mxu1 %v1838_v19  ;;  %v1891_v58 = vld [vmem:[%s2497_s1 + $0x180] sm:$0xff]   ;;  %v1887_v61 = vld [vmem:[%s2498_s0 + $0xec] ss:$28 sps:$4 sm:$0xff]   ;;  %v1892_v1 = vld [vmem:[%s2498_s0 + $0x11c] ss:$28 sps:$4 sm:$0xff]  }
  0x16   :  { %1659 = vmatprep.subr.bf16.mxu1 %v1841_v22  ;;  %v1898_v62 = vld [vmem:[%s2497_s1 + $0x128] sm:$0xff]   ;;  %v1885_v63 = vld [vmem:[%s2498_s0 + $0xe0] ss:$28 sps:$4 sm:$0xff]   ;;  %v1904_v2 = vld [vmem:[%s2497_s1 + $0x170] sm:$0xff]  }
  0x17   :  { %1596 = vmatpush3.bf16.msra.mxu0 %v1840_v21  ;;  %v1902_v0 = vld [vmem:[%s2497_s1 + $0x188] sm:$0xff]   ;;  %v1896_v4 = vld [vmem:[%s2498_s0 + $0x124] ss:$28 sps:$4 sm:$0xff]   ;;  %v1907_v5 = vld [vmem:[%s2497_s1 + $0x130] sm:$0xff]  }
  0x18   :  { %1597 = vmatprep.subr.bf16.mxu0 %v1843_v24  ;;  %v1890_v3 = vld [vmem:[%s2498_s0 + $0xe8] ss:$28 sps:$4 sm:$0xff]   ;;  %v1909_v6 = vld [vmem:[%s2497_s1 + $0x190] sm:$0xff]   ;;  %v1913_v8 = vld [vmem:[%s2497_s1 + $0x178] sm:$0xff]  }
  0x19   :  { %1660 = vmatpush3.bf16.msra.mxu1 %v1842_v23  ;;  %v1894_v7 = vld [vmem:[%s2498_s0 + $0x118] ss:$28 sps:$4 sm:$0xff]   ;;  %v1899_v12 = vld [vmem:[%s2498_s0 + $0x120] ss:$28 sps:$4 sm:$0xff]   ;;  %v1923_v15 = vld [vmem:[%s2497_s1 + $0x1a8] sm:$0xff]  }
  0x1a   :  { %1661 = vmatprep.subr.bf16.mxu1 %v1845_v26  ;;  %v1914_v9 = vld [vmem:[%s2497_s1 + $0x198] sm:$0xff]   ;;  %v1900_v10 = vld [vmem:[%s2498_s0 + $0x154] ss:$28 sps:$4 sm:$0xff]   ;;  %v1919_v13 = vld [vmem:[%s2497_s1 + $0x1a0] sm:$0xff]  }
  0x1b   :  { %1598 = vmatpush3.bf16.msra.mxu0 %v1844_v25  ;;  %v1917_v11 = vld [vmem:[%s2497_s1 + $0x138] sm:$0xff]   ;;  %v1903_v16 = vld [vmem:[%s2498_s0 + $0x150] ss:$28 sps:$4 sm:$0xff]   ;;  %v1912_v20 = vld [vmem:[%s2498_s0 + $0x188] ss:$28 sps:$4 sm:$0xff]  }
  0x1c   :  { %1599 = vmatprep.subr.bf16.mxu0 %v1847_v28  ;;  %v1905_v14 = vld [vmem:[%s2498_s0 + $0x15c] ss:$28 sps:$4 sm:$0xff]   ;;  %v1910_v17 = vld [vmem:[%s2498_s0 + $0x18c] ss:$28 sps:$4 sm:$0xff]   ;;  %v1915_v19 = vld [vmem:[%s2498_s0 + $0x194] ss:$28 sps:$4 sm:$0xff]  }
  0x1d   :  { %1662 = vmatpush3.bf16.msra.mxu1 %v1846_v27  ;;  %v1908_v18 = vld [vmem:[%s2498_s0 + $0x158] ss:$28 sps:$4 sm:$0xff]   ;;  %v1918_v22 = vld [vmem:[%s2498_s0 + $0x190] ss:$28 sps:$4 sm:$0xff]   ;;  %v1932_v27 = vld [vmem:[%s2498_s0 + $0x88] ss:$28 sps:$4 sm:$0xff]  }
  0x1e   :  { %1663 = vmatprep.subr.bf16.mxu1 %v1849_v30  ;;  %v1922_v21 = vld [vmem:[%s2498_s0 + $0x14] ss:$28 sps:$4 sm:$0xff]   ;;  %v1926_v25 = vld [vmem:[%s2498_s0 + $0x4c] ss:$28 sps:$4 sm:$0xff]   ;;  %v1933_v30 = vld [vmem:[%s2498_s0 + $0xc0] ss:$28 sps:$4 sm:$0xff]  }
  0x1f   :  { %1600 = vmatpush3.bf16.msra.mxu0 %v1848_v29  ;;  %v1924_v23 = vld [vmem:[%s2498_s0 + $0x18] ss:$28 sps:$4 sm:$0xff]   ;;  %v1920_v24 = vld [vmem:[%s2498_s0 + $0x10] ss:$28 sps:$4 sm:$0xff]   ;;  %v1928_v28 = vld [vmem:[%s2498_s0 + $0x48] ss:$28 sps:$4 sm:$0xff]  }
  0x20   :  { %1713 = vmatprep.subr.bf16.mxu0 %v1854_v34  ;;  %v1925_v26 = vld [vmem:[%s2498_s0 + $0x50] ss:$28 sps:$4 sm:$0xff]   ;;  %v1929_v29 = vld [vmem:[%s2498_s0 + $0x84] ss:$28 sps:$4 sm:$0xff]   ;;  %v1936_v36 = vld [vmem:[%s2498_s0 + $0xb8] ss:$28 sps:$4 sm:$0xff]  }
  0x21   :  { %1664 = vmatpush3.bf16.msra.mxu1 %v1853_v33  ;;  %v1931_v32 = vld [vmem:[%s2498_s0 + $0x80] ss:$28 sps:$4 sm:$0xff]   ;;  %v1941_v34 = vld [vmem:[%s2498_s0 + $0x130] ss:$28 sps:$4 sm:$0xff]  }
  0x22   :  { %859 = vmatmul.mubr.bf16.vlgmr.msra.gmra.mrb[0].mxu0 %v1850_v31  ;;  %1791 = vmatprep.subr.bf16.mxu1 %v1891_v58  ;;  %v1940_v31 = vld [vmem:[%s2498_s0 + $0xf8] ss:$28 sps:$4 sm:$0xff]  }
  0x23   :  { %1714 = vmatpush3.bf16.msra.mxu0 %v1858_v37  ;;  %866 = vmatprep.mubr.bf16.mxu0 %v1859_v38  ;;  %v1934_v33 = vld [vmem:[%s2498_s0 + $0xbc] ss:$28 sps:$4 sm:$0xff]   ;;  %v1937_v37 = vld [vmem:[%s2498_s0 + $0xf4] ss:$28 sps:$4 sm:$0xff]  }
  0x24   :  { %956 = vmatmul.mubr.bf16.vlgmr.msra.gmra.mrb[0].mxu1 %v1855_v35  ;;  %1715 = vmatprep.subr.bf16.mxu0 %v1862_v40  ;;  %v1948_v35 = vld [vmem:[%s2498_s0 + $0x168] ss:$28 sps:$4 sm:$0xff]   ;;  %v1949_v38 = vld [vmem:[%s2498_s0 + $0x1a0] ss:$28 sps:$4 sm:$0xff]  }
  0x25   :  { %963 = vmatprep.mubr.bf16.mxu1 %v1863_v41  ;;  %1792 = vmatpush3.bf16.msra.mxu1 %v1891_v58  ;;  %v1942_v40 = vld [vmem:[%s2498_s0 + $0x12c] ss:$28 sps:$4 sm:$0xff]  }
  0x26   :  { %1793 = vmatprep.subr.bf16.mxu1 %v1902_v0  ;;  %v1944_v41 = vld [vmem:[%s2498_s0 + $0x128] ss:$28 sps:$4 sm:$0xff]  }
  0x27   :  { %1716 = vmatpush3.bf16.msra.mxu0 %v1865_v42  ;;  %v1945_v42 = vld [vmem:[%s2498_s0 + $0x164] ss:$28 sps:$4 sm:$0xff]  }
  0x28   :  { %1717 = vmatprep.subr.bf16.mxu0 %v1870_v45  ;;  %v1952_v45 = vld [vmem:[%s2498_s0 + $0x198] ss:$28 sps:$4 sm:$0xff]  }
  0x29   :  { %1794 = vmatpush3.bf16.msra.mxu1 %v1902_v0 }
  0x2a   :  { %867 = vmatmul.mubr.bf16.gmra.mrb[4].mxu0 %v1861_v39  ;;  %1795 = vmatprep.subr.bf16.mxu1 %v1909_v6  ;;  %v1939_v39 = vld [vmem:[%s2498_s0 + $0xf0] ss:$28 sps:$4 sm:$0xff]  }
  0x2b   :  { %874 = vmatprep.mubr.bf16.mxu0 %v1867_v44  ;;  %1718 = vmatpush3.bf16.msra.mxu0 %v1873_v47  ;;  %v1950_v44 = vld [vmem:[%s2498_s0 + $0x19c] ss:$28 sps:$4 sm:$0xff]   ;;  %v2319_v47 = vld [vmem:[%s2499_s2] ss:$0 sm:$0xff] }
  0x2c   :  { %964 = vmatmul.mubr.bf16.gmra.mrb[4].mxu1 %v1866_v43  ;;  %1719 = vmatprep.subr.bf16.mxu0 %v1878_v50  ;;  %v1947_v43 = vld [vmem:[%s2498_s0 + $0x160] ss:$28 sps:$4 sm:$0xff]  }
  0x2d   :  { %971 = vmatprep.mubr.bf16.mxu1 %v1871_v46  ;;  %1796 = vmatpush3.bf16.msra.mxu1 %v1909_v6 }
  0x2e   :  { %1797 = vmatprep.subr.bf16.mxu1 %v1914_v9 }
  0x2f   :  { %1720 = vmatpush3.bf16.msra.mxu0 %v1881_v52 }
  0x30   :  { %1721 = vmatprep.subr.bf16.mxu0 %v1886_v54 }
  0x31   :  { %1798 = vmatpush3.bf16.msra.mxu1 %v1914_v9 }
  0x32   :  { %875 = vmatmul.mubr.bf16.gmra.mrb[8].mxu0 %v1869_v48  ;;  %1799 = vmatprep.subr.bf16.mxu1 %v1919_v13 }
  0x33   :  { %882 = vmatprep.mubr.bf16.mxu0 %v1875_v49  ;;  %1722 = vmatpush3.bf16.msra.mxu0 %v1889_v56 }
  0x34   :  { %972 = vmatmul.mubr.bf16.gmra.mrb[8].mxu1 %v1874_v51  ;;  %1723 = vmatprep.subr.bf16.mxu0 %v1895_v60 }
  0x35   :  { %979 = vmatprep.mubr.bf16.mxu1 %v1879_v53  ;;  %1800 = vmatpush3.bf16.msra.mxu1 %v1919_v13 }
  0x36   :  { %1801 = vmatprep.subr.bf16.mxu1 %v1923_v15 }
  0x37   :  { %1724 = vmatpush3.bf16.msra.mxu0 %v1898_v62 }
  0x38   :  { %1725 = vmatprep.subr.bf16.mxu0 %v1904_v2 }
  0x39   :  { %1802 = vmatpush3.bf16.msra.mxu1 %v1923_v15 }
  0x3a   :  { %883 = vmatmul.mubr.bf16.gmra.mrb[12].mxu0 %v1877_v55 }
  0x3b   :  { %890 = vmatprep.mubr.bf16.mxu0 %v1883_v57  ;;  %1726 = vmatpush3.bf16.msra.mxu0 %v1907_v5 }
  0x3c   :  { %980 = vmatmul.mubr.bf16.gmra.mrb[12].mxu1 %v1882_v59  ;;  %1727 = vmatprep.subr.bf16.mxu0 %v1913_v8 }
  0x3d   :  { %987 = vmatprep.mubr.bf16.mxu1 %v1887_v61 }
  0x3f   :  { %1728 = vmatpush3.bf16.msra.mxu0 %v1917_v11 }
  0x42   :  { %891 = vmatmul.mubr.bf16.gmra.mrb[16].mxu0 %v1885_v63 }
  0x43   :  { %898 = vmatprep.mubr.bf16.mxu0 %v1892_v1 }
  0x44   :  { %988 = vmatmul.mubr.bf16.gmra.mrb[16].mxu1 %v1890_v3 }
  0x45   :  { %995 = vmatprep.mubr.bf16.mxu1 %v1896_v4 }
  0x4a   :  { %899 = vmatmul.mubr.bf16.gmra.mrb[20].mxu0 %v1894_v7 }
  0x4b   :  { %906 = vmatprep.mubr.bf16.mxu0 %v1900_v10 }
  0x4c   :  { %996 = vmatmul.mubr.bf16.gmra.mrb[20].mxu1 %v1899_v12 }
  0x4d   :  { %1003 = vmatprep.mubr.bf16.mxu1 %v1905_v14 }
  0x52   :  { %907 = vmatmul.mubr.bf16.gmra.mrb[24].mxu0 %v1903_v16 }
  0x53   :  { %914 = vmatprep.mubr.bf16.mxu0 %v1910_v17 }
  0x54   :  { %1004 = vmatmul.mubr.bf16.gmra.mrb[24].mxu1 %v1908_v18 }
  0x55   :  { %1011 = vmatprep.mubr.bf16.mxu1 %v1915_v19 }
  0x5a   :  { %915 = vmatmul.mubr.bf16.gmra.mrb[28].mxu0 %v1912_v20 }
  0x5b   :  { %1052 = vmatprep.mubr.bf16.mxu0 %v1922_v21 }
  0x5c   :  { %1012 = vmatmul.mubr.bf16.gmra.mrb[28].mxu1 %v1918_v22 }
  0x5d   :  { %1803 = vmatprep.mubr.msk.bf16.mxu1 %vm801_vm0, %v1924_v23 }
  0x62   :  { %1053 = vmatmul.mubr.bf16.vlgmr.msra.gmra.mrb[32].mxu0 %v1920_v24 }
  0x63   :  { %1060 = vmatprep.mubr.bf16.mxu0 %v1926_v25 }
  0x64   :  { %1804 = vmatmul.mubr.msk.bf16.vlgmr.msra.gmra.mrb[32].mxu1 %vm801_vm0, %v1925_v26 }
  0x65   :  { %1807 = vmatprep.mubr.msk.bf16.mxu1 %vm801_vm0, %v1932_v27 }
  0x6a   :  { %1061 = vmatmul.mubr.bf16.gmra.mrb[36].mxu0 %v1928_v28 }
  0x6b   :  { %1068 = vmatprep.mubr.bf16.mxu0 %v1929_v29 }
  0x6c   :  { %1808 = vmatmul.mubr.msk.bf16.gmra.mrb[36].mxu1 %vm801_vm0, %v1933_v30 }
  0x6d   :  { %1811 = vmatprep.mubr.msk.bf16.mxu1 %vm801_vm0, %v1940_v31 }
  0x72   :  { %1069 = vmatmul.mubr.bf16.gmra.mrb[40].mxu0 %v1931_v32 }
  0x73   :  { %1076 = vmatprep.mubr.bf16.mxu0 %v1934_v33 }
  0x74   :  { %1812 = vmatmul.mubr.msk.bf16.gmra.mrb[40].mxu1 %vm801_vm0, %v1941_v34 }
  0x75   :  { %1815 = vmatprep.mubr.msk.bf16.mxu1 %vm801_vm0, %v1948_v35 }
  0x7a   :  { %1077 = vmatmul.mubr.bf16.gmra.mrb[44].mxu0 %v1936_v36 }
  0x7b   :  { %1084 = vmatprep.mubr.bf16.mxu0 %v1937_v37 }
  0x7c   :  { %1816 = vmatmul.mubr.msk.bf16.gmra.mrb[44].mxu1 %vm801_vm0, %v1949_v38 }
  0x82   :  { %1085 = vmatmul.mubr.bf16.gmra.mrb[48].mxu0 %v1939_v39 }
  0x83   :  { %1092 = vmatprep.mubr.bf16.mxu0 %v1942_v40 }
  0x8a   :  { %1093 = vmatmul.mubr.bf16.gmra.mrb[52].mxu0 %v1944_v41 }
  0x8b   :  { %1100 = vmatprep.mubr.bf16.mxu0 %v1945_v42 }
  0x92   :  { %1101 = vmatmul.mubr.bf16.gmra.mrb[56].mxu0 %v1947_v43 }
  0x93   :  { %1108 = vmatprep.mubr.bf16.mxu0 %v1950_v44 }
  0x9a   :  { %1109 = vmatmul.mubr.bf16.gmra.mrb[60].mxu0 %v1952_v45 }
  0xf5   :  { %v1601_v46 = vpop.f32.mrb[0].mxu0 }
  0xf6   :  { %v1602_v48 = vpop.f32.mrb[1].mxu0 }
  0xf7   :  { %v1603_v49 = vadd.f32 %v1602_v48, %v1601_v46  ;;  %v1604_v50 = vpop.f32.mrb[2].mxu0  ;;  %v1665_v51 = vpop.f32.mrb[0].mxu1 }
  0xf8   :  { %v1605_v52 = vpop.f32.mrb[3].mxu0  ;;  %v1666_v55 = vpop.f32.mrb[1].mxu1 }
  0xf9   :  { %v861_v53 = vadd.f32 %v1603_v49, %v2319_v47  ;;  %v1606_v54 = vadd.f32 %v1605_v52, %v1604_v50  ;;  %v1667_v56 = vadd.f32 %v1666_v55, %v1665_v51  ;;  %v1668_v57 = vpop.f32.mrb[2].mxu1 }
  0xfa   :  { %v1669_v59 = vpop.f32.mrb[3].mxu1 }
  0xfb   :  { %v864_v58 = vadd.f32 %v1606_v54, %v2319_v47  ;;  %v2323_v60 = vadd.f32 %v1667_v56, %v861_v53  ;;  %v1670_v61 = vadd.f32 %v1669_v59, %v1668_v57 }
  0xfd   :  { %v1607_v62 = vpop.f32.mrb[4].mxu0  ;;  %v2325_v63 = vadd.f32 %v1670_v61, %v864_v58 }
  0xfe   :  { %v1608_v0 = vpop.f32.mrb[5].mxu0 }
  0xff   :  { %v1609_v1 = vadd.f32 %v1608_v0, %v1607_v62  ;;  %v1610_v2 = vpop.f32.mrb[6].mxu0  ;;  %v1671_v3 = vpop.f32.mrb[4].mxu1 }
 0x100   :  { %v1611_v4 = vpop.f32.mrb[7].mxu0  ;;  %v1672_v7 = vpop.f32.mrb[5].mxu1 }
 0x101   :  { %v869_v5 = vadd.f32 %v1609_v1, %v2319_v47  ;;  %v1612_v6 = vadd.f32 %v1611_v4, %v1610_v2  ;;  %v1673_v8 = vadd.f32 %v1672_v7, %v1671_v3  ;;  %v1674_v9 = vpop.f32.mrb[6].mxu1 }
 0x102   :  { %v1675_v11 = vpop.f32.mrb[7].mxu1 }
 0x103   :  { %v872_v10 = vadd.f32 %v1612_v6, %v2319_v47  ;;  %v2329_v12 = vadd.f32 %v1673_v8, %v869_v5  ;;  %v1676_v13 = vadd.f32 %v1675_v11, %v1674_v9 }
 0x105   :  { %v1613_v14 = vpop.f32.mrb[8].mxu0  ;;  %v2331_v15 = vadd.f32 %v1676_v13, %v872_v10 }
 0x106   :  { %v1614_v16 = vpop.f32.mrb[9].mxu0 }
 0x107   :  { %v1615_v17 = vadd.f32 %v1614_v16, %v1613_v14  ;;  %v1616_v18 = vpop.f32.mrb[10].mxu0  ;;  %v1677_v19 = vpop.f32.mrb[8].mxu1 }
 0x108   :  { %v1617_v20 = vpop.f32.mrb[11].mxu0  ;;  %v1678_v23 = vpop.f32.mrb[9].mxu1 }
 0x109   :  { %v877_v21 = vadd.f32 %v1615_v17, %v2319_v47  ;;  %v1618_v22 = vadd.f32 %v1617_v20, %v1616_v18  ;;  %v1679_v24 = vadd.f32 %v1678_v23, %v1677_v19  ;;  %v1680_v25 = vpop.f32.mrb[10].mxu1 }
 0x10a   :  { %v1681_v27 = vpop.f32.mrb[11].mxu1 }
 0x10b   :  { %v880_v26 = vadd.f32 %v1618_v22, %v2319_v47  ;;  %v2335_v28 = vadd.f32 %v1679_v24, %v877_v21  ;;  %v1682_v29 = vadd.f32 %v1681_v27, %v1680_v25 }
 0x10d   :  { %v1619_v30 = vpop.f32.mrb[12].mxu0  ;;  %v2337_v31 = vadd.f32 %v1682_v29, %v880_v26 }
 0x10e   :  { %v1620_v32 = vpop.f32.mrb[13].mxu0 }
 0x10f   :  { %v1621_v33 = vadd.f32 %v1620_v32, %v1619_v30  ;;  %v1622_v34 = vpop.f32.mrb[14].mxu0  ;;  %v1683_v35 = vpop.f32.mrb[12].mxu1 }
 0x110   :  { %v1623_v36 = vpop.f32.mrb[15].mxu0  ;;  %v1684_v39 = vpop.f32.mrb[13].mxu1 }
 0x111   :  { %v885_v37 = vadd.f32 %v1621_v33, %v2319_v47  ;;  %v1624_v38 = vadd.f32 %v1623_v36, %v1622_v34  ;;  %v1685_v40 = vadd.f32 %v1684_v39, %v1683_v35  ;;  %v1686_v41 = vpop.f32.mrb[14].mxu1 }
 0x112   :  { %v1687_v43 = vpop.f32.mrb[15].mxu1 }
 0x113   :  { %v888_v42 = vadd.f32 %v1624_v38, %v2319_v47  ;;  %v2341_v44 = vadd.f32 %v1685_v40, %v885_v37  ;;  %v1688_v45 = vadd.f32 %v1687_v43, %v1686_v41 }
 0x115   :  { %v1625_v46 = vpop.f32.mrb[16].mxu0  ;;  %v2343_v48 = vadd.f32 %v1688_v45, %v888_v42 }
 0x116   :  { %v1626_v49 = vpop.f32.mrb[17].mxu0 }
 0x117   :  { %v1627_v50 = vadd.f32 %v1626_v49, %v1625_v46  ;;  %v1628_v51 = vpop.f32.mrb[18].mxu0  ;;  %v1689_v52 = vpop.f32.mrb[16].mxu1 }
 0x118   :  { %v1629_v53 = vpop.f32.mrb[19].mxu0  ;;  %v1690_v56 = vpop.f32.mrb[17].mxu1 }
 0x119   :  { %v893_v54 = vadd.f32 %v1627_v50, %v2319_v47  ;;  %v1630_v55 = vadd.f32 %v1629_v53, %v1628_v51  ;;  %v1691_v57 = vadd.f32 %v1690_v56, %v1689_v52  ;;  %v1692_v58 = vpop.f32.mrb[18].mxu1 }
 0x11a   :  { %v1693_v61 = vpop.f32.mrb[19].mxu1 }
 0x11b   :  { %v896_v59 = vadd.f32 %v1630_v55, %v2319_v47  ;;  %v2347_v62 = vadd.f32 %v1691_v57, %v893_v54  ;;  %v1694_v0 = vadd.f32 %v1693_v61, %v1692_v58 }
 0x11d   :  { %v1631_v1 = vpop.f32.mrb[20].mxu0  ;;  %v2349_v2 = vadd.f32 %v1694_v0, %v896_v59  ;;  %v1547_v59 = vld [vmem:[%s2500_s3] sm:$0xff]  }
 0x11e   :  { %v1632_v3 = vpop.f32.mrb[21].mxu0 }
 0x11f   :  { %v1633_v4 = vadd.f32 %v1632_v3, %v1631_v1  ;;  %v1634_v5 = vpop.f32.mrb[22].mxu0  ;;  %v1695_v6 = vpop.f32.mrb[20].mxu1 }
 0x120   :  { %v1635_v7 = vpop.f32.mrb[23].mxu0  ;;  %v1696_v10 = vpop.f32.mrb[21].mxu1 }
 0x121   :  { %v901_v8 = vadd.f32 %v1633_v4, %v2319_v47  ;;  %v1636_v9 = vadd.f32 %v1635_v7, %v1634_v5  ;;  %v1697_v11 = vadd.f32 %v1696_v10, %v1695_v6  ;;  %v1698_v13 = vpop.f32.mrb[22].mxu1  ;;  %v1548_v6 = vunpack.c.l.bf16 %v1547_v59 }
 0x122   :  { %v1699_v16 = vpop.f32.mrb[23].mxu1 }
 0x123   :  { %v904_v14 = vadd.f32 %v1636_v9, %v2319_v47  ;;  %v2353_v17 = vadd.f32 %v1697_v11, %v901_v8  ;;  %v1700_v18 = vadd.f32 %v1699_v16, %v1698_v13  ;;  %v1549_v11 = vunpack.c.h.bf16 %v1547_v59 }
 0x125   :  { %v1637_v19 = vpop.f32.mrb[24].mxu0  ;;  %v2355_v20 = vadd.f32 %v1700_v18, %v904_v14  ;;  %v1578_v18 = vld [vmem:[%s2500_s3 + $0x8] sm:$0xff]  }
 0x126   :  { %v1638_v21 = vpop.f32.mrb[25].mxu0 }
 0x127   :  { %v1639_v22 = vadd.f32 %v1638_v21, %v1637_v19  ;;  %v1640_v23 = vpop.f32.mrb[26].mxu0  ;;  %v1701_v24 = vpop.f32.mrb[24].mxu1 }
 0x128   :  { %v1641_v25 = vpop.f32.mrb[27].mxu0  ;;  %v1702_v29 = vpop.f32.mrb[25].mxu1 }
 0x129   :  { %v909_v26 = vadd.f32 %v1639_v22, %v2319_v47  ;;  %v1642_v27 = vadd.f32 %v1641_v25, %v1640_v23  ;;  %v1703_v30 = vadd.f32 %v1702_v29, %v1701_v24  ;;  %v1704_v32 = vpop.f32.mrb[26].mxu1  ;;  %v1552_v24 = vunpack.c.l.bf16 %v1578_v18 }
 0x12a   :  { %v1705_v34 = vpop.f32.mrb[27].mxu1 }
 0x12b   :  { %v912_v33 = vadd.f32 %v1642_v27, %v2319_v47  ;;  %v2359_v35 = vadd.f32 %v1703_v30, %v909_v26  ;;  %v1706_v36 = vadd.f32 %v1705_v34, %v1704_v32 }
 0x12d   :  { %v1643_v37 = vpop.f32.mrb[28].mxu0  ;;  %v2361_v38 = vadd.f32 %v1706_v36, %v912_v33 }
 0x12e   :  { %v1644_v39 = vpop.f32.mrb[29].mxu0 }
 0x12f   :  { %v1645_v40 = vadd.f32 %v1644_v39, %v1643_v37  ;;  %v1646_v41 = vpop.f32.mrb[30].mxu0  ;;  %v1707_v42 = vpop.f32.mrb[28].mxu1 }
 0x130   :  { %v1647_v43 = vpop.f32.mrb[31].mxu0  ;;  %v1708_v49 = vpop.f32.mrb[29].mxu1 }
 0x131   :  { %v917_v45 = vadd.f32 %v1645_v40, %v2319_v47  ;;  %v1648_v46 = vadd.f32 %v1647_v43, %v1646_v41  ;;  %v1709_v50 = vadd.f32 %v1708_v49, %v1707_v42  ;;  %v1710_v51 = vpop.f32.mrb[30].mxu1  ;;  %v1553_v42 = vunpack.c.h.bf16 %v1578_v18  ;;  %v1579_v49 = vld [vmem:[%s2500_s3 + $0x10] sm:$0xff]  }
 0x132   :  { %v1711_v53 = vpop.f32.mrb[31].mxu1 }
 0x133   :  { %v920_v52 = vadd.f32 %v1648_v46, %v2319_v47  ;;  %v2365_v54 = vadd.f32 %v1709_v50, %v917_v45  ;;  %v1712_v55 = vadd.f32 %v1711_v53, %v1710_v51 }
 0x135   :  { %v1729_v56 = vpop.f32.mrb[32].mxu0  ;;  %v2367_v57 = vadd.f32 %v1712_v55, %v920_v52 }
 0x136   :  { %v1730_v58 = vpop.f32.mrb[33].mxu0 }
 0x137   :  { %v1731_v61 = vadd.f32 %v1730_v58, %v1729_v56  ;;  %v1732_v0 = vpop.f32.mrb[34].mxu0  ;;  %v1805_v3 = vpop.f32.mrb[32].mxu1 }
 0x138   :  { %v1733_v1 = vpop.f32.mrb[35].mxu0  ;;  %v1151_v47 = vpop.f32.mrb[33].mxu1 }
 0x139   :  { %v1734_v4 = vadd.f32 %v1733_v1, %v1732_v0  ;;  %v1055_v5 = vadd.f32 %v1731_v61, %v2323_v60  ;;  %v1806_v7 = vpop.f32.mrb[34].mxu1  ;;  %v1556_v61 = vunpack.c.l.bf16 %v1579_v49 }
 0x13a   :  { %v1154_v10 = vpop.f32.mrb[35].mxu1 }
 0x13b   :  { %v1152_v8 = vadd.f32 %v1151_v47, %v1055_v5  ;;  %v1058_v9 = vadd.f32 %v1734_v4, %v2325_v63 }
 0x13d   :  { %v1246_v13 = vadd.f32 %v1548_v6, %v1152_v8  ;;  %v1155_v14 = vadd.f32 %v1154_v10, %v1058_v9  ;;  %v1735_v16 = vpop.f32.mrb[36].mxu0  ;;  %v1557_v6 = vunpack.c.h.bf16 %v1579_v49 }
 0x13e   :  { %v1736_v19 = vpop.f32.mrb[37].mxu0 }
 0x13f   :  { %vm1262_vm1 = vcmp.gt.f32.partialorder %v1246_v13, 0.0  ;;  %v1278_v21 = vmul.f32 0.2, %v1246_v13  ;;  %v1247_v22 = vadd.f32 %v1549_v11, %v1155_v14  ;;  %v1737_v60 = vadd.f32 %v1736_v19, %v1735_v16  ;;  %v1738_v23 = vpop.f32.mrb[38].mxu0  ;;  %v2377_v26 = vpop.f32.mrb[36].mxu1 }
 0x140   :  { %v1739_v25 = vpop.f32.mrb[39].mxu0  ;;  %v1167_v30 = vpop.f32.mrb[37].mxu1 }
 0x141   :  { %v1294_v63 = vsel %vm1262_vm1, %v1246_v13, %v1278_v21  ;;  %vm1263_vm3 = vcmp.gt.f32.partialorder %v1247_v22, 0.0  ;;  %v1279_v27 = vmul.f32 0.2, %v1247_v22  ;;  %v1063_v29 = vadd.f32 %v1737_v60, %v2329_v12  ;;  %v2380_v34 = vpop.f32.mrb[38].mxu1  ;;  %v1580_v13 = vld [vmem:[%s2500_s3 + $0x18] sm:$0xff]  }
 0x142   :  { %v1530_v32 = vpack.c.bf16 %v1294_v63, %v1294_v63  ;;  %v1740_v33 = vadd.f32 %v1739_v25, %v1738_v23  ;;  %v1170_v39 = vpop.f32.mrb[39].mxu1  ;;  %v1560_v21 = vunpack.c.l.bf16 %v1580_v13 }
 0x143   :  { %v1295_v36 = vsel %vm1263_vm3, %v1247_v22, %v1279_v27  ;;  %v1160_v37 = vadd.f32 %v1805_v3, %v1063_v29 }
 0x144   :  { %1375 = vst.msk [vmem:[%s2501_s4] sm:$0xf] %vm1374_vm2, %v1530_v32  ;;  %v1531_v40 = vpack.c.bf16 %v1295_v36, %v1295_v36  ;;  %v1066_v41 = vadd.f32 %v1740_v33, %v2331_v15 }
 0x145   :  { %v1248_v43 = vadd.f32 %v1552_v24, %v1160_v37  ;;  %v1741_v45 = vpop.f32.mrb[40].mxu0 }
 0x146   :  { %1376 = vst.msk [vmem:[%s2501_s4 + $0x4] sm:$0xf] %vm1374_vm2, %v1531_v40  ;;  %v1163_v12 = vadd.f32 %v1806_v7, %v1066_v41  ;;  %v1742_v46 = vpop.f32.mrb[41].mxu0 }
 0x147   :  { %vm1264_vm4 = vcmp.gt.f32.partialorder %v1248_v43, 0.0  ;;  %v1280_v50 = vmul.f32 0.2, %v1248_v43  ;;  %v1743_v51 = vadd.f32 %v1742_v46, %v1741_v45  ;;  %v1744_v52 = vpop.f32.mrb[42].mxu0  ;;  %v2394_v55 = vpop.f32.mrb[40].mxu1 }
 0x148   :  { %v1249_v53 = vadd.f32 %v1553_v42, %v1163_v12  ;;  %v1745_v15 = vpop.f32.mrb[43].mxu0  ;;  %v1183_v0 = vpop.f32.mrb[41].mxu1 }
 0x149   :  { %v1296_v56 = vsel %vm1264_vm4, %v1248_v43, %v1280_v50  ;;  %v1746_v58 = vadd.f32 %v1745_v15, %v1744_v52  ;;  %v1071_v59 = vadd.f32 %v1743_v51, %v2335_v28  ;;  %v2397_v4 = vpop.f32.mrb[42].mxu1  ;;  %v1581_v43 = vld [vmem:[%s2500_s3 + $0x20] sm:$0xff]  }
 0x14a   :  { %v1532_v1 = vpack.c.bf16 %v1296_v56, %v1296_v56  ;;  %vm1265_vm5 = vcmp.gt.f32.partialorder %v1249_v53, 0.0  ;;  %v1281_v3 = vmul.f32 0.2, %v1249_v53  ;;  %v1186_v7 = vpop.f32.mrb[43].mxu1 }
 0x14b   :  { %v1168_v5 = vadd.f32 %v1167_v30, %v1071_v59  ;;  %v1074_v47 = vadd.f32 %v1746_v58, %v2337_v31  ;;  %v1565_v59 = vunpack.c.h.bf16 %v1581_v43 }
 0x14c   :  { %1377 = vst.msk [vmem:[%s2501_s4 + $0x8] sm:$0xf] %vm1374_vm2, %v1532_v1  ;;  %v1297_v8 = vsel %vm1265_vm5, %v1249_v53, %v1281_v3  ;;  %v1564_v53 = vunpack.c.l.bf16 %v1581_v43 }
 0x14d   :  { %v1533_v9 = vpack.c.bf16 %v1297_v8, %v1297_v8  ;;  %v1250_v28 = vadd.f32 %v1556_v61, %v1168_v5  ;;  %v1171_v10 = vadd.f32 %v1170_v39, %v1074_v47  ;;  %v1747_v11 = vpop.f32.mrb[44].mxu0 }
 0x14e   :  { %v1748_v14 = vpop.f32.mrb[45].mxu0 }
 0x14f   :  { %1378 = vst.msk [vmem:[%s2501_s4 + $0xc] sm:$0xf] %vm1374_vm2, %v1533_v9  ;;  %vm1266_vm6 = vcmp.gt.f32.partialorder %v1250_v28, 0.0  ;;  %v1282_v31 = vmul.f32 0.2, %v1250_v28  ;;  %v1251_v16 = vadd.f32 %v1557_v6, %v1171_v10  ;;  %v1749_v18 = vadd.f32 %v1748_v14, %v1747_v11  ;;  %v1750_v19 = vpop.f32.mrb[46].mxu0 }
 0x150   :  { %v1751_v22 = vpop.f32.mrb[47].mxu0  ;;  %v2411_v60 = vpop.f32.mrb[44].mxu1 }
 0x151   :  { %v1298_v23 = vsel %vm1266_vm6, %v1250_v28, %v1282_v31  ;;  %vm1267_vm7 = vcmp.gt.f32.partialorder %v1251_v16, 0.0  ;;  %v1283_v24 = vmul.f32 0.2, %v1251_v16  ;;  %v1079_v25 = vadd.f32 %v1749_v18, %v2341_v44  ;;  %v2414_v63 = vpop.f32.mrb[45].mxu1 }
 0x152   :  { %v1534_v27 = vpack.c.bf16 %v1298_v23, %v1298_v23  ;;  %v1752_v29 = vadd.f32 %v1751_v22, %v1750_v19  ;;  %v2416_v30 = vpop.f32.mrb[46].mxu1  ;;  %v1561_v44 = vunpack.c.h.bf16 %v1580_v13 }
 0x153   :  { %v1299_v32 = vsel %vm1267_vm7, %v1251_v16, %v1283_v24  ;;  %v1176_v33 = vadd.f32 %v2377_v26, %v1079_v25  ;;  %v2419_v36 = vpop.f32.mrb[47].mxu1 }
 0x154   :  { %1379 = vst.msk [vmem:[%s2501_s4 + $0x10] sm:$0xf] %vm1374_vm2, %v1534_v27  ;;  %v1535_v37 = vpack.c.bf16 %v1299_v32, %v1299_v32  ;;  %v1082_v39 = vadd.f32 %v1752_v29, %v2343_v48 }
 0x155   :  { %v1252_v40 = vadd.f32 %v1560_v21, %v1176_v33  ;;  %v1753_v41 = vpop.f32.mrb[48].mxu0 }
 0x156   :  { %1380 = vst.msk [vmem:[%s2501_s4 + $0x14] sm:$0xf] %vm1374_vm2, %v1535_v37  ;;  %v1179_v26 = vadd.f32 %v2380_v34, %v1082_v39  ;;  %v1754_v42 = vpop.f32.mrb[49].mxu0 }
 0x157   :  { %vm1268_vm8 = vcmp.gt.f32.partialorder %v1252_v40, 0.0  ;;  %v1284_v45 = vmul.f32 0.2, %v1252_v40  ;;  %v1755_v12 = vadd.f32 %v1754_v42, %v1753_v41  ;;  %v1756_v46 = vpop.f32.mrb[50].mxu0 }
 0x158   :  { %v1253_v48 = vadd.f32 %v1561_v44, %v1179_v26  ;;  %v1757_v49 = vpop.f32.mrb[51].mxu0 }
 0x159   :  { %v1300_v50 = vsel %vm1268_vm8, %v1252_v40, %v1284_v45  ;;  %v1758_v51 = vadd.f32 %v1757_v49, %v1756_v46  ;;  %v1087_v52 = vadd.f32 %v1755_v12, %v2347_v62  ;;  %v1582_v62 = vld [vmem:[%s2500_s3 + $0x28] sm:$0xff]   ;;  %v1584_v49 = vld [vmem:[%s2500_s3 + $0x38] sm:$0xff]  }
 0x15a   :  { %v1536_v15 = vpack.c.bf16 %v1300_v50, %v1300_v50  ;;  %vm1269_vm9 = vcmp.gt.f32.partialorder %v1253_v48, 0.0  ;;  %v1285_v56 = vmul.f32 0.2, %v1253_v48  ;;  %v1568_v28 = vunpack.c.l.bf16 %v1582_v62 }
 0x15b   :  { %v1184_v34 = vadd.f32 %v1183_v0, %v1087_v52  ;;  %v1090_v58 = vadd.f32 %v1758_v51, %v2349_v2  ;;  %v1569_v22 = vunpack.c.h.bf16 %v1582_v62 }
 0x15c   :  { %1381 = vst.msk [vmem:[%s2501_s4 + $0x18] sm:$0xf] %vm1374_vm2, %v1536_v15  ;;  %v1301_v61 = vsel %vm1269_vm9, %v1253_v48, %v1285_v56 }
 0x15d   :  { %v1537_v1 = vpack.c.bf16 %v1301_v61, %v1301_v61  ;;  %v1254_v3 = vadd.f32 %v1564_v53, %v1184_v34  ;;  %v1187_v5 = vadd.f32 %v1186_v7, %v1090_v58  ;;  %v1759_v47 = vpop.f32.mrb[52].mxu0  ;;  %v1576_v53 = vunpack.c.l.bf16 %v1584_v49 }
 0x15e   :  { %v1760_v6 = vpop.f32.mrb[53].mxu0 }
 0x15f   :  { %1382 = vst.msk [vmem:[%s2501_s4 + $0x1c] sm:$0xf] %vm1374_vm2, %v1537_v1  ;;  %vm1270_vm10 = vcmp.gt.f32.partialorder %v1254_v3, 0.0  ;;  %v1286_v2 = vmul.f32 0.2, %v1254_v3  ;;  %v1255_v0 = vadd.f32 %v1565_v59, %v1187_v5  ;;  %v1761_v8 = vadd.f32 %v1760_v6, %v1759_v47  ;;  %v1762_v9 = vpop.f32.mrb[54].mxu0 }
 0x160   :  { %v1763_v10 = vpop.f32.mrb[55].mxu0  ;;  %v1577_v47 = vunpack.c.h.bf16 %v1584_v49 }
 0x161   :  { %v1302_v11 = vsel %vm1270_vm10, %v1254_v3, %v1286_v2  ;;  %vm1271_vm11 = vcmp.gt.f32.partialorder %v1255_v0, 0.0  ;;  %v1287_v7 = vmul.f32 0.2, %v1255_v0  ;;  %v1095_v13 = vadd.f32 %v1761_v8, %v2353_v17 }
 0x162   :  { %v1538_v14 = vpack.c.bf16 %v1302_v11, %v1302_v11  ;;  %v1764_v31 = vadd.f32 %v1763_v10, %v1762_v9 }
 0x163   :  { %v1303_v16 = vsel %vm1271_vm11, %v1255_v0, %v1287_v7  ;;  %v1192_v18 = vadd.f32 %v2394_v55, %v1095_v13  ;;  %v1583_v55 = vld [vmem:[%s2500_s3 + $0x30] sm:$0xff]  }
 0x164   :  { %1383 = vst.msk [vmem:[%s2501_s4 + $0x20] sm:$0xf] %vm1374_vm2, %v1538_v14  ;;  %v1539_v19 = vpack.c.bf16 %v1303_v16, %v1303_v16  ;;  %v1098_v21 = vadd.f32 %v1764_v31, %v2355_v20  ;;  %v1572_v40 = vunpack.c.l.bf16 %v1583_v55  ;;  %v1573_v43 = vunpack.c.h.bf16 %v1583_v55 }
 0x165   :  { %v1256_v23 = vadd.f32 %v1568_v28, %v1192_v18  ;;  %v1765_v24 = vpop.f32.mrb[56].mxu0 }
 0x166   :  { %1384 = vst.msk [vmem:[%s2501_s4 + $0x24] sm:$0xf] %vm1374_vm2, %v1539_v19  ;;  %v1195_v17 = vadd.f32 %v2397_v4, %v1098_v21  ;;  %v1766_v25 = vpop.f32.mrb[57].mxu0 }
 0x167   :  { %vm1272_vm12 = vcmp.gt.f32.partialorder %v1256_v23, 0.0  ;;  %v1288_v27 = vmul.f32 0.2, %v1256_v23  ;;  %v1767_v29 = vadd.f32 %v1766_v25, %v1765_v24  ;;  %v1768_v32 = vpop.f32.mrb[58].mxu0 }
 0x168   :  { %v1257_v20 = vadd.f32 %v1569_v22, %v1195_v17  ;;  %v1769_v33 = vpop.f32.mrb[59].mxu0 }
 0x169   :  { %v1304_v37 = vsel %vm1272_vm12, %v1256_v23, %v1288_v27  ;;  %v1770_v39 = vadd.f32 %v1769_v33, %v1768_v32  ;;  %v1103_v44 = vadd.f32 %v1767_v29, %v2359_v35 }
 0x16a   :  { %v1540_v41 = vpack.c.bf16 %v1304_v37, %v1304_v37  ;;  %vm1273_vm13 = vcmp.gt.f32.partialorder %v1257_v20, 0.0  ;;  %v1289_v26 = vmul.f32 0.2, %v1257_v20 }
 0x16b   :  { %v1200_v4 = vadd.f32 %v2414_v63, %v1103_v44  ;;  %v1106_v42 = vadd.f32 %v1770_v39, %v2361_v38 }
 0x16c   :  { %1385 = vst.msk [vmem:[%s2501_s4 + $0x28] sm:$0xf] %vm1374_vm2, %v1540_v41  ;;  %v1305_v45 = vsel %vm1273_vm13, %v1257_v20, %v1289_v26 }
 0x16d   :  { %v1541_v12 = vpack.c.bf16 %v1305_v45, %v1305_v45  ;;  %v1258_v46 = vadd.f32 %v1572_v40, %v1200_v4  ;;  %v1203_v48 = vadd.f32 %v2419_v36, %v1106_v42  ;;  %v1771_v35 = vpop.f32.mrb[60].mxu0 }
 0x16e   :  { %v1772_v50 = vpop.f32.mrb[61].mxu0 }
 0x16f   :  { %1386 = vst.msk [vmem:[%s2501_s4 + $0x2c] sm:$0xf] %vm1374_vm2, %v1541_v12  ;;  %vm1274_vm14 = vcmp.gt.f32.partialorder %v1258_v46, 0.0  ;;  %v1290_v38 = vmul.f32 0.2, %v1258_v46  ;;  %v1259_v63 = vadd.f32 %v1573_v43, %v1203_v48  ;;  %v1773_v51 = vadd.f32 %v1772_v50, %v1771_v35  ;;  %v1774_v52 = vpop.f32.mrb[62].mxu0 }
 0x170   :  { %v1775_v15 = vpop.f32.mrb[63].mxu0 }
 0x171   :  { %v1306_v56 = vsel %vm1274_vm14, %v1258_v46, %v1290_v38  ;;  %vm1275_vm15 = vcmp.gt.f32.partialorder %v1259_v63, 0.0  ;;  %v1291_v36 = vmul.f32 0.2, %v1259_v63  ;;  %v1111_v34 = vadd.f32 %v1773_v51, %v2365_v54 }
 0x172   :  { %v1542_v58 = vpack.c.bf16 %v1306_v56, %v1306_v56  ;;  %v1776_v59 = vadd.f32 %v1775_v15, %v1774_v52 }
 0x173   :  { %v1307_v61 = vsel %vm1275_vm15, %v1259_v63, %v1291_v36  ;;  %v1208_v1 = vadd.f32 %v2411_v60, %v1111_v34 }
 0x174   :  { %1387 = vst.msk [vmem:[%s2501_s4 + $0x30] sm:$0xf] %vm1374_vm2, %v1542_v58  ;;  %v1543_v3 = vpack.c.bf16 %v1307_v61, %v1307_v61  ;;  %v1114_v5 = vadd.f32 %v1776_v59, %v2367_v57 }
 0x175   :  { %v1260_v62 = vadd.f32 %v1576_v53, %v1208_v1 }
 0x176   :  { %1388 = vst.msk [vmem:[%s2501_s4 + $0x34] sm:$0xf] %vm1374_vm2, %v1543_v3  ;;  %v1211_v54 = vadd.f32 %v2416_v30, %v1114_v5 }
 0x177   :  { %vm1276_vm0 = vcmp.gt.f32.partialorder %v1260_v62, 0.0  ;;  %v1292_v6 = vmul.f32 0.2, %v1260_v62 }
 0x178   :  { %v1261_v60 = vadd.f32 %v1577_v47, %v1211_v54 }
 0x179   :  { %v1308_v2 = vsel %vm1276_vm0, %v1260_v62, %v1292_v6 }
 0x17a   :  { %v1544_v0 = vpack.c.bf16 %v1308_v2, %v1308_v2  ;;  %vm1277_vm1 = vcmp.gt.f32.partialorder %v1261_v60, 0.0  ;;  %v1293_v8 = vmul.f32 0.2, %v1261_v60 }
 0x17c   :  { %1389 = vst.msk [vmem:[%s2501_s4 + $0x38] sm:$0xf] %vm1374_vm2, %v1544_v0  ;;  %v1309_v57 = vsel %vm1277_vm1, %v1261_v60, %v1293_v8 }
 0x17d   :  { %v1545_v9 = vpack.c.bf16 %v1309_v57, %v1309_v57 }
 0x17f   :  { %1390 = vst.msk [vmem:[%s2501_s4 + $0x3c] sm:$0xf] %vm1374_vm2, %v1545_v9 }

// kernel: voxel_processing.31
= control target key start
LH: loop header
LB: loop body
LE: loop exit
PB: predicated region body
PF: predicated region fallthrough
CT: control target
= control target key end

     0   :  { %s935_s15 = smov 0   ;;  %s937_s16 = smov 0   ;;  %s1081_s0 = inlined_call_operand.vmem [shape: bf16[32,128], index: 0, kind: input, shape index: {}]   ;;  %s1082_s1 = inlined_call_operand.vmem [shape: bf16[32,128], index: 1, kind: input, shape index: {}]   ;;  %s1083_s2 = inlined_call_operand.vmem [shape: bf16[128,512], index: 2, kind: input, shape index: {}]   ;;  %s1084_s3 = inlined_call_operand.vmem [shape: f32[1,512], index: 3, kind: input, shape index: {}]   ;;  %s1085_s4 = inlined_call_operand.vmem [shape: f32[32,512], index: 4, kind: output, shape index: {}]  }
   0x1   :  { %s939_s17 = smov 0   ;;  %s941_s18 = smov 0  }
   0x2   :  { %s943_s19 = smov 0  }
   0x3 LB: > { %s23_s20 = sadd.s32 1, %s903_s18  ;;  %s734_s21 = sadd.s32 4294967295, %s907_s19   ;;  %s907_s19 = sphi %s943_s19, %s14_s19   ;;  %s903_s18 = sphi %s941_s18, %s1090_s18   ;;  %s899_s17 = sphi %s939_s17, %s1089_s17   ;;  %s895_s16 = sphi %s937_s16, %s1088_s16   ;;  %s891_s15 = sphi %s935_s15, %s1087_s15  }
   0x4   : > { %p24_p0 = scmp.ge.s32.totalorder %s23_s20, 2  ;;  %p92_p1 = scmp.ne.s32.totalorder %s895_s16, %s891_s15 }
   0x5   : > { %p93_p2 = scmp.eq.s32.totalorder %s907_s19, 0  ;;  %p150_p4 = scmp.eq.s32.totalorder %s734_s21, 1 }
   0x6   : > { %s1092_s20 = smov (%p24_p0, %s23_s20), 0  ;;  %s85_s23 = sadd.s32 1, %s895_s16 }
   0x7   : > { %p94_p3 = por %p93_p2, %p92_p1  ;;  %s82_s22 = ssub.s32 %s903_s18, %s1092_s20 }
   0x8   : > { %p83_p5 = scmp.eq.s32.totalorder %s82_s22, 0  ;;  %p970_p6 = por %p150_p4, %p92_p1 }
   0x9   : > { %p739_p7 = scmp.ge.s32.totalorder %s907_s19, 2 }
   0xa   : > { %s975_s25 = scalar_select %p83_p5, %s895_s16, %s85_s23  }
   0xb   : > { %190 = sbr.rel (%p739_p7) target bundleno = 30 (0x1e), region = 24 }
  0x12   : > { %193 = sbr.rel (!%p94_p3) target bundleno = 30 (0x1e), region = 28  ;;  %s195_s26 = sand.u32 (%p94_p3), 1, %s895_s16  }
  0x13   : > { %s768_s27 = sshll.u32 (%p94_p3), %s903_s18, 3  ;;  %s740_s28 = sshll.u32 (%p94_p3), %s195_s26, 7 }
  0x14   : > { %s983_s5 = scalar_lea.vmem (%p94_p3), %s1083_s2, %s768_s27  ;;  %s197_s6 = scalar_lea.vmem (%p94_p3), [#allocation2], %s740_s28 }
  0x15   : > { %v258_v0 = vld [vmem:[%s983_s5] sm:$0xff] (%p94_p3)  ;;  %v260_v1 = vld [vmem:[%s983_s5 + $0x10] sm:$0xff] (%p94_p3) }
  0x16   : > { %v262_v2 = vld [vmem:[%s983_s5 + $0x20] sm:$0xff] (%p94_p3)  ;;  %259 = vst [vmem:[%s197_s6] sm:$0xff] (%p94_p3), %v258_v0  ;;  %261 = vst [vmem:[%s197_s6 + $0x8] sm:$0xff] (%p94_p3), %v260_v1  ;;  %v264_v3 = vld [vmem:[%s983_s5 + $0x30] sm:$0xff] (%p94_p3) }
  0x17   : > { %263 = vst [vmem:[%s197_s6 + $0x10] sm:$0xff] (%p94_p3), %v262_v2  ;;  %v266_v4 = vld [vmem:[%s983_s5 + $0x40] sm:$0xff] (%p94_p3)  ;;  %v268_v5 = vld [vmem:[%s983_s5 + $0x50] sm:$0xff] (%p94_p3)  ;;  %265 = vst [vmem:[%s197_s6 + $0x18] sm:$0xff] (%p94_p3), %v264_v3 }
  0x18   : > { %267 = vst [vmem:[%s197_s6 + $0x20] sm:$0xff] (%p94_p3), %v266_v4  ;;  %269 = vst [vmem:[%s197_s6 + $0x28] sm:$0xff] (%p94_p3), %v268_v5  ;;  %v270_v6 = vld [vmem:[%s983_s5 + $0x60] sm:$0xff] (%p94_p3)  ;;  %v272_v7 = vld [vmem:[%s983_s5 + $0x70] sm:$0xff] (%p94_p3) }
  0x19   : > { %v274_v8 = vld [vmem:[%s983_s5 + $0x80] sm:$0xff]  ;;  %271 = vst [vmem:[%s197_s6 + $0x30] sm:$0xff] %v270_v6  ;;  %273 = vst [vmem:[%s197_s6 + $0x38] sm:$0xff] %v272_v7  ;;  %v276_v9 = vld [vmem:[%s983_s5 + $0x90] sm:$0xff] }
  0x1a   : > { %275 = vst [vmem:[%s197_s6 + $0x40] sm:$0xff] %v274_v8  ;;  %v278_v10 = vld [vmem:[%s983_s5 + $0xa0] sm:$0xff]  ;;  %v280_v11 = vld [vmem:[%s983_s5 + $0xb0] sm:$0xff]  ;;  %277 = vst [vmem:[%s197_s6 + $0x48] sm:$0xff] %v276_v9 }
  0x1b   : > { %279 = vst [vmem:[%s197_s6 + $0x50] sm:$0xff] %v278_v10  ;;  %281 = vst [vmem:[%s197_s6 + $0x58] sm:$0xff] %v280_v11  ;;  %v282_v12 = vld [vmem:[%s983_s5 + $0xc0] sm:$0xff]  ;;  %v284_v13 = vld [vmem:[%s983_s5 + $0xd0] sm:$0xff] }
  0x1c   : > { %v286_v14 = vld [vmem:[%s983_s5 + $0xe0] sm:$0xff]  ;;  %283 = vst [vmem:[%s197_s6 + $0x60] sm:$0xff] %v282_v12  ;;  %285 = vst [vmem:[%s197_s6 + $0x68] sm:$0xff] %v284_v13  ;;  %v288_v15 = vld [vmem:[%s983_s5 + $0xf0] sm:$0xff] }
  0x1d   : > { %287 = vst [vmem:[%s197_s6 + $0x70] sm:$0xff] %v286_v14  ;;  %289 = vst [vmem:[%s197_s6 + $0x78] sm:$0xff] %v288_v15 }
  0x1e PF: > { %p743_p8 = scmp.ge.s32.totalorder %s907_s19, 1  ;;  %p302_p9 = scmp.lt.s32.totalorder %s907_s19, 3 }
  0x20   : > { %p303_p10 = pnand %p743_p8, %p302_p9 }
  0x21   : > { %s309_s7 = sand.u32 (!%p303_p10), 1, %s891_s15   ;;  %v909_v16 = vmov (!%p303_p10), 0   ;;  %v771_v28 = vld [vmem:[%s1081_s0] sm:$0xff] (!%p303_p10)   ;;  %v786_v31 = vld [vmem:[%s1081_s0 + $0x8] sm:$0xff] (!%p303_p10)   ;;  %s746_s26 = sshll.u32 (!%p303_p10), %s899_s17, 1  ;;  %v408_v51 = vlaneseq (!%p303_p10) }
  0x22   : > { %306 = sbr.rel (%p303_p10) target bundleno = 301 (0x12d), region = 70  ;;  %s744_s8 = sshll.u32 (!%p303_p10), %s309_s7, 7  ;;  %530 = vmatprep.mubr.bf16.mxu0 (!%p303_p10), %v909_v16  ;;  %540 = vmatprep.mubr.bf16.mxu1 (!%p303_p10), %v909_v16  ;;  %v779_v29 = vld [vmem:[%s1082_s1] sm:$0xff] (!%p303_p10)   ;;  %v787_v32 = vld [vmem:[%s1082_s1 + $0x8] sm:$0xff] (!%p303_p10)   ;;  %v772_v34 = vunpack.c.l.bf16 (!%p303_p10), %v771_v28  ;;  %v773_v35 = vunpack.c.h.bf16 (!%p303_p10), %v771_v28  ;;  %v776_v38 = vunpack.c.l.bf16 (!%p303_p10), %v786_v31  ;;  %v777_v39 = vunpack.c.h.bf16 (!%p303_p10), %v786_v31 }
  0x23   : > { %s1006_s9 = scalar_lea.vmem (!%p303_p10), [#allocation2], %s744_s8  ;;  %v780_v36 = vunpack.c.l.bf16 (!%p303_p10), %v779_v29  ;;  %v781_v37 = vunpack.c.h.bf16 (!%p303_p10), %v779_v29  ;;  %v784_v40 = vunpack.c.l.bf16 (!%p303_p10), %v787_v32  ;;  %v785_v41 = vunpack.c.h.bf16 (!%p303_p10), %v787_v32  ;;  %p361_p11 = scmp.lt.s32.totalorder (!%p303_p10), %s746_s26, 3 }
  0x24   : > { %v845_v17 = vld [vmem:[%s1006_s9 + $0x4] ss:$8 sps:$4 sm:$0xff] (!%p303_p10)   ;;  %v847_v18 = vld [vmem:[%s1006_s9] ss:$8 sps:$4 sm:$0xff] (!%p303_p10)   ;;  %v848_v19 = vld [vmem:[%s1006_s9 + $0x14] ss:$8 sps:$4 sm:$0xff] (!%p303_p10)  }
  0x25   : > { %498 = vmatprep.subr.bf16.mxu0 (!%p303_p10), %v845_v17  ;;  %788 = vmatprep.subr.bf16.mxu1 (!%p303_p10), %v845_v17  ;;  %v850_v20 = vld [vmem:[%s1006_s9 + $0x10] ss:$8 sps:$4 sm:$0xff] (!%p303_p10)   ;;  %v851_v21 = vld [vmem:[%s1006_s9 + $0x24] ss:$8 sps:$4 sm:$0xff] (!%p303_p10)   ;;  %v853_v22 = vld [vmem:[%s1006_s9 + $0x20] ss:$8 sps:$4 sm:$0xff] (!%p303_p10)   ;;  %v384_v44 = vadd.f32 (!%p303_p10), %v780_v36, %v772_v34  ;;  %v385_v45 = vadd.f32 (!%p303_p10), %v781_v37, %v773_v35  ;;  %v386_v46 = vadd.f32 (!%p303_p10), %v784_v40, %v776_v38 }
  0x26   : > { %499 = vmatpush1.bf16.msra.mxu0 (!%p303_p10), %v847_v18  ;;  %796 = vmatpush1.bf16.msra.mxu1 (!%p303_p10), %v847_v18  ;;  %v854_v23 = vld [vmem:[%s1006_s9 + $0x34] ss:$8 sps:$4 sm:$0xff] (!%p303_p10)   ;;  %v856_v24 = vld [vmem:[%s1006_s9 + $0x30] ss:$8 sps:$4 sm:$0xff] (!%p303_p10)   ;;  %v857_v25 = vld [vmem:[%s1006_s9 + $0x44] ss:$8 sps:$4 sm:$0xff] (!%p303_p10)   ;;  %v387_v47 = vadd.f32 (!%p303_p10), %v785_v41, %v777_v39 }
  0x27   : > { %500 = vmatprep.subr.bf16.mxu0 (!%p303_p10), %v848_v19  ;;  %789 = vmatprep.subr.bf16.mxu1 (!%p303_p10), %v848_v19  ;;  %v859_v26 = vld [vmem:[%s1006_s9 + $0x40] ss:$8 sps:$4 sm:$0xff] (!%p303_p10)   ;;  %v860_v27 = vld [vmem:[%s1006_s9 + $0x54] ss:$8 sps:$4 sm:$0xff] (!%p303_p10)   ;;  %v862_v30 = vld [vmem:[%s1006_s9 + $0x50] ss:$8 sps:$4 sm:$0xff] (!%p303_p10)   ;;  %v388_v49 = vpack.c.bf16 (!%p303_p10), %v385_v45, %v384_v44 }
  0x28   : > { %v863_v33 = vld [vmem:[%s1006_s9 + $0x64] ss:$8 sps:$4 sm:$0xff] (!%p303_p10)   ;;  %v865_v42 = vld [vmem:[%s1006_s9 + $0x60] ss:$8 sps:$4 sm:$0xff] (!%p303_p10)   ;;  %v866_v43 = vld [vmem:[%s1006_s9 + $0x74] ss:$8 sps:$4 sm:$0xff] (!%p303_p10)   ;;  %v389_v50 = vpack.c.bf16 (!%p303_p10), %v387_v47, %v386_v46 }
  0x29   : > { %v868_v48 = vld [vmem:[%s1006_s9 + $0x70] ss:$8 sps:$4 sm:$0xff]   ;;  %s1094_s26 = smov (!%p361_p11, %s746_s26), 3  ;;  %v409_v52 = vshrl.u32 %v408_v51, 7  ;;  %s745_s30 = sshll.u32 %s309_s7, 6 }
  0x2a   : > { %501 = vmatpush1.bf16.msra.mxu0 %v850_v20  ;;  %797 = vmatpush1.bf16.msra.mxu1 %v850_v20  ;;  %s363_s29 = scalar_lea.vmem %s1084_s3, %s1094_s26  ;;  %s1042_s15 = scalar_lea.vmem [#allocation3], %s745_s30 }
  0x2b   : > { %502 = vmatprep.subr.bf16.mxu0 %v851_v21  ;;  %790 = vmatprep.subr.bf16.mxu1 %v851_v21  ;;  %v410_v53 = vsub.s32 0, %v409_v52  ;;  %v406_v54 = vld [vmem:[%s363_s29] sm:$0x3]  ;;  %v414_v55 = vsub.s32 1, %v409_v52  ;;  %s769_s5 = sshll.u32 (%p970_p6), %s899_s17, 4 }
  0x2c   : > { %s595_s8 = scalar_lea.vmem (%p970_p6), %s1085_s4, %s769_s5 }
  0x2d   : > { %v411_v56 = vrot.slane %v406_v54, %v410_v53  ;;  %v415_v57 = vrot.slane %v406_v54, %v414_v55 }
  0x2e   : > { %503 = vmatpush1.bf16.msra.mxu0 %v853_v22  ;;  %798 = vmatpush1.bf16.msra.mxu1 %v853_v22 }
  0x2f   : > { %504 = vmatprep.subr.bf16.mxu0 %v854_v23  ;;  %791 = vmatprep.subr.bf16.mxu1 %v854_v23 }
  0x32   : > { %505 = vmatpush1.bf16.msra.mxu0 %v856_v24  ;;  %799 = vmatpush1.bf16.msra.mxu1 %v856_v24 }
  0x33   : > { %506 = vmatprep.subr.bf16.mxu0 %v857_v25  ;;  %792 = vmatprep.subr.bf16.mxu1 %v857_v25 }
  0x36   : > { %507 = vmatpush1.bf16.msra.mxu0 %v859_v26  ;;  %800 = vmatpush1.bf16.msra.mxu1 %v859_v26 }
  0x37   : > { %508 = vmatprep.subr.bf16.mxu0 %v860_v27  ;;  %793 = vmatprep.subr.bf16.mxu1 %v860_v27 }
  0x3a   : > { %509 = vmatpush1.bf16.msra.mxu0 %v862_v30  ;;  %801 = vmatpush1.bf16.msra.mxu1 %v862_v30 }
  0x3b   : > { %510 = vmatprep.subr.bf16.mxu0 %v863_v33  ;;  %794 = vmatprep.subr.bf16.mxu1 %v863_v33 }
  0x3e   : > { %511 = vmatpush1.bf16.msra.mxu0 %v865_v42  ;;  %802 = vmatpush1.bf16.msra.mxu1 %v865_v42 }
  0x3f   : > { %512 = vmatprep.subr.bf16.mxu0 %v866_v43  ;;  %795 = vmatprep.subr.bf16.mxu1 %v866_v43 }
  0x42   : > { %513 = vmatpush1.bf16.msra.mxu0 %v868_v48  ;;  %803 = vmatpush1.bf16.msra.mxu1 %v868_v48 }
  0x45   : > { %531 = vmatmul.mubr.bf16.vlgmr.msra.gmra.mrb[0].mxu0 %v388_v49  ;;  %541 = vmatmul.mubr.bf16.vlgmr.msra.gmra.mrb[0].mxu1 %v389_v50 }
 0x118   : > { %v532_v58 = vpop.f32.mrb[0].mxu0  ;;  %v542_v59 = vpop.f32.mrb[0].mxu1 }
 0x119   : > { %v533_v60 = vadd.f32 %v532_v58, %v411_v56  ;;  %v543_v61 = vadd.f32 %v542_v59, %v411_v56  ;;  %v534_v62 = vpop.f32.mrb[1].mxu0  ;;  %v544_v63 = vpop.f32.mrb[1].mxu1 }
 0x11a   : > { %v535_v0 = vadd.f32 %v534_v62, %v415_v57  ;;  %v545_v1 = vadd.f32 %v544_v63, %v415_v57  ;;  %v536_v2 = vpop.f32.mrb[2].mxu0  ;;  %v546_v3 = vpop.f32.mrb[2].mxu1 }
 0x11b   : > { %vm551_vm0 = vcmp.gt.f32.partialorder %v533_v60, 0.0  ;;  %v559_v4 = vmul.f32 0.3, %v533_v60  ;;  %vm555_vm1 = vcmp.gt.f32.partialorder %v543_v61, 0.0  ;;  %v563_v5 = vmul.f32 0.3, %v543_v61 }
 0x11c   : > { %vm552_vm2 = vcmp.gt.f32.partialorder %v535_v0, 0.0  ;;  %v560_v6 = vmul.f32 0.3, %v535_v0  ;;  %vm556_vm3 = vcmp.gt.f32.partialorder %v545_v1, 0.0  ;;  %v564_v7 = vmul.f32 0.3, %v545_v1 }
 0x11d   : > { %v567_v8 = vsel %vm551_vm0, %v533_v60, %v559_v4  ;;  %v571_v9 = vsel %vm555_vm1, %v543_v61, %v563_v5  ;;  %v537_v10 = vadd.f32 %v536_v2, %v411_v56  ;;  %v547_v11 = vadd.f32 %v546_v3, %v411_v56  ;;  %v538_v12 = vpop.f32.mrb[3].mxu0  ;;  %v548_v13 = vpop.f32.mrb[3].mxu1 }
 0x11e   : > { %575 = vst [vmem:[%s1042_s15] sm:$0xff] %v567_v8  ;;  %579 = vst [vmem:[%s1042_s15 + $0x20] sm:$0xff] %v571_v9  ;;  %v568_v14 = vsel %vm552_vm2, %v535_v0, %v560_v6  ;;  %v572_v15 = vsel %vm556_vm3, %v545_v1, %v564_v7  ;;  %v539_v16 = vadd.f32 %v538_v12, %v415_v57  ;;  %589 = sbr.rel (!%p970_p6) target bundleno = 301 (0x12d), region = 78 }
 0x11f   : > { %v549_v17 = vadd.f32 %v548_v13, %v415_v57  ;;  %576 = vst [vmem:[%s1042_s15 + $0x8] sm:$0xff] %v568_v14  ;;  %580 = vst [vmem:[%s1042_s15 + $0x28] sm:$0xff] %v572_v15  ;;  %vm553_vm4 = vcmp.gt.f32.partialorder %v537_v10, 0.0  ;;  %v561_v18 = vmul.f32 0.3, %v537_v10  ;;  %vm557_vm5 = vcmp.gt.f32.partialorder %v547_v11, 0.0 }
 0x120   : > { %v565_v19 = vmul.f32 0.3, %v547_v11  ;;  %vm554_vm6 = vcmp.gt.f32.partialorder %v539_v16, 0.0  ;;  %v562_v20 = vmul.f32 0.3, %v539_v16 }
 0x121   : > { %vm558_vm7 = vcmp.gt.f32.partialorder %v549_v17, 0.0  ;;  %v566_v21 = vmul.f32 0.3, %v549_v17  ;;  %v569_v22 = vsel %vm553_vm4, %v537_v10, %v561_v18 }
 0x122   : > { %v573_v23 = vsel %vm557_vm5, %v547_v11, %v565_v19  ;;  %577 = vst [vmem:[%s1042_s15 + $0x10] sm:$0xff] %v569_v22  ;;  %v570_v24 = vsel %vm554_vm6, %v539_v16, %v562_v20 }
 0x123   : > { %581 = vst [vmem:[%s1042_s15 + $0x30] sm:$0xff] %v573_v23  ;;  %v574_v25 = vsel %vm558_vm7, %v549_v17, %v566_v21  ;;  %578 = vst [vmem:[%s1042_s15 + $0x18] sm:$0xff] %v570_v24 }
 0x124   : > { %582 = vst [vmem:[%s1042_s15 + $0x38] sm:$0xff] %v574_v25 }
 0x125   : > { %v608_v26 = vld [vmem:[%s1042_s15] sm:$0xff] }
 0x126   : > { %v610_v27 = vld [vmem:[%s1042_s15 + $0x8] sm:$0xff]  ;;  %v616_v30 = vld [vmem:[%s1042_s15 + $0x20] sm:$0xff]  ;;  %609 = vst [vmem:[%s595_s8] sm:$0xff] %v608_v26 }
 0x127   : > { %v618_v31 = vld [vmem:[%s1042_s15 + $0x28] sm:$0xff]  ;;  %611 = vst [vmem:[%s595_s8 + $0x8] sm:$0xff] %v610_v27  ;;  %617 = vst [vmem:[%s595_s8 + $0x40] sm:$0xff] %v616_v30 }
 0x128   : > { %619 = vst [vmem:[%s595_s8 + $0x48] sm:$0xff] %v618_v31 }
 0x129   : > { %v612_v28 = vld [vmem:[%s1042_s15 + $0x10] sm:$0xff] }
 0x12a   : > { %v614_v29 = vld [vmem:[%s1042_s15 + $0x18] sm:$0xff]  ;;  %613 = vst [vmem:[%s595_s8 + $0x20] sm:$0xff] %v612_v28  ;;  %v620_v32 = vld [vmem:[%s1042_s15 + $0x30] sm:$0xff] }
 0x12b   : > { %615 = vst [vmem:[%s595_s8 + $0x28] sm:$0xff] %v614_v29  ;;  %v622_v33 = vld [vmem:[%s1042_s15 + $0x38] sm:$0xff]  ;;  %621 = vst [vmem:[%s595_s8 + $0x60] sm:$0xff] %v620_v32 }
 0x12c   : > { %623 = vst [vmem:[%s595_s8 + $0x68] sm:$0xff] %v622_v33 }
 0x12d PF: > { %s14_s19 = sadd.s32 1, %s907_s19   ;;  %s1087_s15 = smov %s895_s16 }
 0x12e   : > { %p11_p12 = scmp.ge.s32.totalorder %s14_s19, 4   ;;  %s1088_s16 = smov %s975_s25 }
 0x12f   : > { %s1089_s17 = smov %s903_s18  ;;  %s1090_s18 = smov %s1092_s20 }
 0x130   :  { %13 = sbr.rel (!%p11_p12) target bundleno = 3 (0x3), region = 141 }

</bundles_post_ra>
